<compile_context>
chip_gen: v6e
topology: v6e:2x2x1
jax: 0.10.0
libtpu: 0.0.40
codegen_flags: <defaults>
</compile_context>

<pallas_src>
import functools

import jax
import jax.numpy as jnp
from jax.experimental import pallas as pl
from jax.experimental.pallas import tpu as pltpu


# ----------------------------------------------------------------------------
# Pallas kernels
# ----------------------------------------------------------------------------
def selfonn_layer_kernel(a_ref, w1_ref, w2_ref, b_ref, o_ref, *,
                         apply_norm, apply_tanh):
    """SelfONN conv layer, W @ A orientation (one sample, one Cout/HW tile).

    a_ref  : (1, CKK, HWt)      im2col^T patches (bf16 or f32; powers formed in-kernel)
    w1_ref : (Cout_t, CKK)      weights for x^1 (f32)
    w2_ref : (Cout_t, CKK)      weights for x^2 (f32)
    b_ref  : (Cout_t, 1)        conv bias
    o_ref  : (1, Cout_t, HWt)   lane-dense output (HW on lanes)
    """
    a = a_ref[0].astype(jnp.float32)                              # upcast BEFORE a*a
    y = jnp.dot(w1_ref[...], a, preferred_element_type=jnp.float32)
    y = y + jnp.dot(w2_ref[...], a * a, preferred_element_type=jnp.float32)
    y = y + b_ref[...]                                            # (Cout_t, 1) bcast

    if apply_norm:
        # InstanceNorm2d(affine=False, eps=1e-5): per-sample, per-channel over HW
        # (only used with the full HW in one block; Cout split is legal).
        mean = jnp.mean(y, axis=1, keepdims=True)
        var = jnp.mean((y - mean) ** 2, axis=1, keepdims=True)
        y = (y - mean) * jax.lax.rsqrt(var + 1e-5)

    if apply_tanh:
        y = jnp.tanh(y)

    o_ref[0] = y.astype(o_ref.dtype)


def selfonn_layer_t_kernel(a_ref, w1t_ref, w2t_ref, b_ref, o_ref, *,
                           apply_norm, apply_tanh):
    """SelfONN conv layer, transposed (HW,CKK)@(CKK,Cout) orientation (lane-dense for
    small-HW layers such as layer 3 where HW=16 but CKK/Cout are large).

    a_ref  : (1, HW, CKK)   w1t/w2t: (CKK, Cout)   b_ref: (1, Cout)   o_ref: (1, HW, Cout)
    """
    a = a_ref[0].astype(jnp.float32)                              # (HW, CKK)
    y = jnp.dot(a, w1t_ref[...], preferred_element_type=jnp.float32)
    y = y + jnp.dot(a * a, w2t_ref[...], preferred_element_type=jnp.float32)
    y = y + b_ref[...]                                            # (1, Cout) bcast

    if apply_norm:
        mean = jnp.mean(y, axis=0, keepdims=True)                 # per-channel over HW
        var = jnp.mean((y - mean) ** 2, axis=0, keepdims=True)
        y = (y - mean) * jax.lax.rsqrt(var + 1e-5)

    if apply_tanh:
        y = jnp.tanh(y)

    o_ref[0] = y.astype(o_ref.dtype)


def tail_kernel(a4_ref, w4a_ref, w4b_ref, b4_ref, w5all_ref, b5_ref,
                fc1w_ref, fc1b_ref, fc2w_ref, fc2b_ref, o_ref):
    """Fused tail for one sample: layer4 (conv+IN+tanh) -> layer5 (conv) -> fc1 -> fc2.

    a4_ref   : (1, 1024, 4)  im2col^T of the layer-3 output (K=4, s=2, p=1)
    w4a/w4b  : (64, 1024), b4: (64, 1)
    w5all    : (32, 128)  layer-5 weights reduced to taps [1:3,1:3]; row r = p*8 + o,
               cols 0:64 = x^1 weights, 64:128 = x^2 weights (p = layer-4 output pos)
    b5       : (8, 1)
    fc1w     : (16, 8), fc1b: (16, 1), fc2w: (1, 16), fc2b: (1, 1)
    o_ref    : (1, 1, 1)
    """
    a = a4_ref[0]                                                 # (1024, 4) f32
    y4 = jnp.dot(w4a_ref[...], a, preferred_element_type=jnp.float32)
    y4 = y4 + jnp.dot(w4b_ref[...], a * a, preferred_element_type=jnp.float32)
    y4 = y4 + b4_ref[...]                                         # (64, 4)

    mean = jnp.mean(y4, axis=1, keepdims=True)
    var = jnp.mean((y4 - mean) ** 2, axis=1, keepdims=True)
    y4 = jnp.tanh((y4 - mean) * jax.lax.rsqrt(var + 1e-5))

    # Layer 5: 4x4 conv, stride 1, pad 1 on a 2x2 map -> 1x1 output; only kernel taps
    # (ki,kj) in {1,2}^2 see data.  Single contraction (review item 6):
    #   z[p*8+o, p] = sum_c W5_1[o,c,tap(p)]*y4[c,p] + W5_2[o,c,tap(p)]*y4[c,p]^2
    acat = jnp.concatenate([y4, y4 * y4], axis=0)                 # (128, 4)
    z = jnp.dot(w5all_ref[...], acat, preferred_element_type=jnp.float32)  # (32, 4)
    y5 = (b5_ref[...]
          + z[0:8, 0:1] + z[8:16, 1:2] + z[16:24, 2:3] + z[24:32, 3:4])    # (8, 1)

    # FC head: relu(fc1) -> relu(fc2)   (yes, the reference applies ReLU after fc2 too)
    h = jnp.dot(fc1w_ref[...], y5, preferred_element_type=jnp.float32) + fc1b_ref[...]
    h = jnp.maximum(h, 0.0)
    out = jnp.dot(fc2w_ref[...], h, preferred_element_type=jnp.float32) + fc2b_ref[...]
    out = jnp.maximum(out, 0.0)
    o_ref[0] = out                                                # (1, 1)


# ----------------------------------------------------------------------------
# Glue: im2col (pad / strided slice / stack / reshape; kept outside the kernel)
# ----------------------------------------------------------------------------
def _patches(x, K, stride, pad):
    """x: (B, C, H, W) -> patches (B, C, K*K, Ho, Wo); tap order (ki, kj)."""
    xpad = jnp.pad(x, ((0, 0), (0, 0), (pad, pad), (pad, pad)))
    B, C, Hp, Wp = xpad.shape
    Ho = (Hp - K) // stride + 1
    Wo = (Wp - K) // stride + 1
    cols = []
    for ki in range(K):
        for kj in range(K):
            cols.append(
                xpad[:, :,
                     ki:ki + stride * (Ho - 1) + 1:stride,
                     kj:kj + stride * (Wo - 1) + 1:stride])       # (B, C, Ho, Wo)
    return jnp.stack(cols, axis=2), Ho, Wo


def im2col_T(x, K, stride, pad):
    """A_T[b, (c,ki,kj), (ho,wo)] -> (B, C*K*K, Ho*Wo); reshape only (no transpose)."""
    p, Ho, Wo = _patches(x, K, stride, pad)
    B, C, KK = p.shape[:3]
    return p.reshape(B, C * KK, Ho * Wo), Ho, Wo


def im2col_NT(x, K, stride, pad):
    """A[b, (ho,wo), (c,ki,kj)] -> (B, Ho*Wo, C*K*K); one tiny XLA transpose."""
    p, Ho, Wo = _patches(x, K, stride, pad)
    B, C, KK = p.shape[:3]
    return jnp.transpose(p, (0, 3, 4, 1, 2)).reshape(B, Ho * Wo, C * KK), Ho, Wo
# TODO(synk): layer 1 has stride==K, so its im2col is a pure permutation; an in-kernel
# patch assembly (memory_space=pl.ANY input) would remove the remaining A round-trip.


# ----------------------------------------------------------------------------
# Layer wrappers calling pallas_call
# ----------------------------------------------------------------------------
def selfonn_conv_layer(x_nchw, W1, W2, b, *, K, stride, pad,
                       apply_norm, apply_tanh, hw_tile=None, cout_tile=None,
                       out_dtype=jnp.float32):
    """W @ A orientation (HW on lanes). Optional HW tiling (no-norm layers only) and
    Cout tiling (always legal: InstanceNorm is per-channel)."""
    A, Ho, Wo = im2col_T(x_nchw, K, stride, pad)                  # (B, CKK, HW)
    Bn, CKK, HW = A.shape
    Cout = W1.shape[0]

    if apply_norm or hw_tile is None or (HW % hw_tile) != 0 or hw_tile > HW:
        hw_tile = HW                                              # norm needs full HW
    if cout_tile is None or (Cout % cout_tile) != 0:
        cout_tile = Cout
    n_hw = HW // hw_tile
    n_co = Cout // cout_tile

    kernel = functools.partial(selfonn_layer_kernel,
                               apply_norm=apply_norm, apply_tanh=apply_tanh)

    out = pl.pallas_call(
        kernel,
        out_shape=jax.ShapeDtypeStruct((Bn, Cout, HW), out_dtype),
        grid=(Bn, n_co, n_hw),
        in_specs=[
            pl.BlockSpec((1, CKK, hw_tile), lambda bi, ci, ti: (bi, 0, ti)),
            pl.BlockSpec((cout_tile, CKK), lambda bi, ci, ti: (ci, 0)),
            pl.BlockSpec((cout_tile, CKK), lambda bi, ci, ti: (ci, 0)),
            pl.BlockSpec((cout_tile, 1), lambda bi, ci, ti: (ci, 0)),
        ],
        out_specs=pl.BlockSpec((1, cout_tile, hw_tile),
                               lambda bi, ci, ti: (bi, ci, ti)),
        compiler_params=pltpu.CompilerParams(
            dimension_semantics=("parallel", "parallel", "parallel")),
    )(A, W1, W2, b)

    return out.reshape(Bn, Cout, Ho, Wo)                          # free reshape (NCHW)


def selfonn_conv_layer_t(x_nchw, W1, W2, b, *, K, stride, pad,
                         apply_norm, apply_tanh):
    """(HW, CKK) @ (CKK, Cout) orientation for small-HW layers (lane-dense loads/stores)."""
    A, Ho, Wo = im2col_NT(x_nchw, K, stride, pad)                 # (B, HW, CKK)
    Bn, HW, CKK = A.shape
    Cout = W1.shape[0]
    w1t, w2t = W1.T, W2.T                                         # (CKK, Cout)
    brow = b.reshape(1, Cout)

    kernel = functools.partial(selfonn_layer_t_kernel,
                               apply_norm=apply_norm, apply_tanh=apply_tanh)

    out = pl.pallas_call(
        kernel,
        out_shape=jax.ShapeDtypeStruct((Bn, HW, Cout), jnp.float32),
        grid=(Bn,),
        in_specs=[
            pl.BlockSpec((1, HW, CKK), lambda bi: (bi, 0, 0)),
            pl.BlockSpec((CKK, Cout), lambda bi: (0, 0)),
            pl.BlockSpec((CKK, Cout), lambda bi: (0, 0)),
            pl.BlockSpec((1, Cout), lambda bi: (0, 0)),
        ],
        out_specs=pl.BlockSpec((1, HW, Cout), lambda bi: (bi, 0, 0)),
        compiler_params=pltpu.CompilerParams(dimension_semantics=("parallel",)),
    )(A, w1t, w2t, brow)

    # back to NCHW for the tail's im2col (tiny: Cout*HW*4 bytes per sample)
    return jnp.transpose(out, (0, 2, 1)).reshape(Bn, Cout, Ho, Wo)


def fused_tail(x_nchw, W4_1, W4_2, b4, W5_1, W5_2, b5, fc1_w, fc1_b, fc2_w, fc2_b):
    """Layer 4 (conv+IN+tanh) + layer 5 (conv) + fc1/relu + fc2/relu in one kernel."""
    A4, _, _ = im2col_T(x_nchw, 4, 2, 1)                          # (B, 1024, 4)
    A4 = A4.astype(jnp.float32)
    Bn, CKK, HW = A4.shape
    Cout4 = W4_1.shape[0]                                         # 64
    cin5 = Cout4

    # Reduce the layer-5 4x4 weights to the [1:3,1:3] taps and pack them so the whole
    # layer is ONE (32,128)@(128,4) contraction in-kernel: row r = p*8 + o,
    # columns 0:64 -> x^1 weights, 64:128 -> x^2 weights (p = ih*2+iw).
    def reduce_w5(W):
        w = W.reshape(8, cin5, 4, 4)[:, :, 1:3, 1:3].reshape(8, cin5, 4)  # [o, c, p]
        return jnp.transpose(w, (2, 0, 1)).reshape(4 * 8, cin5)           # [p*8+o, c]
    w5all = jnp.concatenate([reduce_w5(W5_1), reduce_w5(W5_2)], axis=1)   # (32, 128)

    return pl.pallas_call(
        tail_kernel,
        out_shape=jax.ShapeDtypeStruct((Bn, 1, 1), jnp.float32),
        grid=(Bn,),
        in_specs=[
            pl.BlockSpec((1, CKK, HW), lambda bi: (bi, 0, 0)),
            pl.BlockSpec((Cout4, CKK), lambda bi: (0, 0)),
            pl.BlockSpec((Cout4, CKK), lambda bi: (0, 0)),
            pl.BlockSpec((Cout4, 1), lambda bi: (0, 0)),
            pl.BlockSpec((32, 2 * cin5), lambda bi: (0, 0)),
            pl.BlockSpec((8, 1), lambda bi: (0, 0)),
            pl.BlockSpec((16, 8), lambda bi: (0, 0)),
            pl.BlockSpec((16, 1), lambda bi: (0, 0)),
            pl.BlockSpec((1, 16), lambda bi: (0, 0)),
            pl.BlockSpec((1, 1), lambda bi: (0, 0)),
        ],
        out_specs=pl.BlockSpec((1, 1, 1), lambda bi: (bi, 0, 0)),
        compiler_params=pltpu.CompilerParams(dimension_semantics=("parallel",)),
    )(A4, W4_1, W4_2, b4, w5all, b5, fc1_w, fc1_b, fc2_w, fc2_b)
# TODO(synk): folding layer 3 into this kernel (review item 4) needs an in-kernel
# spatial re-layout of the (64,4,4) intermediate; kept standalone (with the lane-dense
# transposed orientation) to avoid relayout lowering risk.


# ----------------------------------------------------------------------------
# Model
# ----------------------------------------------------------------------------
FILTER = 16
Q = 2
# (Cin, Cout, K, stride, pad, apply_norm, apply_tanh)
LAYER_CFGS = [
    (3,          FILTER,     4, 4, 1, False, True),   # Downsample 1 (no norm)
    (FILTER,     FILTER * 4, 4, 4, 1, True,  True),   # Downsample 2
    (FILTER * 4, FILTER * 4, 4, 4, 1, True,  True),   # Downsample 3
    (FILTER * 4, FILTER * 4, 4, 2, 1, True,  True),   # Downsample 4 (fused in tail)
    (FILTER * 4, 8,          4, 1, 1, False, False),  # self.last    (fused in tail)
]


def init_params(key):
    params = {"convs": []}
    for (cin, cout, k, _, _, _, _) in LAYER_CFGS:
        key, kw1, kw2, kb = jax.random.split(key, 4)
        fan_in = float(cin * Q * k * k)
        scale = 1.0 / jnp.sqrt(fan_in)
        W1 = jax.random.normal(kw1, (cout, cin * k * k), jnp.float32) * scale
        W2 = jax.random.normal(kw2, (cout, cin * k * k), jnp.float32) * scale
        b = jax.random.normal(kb, (cout, 1), jnp.float32) * 0.01
        params["convs"].append((W1, W2, b))
    key, k1, k2, k3, k4 = jax.random.split(key, 5)
    params["fc1_w"] = jax.random.normal(k1, (16, 8), jnp.float32) / jnp.sqrt(8.0)
    params["fc1_b"] = jax.random.normal(k2, (16, 1), jnp.float32) * 0.01
    params["fc2_w"] = jax.random.normal(k3, (1, 16), jnp.float32) / jnp.sqrt(16.0)
    params["fc2_b"] = jax.random.normal(k4, (1, 1), jnp.float32) * 0.01
    return params


def master_regressor_forward(params, x):
    """x: (B, 3, 256, 256) NCHW  ->  (B, 1, 1)."""
    B = x.shape[0]

    # bf16 feed for the memory-bound front (layer-1 A, layer-1 out, layer-2 A all bf16);
    # kernels upcast to f32 before squaring / accumulating, IN & tanh stay f32.
    x = x.astype(jnp.bfloat16)

    # Layer 1 (no norm): big HW tiles (4096 == full when B>=2, else 2048 so both v7x
    # TensorCores get work at B==1); bf16 in/out.
    _, _, k, s, p, norm, act = LAYER_CFGS[0]
    W1, W2, b = params["convs"][0]
    x = selfonn_conv_layer(x, W1, W2, b, K=k, stride=s, pad=p,
                           apply_norm=norm, apply_tanh=act,
                           hw_tile=(4096 if B >= 2 else 2048),
                           out_dtype=jnp.bfloat16)

    # Layer 2: full HW (InstanceNorm), Cout split into 2 parallel blocks (per-channel
    # norm makes this legal) so both v7x TCs are busy even at B==1; bf16 A, f32 out.
    _, _, k, s, p, norm, act = LAYER_CFGS[1]
    W1, W2, b = params["convs"][1]
    x = selfonn_conv_layer(x, W1, W2, b, K=k, stride=s, pad=p,
                           apply_norm=norm, apply_tanh=act,
                           cout_tile=32, out_dtype=jnp.float32)

    # Layer 3: transposed (HW, CKK)@(CKK, Cout) orientation -> lane-dense blocks
    # (1,16,1024) in / (1,16,64) out instead of 16-wide lanes.
    _, _, k, s, p, norm, act = LAYER_CFGS[2]
    W1, W2, b = params["convs"][2]
    x = selfonn_conv_layer_t(x, W1, W2, b, K=k, stride=s, pad=p,
                             apply_norm=norm, apply_tanh=act)

    # Fused tail: layer 4 + layer 5 + fc1 + fc2  (x is (B, 64, 4, 4) here).
    W4_1, W4_2, b4 = params["convs"][3]
    W5_1, W5_2, b5 = params["convs"][4]
    return fused_tail(x, W4_1, W4_2, b4, W5_1, W5_2, b5,
                      params["fc1_w"], params["fc1_b"],
                      params["fc2_w"], params["fc2_b"])           # (B, 1, 1)


# ----------------------------------------------------------------------------
if __name__ == "__main__":
    # fc1 = Linear(8, 16) after Flatten(1) forces the final spatial size to 1x1,
    # so the smallest consistent input is 256 (256 -> 64 -> 16 -> 4 -> 2 -> 1).
    key = jax.random.PRNGKey(0)
    kx, kp = jax.random.split(key)
    x = jax.random.normal(kx, (2, 3, 256, 256), jnp.float32)
    params = init_params(kp)

    out = jax.jit(master_regressor_forward)(params, x)
    out = jax.block_until_ready(out)
    assert out.shape == (2, 1, 1), out.shape
    assert out.dtype == jnp.float32
    print("KERNEL_OK")
</pallas_src>

<mosaic_0001>
module attributes {stable_mosaic.version = 11 : i64} {
  func.func @selfonn_layer_kernel(%arg0: i32, %arg1: i32, %arg2: i32, %arg3: memref<1x48x4096xbf16, #tpu.memory_space<vmem>>, %arg4: memref<16x48xf32, #tpu.memory_space<vmem>>, %arg5: memref<16x48xf32, #tpu.memory_space<vmem>>, %arg6: memref<16x1xf32, #tpu.memory_space<vmem>>, %arg7: memref<1x16x4096xbf16, #tpu.memory_space<vmem>>) attributes {dimension_semantics = [#tpu.dimension_semantics<parallel>, #tpu.dimension_semantics<parallel>, #tpu.dimension_semantics<parallel>], iteration_bounds = array<i64: 2, 1, 1>, scalar_prefetch = 0 : i64, scratch_operands = 0 : i64, tpu.core_type = #tpu.core_type<tc>, window_params = [{transform_indices = @transform_0, window_bounds = array<i64: 1, 48, 4096>}, {transform_indices = @transform_1, window_bounds = array<i64: 16, 48>}, {transform_indices = @transform_2, window_bounds = array<i64: 16, 48>}, {transform_indices = @transform_3, window_bounds = array<i64: 16, 1>}, {transform_indices = @transform_4, window_bounds = array<i64: 1, 16, 4096>}]} {
    %c0 = arith.constant 0 : index
    %c0_0 = arith.constant 0 : index
    %c0_1 = arith.constant 0 : index
    %0 = vector.load %arg3[%c0, %c0_0, %c0_1] : memref<1x48x4096xbf16, #tpu.memory_space<vmem>>, vector<1x48x4096xbf16>
    %1 = vector.shape_cast %0 : vector<1x48x4096xbf16> to vector<48x4096xbf16>
    %2 = arith.extf %1 : vector<48x4096xbf16> to vector<48x4096xf32>
    %c0_2 = arith.constant 0 : index
    %c0_3 = arith.constant 0 : index
    %3 = vector.load %arg4[%c0_2, %c0_3] : memref<16x48xf32, #tpu.memory_space<vmem>>, vector<16x48xf32>
    %cst = arith.constant dense<0.000000e+00> : vector<16x4096xf32>
    %4 = tpu.matmul %3, %2, %cst {dimension_numbers = #tpu.dot_dimension_numbers<[1], [0], [0], [1], [0, 0, 1, 1], [], []>} : vector<16x48xf32>, vector<48x4096xf32>, vector<16x4096xf32> -> vector<16x4096xf32>
    %c0_4 = arith.constant 0 : index
    %c0_5 = arith.constant 0 : index
    %5 = vector.load %arg5[%c0_4, %c0_5] : memref<16x48xf32, #tpu.memory_space<vmem>>, vector<16x48xf32>
    %6 = arith.mulf %2, %2 : vector<48x4096xf32>
    %cst_6 = arith.constant dense<0.000000e+00> : vector<16x4096xf32>
    %7 = tpu.matmul %5, %6, %cst_6 {dimension_numbers = #tpu.dot_dimension_numbers<[1], [0], [0], [1], [0, 0, 1, 1], [], []>} : vector<16x48xf32>, vector<48x4096xf32>, vector<16x4096xf32> -> vector<16x4096xf32>
    %8 = arith.addf %4, %7 : vector<16x4096xf32>
    %c0_7 = arith.constant 0 : index
    %c0_8 = arith.constant 0 : index
    %9 = vector.load %arg6[%c0_7, %c0_8] : memref<16x1xf32, #tpu.memory_space<vmem>>, vector<16x1xf32>
    %10 = vector.broadcast %9 : vector<16x1xf32> to vector<16x4096xf32>
    %11 = arith.addf %8, %10 : vector<16x4096xf32>
    %12 = math.tanh %11 : vector<16x4096xf32>
    %13 = arith.truncf %12 : vector<16x4096xf32> to vector<16x4096xbf16>
    %c0_9 = arith.constant 0 : index
    %c0_10 = arith.constant 0 : index
    %c0_11 = arith.constant 0 : index
    %14 = vector.load %arg7[%c0_9, %c0_10, %c0_11] : memref<1x16x4096xbf16, #tpu.memory_space<vmem>>, vector<1x16x4096xbf16>
    %15 = vector.shape_cast %14 : vector<1x16x4096xbf16> to vector<16x4096xbf16>
    %16 = vector.shape_cast %13 : vector<16x4096xbf16> to vector<1x16x4096xbf16>
    tpu.vector_store %arg7[%c0_9, %c0_10, %c0_11], %16 {strides = array<i32>} : memref<1x16x4096xbf16, #tpu.memory_space<vmem>>, vector<1x16x4096xbf16>,
    return
  }
  func.func @transform_0(%arg0: i32, %arg1: i32, %arg2: i32) -> (i32, i32, i32) {
    %c0_i32 = arith.constant 0 : i32
    %c0_i32_0 = arith.constant 0 : i32
    return %arg0, %c0_i32, %arg2 : i32, i32, i32
  }
  func.func @transform_1(%arg0: i32, %arg1: i32, %arg2: i32) -> (i32, i32) {
    %c0_i32 = arith.constant 0 : i32
    %c0_i32_0 = arith.constant 0 : i32
    return %arg1, %c0_i32 : i32, i32
  }
  func.func @transform_2(%arg0: i32, %arg1: i32, %arg2: i32) -> (i32, i32) {
    %c0_i32 = arith.constant 0 : i32
    %c0_i32_0 = arith.constant 0 : i32
    return %arg1, %c0_i32 : i32, i32
  }
  func.func @transform_3(%arg0: i32, %arg1: i32, %arg2: i32) -> (i32, i32) {
    %c0_i32 = arith.constant 0 : i32
    %c0_i32_0 = arith.constant 0 : i32
    return %arg1, %c0_i32 : i32, i32
  }
  func.func @transform_4(%arg0: i32, %arg1: i32, %arg2: i32) -> (i32, i32, i32) {
    %c0_i32 = arith.constant 0 : i32
    return %arg0, %arg1, %arg2 : i32, i32, i32
  }
}

module attributes {stable_mosaic.version = 11 : i64} {
  func.func @selfonn_layer_kernel(%arg0: i32, %arg1: i32, %arg2: i32, %arg3: memref<1x256x256xbf16, #tpu.memory_space<vmem>>, %arg4: memref<32x256xf32, #tpu.memory_space<vmem>>, %arg5: memref<32x256xf32, #tpu.memory_space<vmem>>, %arg6: memref<32x1xf32, #tpu.memory_space<vmem>>, %arg7: memref<1x32x256xf32, #tpu.memory_space<vmem>>) attributes {dimension_semantics = [#tpu.dimension_semantics<parallel>, #tpu.dimension_semantics<parallel>, #tpu.dimension_semantics<parallel>], iteration_bounds = array<i64: 2, 2, 1>, scalar_prefetch = 0 : i64, scratch_operands = 0 : i64, tpu.core_type = #tpu.core_type<tc>, window_params = [{transform_indices = @transform_0, window_bounds = array<i64: 1, 256, 256>}, {transform_indices = @transform_1, window_bounds = array<i64: 32, 256>}, {transform_indices = @transform_2, window_bounds = array<i64: 32, 256>}, {transform_indices = @transform_3, window_bounds = array<i64: 32, 1>}, {transform_indices = @transform_4, window_bounds = array<i64: 1, 32, 256>}]} {
    %c0 = arith.constant 0 : index
    %c0_0 = arith.constant 0 : index
    %c0_1 = arith.constant 0 : index
    %0 = vector.load %arg3[%c0, %c0_0, %c0_1] : memref<1x256x256xbf16, #tpu.memory_space<vmem>>, vector<1x256x256xbf16>
    %1 = vector.shape_cast %0 : vector<1x256x256xbf16> to vector<256x256xbf16>
    %2 = arith.extf %1 : vector<256x256xbf16> to vector<256x256xf32>
    %c0_2 = arith.constant 0 : index
    %c0_3 = arith.constant 0 : index
    %3 = vector.load %arg4[%c0_2, %c0_3] : memref<32x256xf32, #tpu.memory_space<vmem>>, vector<32x256xf32>
    %cst = arith.constant dense<0.000000e+00> : vector<32x256xf32>
    %4 = tpu.matmul %3, %2, %cst {dimension_numbers = #tpu.dot_dimension_numbers<[1], [0], [0], [1], [0, 0, 1, 1], [], []>} : vector<32x256xf32>, vector<256x256xf32>, vector<32x256xf32> -> vector<32x256xf32>
    %c0_4 = arith.constant 0 : index
    %c0_5 = arith.constant 0 : index
    %5 = vector.load %arg5[%c0_4, %c0_5] : memref<32x256xf32, #tpu.memory_space<vmem>>, vector<32x256xf32>
    %6 = arith.mulf %2, %2 : vector<256x256xf32>
    %cst_6 = arith.constant dense<0.000000e+00> : vector<32x256xf32>
    %7 = tpu.matmul %5, %6, %cst_6 {dimension_numbers = #tpu.dot_dimension_numbers<[1], [0], [0], [1], [0, 0, 1, 1], [], []>} : vector<32x256xf32>, vector<256x256xf32>, vector<32x256xf32> -> vector<32x256xf32>
    %8 = arith.addf %4, %7 : vector<32x256xf32>
    %c0_7 = arith.constant 0 : index
    %c0_8 = arith.constant 0 : index
    %9 = vector.load %arg6[%c0_7, %c0_8] : memref<32x1xf32, #tpu.memory_space<vmem>>, vector<32x1xf32>
    %10 = vector.broadcast %9 : vector<32x1xf32> to vector<32x256xf32>
    %11 = arith.addf %8, %10 : vector<32x256xf32>
    %cst_9 = arith.constant dense<0.000000e+00> : vector<32xf32>
    %12 = vector.multi_reduction <add>, %11, %cst_9 [1] : vector<32x256xf32> to vector<32xf32>
    %13 = vector.shape_cast %12 : vector<32xf32> to vector<32x1xf32>
    %cst_10 = arith.constant 2.560000e+02 : f32
    %14 = vector.broadcast %cst_10 : f32 to vector<32x1xf32>
    %15 = arith.divf %13, %14 : vector<32x1xf32>
    %16 = vector.broadcast %15 : vector<32x1xf32> to vector<32x256xf32>
    %17 = arith.subf %11, %16 : vector<32x256xf32>
    %18 = arith.mulf %17, %17 : vector<32x256xf32>
    %cst_11 = arith.constant dense<0.000000e+00> : vector<32xf32>
    %19 = vector.multi_reduction <add>, %18, %cst_11 [1] : vector<32x256xf32> to vector<32xf32>
    %20 = vector.shape_cast %19 : vector<32xf32> to vector<32x1xf32>
    %cst_12 = arith.constant 2.560000e+02 : f32
    %21 = vector.broadcast %cst_12 : f32 to vector<32x1xf32>
    %22 = arith.divf %20, %21 : vector<32x1xf32>
    %23 = vector.broadcast %15 : vector<32x1xf32> to vector<32x256xf32>
    %24 = arith.subf %11, %23 : vector<32x256xf32>
    %cst_13 = arith.constant 9.99999974E-6 : f32
    %25 = vector.broadcast %cst_13 : f32 to vector<32x1xf32>
    %26 = arith.addf %22, %25 : vector<32x1xf32>
    %27 = math.rsqrt %26 : vector<32x1xf32>
    %28 = vector.broadcast %27 : vector<32x1xf32> to vector<32x256xf32>
    %29 = arith.mulf %24, %28 : vector<32x256xf32>
    %30 = math.tanh %29 : vector<32x256xf32>
    %c0_14 = arith.constant 0 : index
    %c0_15 = arith.constant 0 : index
    %c0_16 = arith.constant 0 : index
    %31 = vector.load %arg7[%c0_14, %c0_15, %c0_16] : memref<1x32x256xf32, #tpu.memory_space<vmem>>, vector<1x32x256xf32>
    %32 = vector.shape_cast %31 : vector<1x32x256xf32> to vector<32x256xf32>
    %33 = vector.shape_cast %30 : vector<32x256xf32> to vector<1x32x256xf32>
    tpu.vector_store %arg7[%c0_14, %c0_15, %c0_16], %33 {strides = array<i32>} : memref<1x32x256xf32, #tpu.memory_space<vmem>>, vector<1x32x256xf32>,
    return
  }
  func.func @transform_0(%arg0: i32, %arg1: i32, %arg2: i32) -> (i32, i32, i32) {
    %c0_i32 = arith.constant 0 : i32
    %c0_i32_0 = arith.constant 0 : i32
    return %arg0, %c0_i32, %arg2 : i32, i32, i32
  }
  func.func @transform_1(%arg0: i32, %arg1: i32, %arg2: i32) -> (i32, i32) {
    %c0_i32 = arith.constant 0 : i32
    %c0_i32_0 = arith.constant 0 : i32
    return %arg1, %c0_i32 : i32, i32
  }
  func.func @transform_2(%arg0: i32, %arg1: i32, %arg2: i32) -> (i32, i32) {
    %c0_i32 = arith.constant 0 : i32
    %c0_i32_0 = arith.constant 0 : i32
    return %arg1, %c0_i32 : i32, i32
  }
  func.func @transform_3(%arg0: i32, %arg1: i32, %arg2: i32) -> (i32, i32) {
    %c0_i32 = arith.constant 0 : i32
    %c0_i32_0 = arith.constant 0 : i32
    return %arg1, %c0_i32 : i32, i32
  }
  func.func @transform_4(%arg0: i32, %arg1: i32, %arg2: i32) -> (i32, i32, i32) {
    %c0_i32 = arith.constant 0 : i32
    return %arg0, %arg1, %arg2 : i32, i32, i32
  }
}

module attributes {stable_mosaic.version = 11 : i64} {
  func.func @selfonn_layer_t_kernel(%arg0: i32, %arg1: memref<1x16x1024xf32, #tpu.memory_space<vmem>>, %arg2: memref<1024x64xf32, #tpu.memory_space<vmem>>, %arg3: memref<1024x64xf32, #tpu.memory_space<vmem>>, %arg4: memref<1x64xf32, #tpu.memory_space<vmem>>, %arg5: memref<1x16x64xf32, #tpu.memory_space<vmem>>) attributes {dimension_semantics = [#tpu.dimension_semantics<parallel>], iteration_bounds = array<i64: 2>, scalar_prefetch = 0 : i64, scratch_operands = 0 : i64, tpu.core_type = #tpu.core_type<tc>, window_params = [{transform_indices = @transform_0, window_bounds = array<i64: 1, 16, 1024>}, {pipeline_mode = #tpu.pipeline_mode<synchronous>, transform_indices = @transform_1, window_bounds = array<i64: 1024, 64>}, {pipeline_mode = #tpu.pipeline_mode<synchronous>, transform_indices = @transform_2, window_bounds = array<i64: 1024, 64>}, {pipeline_mode = #tpu.pipeline_mode<synchronous>, transform_indices = @transform_3, window_bounds = array<i64: 1, 64>}, {transform_indices = @transform_4, window_bounds = array<i64: 1, 16, 64>}]} {
    %c0 = arith.constant 0 : index
    %c0_0 = arith.constant 0 : index
    %c0_1 = arith.constant 0 : index
    %0 = vector.load %arg1[%c0, %c0_0, %c0_1] : memref<1x16x1024xf32, #tpu.memory_space<vmem>>, vector<1x16x1024xf32>
    %1 = vector.shape_cast %0 : vector<1x16x1024xf32> to vector<16x1024xf32>
    %c0_2 = arith.constant 0 : index
    %c0_3 = arith.constant 0 : index
    %2 = vector.load %arg2[%c0_2, %c0_3] : memref<1024x64xf32, #tpu.memory_space<vmem>>, vector<1024x64xf32>
    %cst = arith.constant dense<0.000000e+00> : vector<16x64xf32>
    %3 = tpu.matmul %1, %2, %cst {dimension_numbers = #tpu.dot_dimension_numbers<[1], [0], [0], [1], [0, 0, 1, 1], [], []>} : vector<16x1024xf32>, vector<1024x64xf32>, vector<16x64xf32> -> vector<16x64xf32>
    %4 = arith.mulf %1, %1 : vector<16x1024xf32>
    %c0_4 = arith.constant 0 : index
    %c0_5 = arith.constant 0 : index
    %5 = vector.load %arg3[%c0_4, %c0_5] : memref<1024x64xf32, #tpu.memory_space<vmem>>, vector<1024x64xf32>
    %cst_6 = arith.constant dense<0.000000e+00> : vector<16x64xf32>
    %6 = tpu.matmul %4, %5, %cst_6 {dimension_numbers = #tpu.dot_dimension_numbers<[1], [0], [0], [1], [0, 0, 1, 1], [], []>} : vector<16x1024xf32>, vector<1024x64xf32>, vector<16x64xf32> -> vector<16x64xf32>
    %7 = arith.addf %3, %6 : vector<16x64xf32>
    %c0_7 = arith.constant 0 : index
    %c0_8 = arith.constant 0 : index
    %8 = vector.load %arg4[%c0_7, %c0_8] : memref<1x64xf32, #tpu.memory_space<vmem>>, vector<1x64xf32>
    %9 = vector.broadcast %8 : vector<1x64xf32> to vector<16x64xf32>
    %10 = arith.addf %7, %9 : vector<16x64xf32>
    %cst_9 = arith.constant dense<0.000000e+00> : vector<64xf32>
    %11 = vector.multi_reduction <add>, %10, %cst_9 [0] : vector<16x64xf32> to vector<64xf32>
    %12 = vector.shape_cast %11 : vector<64xf32> to vector<1x64xf32>
    %cst_10 = arith.constant 1.600000e+01 : f32
    %13 = vector.broadcast %cst_10 : f32 to vector<1x64xf32>
    %14 = arith.divf %12, %13 : vector<1x64xf32>
    %15 = vector.broadcast %14 : vector<1x64xf32> to vector<16x64xf32>
    %16 = arith.subf %10, %15 : vector<16x64xf32>
    %17 = arith.mulf %16, %16 : vector<16x64xf32>
    %cst_11 = arith.constant dense<0.000000e+00> : vector<64xf32>
    %18 = vector.multi_reduction <add>, %17, %cst_11 [0] : vector<16x64xf32> to vector<64xf32>
    %19 = vector.shape_cast %18 : vector<64xf32> to vector<1x64xf32>
    %cst_12 = arith.constant 1.600000e+01 : f32
    %20 = vector.broadcast %cst_12 : f32 to vector<1x64xf32>
    %21 = arith.divf %19, %20 : vector<1x64xf32>
    %22 = vector.broadcast %14 : vector<1x64xf32> to vector<16x64xf32>
    %23 = arith.subf %10, %22 : vector<16x64xf32>
    %cst_13 = arith.constant 9.99999974E-6 : f32
    %24 = vector.broadcast %cst_13 : f32 to vector<1x64xf32>
    %25 = arith.addf %21, %24 : vector<1x64xf32>
    %26 = math.rsqrt %25 : vector<1x64xf32>
    %27 = vector.broadcast %26 : vector<1x64xf32> to vector<16x64xf32>
    %28 = arith.mulf %23, %27 : vector<16x64xf32>
    %29 = math.tanh %28 : vector<16x64xf32>
    %c0_14 = arith.constant 0 : index
    %c0_15 = arith.constant 0 : index
    %c0_16 = arith.constant 0 : index
    %30 = vector.load %arg5[%c0_14, %c0_15, %c0_16] : memref<1x16x64xf32, #tpu.memory_space<vmem>>, vector<1x16x64xf32>
    %31 = vector.shape_cast %30 : vector<1x16x64xf32> to vector<16x64xf32>
    %32 = vector.shape_cast %29 : vector<16x64xf32> to vector<1x16x64xf32>
    tpu.vector_store %arg5[%c0_14, %c0_15, %c0_16], %32 {strides = array<i32>} : memref<1x16x64xf32, #tpu.memory_space<vmem>>, vector<1x16x64xf32>,
    return
  }
  func.func @transform_0(%arg0: i32) -> (i32, i32, i32) {
    %c0_i32 = arith.constant 0 : i32
    %c0_i32_0 = arith.constant 0 : i32
    %c0_i32_1 = arith.constant 0 : i32
    return %arg0, %c0_i32, %c0_i32_0 : i32, i32, i32
  }
  func.func @transform_1(%arg0: i32) -> (i32, i32) {
    %c0_i32 = arith.constant 0 : i32
    %c0_i32_0 = arith.constant 0 : i32
    %c0_i32_1 = arith.constant 0 : i32
    return %c0_i32, %c0_i32_0 : i32, i32
  }
  func.func @transform_2(%arg0: i32) -> (i32, i32) {
    %c0_i32 = arith.constant 0 : i32
    %c0_i32_0 = arith.constant 0 : i32
    %c0_i32_1 = arith.constant 0 : i32
    return %c0_i32, %c0_i32_0 : i32, i32
  }
  func.func @transform_3(%arg0: i32) -> (i32, i32) {
    %c0_i32 = arith.constant 0 : i32
    %c0_i32_0 = arith.constant 0 : i32
    %c0_i32_1 = arith.constant 0 : i32
    return %c0_i32, %c0_i32_0 : i32, i32
  }
  func.func @transform_4(%arg0: i32) -> (i32, i32, i32) {
    %c0_i32 = arith.constant 0 : i32
    %c0_i32_0 = arith.constant 0 : i32
    %c0_i32_1 = arith.constant 0 : i32
    return %arg0, %c0_i32, %c0_i32_0 : i32, i32, i32
  }
}

module attributes {stable_mosaic.version = 11 : i64} {
  func.func @tail_kernel(%arg0: i32, %arg1: memref<1x1024x4xf32, #tpu.memory_space<vmem>>, %arg2: memref<64x1024xf32, #tpu.memory_space<vmem>>, %arg3: memref<64x1024xf32, #tpu.memory_space<vmem>>, %arg4: memref<64x1xf32, #tpu.memory_space<vmem>>, %arg5: memref<32x128xf32, #tpu.memory_space<vmem>>, %arg6: memref<8x1xf32, #tpu.memory_space<vmem>>, %arg7: memref<16x8xf32, #tpu.memory_space<vmem>>, %arg8: memref<16x1xf32, #tpu.memory_space<vmem>>, %arg9: memref<1x16xf32, #tpu.memory_space<vmem>>, %arg10: memref<1x1xf32, #tpu.memory_space<vmem>>, %arg11: memref<1x1x1xf32, #tpu.memory_space<vmem>>) attributes {dimension_semantics = [#tpu.dimension_semantics<parallel>], iteration_bounds = array<i64: 2>, scalar_prefetch = 0 : i64, scratch_operands = 0 : i64, tpu.core_type = #tpu.core_type<tc>, window_params = [{transform_indices = @transform_0, window_bounds = array<i64: 1, 1024, 4>}, {pipeline_mode = #tpu.pipeline_mode<synchronous>, transform_indices = @transform_1, window_bounds = array<i64: 64, 1024>}, {pipeline_mode = #tpu.pipeline_mode<synchronous>, transform_indices = @transform_2, window_bounds = array<i64: 64, 1024>}, {pipeline_mode = #tpu.pipeline_mode<synchronous>, transform_indices = @transform_3, window_bounds = array<i64: 64, 1>}, {pipeline_mode = #tpu.pipeline_mode<synchronous>, transform_indices = @transform_4, window_bounds = array<i64: 32, 128>}, {pipeline_mode = #tpu.pipeline_mode<synchronous>, transform_indices = @transform_5, window_bounds = array<i64: 8, 1>}, {pipeline_mode = #tpu.pipeline_mode<synchronous>, transform_indices = @transform_6, window_bounds = array<i64: 16, 8>}, {pipeline_mode = #tpu.pipeline_mode<synchronous>, transform_indices = @transform_7, window_bounds = array<i64: 16, 1>}, {pipeline_mode = #tpu.pipeline_mode<synchronous>, transform_indices = @transform_8, window_bounds = array<i64: 1, 16>}, {pipeline_mode = #tpu.pipeline_mode<synchronous>, transform_indices = @transform_9, window_bounds = array<i64: 1, 1>}, {transform_indices = @transform_10, window_bounds = array<i64: 1, 1, 1>}]} {
    %c0 = arith.constant 0 : index
    %c0_0 = arith.constant 0 : index
    %c0_1 = arith.constant 0 : index
    %0 = vector.load %arg1[%c0, %c0_0, %c0_1] : memref<1x1024x4xf32, #tpu.memory_space<vmem>>, vector<1x1024x4xf32>
    %1 = vector.shape_cast %0 : vector<1x1024x4xf32> to vector<1024x4xf32>
    %c0_2 = arith.constant 0 : index
    %c0_3 = arith.constant 0 : index
    %2 = vector.load %arg2[%c0_2, %c0_3] : memref<64x1024xf32, #tpu.memory_space<vmem>>, vector<64x1024xf32>
    %cst = arith.constant dense<0.000000e+00> : vector<64x4xf32>
    %3 = tpu.matmul %2, %1, %cst {dimension_numbers = #tpu.dot_dimension_numbers<[1], [0], [0], [1], [0, 0, 1, 1], [], []>} : vector<64x1024xf32>, vector<1024x4xf32>, vector<64x4xf32> -> vector<64x4xf32>
    %c0_4 = arith.constant 0 : index
    %c0_5 = arith.constant 0 : index
    %4 = vector.load %arg3[%c0_4, %c0_5] : memref<64x1024xf32, #tpu.memory_space<vmem>>, vector<64x1024xf32>
    %5 = arith.mulf %1, %1 : vector<1024x4xf32>
    %cst_6 = arith.constant dense<0.000000e+00> : vector<64x4xf32>
    %6 = tpu.matmul %4, %5, %cst_6 {dimension_numbers = #tpu.dot_dimension_numbers<[1], [0], [0], [1], [0, 0, 1, 1], [], []>} : vector<64x1024xf32>, vector<1024x4xf32>, vector<64x4xf32> -> vector<64x4xf32>
    %7 = arith.addf %3, %6 : vector<64x4xf32>
    %c0_7 = arith.constant 0 : index
    %c0_8 = arith.constant 0 : index
    %8 = vector.load %arg4[%c0_7, %c0_8] : memref<64x1xf32, #tpu.memory_space<vmem>>, vector<64x1xf32>
    %9 = vector.broadcast %8 : vector<64x1xf32> to vector<64x4xf32>
    %10 = arith.addf %7, %9 : vector<64x4xf32>
    %cst_9 = arith.constant dense<0.000000e+00> : vector<64xf32>
    %11 = vector.multi_reduction <add>, %10, %cst_9 [1] : vector<64x4xf32> to vector<64xf32>
    %12 = vector.shape_cast %11 : vector<64xf32> to vector<64x1xf32>
    %cst_10 = arith.constant 4.000000e+00 : f32
    %13 = vector.broadcast %cst_10 : f32 to vector<64x1xf32>
    %14 = arith.divf %12, %13 : vector<64x1xf32>
    %15 = vector.broadcast %14 : vector<64x1xf32> to vector<64x4xf32>
    %16 = arith.subf %10, %15 : vector<64x4xf32>
    %17 = arith.mulf %16, %16 : vector<64x4xf32>
    %cst_11 = arith.constant dense<0.000000e+00> : vector<64xf32>
    %18 = vector.multi_reduction <add>, %17, %cst_11 [1] : vector<64x4xf32> to vector<64xf32>
    %19 = vector.shape_cast %18 : vector<64xf32> to vector<64x1xf32>
    %cst_12 = arith.constant 4.000000e+00 : f32
    %20 = vector.broadcast %cst_12 : f32 to vector<64x1xf32>
    %21 = arith.divf %19, %20 : vector<64x1xf32>
    %22 = vector.broadcast %14 : vector<64x1xf32> to vector<64x4xf32>
    %23 = arith.subf %10, %22 : vector<64x4xf32>
    %cst_13 = arith.constant 9.99999974E-6 : f32
    %24 = vector.broadcast %cst_13 : f32 to vector<64x1xf32>
    %25 = arith.addf %21, %24 : vector<64x1xf32>
    %26 = math.rsqrt %25 : vector<64x1xf32>
    %27 = vector.broadcast %26 : vector<64x1xf32> to vector<64x4xf32>
    %28 = arith.mulf %23, %27 : vector<64x4xf32>
    %29 = math.tanh %28 : vector<64x4xf32>
    %30 = arith.mulf %29, %29 : vector<64x4xf32>
    %31 = tpu.concatenate %29, %30 in 0 : vector<64x4xf32>, vector<64x4xf32> -> vector<128x4xf32>
    %c0_14 = arith.constant 0 : index
    %c0_15 = arith.constant 0 : index
    %32 = vector.load %arg5[%c0_14, %c0_15] : memref<32x128xf32, #tpu.memory_space<vmem>>, vector<32x128xf32>
    %cst_16 = arith.constant dense<0.000000e+00> : vector<32x4xf32>
    %33 = tpu.matmul %32, %31, %cst_16 {dimension_numbers = #tpu.dot_dimension_numbers<[1], [0], [0], [1], [0, 0, 1, 1], [], []>} : vector<32x128xf32>, vector<128x4xf32>, vector<32x4xf32> -> vector<32x4xf32>
    %c0_17 = arith.constant 0 : index
    %c0_18 = arith.constant 0 : index
    %34 = vector.load %arg6[%c0_17, %c0_18] : memref<8x1xf32, #tpu.memory_space<vmem>>, vector<8x1xf32>
    %35 = vector.extract_strided_slice %33 {offsets = [0, 0], sizes = [8, 1], strides = [1, 1]} : vector<32x4xf32> to vector<8x1xf32>
    %36 = arith.addf %34, %35 : vector<8x1xf32>
    %37 = vector.extract_strided_slice %33 {offsets = [8, 1], sizes = [8, 1], strides = [1, 1]} : vector<32x4xf32> to vector<8x1xf32>
    %38 = arith.addf %36, %37 : vector<8x1xf32>
    %39 = vector.extract_strided_slice %33 {offsets = [16, 2], sizes = [8, 1], strides = [1, 1]} : vector<32x4xf32> to vector<8x1xf32>
    %40 = arith.addf %38, %39 : vector<8x1xf32>
    %41 = vector.extract_strided_slice %33 {offsets = [24, 3], sizes = [8, 1], strides = [1, 1]} : vector<32x4xf32> to vector<8x1xf32>
    %42 = arith.addf %40, %41 : vector<8x1xf32>
    %c0_19 = arith.constant 0 : index
    %c0_20 = arith.constant 0 : index
    %43 = vector.load %arg7[%c0_19, %c0_20] : memref<16x8xf32, #tpu.memory_space<vmem>>, vector<16x8xf32>
    %cst_21 = arith.constant dense<0.000000e+00> : vector<16x1xf32>
    %44 = tpu.matmul %43, %42, %cst_21 {dimension_numbers = #tpu.dot_dimension_numbers<[1], [0], [0], [1], [0, 0, 1, 1], [], []>} : vector<16x8xf32>, vector<8x1xf32>, vector<16x1xf32> -> vector<16x1xf32>
    %c0_22 = arith.constant 0 : index
    %c0_23 = arith.constant 0 : index
    %45 = vector.load %arg8[%c0_22, %c0_23] : memref<16x1xf32, #tpu.memory_space<vmem>>, vector<16x1xf32>
    %46 = arith.addf %44, %45 : vector<16x1xf32>
    %cst_24 = arith.constant 0.000000e+00 : f32
    %47 = vector.broadcast %cst_24 : f32 to vector<16x1xf32>
    %48 = arith.maximumf %46, %47 : vector<16x1xf32>
    %c0_25 = arith.constant 0 : index
    %c0_26 = arith.constant 0 : index
    %49 = vector.load %arg9[%c0_25, %c0_26] : memref<1x16xf32, #tpu.memory_space<vmem>>, vector<1x16xf32>
    %cst_27 = arith.constant dense<0.000000e+00> : vector<1x1xf32>
    %50 = tpu.matmul %49, %48, %cst_27 {dimension_numbers = #tpu.dot_dimension_numbers<[1], [0], [0], [1], [0, 0, 1, 1], [], []>} : vector<1x16xf32>, vector<16x1xf32>, vector<1x1xf32> -> vector<1x1xf32>
    %c0_28 = arith.constant 0 : index
    %c0_29 = arith.constant 0 : index
    %51 = vector.load %arg10[%c0_28, %c0_29] : memref<1x1xf32, #tpu.memory_space<vmem>>, vector<1x1xf32>
    %52 = arith.addf %50, %51 : vector<1x1xf32>
    %cst_30 = arith.constant 0.000000e+00 : f32
    %53 = vector.broadcast %cst_30 : f32 to vector<1x1xf32>
    %54 = arith.maximumf %52, %53 : vector<1x1xf32>
    %c0_31 = arith.constant 0 : index
    %c0_32 = arith.constant 0 : index
    %c0_33 = arith.constant 0 : index
    %55 = vector.load %arg11[%c0_31, %c0_32, %c0_33] : memref<1x1x1xf32, #tpu.memory_space<vmem>>, vector<1x1x1xf32>
    %56 = vector.shape_cast %55 : vector<1x1x1xf32> to vector<1x1xf32>
    %57 = vector.shape_cast %54 : vector<1x1xf32> to vector<1x1x1xf32>
    tpu.vector_store %arg11[%c0_31, %c0_32, %c0_33], %57 {strides = array<i32>} : memref<1x1x1xf32, #tpu.memory_space<vmem>>, vector<1x1x1xf32>,
    return
  }
  func.func @transform_0(%arg0: i32) -> (i32, i32, i32) {
    %c0_i32 = arith.constant 0 : i32
    %c0_i32_0 = arith.constant 0 : i32
    %c0_i32_1 = arith.constant 0 : i32
    return %arg0, %c0_i32, %c0_i32_0 : i32, i32, i32
  }
  func.func @transform_1(%arg0: i32) -> (i32, i32) {
    %c0_i32 = arith.constant 0 : i32
    %c0_i32_0 = arith.constant 0 : i32
    %c0_i32_1 = arith.constant 0 : i32
    return %c0_i32, %c0_i32_0 : i32, i32
  }
  func.func @transform_2(%arg0: i32) -> (i32, i32) {
    %c0_i32 = arith.constant 0 : i32
    %c0_i32_0 = arith.constant 0 : i32
    %c0_i32_1 = arith.constant 0 : i32
    return %c0_i32, %c0_i32_0 : i32, i32
  }
  func.func @transform_3(%arg0: i32) -> (i32, i32) {
    %c0_i32 = arith.constant 0 : i32
    %c0_i32_0 = arith.constant 0 : i32
    %c0_i32_1 = arith.constant 0 : i32
    return %c0_i32, %c0_i32_0 : i32, i32
  }
  func.func @transform_4(%arg0: i32) -> (i32, i32) {
    %c0_i32 = arith.constant 0 : i32
    %c0_i32_0 = arith.constant 0 : i32
    %c0_i32_1 = arith.constant 0 : i32
    return %c0_i32, %c0_i32_0 : i32, i32
  }
  func.func @transform_5(%arg0: i32) -> (i32, i32) {
    %c0_i32 = arith.constant 0 : i32
    %c0_i32_0 = arith.constant 0 : i32
    %c0_i32_1 = arith.constant 0 : i32
    return %c0_i32, %c0_i32_0 : i32, i32
  }
  func.func @transform_6(%arg0: i32) -> (i32, i32) {
    %c0_i32 = arith.constant 0 : i32
    %c0_i32_0 = arith.constant 0 : i32
    %c0_i32_1 = arith.constant 0 : i32
    return %c0_i32, %c0_i32_0 : i32, i32
  }
  func.func @transform_7(%arg0: i32) -> (i32, i32) {
    %c0_i32 = arith.constant 0 : i32
    %c0_i32_0 = arith.constant 0 : i32
    %c0_i32_1 = arith.constant 0 : i32
    return %c0_i32, %c0_i32_0 : i32, i32
  }
  func.func @transform_8(%arg0: i32) -> (i32, i32) {
    %c0_i32 = arith.constant 0 : i32
    %c0_i32_0 = arith.constant 0 : i32
    %c0_i32_1 = arith.constant 0 : i32
    return %c0_i32, %c0_i32_0 : i32, i32
  }
  func.func @transform_9(%arg0: i32) -> (i32, i32) {
    %c0_i32 = arith.constant 0 : i32
    %c0_i32_0 = arith.constant 0 : i32
    %c0_i32_1 = arith.constant 0 : i32
    return %c0_i32, %c0_i32_0 : i32, i32
  }
  func.func @transform_10(%arg0: i32) -> (i32, i32, i32) {
    %c0_i32 = arith.constant 0 : i32
    %c0_i32_0 = arith.constant 0 : i32
    %c0_i32_1 = arith.constant 0 : i32
    return %arg0, %c0_i32, %c0_i32_0 : i32, i32, i32
  }
}

</mosaic_0001>

<bundles_post_ra>
// kernel: master_regressor_forward.4
= control target key start
LH: loop header
LB: loop body
LE: loop exit
PB: predicated region body
PF: predicated region fallthrough
CT: control target
= control target key end

     0   :  { %s4153_s15 = smov 0   ;;  %s4155_s16 = smov 0   ;;  %s5764_s0 = inlined_call_operand.vmem [shape: bf16[2,48,4096], index: 0, kind: input, shape index: {}]   ;;  %s5765_s1 = inlined_call_operand.vmem [shape: f32[16,48], index: 1, kind: input, shape index: {}]   ;;  %s5766_s2 = inlined_call_operand.vmem [shape: f32[16,48], index: 2, kind: input, shape index: {}]   ;;  %s5767_s3 = inlined_call_operand.vmem [shape: f32[16,1], index: 3, kind: input, shape index: {}]   ;;  %s5768_s4 = inlined_call_operand.vmem [shape: bf16[2,16,4096], index: 4, kind: output, shape index: {}]  }
   0x1   :  { %s4157_s17 = smov 0  }
   0x2 LB: > { %s33_s18 = sadd.s32 1, %s4120_s16  ;;  %p3809_p0 = scmp.ge.s32.totalorder %s4124_s17, 1  ;;  %s4124_s17 = sphi %s4157_s17, %s14_s17   ;;  %s4120_s16 = sphi %s4155_s16, %s6238_s16   ;;  %s4116_s15 = sphi %s4153_s15, %s6237_s15  }
   0x3   : > { %p35_p1 = scmp.ge.s32.totalorder %s33_s18, 2  ;;  %p225_p2 = scmp.lt.s32.totalorder %s4124_s17, 3 }
   0x5   : > { %s6240_s18 = smov (%p35_p1, %s33_s18), 0  ;;  %p226_p3 = pnand %p3809_p0, %p225_p2 }
   0x7   : > { %229 = sbr.rel (%p226_p3) target bundleno = 497 (0x1f1), region = 36 }
   0xc   : > { %p280_p4 = scmp.lt.s32.totalorder %s4116_s15, 1  ;;  %v5769_v0 = vmov 0.0   ;;  %vm807_vm0 = vcmask 392192  }
   0xd   : > { %878 = vmatprep.mubr.f32.mxu0 %v5769_v0  ;;  %955 = vmatprep.mubr.f32.mxu1 %v5769_v0 }
   0xe   : > { %s6242_s15 = smov (!%p280_p4, %s4116_s15), 1 }
   0xf   : > { %s3944_s19 = smul.u32 768, %s6242_s15  ;;  %s3911_s13 = sshll.u32 %s6242_s15, 8 }
  0x11   : > { %s4179_s22 = scalar_lea.vmem %s5764_s0, %s3944_s19  ;;  %s5631_s19 = scalar_lea.vmem %s5768_s4, %s3911_s13 }
  0x12   : > { %v403_v1 = vld [vmem:[%s4179_s22 + $0x280] sm:$0xff]  ;;  %v404_v2 = vld [vmem:[%s4179_s22 + $0x288] sm:$0xff]  ;;  %v405_v45 = vld [vmem:[%s4179_s22 + $0x290] sm:$0xff] }
  0x13   : > { %v387_v3 = vld [vmem:[%s4179_s22 + $0x200] sm:$0xff]  ;;  %v4184_v4 = vunpack.c.h.bf16 %v403_v1  ;;  %v4186_v5 = vunpack.c.h.bf16 %v404_v2  ;;  %v4188_v6 = vunpack.c.l.bf16 %v403_v1  ;;  %v4190_v7 = vunpack.c.l.bf16 %v404_v2  ;;  %v388_v8 = vld [vmem:[%s4179_s22 + $0x208] sm:$0xff]  ;;  %v406_v54 = vld [vmem:[%s4179_s22 + $0x298] sm:$0xff] }
  0x14   : > { %v4193_v9 = vunpack.c.h.bf16 %v387_v3  ;;  %v4195_v10 = vunpack.c.h.bf16 %v388_v8  ;;  %v4197_v11 = vunpack.c.l.bf16 %v387_v3  ;;  %v4199_v12 = vunpack.c.l.bf16 %v388_v8  ;;  %v371_v13 = vld [vmem:[%s4179_s22 + $0x180] sm:$0xff]  ;;  %v372_v14 = vld [vmem:[%s4179_s22 + $0x188] sm:$0xff]  ;;  %v389_v59 = vld [vmem:[%s4179_s22 + $0x210] sm:$0xff] }
  0x15   : > { %v776_v15 = vmul.f32 %v4184_v4, %v4184_v4  ;;  %v778_v16 = vmul.f32 %v4186_v5, %v4186_v5  ;;  %v775_v17 = vmul.f32 %v4188_v6, %v4188_v6  ;;  %v777_v18 = vmul.f32 %v4190_v7, %v4190_v7  ;;  %v355_v19 = vld [vmem:[%s4179_s22 + $0x100] sm:$0xff]  ;;  %v356_v20 = vld [vmem:[%s4179_s22 + $0x108] sm:$0xff]  ;;  %v390_v1 = vld [vmem:[%s4179_s22 + $0x218] sm:$0xff] }
  0x16   : > { %v744_v21 = vmul.f32 %v4193_v9, %v4193_v9  ;;  %v746_v22 = vmul.f32 %v4195_v10, %v4195_v10  ;;  %v743_v23 = vmul.f32 %v4197_v11, %v4197_v11  ;;  %v745_v24 = vmul.f32 %v4199_v12, %v4199_v12  ;;  %v339_v25 = vld [vmem:[%s4179_s22 + $0x80] sm:$0xff]  ;;  %v340_v30 = vld [vmem:[%s4179_s22 + $0x88] sm:$0xff] }
  0x17   : > { %834 = vmatprep.subr.mxu0 %v776_v15  ;;  %911 = vmatprep.subr.mxu1 %v778_v16  ;;  %v4222_v26 = vunpack.c.h.bf16 %v371_v13  ;;  %v4224_v27 = vunpack.c.h.bf16 %v372_v14  ;;  %v4226_v28 = vunpack.c.l.bf16 %v371_v13  ;;  %v4228_v29 = vunpack.c.l.bf16 %v372_v14  ;;  %v323_v39 = vld [vmem:[%s4179_s22] sm:$0xff]  ;;  %v324_v40 = vld [vmem:[%s4179_s22 + $0x8] sm:$0xff]  ;;  %v373_v14 = vld [vmem:[%s4179_s22 + $0x190] sm:$0xff] }
  0x18   : > { %835 = vmatpush1.msra.mxu0 %v775_v17  ;;  %912 = vmatpush1.msra.mxu1 %v777_v18  ;;  %v4231_v31 = vunpack.c.h.bf16 %v355_v19  ;;  %v4233_v32 = vunpack.c.h.bf16 %v356_v20  ;;  %v4235_v33 = vunpack.c.l.bf16 %v355_v19  ;;  %v4237_v34 = vunpack.c.l.bf16 %v356_v20  ;;  %v4305_v15 = vld [vmem:[%s5766_s2] sm:$0xff]  ;;  %v374_v20 = vld [vmem:[%s4179_s22 + $0x198] sm:$0xff] }
  0x19   : > { %836 = vmatprep.subr.mxu0 %v744_v21  ;;  %913 = vmatprep.subr.mxu1 %v746_v22  ;;  %v712_v35 = vmul.f32 %v4222_v26, %v4222_v26  ;;  %v714_v36 = vmul.f32 %v4224_v27, %v4224_v27  ;;  %v711_v37 = vmul.f32 %v4226_v28, %v4226_v28  ;;  %v4245_v38 = vunpack.c.h.bf16 %v339_v25 }
  0x1a   : > { %837 = vmatpush1.msra.mxu0 %v743_v23  ;;  %914 = vmatpush1.msra.mxu1 %v745_v24  ;;  %v713_v41 = vmul.f32 %v4228_v29, %v4228_v29  ;;  %v680_v42 = vmul.f32 %v4231_v31, %v4231_v31  ;;  %v682_v43 = vmul.f32 %v4233_v32, %v4233_v32  ;;  %v4255_v44 = vunpack.c.h.bf16 %v340_v30 }
  0x1b   : > { %838 = vmatprep.subr.mxu0 %v712_v35  ;;  %915 = vmatprep.subr.mxu1 %v714_v36  ;;  %v679_v46 = vmul.f32 %v4235_v33, %v4235_v33  ;;  %v681_v47 = vmul.f32 %v4237_v34, %v4237_v34  ;;  %v648_v48 = vmul.f32 %v4245_v38, %v4245_v38  ;;  %v4264_v49 = vunpack.c.l.bf16 %v339_v25  ;;  %v357_v25 = vld [vmem:[%s4179_s22 + $0x110] sm:$0xff] }
  0x1c   : > { %839 = vmatpush1.msra.mxu0 %v711_v37  ;;  %916 = vmatpush1.msra.mxu1 %v713_v41  ;;  %v650_v50 = vmul.f32 %v4255_v44, %v4255_v44  ;;  %v4268_v51 = vunpack.c.l.bf16 %v340_v30  ;;  %v4270_v52 = vunpack.c.h.bf16 %v323_v39  ;;  %v4272_v53 = vunpack.c.h.bf16 %v324_v40 }
  0x1d   : > { %840 = vmatprep.subr.mxu0 %v680_v42  ;;  %917 = vmatprep.subr.mxu1 %v682_v43  ;;  %v647_v55 = vmul.f32 %v4264_v49, %v4264_v49  ;;  %v4277_v56 = vunpack.c.l.bf16 %v323_v39  ;;  %v4279_v57 = vunpack.c.l.bf16 %v324_v40  ;;  %v4281_v58 = vunpack.c.l.bf16 %v405_v45  ;;  %v358_v39 = vld [vmem:[%s4179_s22 + $0x118] sm:$0xff] }
  0x1e   : > { %841 = vmatpush1.msra.mxu0 %v679_v46  ;;  %918 = vmatpush1.msra.mxu1 %v681_v47  ;;  %v649_v60 = vmul.f32 %v4268_v51, %v4268_v51  ;;  %v616_v61 = vmul.f32 %v4270_v52, %v4270_v52  ;;  %v618_v62 = vmul.f32 %v4272_v53, %v4272_v53  ;;  %v4290_v63 = vunpack.c.h.bf16 %v405_v45  ;;  %v341_v45 = vld [vmem:[%s4179_s22 + $0x90] sm:$0xff] }
  0x1f   : > { %842 = vmatprep.subr.mxu0 %v648_v48  ;;  %919 = vmatprep.subr.mxu1 %v650_v50  ;;  %v615_v2 = vmul.f32 %v4277_v56, %v4277_v56  ;;  %v617_v3 = vmul.f32 %v4279_v57, %v4279_v57  ;;  %v4297_v8 = vunpack.c.l.bf16 %v406_v54  ;;  %v4299_v13 = vunpack.c.h.bf16 %v406_v54  ;;  %v342_v54 = vld [vmem:[%s4179_s22 + $0x98] sm:$0xff] }
  0x20   : > { %843 = vmatpush1.msra.mxu0 %v647_v55  ;;  %920 = vmatpush1.msra.mxu1 %v649_v60  ;;  %v780_v16 = vmul.f32 %v4290_v63, %v4290_v63  ;;  %v779_v17 = vmul.f32 %v4281_v58, %v4281_v58  ;;  %v4311_v18 = vunpack.c.l.bf16 %v389_v59  ;;  %v4313_v19 = vunpack.c.h.bf16 %v389_v59 }
  0x21   : > { %844 = vmatprep.subr.mxu0 %v616_v61  ;;  %921 = vmatprep.subr.mxu1 %v618_v62  ;;  %v782_v21 = vmul.f32 %v4299_v13, %v4299_v13  ;;  %v781_v22 = vmul.f32 %v4297_v8, %v4297_v8  ;;  %v4320_v23 = vunpack.c.l.bf16 %v390_v1  ;;  %v4322_v24 = vunpack.c.h.bf16 %v390_v1  ;;  %v325_v62 = vld [vmem:[%s4179_s22 + $0x10] sm:$0xff] }
  0x22   : > { %845 = vmatpush1.msra.mxu0 %v615_v2  ;;  %922 = vmatpush1.msra.mxu1 %v617_v3  ;;  %v748_v30 = vmul.f32 %v4313_v19, %v4313_v19  ;;  %v747_v35 = vmul.f32 %v4311_v18, %v4311_v18  ;;  %v4329_v36 = vunpack.c.l.bf16 %v373_v14  ;;  %v4331_v37 = vunpack.c.h.bf16 %v373_v14  ;;  %v326_v3 = vld [vmem:[%s4179_s22 + $0x18] sm:$0xff] }
  0x23   : > { %3813 = vmatmul.mubr.msk.f32.vlgmr.msra.gmra.mxu0 %vm807_vm0, %v4305_v15  ;;  %3815 = vmatmul.mubr.msk.f32.vlgmr.msra.gmra.mxu1 %vm807_vm0, %v4305_v15  ;;  %v750_v40 = vmul.f32 %v4322_v24, %v4322_v24  ;;  %v749_v41 = vmul.f32 %v4320_v23, %v4320_v23  ;;  %v4342_v42 = vunpack.c.l.bf16 %v374_v20  ;;  %v4344_v43 = vunpack.c.h.bf16 %v374_v20 }
  0x24   : > { %988 = vmatprep.subr.mxu0 %v780_v16  ;;  %1065 = vmatprep.subr.mxu1 %v782_v21  ;;  %v716_v46 = vmul.f32 %v4331_v37, %v4331_v37  ;;  %v715_v47 = vmul.f32 %v4329_v36, %v4329_v36  ;;  %v4351_v48 = vunpack.c.l.bf16 %v357_v25  ;;  %v4353_v50 = vunpack.c.h.bf16 %v357_v25 }
  0x25   : > { %989 = vmatpush1.msra.mxu0 %v779_v17  ;;  %1066 = vmatpush1.msra.mxu1 %v781_v22  ;;  %v718_v55 = vmul.f32 %v4344_v43, %v4344_v43  ;;  %v717_v59 = vmul.f32 %v4342_v42, %v4342_v42  ;;  %v4360_v60 = vunpack.c.l.bf16 %v358_v39  ;;  %v4362_v61 = vunpack.c.h.bf16 %v358_v39  ;;  %v4383_v22 = vld [vmem:[%s5766_s2 + $0x8] sm:$0xff] }
  0x26   : > { %5912 = vst [vmem:[#allocation2_spill] sm:$0xff] %v4351_v48  ;;  %5913 = vst [vmem:[#allocation3_spill] sm:$0xff] %v4353_v50  ;;  %990 = vmatprep.subr.mxu0 %v748_v30  ;;  %1067 = vmatprep.subr.mxu1 %v750_v40  ;;  %v684_v1 = vmul.f32 %v4353_v50, %v4353_v50  ;;  %v4367_v2 = vunpack.c.h.bf16 %v341_v45  ;;  %v4372_v16 = vunpack.c.l.bf16 %v341_v45  ;;  %v4374_v17 = vunpack.c.l.bf16 %v342_v54  ;;  %v407_v40 = vld [vmem:[%s4179_s22 + $0x2a0] sm:$0xff] }
  0x27   : > { %5914 = vst [vmem:[#allocation4_spill] sm:$0xff] %v4360_v60  ;;  %5915 = vst [vmem:[#allocation5_spill] sm:$0xff] %v4362_v61  ;;  %991 = vmatpush1.msra.mxu0 %v747_v35  ;;  %1068 = vmatpush1.msra.mxu1 %v749_v41  ;;  %v686_v14 = vmul.f32 %v4362_v61, %v4362_v61  ;;  %v4376_v20 = vunpack.c.h.bf16 %v342_v54  ;;  %v4378_v21 = vunpack.c.h.bf16 %v325_v62  ;;  %v4389_v35 = vunpack.c.l.bf16 %v325_v62  ;;  %v408_v41 = vld [vmem:[%s4179_s22 + $0x2a8] sm:$0xff] }
  0x28   : > { %5916 = vst [vmem:[#allocation6_spill] sm:$0xff] %v4367_v2  ;;  %5917 = vst [vmem:[#allocation7_spill] sm:$0xff] %v4372_v16  ;;  %992 = vmatprep.subr.mxu0 %v716_v46  ;;  %1069 = vmatprep.subr.mxu1 %v718_v55  ;;  %v683_v25 = vmul.f32 %v4351_v48, %v4351_v48  ;;  %v685_v30 = vmul.f32 %v4360_v60, %v4360_v60  ;;  %v4391_v39 = vunpack.c.h.bf16 %v326_v3  ;;  %v392_v62 = vld [vmem:[%s4179_s22 + $0x228] sm:$0xff] }
  0x29   : > { %5918 = vst [vmem:[#allocation8_spill] sm:$0xff] %v4374_v17  ;;  %5919 = vst [vmem:[#allocation9_spill] sm:$0xff] %v4376_v20  ;;  %993 = vmatpush1.msra.mxu0 %v715_v47  ;;  %1070 = vmatpush1.msra.mxu1 %v717_v59  ;;  %v652_v45 = vmul.f32 %v4367_v2, %v4367_v2  ;;  %v654_v46 = vmul.f32 %v4376_v20, %v4376_v20  ;;  %v4401_v47 = vunpack.c.l.bf16 %v326_v3  ;;  %v391_v59 = vld [vmem:[%s4179_s22 + $0x220] sm:$0xff]  ;;  %v376_v60 = vld [vmem:[%s4179_s22 + $0x1a8] sm:$0xff] }
  0x2a   : > { %5920 = vst [vmem:[#allocation10_spill] sm:$0xff] %v4378_v21  ;;  %5921 = vst [vmem:[#allocation11_spill] sm:$0xff] %v4389_v35  ;;  %884 = vmatprep.mubr.f32.mxu0 %v5769_v0  ;;  %961 = vmatprep.mubr.f32.mxu1 %v5769_v0  ;;  %v651_v54 = vmul.f32 %v4372_v16, %v4372_v16  ;;  %v653_v55 = vmul.f32 %v4374_v17, %v4374_v17  ;;  %v4419_v0 = vunpack.c.h.bf16 %v408_v41  ;;  %v375_v2 = vld [vmem:[%s4179_s22 + $0x1a0] sm:$0xff]  ;;  %v360_v48 = vld [vmem:[%s4179_s22 + $0x128] sm:$0xff] }
  0x2b   : > { %5922 = vst [vmem:[#allocation12_spill] sm:$0xff] %v4391_v39  ;;  %5923 = vst [vmem:[#allocation13_spill] sm:$0xff] %v4401_v47  ;;  %994 = vmatprep.subr.mxu0 %v684_v1  ;;  %1071 = vmatprep.subr.mxu1 %v686_v14  ;;  %v620_v1 = vmul.f32 %v4378_v21, %v4378_v21  ;;  %v622_v3 = vmul.f32 %v4391_v39, %v4391_v39  ;;  %v4417_v14 = vunpack.c.h.bf16 %v407_v40 }
  0x2c   : > { %3814 = vmatmul.mubr.msk.f32.gmra.mxu0 %vm807_vm0, %v4383_v22  ;;  %3816 = vmatmul.mubr.msk.f32.gmra.mxu1 %vm807_vm0, %v4383_v22  ;;  %5925 = vst [vmem:[#allocation15_spill] sm:$0xff] %v4419_v0  ;;  %v619_v17 = vmul.f32 %v4389_v35, %v4389_v35  ;;  %v4423_v16 = vunpack.c.l.bf16 %v407_v40  ;;  %v4425_v20 = vunpack.c.l.bf16 %v408_v41  ;;  %v621_v39 = vmul.f32 %v4401_v47, %v4401_v47  ;;  %v359_v35 = vld [vmem:[%s4179_s22 + $0x120] sm:$0xff] }
  0x2d   : > { %5924 = vst [vmem:[#allocation14_spill] sm:$0xff] %v4417_v14  ;;  %995 = vmatpush1.msra.mxu0 %v683_v25  ;;  %1072 = vmatpush1.msra.mxu1 %v685_v30  ;;  %v4431_v21 = vunpack.c.h.bf16 %v391_v59  ;;  %v4433_v25 = vunpack.c.h.bf16 %v392_v62  ;;  %v4435_v30 = vunpack.c.l.bf16 %v391_v59  ;;  %v4437_v40 = vunpack.c.l.bf16 %v392_v62 }
  0x2e   : > { %5926 = vst [vmem:[#allocation16_spill] sm:$0xff] %v4423_v16  ;;  %5927 = vst [vmem:[#allocation17_spill] sm:$0xff] %v4425_v20  ;;  %996 = vmatprep.subr.mxu0 %v652_v45  ;;  %1073 = vmatprep.subr.mxu1 %v654_v46  ;;  %v784_v41 = vmul.f32 %v4417_v14, %v4417_v14  ;;  %v786_v45 = vmul.f32 %v4419_v0, %v4419_v0  ;;  %v4443_v46 = vunpack.c.h.bf16 %v375_v2 }
  0x2f   : > { %5928 = vst [vmem:[#allocation18_spill] sm:$0xff] %v4431_v21  ;;  %5929 = vst [vmem:[#allocation19_spill] sm:$0xff] %v4433_v25  ;;  %997 = vmatpush1.msra.mxu0 %v651_v54  ;;  %1074 = vmatpush1.msra.mxu1 %v653_v55  ;;  %v4445_v47 = vunpack.c.h.bf16 %v376_v60  ;;  %v5934_v54 = vmov 0.0   ;;  %v783_v55 = vmul.f32 %v4423_v16, %v4423_v16  ;;  %v785_v59 = vmul.f32 %v4425_v20, %v4425_v20  ;;  %v343_v20 = vld [vmem:[%s4179_s22 + $0xa0] sm:$0xff] }
  0x30   : > { %5930 = vst [vmem:[#allocation20_spill] sm:$0xff] %v4435_v30  ;;  %5931 = vst [vmem:[#allocation21_spill] sm:$0xff] %v4437_v40  ;;  %998 = vmatprep.subr.mxu0 %v620_v1  ;;  %1075 = vmatprep.subr.mxu1 %v622_v3  ;;  %v4454_v62 = vunpack.c.l.bf16 %v375_v2  ;;  %v4456_v1 = vunpack.c.l.bf16 %v376_v60  ;;  %v754_v3 = vmul.f32 %v4433_v25, %v4433_v25  ;;  %v344_v25 = vld [vmem:[%s4179_s22 + $0xa8] sm:$0xff]  ;;  %v4485_v14 = vunpack.c.l.bf16 %v359_v35 }
  0x31   : > { %5932 = vst [vmem:[#allocation22_spill] sm:$0xff] %v4443_v46  ;;  %5933 = vst [vmem:[#allocation23_spill] sm:$0xff] %v4445_v47  ;;  %999 = vmatpush1.msra.mxu0 %v619_v17  ;;  %1032 = vmatprep.mubr.f32.mxu0 %v5934_v54  ;;  %v752_v17 = vmul.f32 %v4431_v21, %v4431_v21  ;;  %v751_v2 = vmul.f32 %v4435_v30, %v4435_v30  ;;  %v4473_v21 = vunpack.c.h.bf16 %v360_v48 }
  0x32   : > { %5935 = vst [vmem:[#allocation24_spill] sm:$0xff] %v4454_v62  ;;  %5936 = vst [vmem:[#allocation25_spill] sm:$0xff] %v4456_v1  ;;  %1076 = vmatpush1.msra.mxu1 %v621_v39  ;;  %1109 = vmatprep.mubr.f32.mxu1 %v5934_v54  ;;  %v753_v60 = vmul.f32 %v4437_v40, %v4437_v40  ;;  %v4471_v39 = vunpack.c.h.bf16 %v359_v35  ;;  %v720_v16 = vmul.f32 %v4443_v46, %v4443_v46 }
  0x33   : > { %3817 = vmatmul.mubr.msk.f32.vlgmr.msra.gmra.mxu0 %vm807_vm0, %v4305_v15  ;;  %3819 = vmatmul.mubr.msk.f32.vlgmr.msra.gmra.mxu1 %vm807_vm0, %v4305_v15  ;;  %5938 = vst [vmem:[#allocation27_spill] sm:$0xff] %v4473_v21  ;;  %v722_v0 = vmul.f32 %v4445_v47, %v4445_v47  ;;  %v719_v40 = vmul.f32 %v4454_v62, %v4454_v62  ;;  %5939 = vst [vmem:[#allocation28_spill] sm:$0xff] %v4485_v14  ;;  %v4487_v61 = vunpack.c.l.bf16 %v360_v48  ;;  %v362_v62 = vld [vmem:[%s4179_s22 + $0x138] sm:$0xff] }
  0x34   : > { %5937 = vst [vmem:[#allocation26_spill] sm:$0xff] %v4471_v39  ;;  %1142 = vmatprep.subr.mxu0 %v784_v41  ;;  %1219 = vmatprep.subr.mxu1 %v786_v45  ;;  %v721_v30 = vmul.f32 %v4456_v1, %v4456_v1  ;;  %v327_v41 = vld [vmem:[%s4179_s22 + $0x20] sm:$0xff]  ;;  %v328_v45 = vld [vmem:[%s4179_s22 + $0x28] sm:$0xff]  ;;  %v4491_v46 = vunpack.c.h.bf16 %v343_v20  ;;  %v4493_v50 = vunpack.c.h.bf16 %v344_v25  ;;  %v690_v35 = vmul.f32 %v4473_v21, %v4473_v21  ;;  %v410_v21 = vld [vmem:[%s4179_s22 + $0x2b8] sm:$0xff] }
  0x35   : > { %1143 = vmatpush1.msra.mxu0 %v783_v55  ;;  %1220 = vmatpush1.msra.mxu1 %v785_v59  ;;  %5940 = vst [vmem:[#allocation29_spill] sm:$0xff] %v4487_v61  ;;  %v688_v55 = vmul.f32 %v4471_v39, %v4471_v39  ;;  %v4499_v48 = vunpack.c.l.bf16 %v343_v20  ;;  %v4501_v59 = vunpack.c.l.bf16 %v344_v25  ;;  %v4511_v20 = vunpack.c.l.bf16 %v327_v41  ;;  %v409_v25 = vld [vmem:[%s4179_s22 + $0x2b0] sm:$0xff]  ;;  %v378_v1 = vld [vmem:[%s4179_s22 + $0x1b8] sm:$0xff] }
  0x36   : > { %1144 = vmatprep.subr.mxu0 %v752_v17  ;;  %1221 = vmatprep.subr.mxu1 %v754_v3  ;;  %5941 = vst [vmem:[#allocation30_spill] sm:$0xff] %v4491_v46  ;;  %5942 = vst [vmem:[#allocation31_spill] sm:$0xff] %v4493_v50  ;;  %v4503_v17 = vunpack.c.h.bf16 %v327_v41  ;;  %v4505_v3 = vunpack.c.h.bf16 %v328_v45  ;;  %v377_v39 = vld [vmem:[%s4179_s22 + $0x1b0] sm:$0xff] }
  0x37   : > { %1145 = vmatpush1.msra.mxu0 %v751_v2  ;;  %1222 = vmatpush1.msra.mxu1 %v753_v60  ;;  %5943 = vst [vmem:[#allocation32_spill] sm:$0xff] %v4499_v48  ;;  %5944 = vst [vmem:[#allocation33_spill] sm:$0xff] %v4501_v59  ;;  %v687_v2 = vmul.f32 %v4485_v14, %v4485_v14  ;;  %v689_v60 = vmul.f32 %v4487_v61, %v4487_v61  ;;  %v393_v61 = vld [vmem:[%s4179_s22 + $0x230] sm:$0xff]  ;;  %v394_v14 = vld [vmem:[%s4179_s22 + $0x238] sm:$0xff] }
  0x38   : > { %1146 = vmatprep.subr.mxu0 %v720_v16  ;;  %1223 = vmatprep.subr.mxu1 %v722_v0  ;;  %5945 = vst [vmem:[#allocation34_spill] sm:$0xff] %v4503_v17  ;;  %5946 = vst [vmem:[#allocation35_spill] sm:$0xff] %v4505_v3  ;;  %v656_v0 = vmul.f32 %v4491_v46, %v4491_v46  ;;  %v658_v16 = vmul.f32 %v4493_v50, %v4493_v50  ;;  %v4543_v50 = vunpack.c.l.bf16 %v409_v25 }
  0x39   : > { %1147 = vmatpush1.msra.mxu0 %v719_v40  ;;  %1224 = vmatpush1.msra.mxu1 %v721_v30  ;;  %5947 = vst [vmem:[#allocation36_spill] sm:$0xff] %v4511_v20  ;;  %v4521_v30 = vunpack.c.l.bf16 %v328_v45  ;;  %v655_v40 = vmul.f32 %v4499_v48, %v4499_v48  ;;  %v657_v41 = vmul.f32 %v4501_v59, %v4501_v59  ;;  %v4539_v48 = vunpack.c.h.bf16 %v410_v21 }
  0x3a   : > { %1038 = vmatprep.mubr.f32.mxu0 %v5934_v54  ;;  %1115 = vmatprep.mubr.f32.mxu1 %v5934_v54  ;;  %v624_v45 = vmul.f32 %v4503_v17, %v4503_v17  ;;  %v623_v59 = vmul.f32 %v4511_v20, %v4511_v20  ;;  %5951 = vst [vmem:[#allocation40_spill] sm:$0xff] %v4543_v50  ;;  %v4545_v46 = vunpack.c.l.bf16 %v410_v21  ;;  %v4551_v17 = vunpack.c.h.bf16 %v393_v61  ;;  %v361_v20 = vld [vmem:[%s4179_s22 + $0x130] sm:$0xff] }
  0x3b   : > { %5948 = vst [vmem:[#allocation37_spill] sm:$0xff] %v4521_v30  ;;  %1148 = vmatprep.subr.mxu0 %v688_v55  ;;  %1225 = vmatprep.subr.mxu1 %v690_v35  ;;  %v626_v55 = vmul.f32 %v4505_v3, %v4505_v3  ;;  %v4537_v35 = vunpack.c.h.bf16 %v409_v25  ;;  %5950 = vst [vmem:[#allocation39_spill] sm:$0xff] %v4539_v48  ;;  %v625_v3 = vmul.f32 %v4521_v30, %v4521_v30 }
  0x3c   : > { %3818 = vmatmul.mubr.msk.f32.gmra.mxu0 %vm807_vm0, %v4383_v22  ;;  %3820 = vmatmul.mubr.msk.f32.gmra.mxu1 %vm807_vm0, %v4383_v22  ;;  %5952 = vst [vmem:[#allocation41_spill] sm:$0xff] %v4545_v46  ;;  %5953 = vst [vmem:[#allocation42_spill] sm:$0xff] %v4551_v17  ;;  %v4557_v25 = vunpack.c.l.bf16 %v394_v14  ;;  %v4565_v30 = vunpack.c.h.bf16 %v378_v1 }
  0x3d   : > { %5949 = vst [vmem:[#allocation38_spill] sm:$0xff] %v4537_v35  ;;  %1149 = vmatpush1.msra.mxu0 %v687_v2  ;;  %1226 = vmatpush1.msra.mxu1 %v689_v60  ;;  %v4553_v2 = vunpack.c.h.bf16 %v394_v14  ;;  %v4555_v60 = vunpack.c.l.bf16 %v393_v61  ;;  %v788_v21 = vmul.f32 %v4537_v35, %v4537_v35  ;;  %v787_v61 = vmul.f32 %v4543_v50, %v4543_v50 }
  0x3e   : > { %1150 = vmatprep.subr.mxu0 %v656_v0  ;;  %1227 = vmatprep.subr.mxu1 %v658_v16  ;;  %5956 = vst [vmem:[#allocation45_spill] sm:$0xff] %v4557_v25  ;;  %v790_v0 = vmul.f32 %v4539_v48, %v4539_v48  ;;  %v4563_v16 = vunpack.c.h.bf16 %v377_v39  ;;  %5958 = vst [vmem:[#allocation47_spill] sm:$0xff] %v4565_v30  ;;  %v789_v14 = vmul.f32 %v4545_v46, %v4545_v46 }
  0x3f   : > { %5954 = vst [vmem:[#allocation43_spill] sm:$0xff] %v4553_v2  ;;  %1151 = vmatpush1.msra.mxu0 %v655_v40  ;;  %1228 = vmatpush1.msra.mxu1 %v657_v41  ;;  %5955 = vst [vmem:[#allocation44_spill] sm:$0xff] %v4555_v60  ;;  %v4574_v40 = vunpack.c.l.bf16 %v377_v39  ;;  %v4576_v41 = vunpack.c.l.bf16 %v378_v1  ;;  %v755_v39 = vmul.f32 %v4555_v60, %v4555_v60  ;;  %v4605_v48 = vunpack.c.l.bf16 %v361_v20 }
  0x40   : > { %1152 = vmatprep.subr.mxu0 %v624_v45  ;;  %1229 = vmatprep.subr.mxu1 %v626_v55  ;;  %5957 = vst [vmem:[#allocation46_spill] sm:$0xff] %v4563_v16  ;;  %v758_v45 = vmul.f32 %v4553_v2, %v4553_v2  ;;  %v757_v1 = vmul.f32 %v4557_v25, %v4557_v25  ;;  %v4593_v55 = vunpack.c.h.bf16 %v362_v62  ;;  %v346_v2 = vld [vmem:[%s4179_s22 + $0xb8] sm:$0xff]  ;;  %v4607_v35 = vunpack.c.l.bf16 %v362_v62 }
  0x41   : > { %1153 = vmatpush1.msra.mxu0 %v623_v59  ;;  %1186 = vmatprep.mubr.f32.mxu0 %v5934_v54  ;;  %5959 = vst [vmem:[#allocation48_spill] sm:$0xff] %v4574_v40  ;;  %5960 = vst [vmem:[#allocation49_spill] sm:$0xff] %v4576_v41  ;;  %v756_v59 = vmul.f32 %v4551_v17, %v4551_v17  ;;  %v345_v17 = vld [vmem:[%s4179_s22 + $0xb0] sm:$0xff]  ;;  %v724_v46 = vmul.f32 %v4563_v16, %v4563_v16  ;;  %v4613_v47 = vunpack.c.h.bf16 %v346_v2 }
  0x42   : > { %1230 = vmatpush1.msra.mxu1 %v625_v3  ;;  %1263 = vmatprep.mubr.f32.mxu1 %v5934_v54  ;;  %v4591_v3 = vunpack.c.h.bf16 %v361_v20  ;;  %5962 = vst [vmem:[#allocation51_spill] sm:$0xff] %v4593_v55  ;;  %v726_v50 = vmul.f32 %v4565_v30, %v4565_v30  ;;  %v723_v25 = vmul.f32 %v4574_v40, %v4574_v40  ;;  %5963 = vst [vmem:[#allocation52_spill] sm:$0xff] %v4605_v48  ;;  %v364_v40 = vld [vmem:[%s4179_s22 + $0x148] sm:$0xff] }
  0x43   : > { %3821 = vmatmul.mubr.msk.f32.vlgmr.msra.gmra.mxu0 %vm807_vm0, %v4305_v15  ;;  %3823 = vmatmul.mubr.msk.f32.vlgmr.msra.gmra.mxu1 %vm807_vm0, %v4305_v15  ;;  %v725_v60 = vmul.f32 %v4576_v41, %v4576_v41  ;;  %5964 = vst [vmem:[#allocation53_spill] sm:$0xff] %v4607_v35  ;;  %v4611_v16 = vunpack.c.h.bf16 %v345_v17  ;;  %5966 = vst [vmem:[#allocation55_spill] sm:$0xff] %v4613_v47  ;;  %v694_v20 = vmul.f32 %v4593_v55, %v4593_v55  ;;  %v412_v55 = vld [vmem:[%s4179_s22 + $0x2c8] sm:$0xff] }
  0x44   : > { %5961 = vst [vmem:[#allocation50_spill] sm:$0xff] %v4591_v3  ;;  %1296 = vmatprep.subr.mxu0 %v788_v21  ;;  %1373 = vmatprep.subr.mxu1 %v790_v0  ;;  %v329_v21 = vld [vmem:[%s4179_s22 + $0x30] sm:$0xff]  ;;  %v330_v0 = vld [vmem:[%s4179_s22 + $0x38] sm:$0xff]  ;;  %v4619_v62 = vunpack.c.l.bf16 %v345_v17  ;;  %v380_v41 = vld [vmem:[%s4179_s22 + $0x1c8] sm:$0xff] }
  0x45   : > { %1297 = vmatpush1.msra.mxu0 %v787_v61  ;;  %1374 = vmatpush1.msra.mxu1 %v789_v14  ;;  %5965 = vst [vmem:[#allocation54_spill] sm:$0xff] %v4611_v16  ;;  %v692_v61 = vmul.f32 %v4591_v3, %v4591_v3  ;;  %v4621_v14 = vunpack.c.l.bf16 %v346_v2  ;;  %v4631_v17 = vunpack.c.l.bf16 %v329_v21  ;;  %v411_v2 = vld [vmem:[%s4179_s22 + $0x2c0] sm:$0xff] }
  0x46   : > { %1298 = vmatprep.subr.mxu0 %v756_v59  ;;  %1375 = vmatprep.subr.mxu1 %v758_v45  ;;  %5967 = vst [vmem:[#allocation56_spill] sm:$0xff] %v4619_v62  ;;  %v4623_v59 = vunpack.c.h.bf16 %v329_v21  ;;  %v4625_v45 = vunpack.c.h.bf16 %v330_v0  ;;  %v379_v3 = vld [vmem:[%s4179_s22 + $0x1c0] sm:$0xff] }
  0x47   : > { %1299 = vmatpush1.msra.mxu0 %v755_v39  ;;  %1376 = vmatpush1.msra.mxu1 %v757_v1  ;;  %5968 = vst [vmem:[#allocation57_spill] sm:$0xff] %v4621_v14  ;;  %v691_v39 = vmul.f32 %v4605_v48, %v4605_v48  ;;  %v693_v1 = vmul.f32 %v4607_v35, %v4607_v35  ;;  %5971 = vst [vmem:[#allocation60_spill] sm:$0xff] %v4631_v17  ;;  %v395_v35 = vld [vmem:[%s4179_s22 + $0x240] sm:$0xff]  ;;  %v396_v48 = vld [vmem:[%s4179_s22 + $0x248] sm:$0xff] }
  0x48   : > { %1300 = vmatprep.subr.mxu0 %v724_v46  ;;  %1377 = vmatprep.subr.mxu1 %v726_v50  ;;  %5969 = vst [vmem:[#allocation58_spill] sm:$0xff] %v4623_v59  ;;  %5970 = vst [vmem:[#allocation59_spill] sm:$0xff] %v4625_v45  ;;  %v660_v50 = vmul.f32 %v4611_v16, %v4611_v16  ;;  %v662_v46 = vmul.f32 %v4613_v47, %v4613_v47  ;;  %v4663_v47 = vunpack.c.l.bf16 %v411_v2 }
  0x49   : > { %1301 = vmatpush1.msra.mxu0 %v723_v25  ;;  %1378 = vmatpush1.msra.mxu1 %v725_v60  ;;  %v4641_v60 = vunpack.c.l.bf16 %v330_v0  ;;  %v659_v25 = vmul.f32 %v4619_v62, %v4619_v62  ;;  %v661_v21 = vmul.f32 %v4621_v14, %v4621_v14  ;;  %v628_v0 = vmul.f32 %v4623_v59, %v4623_v59 }
  0x4a   : > { %1192 = vmatprep.mubr.f32.mxu0 %v5934_v54  ;;  %1269 = vmatprep.mubr.f32.mxu1 %v5934_v54  ;;  %v4659_v62 = vunpack.c.h.bf16 %v412_v55  ;;  %v627_v14 = vmul.f32 %v4631_v17, %v4631_v17  ;;  %5975 = vst [vmem:[#allocation64_spill] sm:$0xff] %v4663_v47  ;;  %v4665_v16 = vunpack.c.l.bf16 %v412_v55  ;;  %v4671_v59 = vunpack.c.h.bf16 %v395_v35  ;;  %v363_v17 = vld [vmem:[%s4179_s22 + $0x140] sm:$0xff] }
  0x4b   : > { %5972 = vst [vmem:[#allocation61_spill] sm:$0xff] %v4641_v60  ;;  %1302 = vmatprep.subr.mxu0 %v692_v61  ;;  %1379 = vmatprep.subr.mxu1 %v694_v20  ;;  %v630_v61 = vmul.f32 %v4625_v45, %v4625_v45  ;;  %v4657_v20 = vunpack.c.h.bf16 %v411_v2  ;;  %v629_v45 = vmul.f32 %v4641_v60, %v4641_v60  ;;  %v4677_v2 = vunpack.c.l.bf16 %v396_v48 }
  0x4c   : > { %3822 = vmatmul.mubr.msk.f32.gmra.mxu0 %vm807_vm0, %v4383_v22  ;;  %3824 = vmatmul.mubr.msk.f32.gmra.mxu1 %vm807_vm0, %v4383_v22  ;;  %5974 = vst [vmem:[#allocation63_spill] sm:$0xff] %v4659_v62  ;;  %5976 = vst [vmem:[#allocation65_spill] sm:$0xff] %v4665_v16  ;;  %v4685_v60 = vunpack.c.h.bf16 %v380_v41 }
  0x4d   : > { %5973 = vst [vmem:[#allocation62_spill] sm:$0xff] %v4657_v20  ;;  %1303 = vmatpush1.msra.mxu0 %v691_v39  ;;  %1380 = vmatpush1.msra.mxu1 %v693_v1  ;;  %5977 = vst [vmem:[#allocation66_spill] sm:$0xff] %v4671_v59  ;;  %v4673_v39 = vunpack.c.h.bf16 %v396_v48  ;;  %v4675_v1 = vunpack.c.l.bf16 %v395_v35  ;;  %v792_v55 = vmul.f32 %v4657_v20, %v4657_v20  ;;  %v4727_v20 = vunpack.c.l.bf16 %v364_v40 }
  0x4e   : > { %1304 = vmatprep.subr.mxu0 %v660_v50  ;;  %1381 = vmatprep.subr.mxu1 %v662_v46  ;;  %5980 = vst [vmem:[#allocation69_spill] sm:$0xff] %v4677_v2  ;;  %v794_v50 = vmul.f32 %v4659_v62, %v4659_v62  ;;  %v4683_v46 = vunpack.c.h.bf16 %v379_v3  ;;  %5982 = vst [vmem:[#allocation71_spill] sm:$0xff] %v4685_v60  ;;  %v791_v48 = vmul.f32 %v4663_v47, %v4663_v47 }
  0x4f   : > { %5978 = vst [vmem:[#allocation67_spill] sm:$0xff] %v4673_v39  ;;  %1305 = vmatpush1.msra.mxu0 %v659_v25  ;;  %1382 = vmatpush1.msra.mxu1 %v661_v21  ;;  %5979 = vst [vmem:[#allocation68_spill] sm:$0xff] %v4675_v1  ;;  %v793_v35 = vmul.f32 %v4665_v16, %v4665_v16  ;;  %v4694_v25 = vunpack.c.l.bf16 %v379_v3  ;;  %v4696_v21 = vunpack.c.l.bf16 %v380_v41  ;;  %v4725_v62 = vunpack.c.l.bf16 %v363_v17 }
  0x50   : > { %1306 = vmatprep.subr.mxu0 %v628_v0  ;;  %1383 = vmatprep.subr.mxu1 %v630_v61  ;;  %5981 = vst [vmem:[#allocation70_spill] sm:$0xff] %v4683_v46  ;;  %v762_v0 = vmul.f32 %v4673_v39, %v4673_v39  ;;  %v759_v3 = vmul.f32 %v4675_v1, %v4675_v1  ;;  %v4713_v61 = vunpack.c.h.bf16 %v364_v40  ;;  %v348_v39 = vld [vmem:[%s4179_s22 + $0xc8] sm:$0xff]  ;;  %5988 = vst [vmem:[#allocation77_spill] sm:$0xff] %v4727_v20 }
  0x51   : > { %1307 = vmatpush1.msra.mxu0 %v627_v14  ;;  %1340 = vmatprep.mubr.f32.mxu0 %v5934_v54  ;;  %5983 = vst [vmem:[#allocation72_spill] sm:$0xff] %v4694_v25  ;;  %5984 = vst [vmem:[#allocation73_spill] sm:$0xff] %v4696_v21  ;;  %v760_v14 = vmul.f32 %v4671_v59, %v4671_v59  ;;  %v761_v41 = vmul.f32 %v4677_v2, %v4677_v2  ;;  %v347_v59 = vld [vmem:[%s4179_s22 + $0xc0] sm:$0xff]  ;;  %v4733_v30 = vunpack.c.h.bf16 %v348_v39 }
  0x52   : > { %1384 = vmatpush1.msra.mxu1 %v629_v45  ;;  %1417 = vmatprep.mubr.f32.mxu1 %v5934_v54  ;;  %v4711_v45 = vunpack.c.h.bf16 %v363_v17  ;;  %5986 = vst [vmem:[#allocation75_spill] sm:$0xff] %v4713_v61  ;;  %v728_v16 = vmul.f32 %v4683_v46, %v4683_v46  ;;  %v730_v47 = vmul.f32 %v4685_v60, %v4685_v60  ;;  %5987 = vst [vmem:[#allocation76_spill] sm:$0xff] %v4725_v62 }
  0x53   : > { %3825 = vmatmul.mubr.msk.f32.vlgmr.msra.gmra.mxu0 %vm807_vm0, %v4305_v15  ;;  %3827 = vmatmul.mubr.msk.f32.vlgmr.msra.gmra.mxu1 %vm807_vm0, %v4305_v15  ;;  %v727_v2 = vmul.f32 %v4694_v25, %v4694_v25  ;;  %v729_v1 = vmul.f32 %v4696_v21, %v4696_v21  ;;  %v4731_v46 = vunpack.c.h.bf16 %v347_v59  ;;  %5990 = vst [vmem:[#allocation79_spill] sm:$0xff] %v4733_v30  ;;  %v4739_v40 = vunpack.c.l.bf16 %v347_v59  ;;  %v382_v21 = vld [vmem:[%s4179_s22 + $0x1d8] sm:$0xff] }
  0x54   : > { %5985 = vst [vmem:[#allocation74_spill] sm:$0xff] %v4711_v45  ;;  %1450 = vmatprep.subr.mxu0 %v792_v55  ;;  %1527 = vmatprep.subr.mxu1 %v794_v50  ;;  %v331_v55 = vld [vmem:[%s4179_s22 + $0x40] sm:$0xff]  ;;  %v332_v50 = vld [vmem:[%s4179_s22 + $0x48] sm:$0xff]  ;;  %v698_v17 = vmul.f32 %v4713_v61, %v4713_v61  ;;  %v414_v61 = vld [vmem:[%s4179_s22 + $0x2d8] sm:$0xff] }
  0x55   : > { %1451 = vmatpush1.msra.mxu0 %v791_v48  ;;  %1528 = vmatpush1.msra.mxu1 %v793_v35  ;;  %5989 = vst [vmem:[#allocation78_spill] sm:$0xff] %v4731_v46  ;;  %v696_v48 = vmul.f32 %v4711_v45, %v4711_v45  ;;  %5991 = vst [vmem:[#allocation80_spill] sm:$0xff] %v4739_v40  ;;  %v4741_v35 = vunpack.c.l.bf16 %v348_v39  ;;  %v4751_v59 = vunpack.c.l.bf16 %v331_v55  ;;  %v413_v39 = vld [vmem:[%s4179_s22 + $0x2d0] sm:$0xff]  ;;  %v366_v25 = vld [vmem:[%s4179_s22 + $0x158] sm:$0xff] }
  0x56   : > { %1452 = vmatprep.subr.mxu0 %v760_v14  ;;  %1529 = vmatprep.subr.mxu1 %v762_v0  ;;  %v4743_v14 = vunpack.c.h.bf16 %v331_v55  ;;  %v4745_v0 = vunpack.c.h.bf16 %v332_v50  ;;  %v381_v45 = vld [vmem:[%s4179_s22 + $0x1d0] sm:$0xff] }
  0x57   : > { %1453 = vmatpush1.msra.mxu0 %v759_v3  ;;  %1530 = vmatpush1.msra.mxu1 %v761_v41  ;;  %5992 = vst [vmem:[#allocation81_spill] sm:$0xff] %v4741_v35  ;;  %v695_v3 = vmul.f32 %v4725_v62, %v4725_v62  ;;  %v697_v41 = vmul.f32 %v4727_v20, %v4727_v20  ;;  %5995 = vst [vmem:[#allocation84_spill] sm:$0xff] %v4751_v59  ;;  %v397_v20 = vld [vmem:[%s4179_s22 + $0x250] sm:$0xff]  ;;  %v398_v62 = vld [vmem:[%s4179_s22 + $0x258] sm:$0xff] }
  0x58   : > { %1454 = vmatprep.subr.mxu0 %v728_v16  ;;  %1531 = vmatprep.subr.mxu1 %v730_v47  ;;  %5993 = vst [vmem:[#allocation82_spill] sm:$0xff] %v4743_v14  ;;  %5994 = vst [vmem:[#allocation83_spill] sm:$0xff] %v4745_v0  ;;  %v664_v47 = vmul.f32 %v4731_v46, %v4731_v46  ;;  %v666_v16 = vmul.f32 %v4733_v30, %v4733_v30  ;;  %v4783_v30 = vunpack.c.l.bf16 %v413_v39 }
  0x59   : > { %1455 = vmatpush1.msra.mxu0 %v727_v2  ;;  %1532 = vmatpush1.msra.mxu1 %v729_v1  ;;  %v4761_v1 = vunpack.c.l.bf16 %v332_v50  ;;  %v663_v2 = vmul.f32 %v4739_v40, %v4739_v40  ;;  %v665_v55 = vmul.f32 %v4741_v35, %v4741_v35  ;;  %v632_v50 = vmul.f32 %v4743_v14, %v4743_v14 }
  0x5a   : > { %1346 = vmatprep.mubr.f32.mxu0 %v5934_v54  ;;  %1423 = vmatprep.mubr.f32.mxu1 %v5934_v54  ;;  %v4779_v40 = vunpack.c.h.bf16 %v414_v61  ;;  %v631_v35 = vmul.f32 %v4751_v59, %v4751_v59  ;;  %5999 = vst [vmem:[#allocation88_spill] sm:$0xff] %v4783_v30  ;;  %v4785_v46 = vunpack.c.l.bf16 %v414_v61  ;;  %v4791_v14 = vunpack.c.h.bf16 %v397_v20  ;;  %v365_v59 = vld [vmem:[%s4179_s22 + $0x150] sm:$0xff] }
  0x5b   : > { %5996 = vst [vmem:[#allocation85_spill] sm:$0xff] %v4761_v1  ;;  %1456 = vmatprep.subr.mxu0 %v696_v48  ;;  %1533 = vmatprep.subr.mxu1 %v698_v17  ;;  %v634_v48 = vmul.f32 %v4745_v0, %v4745_v0  ;;  %v4777_v17 = vunpack.c.h.bf16 %v413_v39  ;;  %v633_v0 = vmul.f32 %v4761_v1, %v4761_v1  ;;  %v4797_v39 = vunpack.c.l.bf16 %v398_v62 }
  0x5c   : > { %3826 = vmatmul.mubr.msk.f32.gmra.mxu0 %vm807_vm0, %v4383_v22  ;;  %3828 = vmatmul.mubr.msk.f32.gmra.mxu1 %vm807_vm0, %v4383_v22  ;;  %5998 = vst [vmem:[#allocation87_spill] sm:$0xff] %v4779_v40  ;;  %6000 = vst [vmem:[#allocation89_spill] sm:$0xff] %v4785_v46  ;;  %v4805_v1 = vunpack.c.h.bf16 %v382_v21 }
  0x5d   : > { %5997 = vst [vmem:[#allocation86_spill] sm:$0xff] %v4777_v17  ;;  %1457 = vmatpush1.msra.mxu0 %v695_v3  ;;  %1534 = vmatpush1.msra.mxu1 %v697_v41  ;;  %6001 = vst [vmem:[#allocation90_spill] sm:$0xff] %v4791_v14  ;;  %v4793_v3 = vunpack.c.h.bf16 %v398_v62  ;;  %v4795_v41 = vunpack.c.l.bf16 %v397_v20  ;;  %v796_v61 = vmul.f32 %v4777_v17, %v4777_v17  ;;  %v4847_v17 = vunpack.c.l.bf16 %v366_v25 }
  0x5e   : > { %1458 = vmatprep.subr.mxu0 %v664_v47  ;;  %1535 = vmatprep.subr.mxu1 %v666_v16  ;;  %6004 = vst [vmem:[#allocation93_spill] sm:$0xff] %v4797_v39  ;;  %v798_v47 = vmul.f32 %v4779_v40, %v4779_v40  ;;  %v4803_v16 = vunpack.c.h.bf16 %v381_v45  ;;  %v795_v62 = vmul.f32 %v4783_v30, %v4783_v30  ;;  %v4845_v40 = vunpack.c.l.bf16 %v365_v59 }
  0x5f   : > { %6002 = vst [vmem:[#allocation91_spill] sm:$0xff] %v4793_v3  ;;  %1459 = vmatpush1.msra.mxu0 %v663_v2  ;;  %1536 = vmatpush1.msra.mxu1 %v665_v55  ;;  %6003 = vst [vmem:[#allocation92_spill] sm:$0xff] %v4795_v41  ;;  %v797_v20 = vmul.f32 %v4785_v46, %v4785_v46  ;;  %v4814_v2 = vunpack.c.l.bf16 %v381_v45  ;;  %v4816_v55 = vunpack.c.l.bf16 %v382_v21 }
  0x60   : > { %1460 = vmatprep.subr.mxu0 %v632_v50  ;;  %1537 = vmatprep.subr.mxu1 %v634_v48  ;;  %6005 = vst [vmem:[#allocation94_spill] sm:$0xff] %v4803_v16  ;;  %v766_v50 = vmul.f32 %v4793_v3, %v4793_v3  ;;  %v763_v45 = vmul.f32 %v4795_v41, %v4795_v41  ;;  %v4833_v48 = vunpack.c.h.bf16 %v366_v25  ;;  %v350_v3 = vld [vmem:[%s4179_s22 + $0xd8] sm:$0xff]  ;;  %6010 = vst [vmem:[#allocation99_spill] sm:$0xff] %v4845_v40 }
  0x61   : > { %1461 = vmatpush1.msra.mxu0 %v631_v35  ;;  %1494 = vmatprep.mubr.f32.mxu0 %v5934_v54  ;;  %6006 = vst [vmem:[#allocation95_spill] sm:$0xff] %v4814_v2  ;;  %6007 = vst [vmem:[#allocation96_spill] sm:$0xff] %v4816_v55  ;;  %v764_v35 = vmul.f32 %v4791_v14, %v4791_v14  ;;  %v765_v21 = vmul.f32 %v4797_v39, %v4797_v39  ;;  %v349_v14 = vld [vmem:[%s4179_s22 + $0xd0] sm:$0xff]  ;;  %v4853_v60 = vunpack.c.h.bf16 %v350_v3 }
  0x62   : > { %1538 = vmatpush1.msra.mxu1 %v633_v0  ;;  %1571 = vmatprep.mubr.f32.mxu1 %v5934_v54  ;;  %v4831_v0 = vunpack.c.h.bf16 %v365_v59  ;;  %6009 = vst [vmem:[#allocation98_spill] sm:$0xff] %v4833_v48  ;;  %v732_v46 = vmul.f32 %v4803_v16, %v4803_v16  ;;  %v734_v30 = vmul.f32 %v4805_v1, %v4805_v1  ;;  %6011 = vst [vmem:[#allocation100_spill] sm:$0xff] %v4847_v17 }
  0x63   : > { %3829 = vmatmul.mubr.msk.f32.vlgmr.msra.gmra.mxu0 %vm807_vm0, %v4305_v15  ;;  %3831 = vmatmul.mubr.msk.f32.vlgmr.msra.gmra.mxu1 %vm807_vm0, %v4305_v15  ;;  %v731_v39 = vmul.f32 %v4814_v2, %v4814_v2  ;;  %v733_v41 = vmul.f32 %v4816_v55, %v4816_v55  ;;  %v4851_v16 = vunpack.c.h.bf16 %v349_v14  ;;  %6013 = vst [vmem:[#allocation102_spill] sm:$0xff] %v4853_v60  ;;  %v4859_v25 = vunpack.c.l.bf16 %v349_v14  ;;  %v384_v55 = vld [vmem:[%s4179_s22 + $0x1e8] sm:$0xff] }
  0x64   : > { %6008 = vst [vmem:[#allocation97_spill] sm:$0xff] %v4831_v0  ;;  %1604 = vmatprep.subr.mxu0 %v796_v61  ;;  %1681 = vmatprep.subr.mxu1 %v798_v47  ;;  %v333_v61 = vld [vmem:[%s4179_s22 + $0x50] sm:$0xff]  ;;  %v334_v47 = vld [vmem:[%s4179_s22 + $0x58] sm:$0xff]  ;;  %v702_v59 = vmul.f32 %v4833_v48, %v4833_v48  ;;  %v416_v48 = vld [vmem:[%s4179_s22 + $0x2e8] sm:$0xff] }
  0x65   : > { %1605 = vmatpush1.msra.mxu0 %v795_v62  ;;  %1682 = vmatpush1.msra.mxu1 %v797_v20  ;;  %6012 = vst [vmem:[#allocation101_spill] sm:$0xff] %v4851_v16  ;;  %v700_v62 = vmul.f32 %v4831_v0, %v4831_v0  ;;  %6014 = vst [vmem:[#allocation103_spill] sm:$0xff] %v4859_v25  ;;  %v4861_v20 = vunpack.c.l.bf16 %v350_v3  ;;  %v4871_v14 = vunpack.c.l.bf16 %v333_v61  ;;  %v415_v3 = vld [vmem:[%s4179_s22 + $0x2e0] sm:$0xff]  ;;  %v368_v2 = vld [vmem:[%s4179_s22 + $0x168] sm:$0xff] }
  0x66   : > { %1606 = vmatprep.subr.mxu0 %v764_v35  ;;  %1683 = vmatprep.subr.mxu1 %v766_v50  ;;  %v4863_v35 = vunpack.c.h.bf16 %v333_v61  ;;  %v4865_v50 = vunpack.c.h.bf16 %v334_v47  ;;  %v383_v0 = vld [vmem:[%s4179_s22 + $0x1e0] sm:$0xff] }
  0x67   : > { %1607 = vmatpush1.msra.mxu0 %v763_v45  ;;  %1684 = vmatpush1.msra.mxu1 %v765_v21  ;;  %6015 = vst [vmem:[#allocation104_spill] sm:$0xff] %v4861_v20  ;;  %v699_v45 = vmul.f32 %v4845_v40, %v4845_v40  ;;  %v701_v21 = vmul.f32 %v4847_v17, %v4847_v17  ;;  %6018 = vst [vmem:[#allocation107_spill] sm:$0xff] %v4871_v14  ;;  %v399_v17 = vld [vmem:[%s4179_s22 + $0x260] sm:$0xff]  ;;  %v400_v40 = vld [vmem:[%s4179_s22 + $0x268] sm:$0xff] }
  0x68   : > { %1608 = vmatprep.subr.mxu0 %v732_v46  ;;  %1685 = vmatprep.subr.mxu1 %v734_v30  ;;  %6016 = vst [vmem:[#allocation105_spill] sm:$0xff] %v4863_v35  ;;  %6017 = vst [vmem:[#allocation106_spill] sm:$0xff] %v4865_v50  ;;  %v668_v30 = vmul.f32 %v4851_v16, %v4851_v16  ;;  %v670_v46 = vmul.f32 %v4853_v60, %v4853_v60  ;;  %v4903_v60 = vunpack.c.l.bf16 %v415_v3 }
  0x69   : > { %1609 = vmatpush1.msra.mxu0 %v731_v39  ;;  %1686 = vmatpush1.msra.mxu1 %v733_v41  ;;  %v4881_v41 = vunpack.c.l.bf16 %v334_v47  ;;  %v667_v39 = vmul.f32 %v4859_v25, %v4859_v25  ;;  %v669_v61 = vmul.f32 %v4861_v20, %v4861_v20  ;;  %v636_v47 = vmul.f32 %v4863_v35, %v4863_v35 }
  0x6a   : > { %1500 = vmatprep.mubr.f32.mxu0 %v5934_v54  ;;  %1577 = vmatprep.mubr.f32.mxu1 %v5934_v54  ;;  %v4899_v25 = vunpack.c.h.bf16 %v416_v48  ;;  %v635_v20 = vmul.f32 %v4871_v14, %v4871_v14  ;;  %6022 = vst [vmem:[#allocation111_spill] sm:$0xff] %v4903_v60  ;;  %v4905_v16 = vunpack.c.l.bf16 %v416_v48  ;;  %v4911_v35 = vunpack.c.h.bf16 %v399_v17  ;;  %v367_v14 = vld [vmem:[%s4179_s22 + $0x160] sm:$0xff] }
  0x6b   : > { %6019 = vst [vmem:[#allocation108_spill] sm:$0xff] %v4881_v41  ;;  %1610 = vmatprep.subr.mxu0 %v700_v62  ;;  %1687 = vmatprep.subr.mxu1 %v702_v59  ;;  %v638_v62 = vmul.f32 %v4865_v50, %v4865_v50  ;;  %v4897_v59 = vunpack.c.h.bf16 %v415_v3  ;;  %v637_v50 = vmul.f32 %v4881_v41, %v4881_v41  ;;  %v4917_v3 = vunpack.c.l.bf16 %v400_v40 }
  0x6c   : > { %3830 = vmatmul.mubr.msk.f32.gmra.mxu0 %vm807_vm0, %v4383_v22  ;;  %3832 = vmatmul.mubr.msk.f32.gmra.mxu1 %vm807_vm0, %v4383_v22  ;;  %6021 = vst [vmem:[#allocation110_spill] sm:$0xff] %v4899_v25  ;;  %6023 = vst [vmem:[#allocation112_spill] sm:$0xff] %v4905_v16  ;;  %v4925_v41 = vunpack.c.h.bf16 %v384_v55 }
  0x6d   : > { %6020 = vst [vmem:[#allocation109_spill] sm:$0xff] %v4897_v59  ;;  %1611 = vmatpush1.msra.mxu0 %v699_v45  ;;  %1688 = vmatpush1.msra.mxu1 %v701_v21  ;;  %6024 = vst [vmem:[#allocation113_spill] sm:$0xff] %v4911_v35  ;;  %v4913_v45 = vunpack.c.h.bf16 %v400_v40  ;;  %v4915_v21 = vunpack.c.l.bf16 %v399_v17  ;;  %v800_v48 = vmul.f32 %v4897_v59, %v4897_v59 }
  0x6e   : > { %1612 = vmatprep.subr.mxu0 %v668_v30  ;;  %1689 = vmatprep.subr.mxu1 %v670_v46  ;;  %6027 = vst [vmem:[#allocation116_spill] sm:$0xff] %v4917_v3  ;;  %v802_v30 = vmul.f32 %v4899_v25, %v4899_v25  ;;  %v4923_v46 = vunpack.c.h.bf16 %v383_v0  ;;  %6029 = vst [vmem:[#allocation118_spill] sm:$0xff] %v4925_v41  ;;  %v799_v40 = vmul.f32 %v4903_v60, %v4903_v60 }
  0x6f   : > { %6025 = vst [vmem:[#allocation114_spill] sm:$0xff] %v4913_v45  ;;  %1613 = vmatpush1.msra.mxu0 %v667_v39  ;;  %1690 = vmatpush1.msra.mxu1 %v669_v61  ;;  %6026 = vst [vmem:[#allocation115_spill] sm:$0xff] %v4915_v21  ;;  %v801_v17 = vmul.f32 %v4905_v16, %v4905_v16  ;;  %v4934_v39 = vunpack.c.l.bf16 %v383_v0  ;;  %v4936_v61 = vunpack.c.l.bf16 %v384_v55  ;;  %v4965_v60 = vunpack.c.l.bf16 %v367_v14 }
  0x70   : > { %1614 = vmatprep.subr.mxu0 %v636_v47  ;;  %1691 = vmatprep.subr.mxu1 %v638_v62  ;;  %6028 = vst [vmem:[#allocation117_spill] sm:$0xff] %v4923_v46  ;;  %v770_v47 = vmul.f32 %v4913_v45, %v4913_v45  ;;  %v767_v0 = vmul.f32 %v4915_v21, %v4915_v21  ;;  %v4953_v62 = vunpack.c.h.bf16 %v368_v2  ;;  %v352_v45 = vld [vmem:[%s4179_s22 + $0xe8] sm:$0xff]  ;;  %v4967_v25 = vunpack.c.l.bf16 %v368_v2 }
  0x71   : > { %1615 = vmatpush1.msra.mxu0 %v635_v20  ;;  %1648 = vmatprep.mubr.f32.mxu0 %v5934_v54  ;;  %6030 = vst [vmem:[#allocation119_spill] sm:$0xff] %v4934_v39  ;;  %6031 = vst [vmem:[#allocation120_spill] sm:$0xff] %v4936_v61  ;;  %v768_v20 = vmul.f32 %v4911_v35, %v4911_v35  ;;  %v769_v55 = vmul.f32 %v4917_v3, %v4917_v3  ;;  %v351_v35 = vld [vmem:[%s4179_s22 + $0xe0] sm:$0xff]  ;;  %v4973_v59 = vunpack.c.h.bf16 %v352_v45 }
  0x72   : > { %1692 = vmatpush1.msra.mxu1 %v637_v50  ;;  %1725 = vmatprep.mubr.f32.mxu1 %v5934_v54  ;;  %v4951_v50 = vunpack.c.h.bf16 %v367_v14  ;;  %6033 = vst [vmem:[#allocation122_spill] sm:$0xff] %v4953_v62  ;;  %v736_v16 = vmul.f32 %v4923_v46, %v4923_v46  ;;  %v735_v3 = vmul.f32 %v4934_v39, %v4934_v39  ;;  %6034 = vst [vmem:[#allocation123_spill] sm:$0xff] %v4965_v60 }
  0x73   : > { %3833 = vmatmul.mubr.msk.f32.vlgmr.msra.gmra.mxu0 %vm807_vm0, %v4305_v15  ;;  %3835 = vmatmul.mubr.msk.f32.vlgmr.msra.gmra.mxu1 %vm807_vm0, %v4305_v15  ;;  %v738_v15 = vmul.f32 %v4925_v41, %v4925_v41  ;;  %v737_v21 = vmul.f32 %v4936_v61, %v4936_v61  ;;  %6035 = vst [vmem:[#allocation124_spill] sm:$0xff] %v4967_v25  ;;  %v4971_v46 = vunpack.c.h.bf16 %v351_v35  ;;  %6037 = vst [vmem:[#allocation126_spill] sm:$0xff] %v4973_v59  ;;  %v370_v61 = vld [vmem:[%s4179_s22 + $0x178] sm:$0xff] }
  0x74   : > { %6032 = vst [vmem:[#allocation121_spill] sm:$0xff] %v4951_v50  ;;  %1758 = vmatprep.subr.mxu0 %v800_v48  ;;  %1835 = vmatprep.subr.mxu1 %v802_v30  ;;  %v335_v48 = vld [vmem:[%s4179_s22 + $0x60] sm:$0xff]  ;;  %v336_v30 = vld [vmem:[%s4179_s22 + $0x68] sm:$0xff]  ;;  %v706_v14 = vmul.f32 %v4953_v62, %v4953_v62  ;;  %v4979_v2 = vunpack.c.l.bf16 %v351_v35  ;;  %v418_v62 = vld [vmem:[%s4179_s22 + $0x2f8] sm:$0xff]  ;;  %v5092_v39 = vunpack.c.l.bf16 %v370_v61 }
  0x75   : > { %1759 = vmatpush1.msra.mxu0 %v799_v40  ;;  %1836 = vmatpush1.msra.mxu1 %v801_v17  ;;  %6036 = vst [vmem:[#allocation125_spill] sm:$0xff] %v4971_v46  ;;  %v704_v40 = vmul.f32 %v4951_v50, %v4951_v50  ;;  %v4981_v17 = vunpack.c.l.bf16 %v352_v45  ;;  %v4991_v35 = vunpack.c.l.bf16 %v335_v48  ;;  %v417_v45 = vld [vmem:[%s4179_s22 + $0x2f0] sm:$0xff]  ;;  %v386_v50 = vld [vmem:[%s4179_s22 + $0x1f8] sm:$0xff] }
  0x76   : > { %1760 = vmatprep.subr.mxu0 %v768_v20  ;;  %1837 = vmatprep.subr.mxu1 %v770_v47  ;;  %6038 = vst [vmem:[#allocation127_spill] sm:$0xff] %v4979_v2  ;;  %v4983_v20 = vunpack.c.h.bf16 %v335_v48  ;;  %v4985_v47 = vunpack.c.h.bf16 %v336_v30 }
  0x77   : > { %1761 = vmatpush1.msra.mxu0 %v767_v0  ;;  %1838 = vmatpush1.msra.mxu1 %v769_v55  ;;  %6039 = vst [vmem:[#allocation128_spill] sm:$0xff] %v4981_v17  ;;  %v703_v0 = vmul.f32 %v4965_v60, %v4965_v60  ;;  %v705_v55 = vmul.f32 %v4967_v25, %v4967_v25  ;;  %6042 = vst [vmem:[#allocation131_spill] sm:$0xff] %v4991_v35  ;;  %v401_v25 = vld [vmem:[%s4179_s22 + $0x270] sm:$0xff]  ;;  %v402_v60 = vld [vmem:[%s4179_s22 + $0x278] sm:$0xff] }
  0x78   : > { %1762 = vmatprep.subr.mxu0 %v736_v16  ;;  %1839 = vmatprep.subr.mxu1 %v738_v15  ;;  %6040 = vst [vmem:[#allocation129_spill] sm:$0xff] %v4983_v20  ;;  %6041 = vst [vmem:[#allocation130_spill] sm:$0xff] %v4985_v47  ;;  %v672_v16 = vmul.f32 %v4971_v46, %v4971_v46  ;;  %v671_v15 = vmul.f32 %v4979_v2, %v4979_v2  ;;  %v5019_v2 = vunpack.c.h.bf16 %v418_v62 }
  0x79   : > { %1763 = vmatpush1.msra.mxu0 %v735_v3  ;;  %1840 = vmatpush1.msra.mxu1 %v737_v21  ;;  %v674_v21 = vmul.f32 %v4973_v59, %v4973_v59  ;;  %v5001_v3 = vunpack.c.l.bf16 %v336_v30  ;;  %v673_v48 = vmul.f32 %v4981_v17, %v4981_v17  ;;  %v640_v30 = vmul.f32 %v4983_v20, %v4983_v20 }
  0x7a   : > { %1654 = vmatprep.mubr.f32.mxu0 %v5934_v54  ;;  %1731 = vmatprep.mubr.f32.mxu1 %v5934_v54  ;;  %6045 = vst [vmem:[#allocation134_spill] sm:$0xff] %v5019_v2  ;;  %v639_v17 = vmul.f32 %v4991_v35, %v4991_v35  ;;  %v5023_v59 = vunpack.c.l.bf16 %v417_v45  ;;  %v5025_v46 = vunpack.c.l.bf16 %v418_v62  ;;  %v5031_v20 = vunpack.c.h.bf16 %v401_v25  ;;  %v369_v35 = vld [vmem:[%s4179_s22 + $0x170] sm:$0xff] }
  0x7b   : > { %6043 = vst [vmem:[#allocation132_spill] sm:$0xff] %v5001_v3  ;;  %1764 = vmatprep.subr.mxu0 %v704_v40  ;;  %1841 = vmatprep.subr.mxu1 %v706_v14  ;;  %v642_v40 = vmul.f32 %v4985_v47, %v4985_v47  ;;  %v5017_v14 = vunpack.c.h.bf16 %v417_v45  ;;  %v641_v47 = vmul.f32 %v5001_v3, %v5001_v3  ;;  %v5037_v45 = vunpack.c.l.bf16 %v402_v60 }
  0x7c   : > { %3834 = vmatmul.mubr.msk.f32.gmra.mxu0 %vm807_vm0, %v4383_v22  ;;  %3836 = vmatmul.mubr.msk.f32.gmra.mxu1 %vm807_vm0, %v4383_v22  ;;  %6046 = vst [vmem:[#allocation135_spill] sm:$0xff] %v5023_v59  ;;  %6047 = vst [vmem:[#allocation136_spill] sm:$0xff] %v5025_v46  ;;  %v385_v22 = vld [vmem:[%s4179_s22 + $0x1f0] sm:$0xff]  ;;  %v5045_v3 = vunpack.c.h.bf16 %v386_v50 }
  0x7d   : > { %6044 = vst [vmem:[#allocation133_spill] sm:$0xff] %v5017_v14  ;;  %1765 = vmatpush1.msra.mxu0 %v703_v0  ;;  %1842 = vmatpush1.msra.mxu1 %v705_v55  ;;  %6048 = vst [vmem:[#allocation137_spill] sm:$0xff] %v5031_v20  ;;  %v5033_v0 = vunpack.c.h.bf16 %v402_v60  ;;  %v5035_v55 = vunpack.c.l.bf16 %v401_v25  ;;  %v804_v62 = vmul.f32 %v5017_v14, %v5017_v14  ;;  %v5090_v14 = vunpack.c.l.bf16 %v369_v35 }
  0x7e   : > { %1766 = vmatprep.subr.mxu0 %v672_v16  ;;  %1843 = vmatprep.subr.mxu1 %v674_v21  ;;  %6051 = vst [vmem:[#allocation140_spill] sm:$0xff] %v5037_v45  ;;  %v806_v16 = vmul.f32 %v5019_v2, %v5019_v2  ;;  %v5043_v21 = vunpack.c.h.bf16 %v385_v22  ;;  %v803_v60 = vmul.f32 %v5023_v59, %v5023_v59 }
  0x7f   : > { %6049 = vst [vmem:[#allocation138_spill] sm:$0xff] %v5033_v0  ;;  %1767 = vmatpush1.msra.mxu0 %v671_v15  ;;  %1844 = vmatpush1.msra.mxu1 %v673_v48  ;;  %6050 = vst [vmem:[#allocation139_spill] sm:$0xff] %v5035_v55  ;;  %v805_v25 = vmul.f32 %v5025_v46, %v5025_v46  ;;  %v5054_v15 = vunpack.c.l.bf16 %v385_v22  ;;  %v5056_v48 = vunpack.c.l.bf16 %v386_v50  ;;  %v5076_v22 = vunpack.c.h.bf16 %v369_v35  ;;  %v354_v46 = vld [vmem:[%s4179_s22 + $0xf8] sm:$0xff] }
  0x80   : > { %1768 = vmatprep.subr.mxu0 %v640_v30  ;;  %1845 = vmatprep.subr.mxu1 %v642_v40  ;;  %6052 = vst [vmem:[#allocation141_spill] sm:$0xff] %v5043_v21  ;;  %v774_v30 = vmul.f32 %v5033_v0, %v5033_v0  ;;  %v5066_v40 = vld [vmem:[%s5766_s2] sm:$0xff]  ;;  %v771_v50 = vmul.f32 %v5035_v55, %v5035_v55  ;;  %v5078_v0 = vunpack.c.h.bf16 %v370_v61  ;;  %v5098_v41 = vunpack.c.h.bf16 %v354_v46 }
  0x81   : > { %1769 = vmatpush1.msra.mxu0 %v639_v17  ;;  %1802 = vmatprep.mubr.f32.mxu0 %v5934_v54  ;;  %v772_v17 = vmul.f32 %v5031_v20, %v5031_v20  ;;  %6053 = vst [vmem:[#allocation142_spill] sm:$0xff] %v5076_v22  ;;  %v353_v20 = vld [vmem:[%s4179_s22 + $0xf0] sm:$0xff]  ;;  %v740_v59 = vmul.f32 %v5043_v21, %v5043_v21  ;;  %v5106_v61 = vunpack.c.l.bf16 %v354_v46 }
  0x82   : > { %1846 = vmatpush1.msra.mxu1 %v641_v47  ;;  %1879 = vmatprep.mubr.f32.mxu1 %v5934_v54  ;;  %v773_v47 = vmul.f32 %v5037_v45, %v5037_v45  ;;  %v742_v2 = vmul.f32 %v5045_v3, %v5045_v3  ;;  %v739_v45 = vmul.f32 %v5054_v15, %v5054_v15  ;;  %v5096_v21 = vunpack.c.h.bf16 %v353_v20 }
  0x83   : > { %3837 = vmatmul.mubr.msk.f32.vlgmr.msra.gmra.mxu0 %vm807_vm0, %v5066_v40  ;;  %3839 = vmatmul.mubr.msk.f32.vlgmr.msra.gmra.mxu1 %vm807_vm0, %v5066_v40  ;;  %v741_v55 = vmul.f32 %v5056_v48, %v5056_v48  ;;  %v5104_v35 = vunpack.c.l.bf16 %v353_v20  ;;  %v678_v46 = vmul.f32 %v5098_v41, %v5098_v41 }
  0x84   : > { %1912 = vmatprep.subr.mxu0 %v804_v62  ;;  %1989 = vmatprep.subr.mxu1 %v806_v16  ;;  %v337_v62 = vld [vmem:[%s4179_s22 + $0x70] sm:$0xff]  ;;  %v338_v16 = vld [vmem:[%s4179_s22 + $0x78] sm:$0xff] }
  0x85   : > { %1913 = vmatpush1.msra.mxu0 %v803_v60  ;;  %1990 = vmatpush1.msra.mxu1 %v805_v25  ;;  %v708_v60 = vmul.f32 %v5076_v22, %v5076_v22  ;;  %v710_v25 = vmul.f32 %v5078_v0, %v5078_v0  ;;  %v5116_v22 = vunpack.c.l.bf16 %v337_v62  ;;  %v675_v20 = vmul.f32 %v5104_v35, %v5104_v35 }
  0x86   : > { %1914 = vmatprep.subr.mxu0 %v772_v17  ;;  %1991 = vmatprep.subr.mxu1 %v774_v30  ;;  %v5108_v17 = vunpack.c.h.bf16 %v337_v62  ;;  %v5110_v30 = vunpack.c.h.bf16 %v338_v16 }
  0x87   : > { %1915 = vmatpush1.msra.mxu0 %v771_v50  ;;  %1992 = vmatpush1.msra.mxu1 %v773_v47  ;;  %v707_v50 = vmul.f32 %v5090_v14, %v5090_v14  ;;  %v709_v47 = vmul.f32 %v5092_v39, %v5092_v39 }
  0x88   : > { %1916 = vmatprep.subr.mxu0 %v740_v59  ;;  %1993 = vmatprep.subr.mxu1 %v742_v2  ;;  %v676_v59 = vmul.f32 %v5096_v21, %v5096_v21  ;;  %v5124_v2 = vunpack.c.l.bf16 %v338_v16  ;;  %v644_v62 = vmul.f32 %v5108_v17, %v5108_v17  ;;  %v646_v16 = vmul.f32 %v5110_v30, %v5110_v30 }
  0x89   : > { %1917 = vmatpush1.msra.mxu0 %v739_v45  ;;  %1994 = vmatpush1.msra.mxu1 %v741_v55  ;;  %v677_v55 = vmul.f32 %v5106_v61, %v5106_v61  ;;  %v4101_v45 = vld [vmem:[%s5766_s2 + $0x8] sm:$0xff] }
  0x8a   : > { %1808 = vmatprep.mubr.f32.mxu0 %v5934_v54  ;;  %1885 = vmatprep.mubr.f32.mxu1 %v5934_v54 }
  0x8b   : > { %1918 = vmatprep.subr.mxu0 %v708_v60  ;;  %1995 = vmatprep.subr.mxu1 %v710_v25  ;;  %v643_v60 = vmul.f32 %v5116_v22, %v5116_v22  ;;  %v645_v25 = vmul.f32 %v5124_v2, %v5124_v2 }
  0x8c   : > { %3838 = vmatmul.mubr.msk.f32.gmra.mxu0 %vm807_vm0, %v4101_v45  ;;  %3840 = vmatmul.mubr.msk.f32.gmra.mxu1 %vm807_vm0, %v4101_v45 }
  0x8d   : > { %1919 = vmatpush1.msra.mxu0 %v707_v50  ;;  %1996 = vmatpush1.msra.mxu1 %v709_v47  ;;  %v6089_v50 = vld [vmem:[#allocation37_spill] sm:$0xff]  ;;  %v6090_v47 = vld [vmem:[#allocation38_spill] sm:$0xff] }
  0x8e   : > { %1920 = vmatprep.subr.mxu0 %v676_v59  ;;  %1997 = vmatprep.subr.mxu1 %v678_v46  ;;  %v6091_v59 = vld [vmem:[#allocation39_spill] sm:$0xff]  ;;  %v6092_v46 = vld [vmem:[#allocation40_spill] sm:$0xff] }
  0x8f   : > { %1921 = vmatpush1.msra.mxu0 %v675_v20  ;;  %1998 = vmatpush1.msra.mxu1 %v677_v55  ;;  %v6093_v20 = vld [vmem:[#allocation41_spill] sm:$0xff]  ;;  %v6094_v55 = vld [vmem:[#allocation42_spill] sm:$0xff] }
  0x90   : > { %1922 = vmatprep.subr.mxu0 %v644_v62  ;;  %1999 = vmatprep.subr.mxu1 %v646_v16  ;;  %v6096_v62 = vld [vmem:[#allocation44_spill] sm:$0xff]  ;;  %v6097_v16 = vld [vmem:[#allocation45_spill] sm:$0xff] }
  0x91   : > { %1923 = vmatpush1.msra.mxu0 %v643_v60  ;;  %1956 = vmatprep.mubr.f32.mxu0 %v5934_v54  ;;  %v6098_v60 = vld [vmem:[#allocation46_spill] sm:$0xff] }
  0x92   : > { %2000 = vmatpush1.msra.mxu1 %v645_v25  ;;  %2033 = vmatprep.mubr.f32.mxu1 %v5934_v54  ;;  %v6099_v25 = vld [vmem:[#allocation47_spill] sm:$0xff] }
  0x93   : > { %3841 = vmatmul.mubr.msk.f32.vlgmr.msra.gmra.mxu0 %vm807_vm0, %v5066_v40  ;;  %3843 = vmatmul.mubr.msk.f32.vlgmr.msra.gmra.mxu1 %vm807_vm0, %v5066_v40  ;;  %v6088_v40 = vld [vmem:[#allocation36_spill] sm:$0xff] }
  0x94   : > { %2072 = vmatprep.subr.mxu0 %v4184_v4  ;;  %2149 = vmatprep.subr.mxu1 %v4186_v5  ;;  %v5178_v4 = vld [vmem:[%s5765_s1] sm:$0xff]  ;;  %v5197_v5 = vld [vmem:[%s5765_s1 + $0x8] sm:$0xff] }
  0x95   : > { %2073 = vmatpush1.msra.mxu0 %v4188_v6  ;;  %2150 = vmatpush1.msra.mxu1 %v4190_v7  ;;  %v6054_v6 = vld [vmem:[#allocation3_spill] sm:$0xff]  ;;  %v6055_v7 = vld [vmem:[#allocation5_spill] sm:$0xff] }
  0x96   : > { %2074 = vmatprep.subr.mxu0 %v4193_v9  ;;  %2151 = vmatprep.subr.mxu1 %v4195_v10  ;;  %v6056_v9 = vld [vmem:[#allocation2_spill] sm:$0xff]  ;;  %v6057_v10 = vld [vmem:[#allocation4_spill] sm:$0xff] }
  0x97   : > { %2075 = vmatpush1.msra.mxu0 %v4197_v11  ;;  %2152 = vmatpush1.msra.mxu1 %v4199_v12  ;;  %v6058_v11 = vld [vmem:[#allocation6_spill] sm:$0xff]  ;;  %v6059_v12 = vld [vmem:[#allocation9_spill] sm:$0xff] }
  0x98   : > { %2076 = vmatprep.subr.mxu0 %v4222_v26  ;;  %2153 = vmatprep.subr.mxu1 %v4224_v27  ;;  %v6060_v26 = vld [vmem:[#allocation7_spill] sm:$0xff]  ;;  %v6061_v27 = vld [vmem:[#allocation8_spill] sm:$0xff] }
  0x99   : > { %2077 = vmatpush1.msra.mxu0 %v4226_v28  ;;  %2154 = vmatpush1.msra.mxu1 %v4228_v29  ;;  %v6062_v28 = vld [vmem:[#allocation10_spill] sm:$0xff]  ;;  %v6063_v29 = vld [vmem:[#allocation12_spill] sm:$0xff] }
  0x9a   : > { %1962 = vmatprep.mubr.f32.mxu0 %v5934_v54  ;;  %2039 = vmatprep.mubr.f32.mxu1 %v5934_v54 }
  0x9b   : > { %2078 = vmatprep.subr.mxu0 %v4231_v31  ;;  %2155 = vmatprep.subr.mxu1 %v4233_v32  ;;  %v6064_v31 = vld [vmem:[#allocation11_spill] sm:$0xff]  ;;  %v6065_v32 = vld [vmem:[#allocation13_spill] sm:$0xff] }
  0x9c   : > { %3842 = vmatmul.mubr.msk.f32.gmra.mxu0 %vm807_vm0, %v4101_v45  ;;  %3844 = vmatmul.mubr.msk.f32.gmra.mxu1 %vm807_vm0, %v4101_v45  ;;  %v6095_v45 = vld [vmem:[#allocation43_spill] sm:$0xff] }
  0x9d   : > { %2079 = vmatpush1.msra.mxu0 %v4235_v33  ;;  %2156 = vmatpush1.msra.mxu1 %v4237_v34  ;;  %v6066_v33 = vld [vmem:[#allocation14_spill] sm:$0xff]  ;;  %v6067_v34 = vld [vmem:[#allocation15_spill] sm:$0xff] }
  0x9e   : > { %2080 = vmatprep.subr.mxu0 %v4245_v38  ;;  %2157 = vmatprep.subr.mxu1 %v4255_v44  ;;  %v6068_v38 = vld [vmem:[#allocation16_spill] sm:$0xff]  ;;  %v6069_v44 = vld [vmem:[#allocation17_spill] sm:$0xff] }
  0x9f   : > { %2081 = vmatpush1.msra.mxu0 %v4264_v49  ;;  %2158 = vmatpush1.msra.mxu1 %v4268_v51  ;;  %v6070_v49 = vld [vmem:[#allocation18_spill] sm:$0xff]  ;;  %v6071_v51 = vld [vmem:[#allocation19_spill] sm:$0xff] }
  0xa0   : > { %2082 = vmatprep.subr.mxu0 %v4270_v52  ;;  %2159 = vmatprep.subr.mxu1 %v4272_v53  ;;  %v6072_v52 = vld [vmem:[#allocation20_spill] sm:$0xff]  ;;  %v6073_v53 = vld [vmem:[#allocation21_spill] sm:$0xff] }
  0xa1   : > { %2083 = vmatpush1.msra.mxu0 %v4277_v56  ;;  %2116 = vmatprep.mubr.f32.mxu0 %v5934_v54  ;;  %v6074_v56 = vld [vmem:[#allocation22_spill] sm:$0xff] }
  0xa2   : > { %2160 = vmatpush1.msra.mxu1 %v4279_v57  ;;  %2193 = vmatprep.mubr.f32.mxu1 %v5934_v54  ;;  %v6075_v57 = vld [vmem:[#allocation23_spill] sm:$0xff] }
  0xa3   : > { %3845 = vmatmul.mubr.msk.f32.vlgmr.msra.gmra.mxu0 %vm807_vm0, %v5178_v4  ;;  %3847 = vmatmul.mubr.msk.f32.vlgmr.msra.gmra.mxu1 %vm807_vm0, %v5178_v4 }
  0xa4   : > { %2226 = vmatprep.subr.mxu0 %v4290_v63  ;;  %2303 = vmatprep.subr.mxu1 %v4299_v13  ;;  %v6077_v63 = vld [vmem:[#allocation25_spill] sm:$0xff]  ;;  %v6079_v13 = vld [vmem:[#allocation27_spill] sm:$0xff] }
  0xa5   : > { %2227 = vmatpush1.msra.mxu0 %v4281_v58  ;;  %2304 = vmatpush1.msra.mxu1 %v4297_v8  ;;  %v6076_v58 = vld [vmem:[#allocation24_spill] sm:$0xff]  ;;  %v6078_v8 = vld [vmem:[#allocation26_spill] sm:$0xff] }
  0xa6   : > { %2228 = vmatprep.subr.mxu0 %v4313_v19  ;;  %2305 = vmatprep.subr.mxu1 %v4322_v24  ;;  %v6081_v19 = vld [vmem:[#allocation29_spill] sm:$0xff]  ;;  %v6083_v24 = vld [vmem:[#allocation31_spill] sm:$0xff] }
  0xa7   : > { %2122 = vmatprep.mubr.f32.mxu0 %v5934_v54  ;;  %2199 = vmatprep.mubr.f32.mxu1 %v5934_v54 }
  0xa8   : > { %2229 = vmatpush1.msra.mxu0 %v4311_v18  ;;  %2306 = vmatpush1.msra.mxu1 %v4320_v23  ;;  %v6080_v18 = vld [vmem:[#allocation28_spill] sm:$0xff]  ;;  %v6082_v23 = vld [vmem:[#allocation30_spill] sm:$0xff] }
  0xa9   : > { %3846 = vmatmul.mubr.msk.f32.gmra.mxu0 %vm807_vm0, %v5197_v5  ;;  %3848 = vmatmul.mubr.msk.f32.gmra.mxu1 %vm807_vm0, %v5197_v5 }
  0xaa   : > { %2230 = vmatprep.subr.mxu0 %v4331_v37  ;;  %2307 = vmatprep.subr.mxu1 %v4344_v43  ;;  %v6085_v37 = vld [vmem:[#allocation33_spill] sm:$0xff]  ;;  %v6087_v43 = vld [vmem:[#allocation35_spill] sm:$0xff] }
  0xab   : > { %2231 = vmatpush1.msra.mxu0 %v4329_v36  ;;  %2308 = vmatpush1.msra.mxu1 %v4342_v42  ;;  %v6084_v36 = vld [vmem:[#allocation32_spill] sm:$0xff]  ;;  %v6086_v42 = vld [vmem:[#allocation34_spill] sm:$0xff] }
  0xac   : > { %2232 = vmatprep.subr.mxu0 %v6054_v6  ;;  %2309 = vmatprep.subr.mxu1 %v6055_v7  ;;  %v6100_v6 = vld [vmem:[#allocation48_spill] sm:$0xff]  ;;  %v6101_v7 = vld [vmem:[#allocation49_spill] sm:$0xff] }
  0xad   : > { %2233 = vmatpush1.msra.mxu0 %v6056_v9  ;;  %2310 = vmatpush1.msra.mxu1 %v6057_v10  ;;  %v6102_v9 = vld [vmem:[#allocation50_spill] sm:$0xff]  ;;  %v6103_v10 = vld [vmem:[#allocation51_spill] sm:$0xff] }
  0xae   : > { %2234 = vmatprep.subr.mxu0 %v6058_v11  ;;  %2311 = vmatprep.subr.mxu1 %v6059_v12  ;;  %v6104_v11 = vld [vmem:[#allocation52_spill] sm:$0xff]  ;;  %v6105_v12 = vld [vmem:[#allocation53_spill] sm:$0xff] }
  0xaf   : > { %2235 = vmatpush1.msra.mxu0 %v6060_v26  ;;  %2312 = vmatpush1.msra.mxu1 %v6061_v27  ;;  %v6106_v26 = vld [vmem:[#allocation54_spill] sm:$0xff]  ;;  %v6107_v27 = vld [vmem:[#allocation55_spill] sm:$0xff] }
  0xb0   : > { %2236 = vmatprep.subr.mxu0 %v6062_v28  ;;  %2313 = vmatprep.subr.mxu1 %v6063_v29  ;;  %v6108_v28 = vld [vmem:[#allocation56_spill] sm:$0xff]  ;;  %v6109_v29 = vld [vmem:[#allocation57_spill] sm:$0xff] }
  0xb1   : > { %2237 = vmatpush1.msra.mxu0 %v6064_v31  ;;  %2270 = vmatprep.mubr.f32.mxu0 %v5934_v54  ;;  %v6110_v31 = vld [vmem:[#allocation58_spill] sm:$0xff] }
  0xb2   : > { %2314 = vmatpush1.msra.mxu1 %v6065_v32  ;;  %2347 = vmatprep.mubr.f32.mxu1 %v5934_v54  ;;  %v6111_v32 = vld [vmem:[#allocation59_spill] sm:$0xff] }
  0xb3   : > { %3849 = vmatmul.mubr.msk.f32.vlgmr.msra.gmra.mxu0 %vm807_vm0, %v5178_v4  ;;  %3851 = vmatmul.mubr.msk.f32.vlgmr.msra.gmra.mxu1 %vm807_vm0, %v5178_v4 }
  0xb4   : > { %2380 = vmatprep.subr.mxu0 %v6066_v33  ;;  %2457 = vmatprep.subr.mxu1 %v6067_v34  ;;  %v6112_v33 = vld [vmem:[#allocation60_spill] sm:$0xff]  ;;  %v6113_v34 = vld [vmem:[#allocation61_spill] sm:$0xff] }
  0xb5   : > { %2381 = vmatpush1.msra.mxu0 %v6068_v38  ;;  %2458 = vmatpush1.msra.mxu1 %v6069_v44  ;;  %v6114_v38 = vld [vmem:[#allocation62_spill] sm:$0xff]  ;;  %v6115_v44 = vld [vmem:[#allocation63_spill] sm:$0xff] }
  0xb6   : > { %2382 = vmatprep.subr.mxu0 %v6070_v49  ;;  %2459 = vmatprep.subr.mxu1 %v6071_v51  ;;  %v6116_v49 = vld [vmem:[#allocation64_spill] sm:$0xff]  ;;  %v6117_v51 = vld [vmem:[#allocation65_spill] sm:$0xff] }
  0xb7   : > { %2276 = vmatprep.mubr.f32.mxu0 %v5934_v54  ;;  %2353 = vmatprep.mubr.f32.mxu1 %v5934_v54 }
  0xb8   : > { %2383 = vmatpush1.msra.mxu0 %v6072_v52  ;;  %2460 = vmatpush1.msra.mxu1 %v6073_v53  ;;  %v6118_v52 = vld [vmem:[#allocation66_spill] sm:$0xff]  ;;  %v6119_v53 = vld [vmem:[#allocation67_spill] sm:$0xff] }
  0xb9   : > { %3850 = vmatmul.mubr.msk.f32.gmra.mxu0 %vm807_vm0, %v5197_v5  ;;  %3852 = vmatmul.mubr.msk.f32.gmra.mxu1 %vm807_vm0, %v5197_v5 }
  0xba   : > { %2384 = vmatprep.subr.mxu0 %v6074_v56  ;;  %2461 = vmatprep.subr.mxu1 %v6075_v57  ;;  %v6120_v56 = vld [vmem:[#allocation68_spill] sm:$0xff]  ;;  %v6121_v57 = vld [vmem:[#allocation69_spill] sm:$0xff] }
  0xbb   : > { %2385 = vmatpush1.msra.mxu0 %v6076_v58  ;;  %2462 = vmatpush1.msra.mxu1 %v6077_v63  ;;  %v6122_v58 = vld [vmem:[#allocation70_spill] sm:$0xff]  ;;  %v6123_v63 = vld [vmem:[#allocation71_spill] sm:$0xff] }
  0xbc   : > { %2386 = vmatprep.subr.mxu0 %v6078_v8  ;;  %2463 = vmatprep.subr.mxu1 %v6079_v13  ;;  %v6124_v8 = vld [vmem:[#allocation72_spill] sm:$0xff]  ;;  %v6125_v13 = vld [vmem:[#allocation73_spill] sm:$0xff] }
  0xbd   : > { %2387 = vmatpush1.msra.mxu0 %v6080_v18  ;;  %2464 = vmatpush1.msra.mxu1 %v6081_v19  ;;  %v6126_v18 = vld [vmem:[#allocation74_spill] sm:$0xff]  ;;  %v6127_v19 = vld [vmem:[#allocation75_spill] sm:$0xff] }
  0xbe   : > { %2388 = vmatprep.subr.mxu0 %v6082_v23  ;;  %2465 = vmatprep.subr.mxu1 %v6083_v24  ;;  %v6128_v23 = vld [vmem:[#allocation76_spill] sm:$0xff]  ;;  %v6129_v24 = vld [vmem:[#allocation77_spill] sm:$0xff] }
  0xbf   : > { %2389 = vmatpush1.msra.mxu0 %v6084_v36  ;;  %2466 = vmatpush1.msra.mxu1 %v6085_v37  ;;  %v6130_v36 = vld [vmem:[#allocation78_spill] sm:$0xff]  ;;  %v6131_v37 = vld [vmem:[#allocation79_spill] sm:$0xff] }
  0xc0   : > { %2390 = vmatprep.subr.mxu0 %v6086_v42  ;;  %2467 = vmatprep.subr.mxu1 %v6087_v43  ;;  %v6132_v42 = vld [vmem:[#allocation80_spill] sm:$0xff]  ;;  %v6133_v43 = vld [vmem:[#allocation81_spill] sm:$0xff] }
  0xc1   : > { %2391 = vmatpush1.msra.mxu0 %v6088_v40  ;;  %2424 = vmatprep.mubr.f32.mxu0 %v5934_v54  ;;  %v6134_v40 = vld [vmem:[#allocation82_spill] sm:$0xff] }
  0xc2   : > { %2468 = vmatpush1.msra.mxu1 %v6089_v50  ;;  %2501 = vmatprep.mubr.f32.mxu1 %v5934_v54  ;;  %v6135_v50 = vld [vmem:[#allocation83_spill] sm:$0xff] }
  0xc3   : > { %3853 = vmatmul.mubr.msk.f32.vlgmr.msra.gmra.mxu0 %vm807_vm0, %v5178_v4  ;;  %3855 = vmatmul.mubr.msk.f32.vlgmr.msra.gmra.mxu1 %vm807_vm0, %v5178_v4 }
  0xc4   : > { %2534 = vmatprep.subr.mxu0 %v6090_v47  ;;  %2611 = vmatprep.subr.mxu1 %v6091_v59  ;;  %v6136_v47 = vld [vmem:[#allocation84_spill] sm:$0xff]  ;;  %v6137_v59 = vld [vmem:[#allocation85_spill] sm:$0xff] }
  0xc5   : > { %2535 = vmatpush1.msra.mxu0 %v6092_v46  ;;  %2612 = vmatpush1.msra.mxu1 %v6093_v20  ;;  %v6138_v46 = vld [vmem:[#allocation86_spill] sm:$0xff]  ;;  %v6139_v20 = vld [vmem:[#allocation87_spill] sm:$0xff] }
  0xc6   : > { %2536 = vmatprep.subr.mxu0 %v6094_v55  ;;  %2613 = vmatprep.subr.mxu1 %v6095_v45  ;;  %v6140_v55 = vld [vmem:[#allocation88_spill] sm:$0xff]  ;;  %v6141_v45 = vld [vmem:[#allocation89_spill] sm:$0xff] }
  0xc7   : > { %2430 = vmatprep.mubr.f32.mxu0 %v5934_v54  ;;  %2507 = vmatprep.mubr.f32.mxu1 %v5934_v54 }
  0xc8   : > { %2537 = vmatpush1.msra.mxu0 %v6096_v62  ;;  %2614 = vmatpush1.msra.mxu1 %v6097_v16  ;;  %v6142_v62 = vld [vmem:[#allocation90_spill] sm:$0xff]  ;;  %v6143_v16 = vld [vmem:[#allocation91_spill] sm:$0xff] }
  0xc9   : > { %3854 = vmatmul.mubr.msk.f32.gmra.mxu0 %vm807_vm0, %v5197_v5  ;;  %3856 = vmatmul.mubr.msk.f32.gmra.mxu1 %vm807_vm0, %v5197_v5 }
  0xca   : > { %2538 = vmatprep.subr.mxu0 %v6098_v60  ;;  %2615 = vmatprep.subr.mxu1 %v6099_v25  ;;  %v6144_v60 = vld [vmem:[#allocation92_spill] sm:$0xff]  ;;  %v6145_v25 = vld [vmem:[#allocation93_spill] sm:$0xff] }
  0xcb   : > { %2539 = vmatpush1.msra.mxu0 %v6100_v6  ;;  %2616 = vmatpush1.msra.mxu1 %v6101_v7  ;;  %v6146_v6 = vld [vmem:[#allocation94_spill] sm:$0xff]  ;;  %v6147_v7 = vld [vmem:[#allocation95_spill] sm:$0xff] }
  0xcc   : > { %2540 = vmatprep.subr.mxu0 %v6102_v9  ;;  %2617 = vmatprep.subr.mxu1 %v6103_v10  ;;  %v6148_v9 = vld [vmem:[#allocation96_spill] sm:$0xff]  ;;  %v6149_v10 = vld [vmem:[#allocation97_spill] sm:$0xff] }
  0xcd   : > { %2541 = vmatpush1.msra.mxu0 %v6104_v11  ;;  %2618 = vmatpush1.msra.mxu1 %v6105_v12  ;;  %v6150_v11 = vld [vmem:[#allocation98_spill] sm:$0xff]  ;;  %v6151_v12 = vld [vmem:[#allocation99_spill] sm:$0xff] }
  0xce   : > { %2542 = vmatprep.subr.mxu0 %v6106_v26  ;;  %2619 = vmatprep.subr.mxu1 %v6107_v27  ;;  %v6152_v26 = vld [vmem:[#allocation100_spill] sm:$0xff]  ;;  %v6153_v27 = vld [vmem:[#allocation101_spill] sm:$0xff] }
  0xcf   : > { %2543 = vmatpush1.msra.mxu0 %v6108_v28  ;;  %2620 = vmatpush1.msra.mxu1 %v6109_v29  ;;  %v6154_v28 = vld [vmem:[#allocation102_spill] sm:$0xff]  ;;  %v6155_v29 = vld [vmem:[#allocation103_spill] sm:$0xff] }
  0xd0   : > { %2544 = vmatprep.subr.mxu0 %v6110_v31  ;;  %2621 = vmatprep.subr.mxu1 %v6111_v32  ;;  %v6156_v31 = vld [vmem:[#allocation104_spill] sm:$0xff]  ;;  %v6158_v32 = vld [vmem:[#allocation106_spill] sm:$0xff] }
  0xd1   : > { %2545 = vmatpush1.msra.mxu0 %v6112_v33  ;;  %2578 = vmatprep.mubr.f32.mxu0 %v5934_v54  ;;  %v6159_v33 = vld [vmem:[#allocation107_spill] sm:$0xff] }
  0xd2   : > { %2622 = vmatpush1.msra.mxu1 %v6113_v34  ;;  %2655 = vmatprep.mubr.f32.mxu1 %v5934_v54  ;;  %v6160_v34 = vld [vmem:[#allocation108_spill] sm:$0xff] }
  0xd3   : > { %3857 = vmatmul.mubr.msk.f32.vlgmr.msra.gmra.mxu0 %vm807_vm0, %v5178_v4  ;;  %3859 = vmatmul.mubr.msk.f32.vlgmr.msra.gmra.mxu1 %vm807_vm0, %v5178_v4 }
  0xd4   : > { %2688 = vmatprep.subr.mxu0 %v6114_v38  ;;  %2765 = vmatprep.subr.mxu1 %v6115_v44  ;;  %v6161_v38 = vld [vmem:[#allocation109_spill] sm:$0xff]  ;;  %v6162_v44 = vld [vmem:[#allocation110_spill] sm:$0xff] }
  0xd5   : > { %2689 = vmatpush1.msra.mxu0 %v6116_v49  ;;  %2766 = vmatpush1.msra.mxu1 %v6117_v51  ;;  %v6163_v49 = vld [vmem:[#allocation111_spill] sm:$0xff]  ;;  %v6164_v51 = vld [vmem:[#allocation112_spill] sm:$0xff] }
  0xd6   : > { %2690 = vmatprep.subr.mxu0 %v6118_v52  ;;  %2767 = vmatprep.subr.mxu1 %v6119_v53  ;;  %v6165_v52 = vld [vmem:[#allocation113_spill] sm:$0xff]  ;;  %v6166_v53 = vld [vmem:[#allocation114_spill] sm:$0xff] }
  0xd7   : > { %2584 = vmatprep.mubr.f32.mxu0 %v5934_v54  ;;  %2661 = vmatprep.mubr.f32.mxu1 %v5934_v54 }
  0xd8   : > { %2691 = vmatpush1.msra.mxu0 %v6120_v56  ;;  %2768 = vmatpush1.msra.mxu1 %v6121_v57  ;;  %v6167_v57 = vld [vmem:[#allocation115_spill] sm:$0xff] }
  0xd9   : > { %3858 = vmatmul.mubr.msk.f32.gmra.mxu0 %vm807_vm0, %v5197_v5  ;;  %3860 = vmatmul.mubr.msk.f32.gmra.mxu1 %vm807_vm0, %v5197_v5 }
  0xda   : > { %2692 = vmatprep.subr.mxu0 %v6122_v58  ;;  %2769 = vmatprep.subr.mxu1 %v6123_v63  ;;  %v6168_v58 = vld [vmem:[#allocation116_spill] sm:$0xff] }
  0xdb   : > { %2693 = vmatpush1.msra.mxu0 %v6124_v8  ;;  %2770 = vmatpush1.msra.mxu1 %v6125_v13  ;;  %v6169_v8 = vld [vmem:[#allocation117_spill] sm:$0xff]  ;;  %v6170_v13 = vld [vmem:[#allocation118_spill] sm:$0xff] }
  0xdc   : > { %2694 = vmatprep.subr.mxu0 %v6126_v18  ;;  %2771 = vmatprep.subr.mxu1 %v6127_v19  ;;  %v6171_v18 = vld [vmem:[#allocation119_spill] sm:$0xff]  ;;  %v6172_v19 = vld [vmem:[#allocation120_spill] sm:$0xff] }
  0xdd   : > { %2695 = vmatpush1.msra.mxu0 %v6128_v23  ;;  %2772 = vmatpush1.msra.mxu1 %v6129_v24  ;;  %v6173_v24 = vld [vmem:[#allocation121_spill] sm:$0xff] }
  0xde   : > { %2696 = vmatprep.subr.mxu0 %v6130_v36  ;;  %2773 = vmatprep.subr.mxu1 %v6131_v37  ;;  %v6174_v36 = vld [vmem:[#allocation122_spill] sm:$0xff] }
  0xdf   : > { %2697 = vmatpush1.msra.mxu0 %v6132_v42  ;;  %2774 = vmatpush1.msra.mxu1 %v6133_v43  ;;  %v6175_v42 = vld [vmem:[#allocation123_spill] sm:$0xff]  ;;  %v6176_v43 = vld [vmem:[#allocation124_spill] sm:$0xff] }
  0xe0   : > { %2698 = vmatprep.subr.mxu0 %v6134_v40  ;;  %2775 = vmatprep.subr.mxu1 %v6135_v50  ;;  %v6177_v50 = vld [vmem:[#allocation125_spill] sm:$0xff] }
  0xe1   : > { %2699 = vmatpush1.msra.mxu0 %v6136_v47  ;;  %2732 = vmatprep.mubr.f32.mxu0 %v5934_v54  ;;  %v6178_v47 = vld [vmem:[#allocation126_spill] sm:$0xff] }
  0xe2   : > { %2776 = vmatpush1.msra.mxu1 %v6137_v59  ;;  %2809 = vmatprep.mubr.f32.mxu1 %v5934_v54  ;;  %v3284_v59 = vld [vmem:[%s5767_s3] sm:$0xff] }
  0xe3   : > { %3861 = vmatmul.mubr.msk.f32.vlgmr.msra.gmra.mxu0 %vm807_vm0, %v5178_v4  ;;  %3863 = vmatmul.mubr.msk.f32.vlgmr.msra.gmra.mxu1 %vm807_vm0, %v5178_v4  ;;  %v5381_v56 = vpop.f32.mrf.mxu0  ;;  %v5385_v63 = vpop.f32.mrf.mxu1 }
  0xe4   : > { %2842 = vmatprep.subr.mxu0 %v6138_v46  ;;  %2919 = vmatprep.subr.mxu1 %v6139_v20  ;;  %v6179_v20 = vld [vmem:[#allocation127_spill] sm:$0xff] }
  0xe5   : > { %2843 = vmatpush1.msra.mxu0 %v6140_v55  ;;  %2920 = vmatpush1.msra.mxu1 %v6141_v45  ;;  %v5395_v23 = vpop.f32.mrf.mxu0  ;;  %v5399_v37 = vpop.f32.mrf.mxu1  ;;  %v6180_v55 = vld [vmem:[#allocation128_spill] sm:$0xff]  ;;  %v4127_v45 = vmov 0  }
  0xe6   : > { %2844 = vmatprep.subr.mxu0 %v6142_v62  ;;  %2921 = vmatprep.subr.mxu1 %v6143_v16  ;;  %v6181_v62 = vld [vmem:[#allocation129_spill] sm:$0xff]  ;;  %v6182_v16 = vld [vmem:[#allocation130_spill] sm:$0xff] }
  0xe7   : > { %2738 = vmatprep.mubr.f32.mxu0 %v5934_v54  ;;  %2815 = vmatprep.mubr.f32.mxu1 %v5934_v54 }
  0xe8   : > { %2845 = vmatpush1.msra.mxu0 %v6144_v60  ;;  %2922 = vmatpush1.msra.mxu1 %v6145_v25  ;;  %v6183_v25 = vld [vmem:[#allocation131_spill] sm:$0xff] }
  0xe9   : > { %3862 = vmatmul.mubr.msk.f32.gmra.mxu0 %vm807_vm0, %v5197_v5  ;;  %3864 = vmatmul.mubr.msk.f32.gmra.mxu1 %vm807_vm0, %v5197_v5 }
  0xea   : > { %2846 = vmatprep.subr.mxu0 %v6146_v6  ;;  %2923 = vmatprep.subr.mxu1 %v4805_v1  ;;  %v6157_v1 = vld [vmem:[#allocation105_spill] sm:$0xff] }
  0xeb   : > { %2847 = vmatpush1.msra.mxu0 %v6147_v7  ;;  %2924 = vmatpush1.msra.mxu1 %v6148_v9  ;;  %v6184_v7 = vld [vmem:[#allocation132_spill] sm:$0xff]  ;;  %v6185_v9 = vld [vmem:[#allocation133_spill] sm:$0xff] }
  0xec   : > { %2848 = vmatprep.subr.mxu0 %v6149_v10  ;;  %2925 = vmatprep.subr.mxu1 %v6150_v11  ;;  %v5403_v40 = vpop.f32.mrf.mxu0  ;;  %v5410_v46 = vpop.f32.mrf.mxu1  ;;  %v6186_v10 = vld [vmem:[#allocation134_spill] sm:$0xff]  ;;  %v3285_v11 = vld [vmem:[%s5767_s3 + $0x8] sm:$0xff] }
  0xed   : > { %2849 = vmatpush1.msra.mxu0 %v6151_v12  ;;  %2926 = vmatpush1.msra.mxu1 %v6152_v26  ;;  %v6187_v26 = vld [vmem:[#allocation135_spill] sm:$0xff] }
  0xee   : > { %2850 = vmatprep.subr.mxu0 %v6153_v27  ;;  %2927 = vmatprep.subr.mxu1 %v6154_v28  ;;  %v5416_v60 = vpop.f32.mrf.mxu0  ;;  %v5420_v6 = vpop.f32.mrf.mxu1  ;;  %v6188_v27 = vld [vmem:[#allocation136_spill] sm:$0xff] }
  0xef   : > { %2851 = vmatpush1.msra.mxu0 %v6155_v29  ;;  %2928 = vmatpush1.msra.mxu1 %v6156_v31  ;;  %v6189_v29 = vld [vmem:[#allocation137_spill] sm:$0xff]  ;;  %v6190_v31 = vld [vmem:[#allocation138_spill] sm:$0xff] }
  0xf0   : > { %2852 = vmatprep.subr.mxu0 %v6157_v1  ;;  %2929 = vmatprep.subr.mxu1 %v6158_v32  ;;  %v6191_v1 = vld [vmem:[#allocation139_spill] sm:$0xff] }
  0xf1   : > { %2853 = vmatpush1.msra.mxu0 %v6159_v33  ;;  %2886 = vmatprep.mubr.f32.mxu0 %v5934_v54  ;;  %v6192_v33 = vld [vmem:[#allocation140_spill] sm:$0xff] }
  0xf2   : > { %2930 = vmatpush1.msra.mxu1 %v6160_v34  ;;  %2963 = vmatprep.mubr.f32.mxu1 %v5934_v54 }
  0xf3   : > { %3865 = vmatmul.mubr.msk.f32.vlgmr.msra.gmra.mxu0 %vm807_vm0, %v5178_v4  ;;  %3867 = vmatmul.mubr.msk.f32.vlgmr.msra.gmra.mxu1 %vm807_vm0, %v5178_v4  ;;  %v5433_v12 = vpop.f32.mrf.mxu0  ;;  %v5437_v28 = vpop.f32.mrf.mxu1 }
  0xf4   : > { %2996 = vmatprep.subr.mxu0 %v6161_v38  ;;  %3073 = vmatprep.subr.mxu1 %v6162_v44  ;;  %v6193_v38 = vld [vmem:[#allocation141_spill] sm:$0xff] }
  0xf5   : > { %2997 = vmatpush1.msra.mxu0 %v6163_v49  ;;  %3074 = vmatpush1.msra.mxu1 %v6164_v51  ;;  %v5444_v32 = vpop.f32.mrf.mxu0  ;;  %v5449_v34 = vpop.f32.mrf.mxu1  ;;  %v6194_v51 = vld [vmem:[#allocation142_spill] sm:$0xff] }
  0xf6   : > { %2998 = vmatprep.subr.mxu0 %v6165_v52  ;;  %3075 = vmatprep.subr.mxu1 %v6166_v53 }
  0xf7   : > { %2892 = vmatprep.mubr.f32.mxu0 %v5934_v54  ;;  %2969 = vmatprep.mubr.f32.mxu1 %v5934_v54 }
  0xf8   : > { %2999 = vmatpush1.msra.mxu0 %v6167_v57  ;;  %3076 = vmatpush1.msra.mxu1 %v6168_v58 }
  0xf9   : > { %3866 = vmatmul.mubr.msk.f32.gmra.mxu0 %vm807_vm0, %v5197_v5  ;;  %3868 = vmatmul.mubr.msk.f32.gmra.mxu1 %vm807_vm0, %v5197_v5 }
  0xfa   : > { %3000 = vmatprep.subr.mxu0 %v6169_v8  ;;  %3077 = vmatprep.subr.mxu1 %v6170_v13 }
  0xfb   : > { %3001 = vmatpush1.msra.mxu0 %v6171_v18  ;;  %3078 = vmatpush1.msra.mxu1 %v6172_v19 }
  0xfc   : > { %3002 = vmatprep.subr.mxu0 %v6173_v24  ;;  %3079 = vmatprep.subr.mxu1 %v6174_v36  ;;  %v5454_v44 = vpop.f32.mrf.mxu0  ;;  %v5458_v49 = vpop.f32.mrf.mxu1 }
  0xfd   : > { %3003 = vmatpush1.msra.mxu0 %v6175_v42  ;;  %3080 = vmatpush1.msra.mxu1 %v6176_v43 }
  0xfe   : > { %3004 = vmatprep.subr.mxu0 %v6177_v50  ;;  %3081 = vmatprep.subr.mxu1 %v6178_v47  ;;  %v5466_v52 = vpop.f32.mrf.mxu0 }
  0xff   : > { %3005 = vmatpush1.msra.mxu0 %v6179_v20  ;;  %3082 = vmatpush1.msra.mxu1 %v6180_v55 }
 0x100   : > { %3971 = vset.pattern.permute.xlu0 %v4127_v45  ;;  %3006 = vmatprep.subr.mxu0 %v6181_v62 }
 0x101   : > { %3083 = vmatprep.subr.mxu1 %v6182_v16  ;;  %3288 = vperm.xlu0 %3971, %v3284_v59  }
 0x102   : > { %3007 = vmatpush1.msra.mxu0 %v6183_v25  ;;  %3040 = vmatprep.mubr.f32.mxu0 %v5934_v54 }
 0x103   : > { %3084 = vmatpush1.msra.mxu1 %v6184_v7  ;;  %3117 = vmatprep.mubr.f32.mxu1 %v5934_v54 }
 0x104   : > { %3869 = vmatmul.mubr.msk.f32.vlgmr.msra.gmra.mxu0 %vm807_vm0, %v5178_v4  ;;  %3871 = vmatmul.mubr.msk.f32.vlgmr.msra.gmra.mxu1 %vm807_vm0, %v5178_v4 }
 0x105   : > { %3150 = vmatprep.subr.mxu0 %v6185_v9  ;;  %3227 = vmatprep.subr.mxu1 %v6186_v10 }
 0x106   : > { %3151 = vmatpush1.msra.mxu0 %v6187_v26  ;;  %3228 = vmatpush1.msra.mxu1 %v6188_v27 }
 0x107   : > { %3152 = vmatprep.subr.mxu0 %v6189_v29  ;;  %3229 = vmatprep.subr.mxu1 %v6190_v31 }
 0x108   : > { %3293 = vperm.xlu0 %3971, %v3285_v11   ;;  %3046 = vmatprep.mubr.f32.mxu0 %v5934_v54 }
 0x109   : > { %3123 = vmatprep.mubr.f32.mxu1 %v5934_v54  ;;  %3153 = vmatpush1.msra.mxu0 %v6191_v1 }
 0x10a   : > { %3230 = vmatpush1.msra.mxu1 %v6192_v33  ;;  %3870 = vmatmul.mubr.msk.f32.gmra.mxu0 %vm807_vm0, %v5197_v5 }
 0x10b   : > { %3872 = vmatmul.mubr.msk.f32.gmra.mxu1 %vm807_vm0, %v5197_v5  ;;  %3154 = vmatprep.subr.mxu0 %v6193_v38 }
 0x10c   : > { %3231 = vmatprep.subr.mxu1 %v5045_v3  ;;  %3155 = vmatpush1.msra.mxu0 %v5054_v15  ;;  %v5470_v3 = vpop.f32.mrf.mxu1 }
 0x10d   : > { %3232 = vmatpush1.msra.mxu1 %v5056_v48  ;;  %3156 = vmatprep.subr.mxu0 %v6194_v51 }
 0x10e   : > { %3233 = vmatprep.subr.mxu1 %v5078_v0  ;;  %3157 = vmatpush1.msra.mxu0 %v5090_v14 }
 0x10f   : > { %3234 = vmatpush1.msra.mxu1 %v5092_v39  ;;  %3158 = vmatprep.subr.mxu0 %v5096_v21  ;;  %v5478_v39 = vpop.f32.mrf.mxu0 }
 0x110   : > { %3235 = vmatprep.subr.mxu1 %v5098_v41  ;;  %3159 = vmatpush1.msra.mxu0 %v5104_v35  ;;  %v5483_v41 = vpop.f32.mrf.mxu1 }
 0x111   : > { %3236 = vmatpush1.msra.mxu1 %v5106_v61  ;;  %3160 = vmatprep.subr.mxu0 %v5108_v17  ;;  %v5489_v14 = vpop.f32.mrf.mxu0 }
 0x112   : > { %3237 = vmatprep.subr.mxu1 %v5110_v30  ;;  %3161 = vmatpush1.msra.mxu0 %v5116_v22  ;;  %v5493_v0 = vpop.f32.mrf.mxu1 }
 0x113   : > { %3194 = vmatprep.mubr.f32.mxu0 %v5934_v54  ;;  %3238 = vmatpush1.msra.mxu1 %v5124_v2  ;;  %v5497_v21 = vpop.f32.mrf.mxu0 }
 0x114   : > { %3271 = vmatprep.mubr.f32.mxu1 %v5934_v54  ;;  %3873 = vmatmul.mubr.msk.f32.vlgmr.msra.gmra.mxu0 %vm807_vm0, %v5178_v4  ;;  %v5499_v15 = vpop.f32.mrf.mxu1 }
 0x115   : > { %3875 = vmatmul.mubr.msk.f32.vlgmr.msra.gmra.mxu1 %vm807_vm0, %v5178_v4  ;;  %3200 = vmatprep.mubr.f32.mxu0 %v5934_v54  ;;  %v5501_v48 = vpop.f32.mrf.mxu0 }
 0x116   : > { %3277 = vmatprep.mubr.f32.mxu1 %v5934_v54  ;;  %v5503_v22 = vpop.f32.mrf.mxu1 }
 0x117   : > { %v5505_v35 = vpop.f32.mrf.mxu0 }
 0x118   : > { %3874 = vmatmul.mubr.msk.f32.gmra.mxu0 %vm807_vm0, %v5197_v5  ;;  %v5507_v54 = vpop.f32.mrf.mxu1 }
 0x119   : > { %3876 = vmatmul.mubr.msk.f32.gmra.mxu1 %vm807_vm0, %v5197_v5  ;;  %v5509_v61 = vpop.f32.mrf.mxu0 }
 0x11a   : > { %v5511_v17 = vpop.f32.mrf.mxu1 }
 0x11c   : > { %v5513_v30 = vpop.f32.mrf.mxu0  ;;  %v5515_v2 = vpop.f32.mrf.mxu1 }
 0x11e   : > { %v5517_v4 = vpop.f32.mrf.mxu0  ;;  %v5519_v5 = vpop.f32.mrf.mxu1 }
 0x123   : > { %v5521_v53 = vpop.f32.mrf.mxu0  ;;  %v5523_v57 = vpop.f32.mrf.mxu1 }
 0x125   : > { %v5525_v58 = vpop.f32.mrf.mxu0  ;;  %v5527_v8 = vpop.f32.mrf.mxu1 }
 0x12c   : > { %v5529_v13 = vpop.f32.mrf.mxu0  ;;  %v5531_v18 = vpop.f32.mrf.mxu1 }
 0x12e   : > { %v5533_v19 = vpop.f32.mrf.mxu0  ;;  %v5535_v24 = vpop.f32.mrf.mxu1 }
 0x133   : > { %v5537_v36 = vpop.f32.mrf.mxu0  ;;  %v5539_v42 = vpop.f32.mrf.mxu1 }
 0x135   : > { %v5541_v43 = vpop.f32.mrf.mxu0  ;;  %v5543_v50 = vpop.f32.mrf.mxu1 }
 0x136   : > { %6195 = vst [vmem:[#allocation3_spill] sm:$0xff] %v5543_v50 }
 0x13c   : > { %v5545_v47 = vpop.f32.mrf.mxu0  ;;  %v5547_v59 = vpop.f32.mrf.mxu1 }
 0x13d   : > { %6196 = vst [vmem:[#allocation5_spill] sm:$0xff] %v5545_v47  ;;  %6197 = vst [vmem:[#allocation2_spill] sm:$0xff] %v5547_v59 }
 0x13e   : > { %v5549_v20 = vpop.f32.mrf.mxu0  ;;  %v5551_v55 = vpop.f32.mrf.mxu1 }
 0x13f   : > { %6198 = vst [vmem:[#allocation4_spill] sm:$0xff] %v5549_v20  ;;  %6199 = vst [vmem:[#allocation6_spill] sm:$0xff] %v5551_v55 }
 0x143   : > { %v5553_v45 = vpop.f32.mrf.mxu0  ;;  %v5555_v62 = vpop.f32.mrf.mxu1 }
 0x144   : > { %6200 = vst [vmem:[#allocation9_spill] sm:$0xff] %v5553_v45  ;;  %6201 = vst [vmem:[#allocation7_spill] sm:$0xff] %v5555_v62 }
 0x145   : > { %v5557_v16 = vpop.f32.mrf.mxu0  ;;  %v5559_v25 = vpop.f32.mrf.mxu1 }
 0x146   : > { %6202 = vst [vmem:[#allocation8_spill] sm:$0xff] %v5557_v16  ;;  %6203 = vst [vmem:[#allocation10_spill] sm:$0xff] %v5559_v25 }
 0x14c   : > { %v5561_v7 = vpop.f32.mrf.mxu0  ;;  %v5563_v9 = vpop.f32.mrf.mxu1 }
 0x14d   : > { %6204 = vst [vmem:[#allocation12_spill] sm:$0xff] %v5561_v7  ;;  %6205 = vst [vmem:[#allocation11_spill] sm:$0xff] %v5563_v9 }
 0x14e   : > { %v5565_v10 = vpop.f32.mrf.mxu0  ;;  %v5567_v11 = vpop.f32.mrf.mxu1 }
 0x14f   : > { %6206 = vst [vmem:[#allocation13_spill] sm:$0xff] %v5565_v10  ;;  %6207 = vst [vmem:[#allocation14_spill] sm:$0xff] %v5567_v11 }
 0x153   : > { %v5569_v26 = vpop.f32.mrf.mxu0  ;;  %v5571_v27 = vpop.f32.mrf.mxu1 }
 0x154   : > { %6208 = vst [vmem:[#allocation15_spill] sm:$0xff] %v5569_v26  ;;  %6209 = vst [vmem:[#allocation16_spill] sm:$0xff] %v5571_v27 }
 0x155   : > { %v5573_v29 = vpop.f32.mrf.mxu0  ;;  %v5575_v31 = vpop.f32.mrf.mxu1 }
 0x156   : > { %6210 = vst [vmem:[#allocation17_spill] sm:$0xff] %v5573_v29  ;;  %6211 = vst [vmem:[#allocation18_spill] sm:$0xff] %v5575_v31 }
 0x15c   : > { %v5577_v1 = vpop.f32.mrf.mxu0  ;;  %v5579_v33 = vpop.f32.mrf.mxu1 }
 0x15d   : > { %6212 = vst [vmem:[#allocation19_spill] sm:$0xff] %v5577_v1  ;;  %6213 = vst [vmem:[#allocation20_spill] sm:$0xff] %v5579_v33 }
 0x15e   : > { %v5581_v38 = vpop.f32.mrf.mxu0  ;;  %v5583_v51 = vpop.f32.mrf.mxu1 }
 0x15f   : > { %6214 = vst [vmem:[#allocation21_spill] sm:$0xff] %v5581_v38  ;;  %6215 = vst [vmem:[#allocation22_spill] sm:$0xff] %v5583_v51 }
 0x163   : > { %v2118_v9 = vpop.f32.mrf.mxu0  ;;  %v2195_v10 = vpop.f32.mrf.mxu1 }
 0x164   : > { %v2119_v31 = vadd.f32 %v2118_v9, %v5381_v56  ;;  %v2196_v1 = vadd.f32 %v2195_v10, %v5385_v63 }
 0x165   : > { %v2120_v7 = vpop.f32.mrf.mxu0  ;;  %v2197_v11 = vpop.f32.mrf.mxu1 }
 0x166   : > { %v2121_v33 = vadd.f32 %v2120_v7, %v5395_v23  ;;  %v2198_v38 = vadd.f32 %v2197_v11, %v5399_v37 }
 0x169   : > { %v2124_v25 = vpop.f32.mrf.mxu0  ;;  %v2201_v26 = vpop.f32.mrf.mxu1 }
 0x16a   : > { %v2125_v37 = vadd.f32 %v2124_v25, %v5403_v40  ;;  %v2202_v7 = vadd.f32 %v2201_v26, %v5410_v46 }
 0x16b   : > { %v2126_v16 = vpop.f32.mrf.mxu0  ;;  %v2203_v27 = vpop.f32.mrf.mxu1 }
 0x16c   : > { %v2204_v10 = vadd.f32 %v2203_v27, %v5420_v6 }
 0x173   : > { %v2272_v62 = vpop.f32.mrf.mxu0  ;;  %v2349_v29 = vpop.f32.mrf.mxu1 }
 0x174   : > { %v2273_v20 = vadd.f32 %v2272_v62, %v5433_v12  ;;  %v2350_v56 = vadd.f32 %v2349_v29, %v5437_v28  ;;  %v2127_v12 = vadd.f32 %v2126_v16, %v5416_v60 }
 0x175   : > { %v2274_v45 = vpop.f32.mrf.mxu0  ;;  %v2351_v51 = vpop.f32.mrf.mxu1 }
 0x176   : > { %v2275_v29 = vadd.f32 %v2274_v45, %v5444_v32  ;;  %v2352_v40 = vadd.f32 %v2351_v51, %v5449_v34 }
 0x179   : > { %v2278_v9 = vpop.f32.mrf.mxu0  ;;  %v2355_v23 = vpop.f32.mrf.mxu1 }
 0x17a   : > { %v2279_v46 = vadd.f32 %v2278_v9, %v5454_v44  ;;  %v2356_v32 = vadd.f32 %v2355_v23, %v5458_v49 }
 0x17b   : > { %v2280_v28 = vpop.f32.mrf.mxu0 }
 0x17c   : > { %v5589_v55 = vpop.permute.xlu0 %3288  ;;  %v2281_v44 = vadd.f32 %v2280_v28, %v5466_v52 }
 0x17d   : > { %v3296_v59 = vadd.f32 %v5589_v55, %v2119_v31  ;;  %v3297_v47 = vadd.f32 %v5589_v55, %v2121_v33  ;;  %v3298_v50 = vadd.f32 %v5589_v55, %v2196_v1  ;;  %v3299_v63 = vadd.f32 %v5589_v55, %v2198_v38  ;;  %v2357_v31 = vpop.f32.mrf.mxu1 }
 0x17e   : > { %v3300_v62 = vadd.f32 %v5589_v55, %v2273_v20  ;;  %v3302_v11 = vadd.f32 %v5589_v55, %v2350_v56  ;;  %v3301_v34 = vadd.f32 %v5589_v55, %v2275_v29  ;;  %v3303_v26 = vadd.f32 %v5589_v55, %v2352_v40 }
 0x17f   : > { %3972 = vtanh.f32 %v3296_v59  ;;  %v2358_v27 = vadd.f32 %v2357_v31, %v5470_v3 }
 0x180   : > { %3974 = vtanh.f32 %v3297_v47 }
 0x181   : > { %3976 = vtanh.f32 %v3298_v50 }
 0x182   : > { %3978 = vtanh.f32 %v3299_v63 }
 0x183   : > { %v5604_v59 = vpop.permute.xlu0 %3293  ;;  %v2426_v47 = vpop.f32.mrf.mxu0  ;;  %3980 = vtanh.f32 %v3300_v62 }
 0x184   : > { %v3328_v60 = vadd.f32 %v5604_v59, %v2125_v37  ;;  %v3329_v50 = vadd.f32 %v5604_v59, %v2127_v12  ;;  %v3330_v6 = vadd.f32 %v5604_v59, %v2202_v7  ;;  %v2503_v20 = vpop.f32.mrf.mxu1  ;;  %v3331_v16 = vadd.f32 %v5604_v59, %v2204_v10 }
 0x185   : > { %3982 = vtanh.f32 %v3302_v11  ;;  %v2428_v45 = vpop.f32.mrf.mxu0  ;;  %v3332_v1 = vadd.f32 %v5604_v59, %v2279_v46  ;;  %v2427_v33 = vadd.f32 %v2426_v47, %v5478_v39  ;;  %v3334_v49 = vadd.f32 %v5604_v59, %v2356_v32 }
 0x186   : > { %3984 = vtanh.f32 %v3328_v60  ;;  %v2505_v25 = vpop.f32.mrf.mxu1  ;;  %v2504_v38 = vadd.f32 %v2503_v20, %v5483_v41  ;;  %v3333_v52 = vadd.f32 %v5604_v59, %v2281_v44  ;;  %v2429_v9 = vadd.f32 %v2428_v45, %v5489_v14 }
 0x187   : > { %3986 = vtanh.f32 %v3329_v50  ;;  %v3335_v3 = vadd.f32 %v5604_v59, %v2358_v27  ;;  %v2506_v63 = vadd.f32 %v2505_v25, %v5493_v0  ;;  %v3304_v37 = vadd.f32 %v5589_v55, %v2427_v33 }
 0x188   : > { %3988 = vtanh.f32 %v3330_v6  ;;  %v3306_v14 = vadd.f32 %v5589_v55, %v2504_v38  ;;  %v3305_v11 = vadd.f32 %v5589_v55, %v2429_v9 }
 0x189   : > { %3990 = vtanh.f32 %v3331_v16  ;;  %v2432_v51 = vpop.f32.mrf.mxu0  ;;  %v2509_v56 = vpop.f32.mrf.mxu1  ;;  %v3307_v29 = vadd.f32 %v5589_v55, %v2506_v63 }
 0x18a   : > { %3992 = vtanh.f32 %v3301_v34  ;;  %v2433_v41 = vadd.f32 %v2432_v51, %v5497_v21  ;;  %v2510_v0 = vadd.f32 %v2509_v56, %v5499_v15 }
 0x18b   : > { %3994 = vtanh.f32 %v3303_v26  ;;  %v2434_v23 = vpop.f32.mrf.mxu0  ;;  %v2511_v7 = vpop.f32.mrf.mxu1 }
 0x18c   : > { %v3973_v39 = vpop.eup %3972  ;;  %3996 = vtanh.f32 %v3332_v1  ;;  %v2435_v21 = vadd.f32 %v2434_v23, %v5501_v48  ;;  %v2512_v31 = vadd.f32 %v2511_v7, %v5503_v22  ;;  %v3336_v46 = vadd.f32 %v5604_v59, %v2433_v41 }
 0x18d   : > { %v3975_v12 = vpop.eup %3974  ;;  %3998 = vtanh.f32 %v3334_v49  ;;  %v3338_v47 = vadd.f32 %v5604_v59, %v2510_v0 }
 0x18e   : > { %v3977_v62 = vpop.eup %3976  ;;  %v3912_v10 = vpack.c.bf16 %v3975_v12, %v3973_v39  ;;  %4000 = vtanh.f32 %v3333_v52  ;;  %v3337_v48 = vadd.f32 %v5604_v59, %v2435_v21  ;;  %v3339_v6 = vadd.f32 %v5604_v59, %v2512_v31 }
 0x18f   : > { %v3979_v28 = vpop.eup %3978  ;;  %4002 = vtanh.f32 %v3335_v3 }
 0x190   : > { %3616 = vst [vmem:[%s5631_s19] sm:$0xff] %v3912_v10  ;;  %v3913_v40 = vpack.c.bf16 %v3979_v28, %v3977_v62  ;;  %4004 = vtanh.f32 %v3304_v37  ;;  %v3981_v15 = vpop.eup %3980 }
 0x191   : > { %4006 = vtanh.f32 %v3306_v14 }
 0x192   : > { %v3983_v60 = vpop.eup %3982  ;;  %3617 = vst [vmem:[%s5631_s19 + $0x8] sm:$0xff] %v3913_v40  ;;  %4008 = vtanh.f32 %v3305_v11 }
 0x193   : > { %v3985_v50 = vpop.eup %3984  ;;  %4010 = vtanh.f32 %v3307_v29  ;;  %v2580_v20 = vpop.f32.mrf.mxu0 }
 0x194   : > { %v2657_v22 = vpop.f32.mrf.mxu1  ;;  %v3987_v16 = vpop.eup %3986  ;;  %4012 = vtanh.f32 %v3336_v46  ;;  %v2581_v32 = vadd.f32 %v2580_v20, %v5505_v35 }
 0x195   : > { %v2658_v45 = vadd.f32 %v2657_v22, %v5507_v54  ;;  %v3989_v34 = vpop.eup %3988  ;;  %v3928_v44 = vpack.c.bf16 %v3987_v16, %v3985_v50  ;;  %4014 = vtanh.f32 %v3338_v47  ;;  %v2582_v25 = vpop.f32.mrf.mxu0 }
 0x196   : > { %v2659_v26 = vpop.f32.mrf.mxu1  ;;  %v3991_v27 = vpop.eup %3990  ;;  %4016 = vtanh.f32 %v3337_v48  ;;  %v3308_v1 = vadd.f32 %v5589_v55, %v2581_v32  ;;  %v2583_v49 = vadd.f32 %v2582_v25, %v5509_v61 }
 0x197   : > { %v3310_v33 = vadd.f32 %v5589_v55, %v2658_v45  ;;  %v3993_v38 = vpop.eup %3992  ;;  %3632 = vst [vmem:[%s5631_s19 + $0x80] sm:$0xff] %v3928_v44  ;;  %v3929_v35 = vpack.c.bf16 %v3991_v27, %v3989_v34  ;;  %4018 = vtanh.f32 %v3339_v6  ;;  %v2660_v54 = vadd.f32 %v2659_v26, %v5511_v17 }
 0x198   : > { %v3995_v51 = vpop.eup %3994  ;;  %v3914_v56 = vpack.c.bf16 %v3993_v38, %v3981_v15  ;;  %4020 = vtanh.f32 %v3308_v1  ;;  %v3309_v52 = vadd.f32 %v5589_v55, %v2583_v49 }
 0x199   : > { %v3997_v9 = vpop.eup %3996  ;;  %3633 = vst [vmem:[%s5631_s19 + $0x88] sm:$0xff] %v3929_v35  ;;  %v3915_v3 = vpack.c.bf16 %v3995_v51, %v3983_v60  ;;  %4022 = vtanh.f32 %v3310_v33  ;;  %v3311_v63 = vadd.f32 %v5589_v55, %v2660_v54  ;;  %v2586_v61 = vpop.f32.mrf.mxu0 }
 0x19a   : > { %v2663_v23 = vpop.f32.mrf.mxu1  ;;  %v3999_v39 = vpop.eup %3998  ;;  %3618 = vst [vmem:[%s5631_s19 + $0x10] sm:$0xff] %v3914_v56  ;;  %4024 = vtanh.f32 %v3309_v52  ;;  %v2587_v37 = vadd.f32 %v2586_v61, %v5513_v30 }
 0x19b   : > { %v2664_v17 = vadd.f32 %v2663_v23, %v5515_v2  ;;  %v4001_v41 = vpop.eup %4000  ;;  %3619 = vst [vmem:[%s5631_s19 + $0x18] sm:$0xff] %v3915_v3  ;;  %4026 = vtanh.f32 %v3311_v63  ;;  %v2588_v7 = vpop.f32.mrf.mxu0 }
 0x19c   : > { %v2665_v12 = vpop.f32.mrf.mxu1  ;;  %v4003_v14 = vpop.eup %4002  ;;  %v3930_v0 = vpack.c.bf16 %v4001_v41, %v3997_v9  ;;  %v3340_v62 = vadd.f32 %v5604_v59, %v2587_v37  ;;  %v2589_v11 = vadd.f32 %v2588_v7, %v5517_v4 }
 0x19d   : > { %v3342_v10 = vadd.f32 %v5604_v59, %v2664_v17  ;;  %v4005_v21 = vpop.eup %4004  ;;  %v3931_v28 = vpack.c.bf16 %v4003_v14, %v3999_v39  ;;  %v2666_v30 = vadd.f32 %v2665_v12, %v5519_v5 }
 0x19e   : > { %v4007_v2 = vpop.eup %4006  ;;  %3634 = vst [vmem:[%s5631_s19 + $0x90] sm:$0xff] %v3930_v0  ;;  %4028 = vtanh.f32 %v3340_v62  ;;  %v3341_v29 = vadd.f32 %v5604_v59, %v2589_v11 }
 0x19f   : > { %v4009_v31 = vpop.eup %4008  ;;  %3635 = vst [vmem:[%s5631_s19 + $0x98] sm:$0xff] %v3931_v28  ;;  %4030 = vtanh.f32 %v3342_v10  ;;  %v3343_v40 = vadd.f32 %v5604_v59, %v2666_v30 }
 0x1a0   : > { %v4011_v46 = vpop.eup %4010  ;;  %v3916_v15 = vpack.c.bf16 %v4009_v31, %v4005_v21  ;;  %4032 = vtanh.f32 %v3341_v29  ;;  %v6216_v29 = vld [vmem:[#allocation3_spill] sm:$0xff] }
 0x1a1   : > { %v4013_v4 = vpop.eup %4012  ;;  %v3917_v47 = vpack.c.bf16 %v4011_v46, %v4007_v2  ;;  %4034 = vtanh.f32 %v3343_v40 }
 0x1a2   : > { %v4015_v5 = vpop.eup %4014  ;;  %3620 = vst [vmem:[%s5631_s19 + $0x20] sm:$0xff] %v3916_v15 }
 0x1a3   : > { %v4017_v60 = vpop.eup %4016  ;;  %3621 = vst [vmem:[%s5631_s19 + $0x28] sm:$0xff] %v3917_v47  ;;  %v2734_v48 = vpop.f32.mrf.mxu0 }
 0x1a4   : > { %v2811_v50 = vpop.f32.mrf.mxu1  ;;  %v4019_v6 = vpop.eup %4018  ;;  %v3932_v20 = vpack.c.bf16 %v4017_v60, %v4013_v4  ;;  %v2735_v22 = vadd.f32 %v2734_v48, %v5521_v53  ;;  %v6217_v60 = vld [vmem:[#allocation5_spill] sm:$0xff] }
 0x1a5   : > { %v2812_v16 = vadd.f32 %v2811_v50, %v5523_v57  ;;  %v4021_v32 = vpop.eup %4020  ;;  %v3933_v45 = vpack.c.bf16 %v4019_v6, %v4015_v5  ;;  %v2736_v34 = vpop.f32.mrf.mxu0 }
 0x1a6   : > { %v2813_v44 = vpop.f32.mrf.mxu1  ;;  %v4023_v25 = vpop.eup %4022  ;;  %3636 = vst [vmem:[%s5631_s19 + $0xa0] sm:$0xff] %v3932_v20  ;;  %v3312_v26 = vadd.f32 %v5589_v55, %v2735_v22  ;;  %v2737_v1 = vadd.f32 %v2736_v34, %v5525_v58  ;;  %v6219_v34 = vld [vmem:[#allocation4_spill] sm:$0xff] }
 0x1a7   : > { %v3314_v27 = vadd.f32 %v5589_v55, %v2812_v16  ;;  %v2814_v33 = vadd.f32 %v2813_v44, %v5527_v8  ;;  %v4025_v49 = vpop.eup %4024  ;;  %3637 = vst [vmem:[%s5631_s19 + $0xa8] sm:$0xff] %v3933_v45 }
 0x1a8   : > { %v4027_v53 = vpop.eup %4026  ;;  %v3918_v57 = vpack.c.bf16 %v4025_v49, %v4021_v32  ;;  %4036 = vtanh.f32 %v3312_v26  ;;  %v3313_v38 = vadd.f32 %v5589_v55, %v2737_v1 }
 0x1a9   : > { %v3315_v35 = vadd.f32 %v5589_v55, %v2814_v33  ;;  %v3919_v54 = vpack.c.bf16 %v4027_v53, %v4023_v25  ;;  %4038 = vtanh.f32 %v3314_v27  ;;  %v2740_v51 = vpop.f32.mrf.mxu0  ;;  %v2817_v56 = vpop.f32.mrf.mxu1  ;;  %v6220_v25 = vld [vmem:[#allocation6_spill] sm:$0xff] }
 0x1aa   : > { %3622 = vst [vmem:[%s5631_s19 + $0x30] sm:$0xff] %v3918_v57  ;;  %4040 = vtanh.f32 %v3313_v38  ;;  %v2741_v58 = vadd.f32 %v2740_v51, %v5529_v13  ;;  %v2818_v8 = vadd.f32 %v2817_v56, %v5531_v18  ;;  %v6221_v51 = vld [vmem:[#allocation9_spill] sm:$0xff] }
 0x1ab   : > { %v4029_v52 = vpop.eup %4028  ;;  %3623 = vst [vmem:[%s5631_s19 + $0x38] sm:$0xff] %v3919_v54  ;;  %4042 = vtanh.f32 %v3315_v35  ;;  %v2742_v9 = vpop.f32.mrf.mxu0 }
 0x1ac   : > { %v2819_v3 = vpop.f32.mrf.mxu1  ;;  %v4031_v63 = vpop.eup %4030  ;;  %v3344_v61 = vadd.f32 %v5604_v59, %v2741_v58  ;;  %v3346_v23 = vadd.f32 %v5604_v59, %v2818_v8  ;;  %v2743_v39 = vadd.f32 %v2742_v9, %v5533_v19  ;;  %v6222_v58 = vld [vmem:[#allocation7_spill] sm:$0xff] }
 0x1ad   : > { %v2820_v37 = vadd.f32 %v2819_v3, %v5535_v24  ;;  %v4033_v17 = vpop.eup %4032 }
 0x1ae   : > { %v4035_v13 = vpop.eup %4034  ;;  %v3934_v41 = vpack.c.bf16 %v4033_v17, %v4029_v52  ;;  %4044 = vtanh.f32 %v3344_v61  ;;  %v3345_v18 = vadd.f32 %v5604_v59, %v2743_v39  ;;  %v6223_v39 = vld [vmem:[#allocation8_spill] sm:$0xff]  ;;  %v6224_v17 = vld [vmem:[#allocation10_spill] sm:$0xff] }
 0x1af   : > { %v3347_v7 = vadd.f32 %v5604_v59, %v2820_v37  ;;  %v3935_v12 = vpack.c.bf16 %v4035_v13, %v4031_v63  ;;  %4046 = vtanh.f32 %v3346_v23 }
 0x1b0   : > { %3638 = vst [vmem:[%s5631_s19 + $0xb0] sm:$0xff] %v3934_v41  ;;  %4048 = vtanh.f32 %v3345_v18 }
 0x1b1   : > { %3639 = vst [vmem:[%s5631_s19 + $0xb8] sm:$0xff] %v3935_v12  ;;  %4050 = vtanh.f32 %v3347_v7 }
 0x1b3   : > { %v2888_v14 = vpop.f32.mrf.mxu0  ;;  %v2965_v0 = vpop.f32.mrf.mxu1 }
 0x1b4   : > { %v2889_v19 = vadd.f32 %v2888_v14, %v5537_v36  ;;  %v2966_v24 = vadd.f32 %v2965_v0, %v5539_v42 }
 0x1b5   : > { %v4037_v62 = vpop.eup %4036  ;;  %v2890_v10 = vpop.f32.mrf.mxu0 }
 0x1b6   : > { %v2967_v11 = vpop.f32.mrf.mxu1  ;;  %v4039_v21 = vpop.eup %4038  ;;  %v3316_v28 = vadd.f32 %v5589_v55, %v2889_v19  ;;  %v3318_v30 = vadd.f32 %v5589_v55, %v2966_v24  ;;  %v2891_v2 = vadd.f32 %v2890_v10, %v5541_v43  ;;  %v6218_v43 = vld [vmem:[#allocation2_spill] sm:$0xff]  ;;  %v6225_v24 = vld [vmem:[#allocation12_spill] sm:$0xff] }
 0x1b7   : > { %v2968_v31 = vadd.f32 %v2967_v11, %v6216_v29  ;;  %v4041_v40 = vpop.eup %4040 }
 0x1b8   : > { %v4043_v46 = vpop.eup %4042  ;;  %v3920_v15 = vpack.c.bf16 %v4041_v40, %v4037_v62  ;;  %4052 = vtanh.f32 %v3316_v28  ;;  %v3317_v36 = vadd.f32 %v5589_v55, %v2891_v2 }
 0x1b9   : > { %v3319_v42 = vadd.f32 %v5589_v55, %v2968_v31  ;;  %v3921_v4 = vpack.c.bf16 %v4043_v46, %v4039_v21  ;;  %4054 = vtanh.f32 %v3318_v30  ;;  %v2894_v47 = vpop.f32.mrf.mxu0  ;;  %v2971_v5 = vpop.f32.mrf.mxu1  ;;  %v6226_v21 = vld [vmem:[#allocation11_spill] sm:$0xff]  ;;  %v6227_v31 = vld [vmem:[#allocation13_spill] sm:$0xff] }
 0x1ba   : > { %3624 = vst [vmem:[%s5631_s19 + $0x40] sm:$0xff] %v3920_v15  ;;  %4056 = vtanh.f32 %v3317_v36  ;;  %v2895_v48 = vadd.f32 %v2894_v47, %v6217_v60  ;;  %v2972_v50 = vadd.f32 %v2971_v5, %v6218_v43 }
 0x1bb   : > { %v4045_v6 = vpop.eup %4044  ;;  %3625 = vst [vmem:[%s5631_s19 + $0x48] sm:$0xff] %v3921_v4  ;;  %4058 = vtanh.f32 %v3319_v42  ;;  %v2896_v20 = vpop.f32.mrf.mxu0  ;;  %v6228_v4 = vld [vmem:[#allocation14_spill] sm:$0xff] }
 0x1bc   : > { %v2973_v22 = vpop.f32.mrf.mxu1  ;;  %v4047_v16 = vpop.eup %4046  ;;  %v3348_v32 = vadd.f32 %v5604_v59, %v2895_v48  ;;  %v3350_v45 = vadd.f32 %v5604_v59, %v2972_v50  ;;  %v2897_v44 = vadd.f32 %v2896_v20, %v6219_v34  ;;  %v6229_v50 = vld [vmem:[#allocation15_spill] sm:$0xff] }
 0x1bd   : > { %v2974_v26 = vadd.f32 %v2973_v22, %v6220_v25  ;;  %v4049_v27 = vpop.eup %4048  ;;  %v6231_v25 = vld [vmem:[#allocation17_spill] sm:$0xff] }
 0x1be   : > { %v4051_v1 = vpop.eup %4050  ;;  %v3936_v33 = vpack.c.bf16 %v4049_v27, %v4045_v6  ;;  %4060 = vtanh.f32 %v3348_v32  ;;  %v3349_v49 = vadd.f32 %v5604_v59, %v2897_v44 }
 0x1bf   : > { %v3351_v53 = vadd.f32 %v5604_v59, %v2974_v26  ;;  %v3937_v57 = vpack.c.bf16 %v4051_v1, %v4047_v16  ;;  %4062 = vtanh.f32 %v3350_v45  ;;  %v6230_v16 = vld [vmem:[#allocation16_spill] sm:$0xff] }
 0x1c0   : > { %3640 = vst [vmem:[%s5631_s19 + $0xc0] sm:$0xff] %v3936_v33  ;;  %4064 = vtanh.f32 %v3349_v49  ;;  %v6232_v49 = vld [vmem:[#allocation18_spill] sm:$0xff] }
 0x1c1   : > { %3641 = vst [vmem:[%s5631_s19 + $0xc8] sm:$0xff] %v3937_v57  ;;  %4066 = vtanh.f32 %v3351_v53 }
 0x1c4   : > { %v3042_v38 = vpop.f32.mrf.mxu0  ;;  %v3119_v35 = vpop.f32.mrf.mxu1 }
 0x1c5   : > { %v4053_v54 = vpop.eup %4052  ;;  %v3043_v56 = vadd.f32 %v3042_v38, %v6221_v51  ;;  %v3120_v8 = vadd.f32 %v3119_v35, %v6222_v58  ;;  %v6233_v51 = vld [vmem:[#allocation19_spill] sm:$0xff] }
 0x1c6   : > { %v4055_v52 = vpop.eup %4054  ;;  %v3044_v9 = vpop.f32.mrf.mxu0 }
 0x1c7   : > { %v3121_v3 = vpop.f32.mrf.mxu1  ;;  %v4057_v63 = vpop.eup %4056  ;;  %v3320_v61 = vadd.f32 %v5589_v55, %v3043_v56  ;;  %v3322_v23 = vadd.f32 %v5589_v55, %v3120_v8  ;;  %v3045_v37 = vadd.f32 %v3044_v9, %v6223_v39  ;;  %v6234_v9 = vld [vmem:[#allocation20_spill] sm:$0xff] }
 0x1c8   : > { %v3122_v13 = vadd.f32 %v3121_v3, %v6224_v17  ;;  %v4059_v41 = vpop.eup %4058  ;;  %v3922_v18 = vpack.c.bf16 %v4057_v63, %v4053_v54 }
 0x1c9   : > { %v3923_v7 = vpack.c.bf16 %v4059_v41, %v4055_v52  ;;  %4068 = vtanh.f32 %v3320_v61  ;;  %v3321_v12 = vadd.f32 %v5589_v55, %v3045_v37  ;;  %v6236_v41 = vld [vmem:[#allocation22_spill] sm:$0xff] }
 0x1ca   : > { %v3323_v14 = vadd.f32 %v5589_v55, %v3122_v13  ;;  %3626 = vst [vmem:[%s5631_s19 + $0x50] sm:$0xff] %v3922_v18  ;;  %4070 = vtanh.f32 %v3322_v23  ;;  %v3048_v0 = vpop.f32.mrf.mxu0  ;;  %v6235_v23 = vld [vmem:[#allocation21_spill] sm:$0xff] }
 0x1cb   : > { %v4061_v19 = vpop.eup %4060  ;;  %3627 = vst [vmem:[%s5631_s19 + $0x58] sm:$0xff] %v3923_v7  ;;  %4072 = vtanh.f32 %v3321_v12  ;;  %v3049_v62 = vadd.f32 %v3048_v0, %v6225_v24  ;;  %v3125_v10 = vpop.f32.mrf.mxu1 }
 0x1cc   : > { %v4063_v11 = vpop.eup %4062  ;;  %4074 = vtanh.f32 %v3323_v14  ;;  %v3126_v28 = vadd.f32 %v3125_v10, %v6226_v21  ;;  %v3050_v30 = vpop.f32.mrf.mxu0 }
 0x1cd   : > { %v4065_v2 = vpop.eup %4064  ;;  %v3352_v29 = vadd.f32 %v5604_v59, %v3049_v62  ;;  %v3051_v40 = vadd.f32 %v3050_v30, %v6227_v31  ;;  %v3127_v46 = vpop.f32.mrf.mxu1 }
 0x1ce   : > { %v4067_v15 = vpop.eup %4066  ;;  %v3938_v36 = vpack.c.bf16 %v4065_v2, %v4061_v19  ;;  %v3354_v42 = vadd.f32 %v5604_v59, %v3126_v28  ;;  %v3128_v47 = vadd.f32 %v3127_v46, %v6228_v4 }
 0x1cf   : > { %v3939_v5 = vpack.c.bf16 %v4067_v15, %v4063_v11  ;;  %4076 = vtanh.f32 %v3352_v29  ;;  %v3353_v60 = vadd.f32 %v5604_v59, %v3051_v40 }
 0x1d0   : > { %3642 = vst [vmem:[%s5631_s19 + $0xd0] sm:$0xff] %v3938_v36  ;;  %4078 = vtanh.f32 %v3354_v42  ;;  %v3355_v48 = vadd.f32 %v5604_v59, %v3128_v47 }
 0x1d1   : > { %3643 = vst [vmem:[%s5631_s19 + $0xd8] sm:$0xff] %v3939_v5  ;;  %4080 = vtanh.f32 %v3353_v60 }
 0x1d2   : > { %4082 = vtanh.f32 %v3355_v48 }
 0x1d4   : > { %v3196_v43 = vpop.f32.mrf.mxu0 }
 0x1d5   : > { %v3197_v6 = vadd.f32 %v3196_v43, %v6229_v50  ;;  %v3273_v20 = vpop.f32.mrf.mxu1 }
 0x1d6   : > { %v4069_v22 = vpop.eup %4068  ;;  %v3274_v32 = vadd.f32 %v3273_v20, %v6230_v16  ;;  %v3198_v45 = vpop.f32.mrf.mxu0 }
 0x1d7   : > { %v4071_v34 = vpop.eup %4070  ;;  %v3324_v44 = vadd.f32 %v5589_v55, %v3197_v6  ;;  %v3199_v26 = vadd.f32 %v3198_v45, %v6231_v25  ;;  %v3275_v27 = vpop.f32.mrf.mxu1 }
 0x1d8   : > { %v4073_v1 = vpop.eup %4072  ;;  %v3326_v33 = vadd.f32 %v5589_v55, %v3274_v32  ;;  %v3276_v53 = vadd.f32 %v3275_v27, %v6232_v49  ;;  %v3202_v57 = vpop.f32.mrf.mxu0 }
 0x1d9   : > { %v4075_v38 = vpop.eup %4074  ;;  %v3924_v35 = vpack.c.bf16 %v4073_v1, %v4069_v22  ;;  %4084 = vtanh.f32 %v3324_v44  ;;  %v3325_v54 = vadd.f32 %v5589_v55, %v3199_v26  ;;  %v3203_v56 = vadd.f32 %v3202_v57, %v6233_v51  ;;  %v3279_v58 = vpop.f32.mrf.mxu1 }
 0x1da   : > { %v3925_v8 = vpack.c.bf16 %v4075_v38, %v4071_v34  ;;  %4086 = vtanh.f32 %v3326_v33  ;;  %v3327_v52 = vadd.f32 %v5589_v55, %v3276_v53  ;;  %v3280_v3 = vadd.f32 %v3279_v58, %v6234_v9  ;;  %v3204_v63 = vpop.f32.mrf.mxu0 }
 0x1db   : > { %3628 = vst [vmem:[%s5631_s19 + $0x60] sm:$0xff] %v3924_v35  ;;  %4088 = vtanh.f32 %v3325_v54  ;;  %v3356_v61 = vadd.f32 %v5604_v59, %v3203_v56  ;;  %v3205_v39 = vadd.f32 %v3204_v63, %v6235_v23  ;;  %v3281_v37 = vpop.f32.mrf.mxu1 }
 0x1dc   : > { %v4077_v17 = vpop.eup %4076  ;;  %3629 = vst [vmem:[%s5631_s19 + $0x68] sm:$0xff] %v3925_v8  ;;  %4090 = vtanh.f32 %v3327_v52  ;;  %v3358_v13 = vadd.f32 %v5604_v59, %v3280_v3  ;;  %v3282_v18 = vadd.f32 %v3281_v37, %v6236_v41 }
 0x1dd   : > { %v4079_v55 = vpop.eup %4078  ;;  %4092 = vtanh.f32 %v3356_v61  ;;  %v3357_v7 = vadd.f32 %v5604_v59, %v3205_v39 }
 0x1de   : > { %v4081_v12 = vpop.eup %4080  ;;  %4094 = vtanh.f32 %v3358_v13  ;;  %v3359_v14 = vadd.f32 %v5604_v59, %v3282_v18 }
 0x1df   : > { %v4083_v0 = vpop.eup %4082  ;;  %v3940_v19 = vpack.c.bf16 %v4081_v12, %v4077_v17  ;;  %4096 = vtanh.f32 %v3357_v7 }
 0x1e0   : > { %v3941_v24 = vpack.c.bf16 %v4083_v0, %v4079_v55  ;;  %4098 = vtanh.f32 %v3359_v14 }
 0x1e1   : > { %3644 = vst [vmem:[%s5631_s19 + $0xe0] sm:$0xff] %v3940_v19 }
 0x1e2   : > { %3645 = vst [vmem:[%s5631_s19 + $0xe8] sm:$0xff] %v3941_v24 }
 0x1e6   : > { %v4085_v62 = vpop.eup %4084 }
 0x1e7   : > { %v4087_v10 = vpop.eup %4086 }
 0x1e8   : > { %v4089_v11 = vpop.eup %4088 }
 0x1e9   : > { %v4091_v21 = vpop.eup %4090  ;;  %v3926_v28 = vpack.c.bf16 %v4089_v11, %v4085_v62 }
 0x1ea   : > { %v4093_v30 = vpop.eup %4092  ;;  %v3927_v2 = vpack.c.bf16 %v4091_v21, %v4087_v10 }
 0x1eb   : > { %v4095_v29 = vpop.eup %4094  ;;  %3630 = vst [vmem:[%s5631_s19 + $0x70] sm:$0xff] %v3926_v28 }
 0x1ec   : > { %v4097_v59 = vpop.eup %4096  ;;  %3631 = vst [vmem:[%s5631_s19 + $0x78] sm:$0xff] %v3927_v2 }
 0x1ed   : > { %v4099_v31 = vpop.eup %4098  ;;  %v3942_v40 = vpack.c.bf16 %v4097_v59, %v4093_v30 }
 0x1ee   : > { %v3943_v46 = vpack.c.bf16 %v4099_v31, %v4095_v29 }
 0x1ef   : > { %3646 = vst [vmem:[%s5631_s19 + $0xf0] sm:$0xff] %v3942_v40 }
 0x1f0   : > { %3647 = vst [vmem:[%s5631_s19 + $0xf8] sm:$0xff] %v3943_v46 }
 0x1f1 PF: > { %s14_s17 = sadd.s32 1, %s4124_s17   ;;  %s6237_s15 = smov %s4120_s16 }
 0x1f2   : > { %p11_p5 = scmp.ge.s32.totalorder %s14_s17, 4   ;;  %s6238_s16 = smov %s6240_s18 }
 0x1f4   :  { %13 = sbr.rel (!%p11_p5) target bundleno = 2 (0x2), region = 75 }

// kernel: master_regressor_forward.5
= control target key start
LH: loop header
LB: loop body
LE: loop exit
PB: predicated region body
PF: predicated region fallthrough
CT: control target
= control target key end

     0   :  { %s1101_s15 = smov 0   ;;  %s1103_s16 = smov 0   ;;  %s1223_s0 = inlined_call_operand.vmem [shape: bf16[2,256,256], index: 0, kind: input, shape index: {}]   ;;  %s1224_s1 = inlined_call_operand.vmem [shape: f32[64,256], index: 1, kind: input, shape index: {}]   ;;  %s1225_s2 = inlined_call_operand.vmem [shape: f32[64,256], index: 2, kind: input, shape index: {}]   ;;  %s1226_s3 = inlined_call_operand.vmem [shape: f32[64,1], index: 3, kind: input, shape index: {}]   ;;  %s1227_s4 = inlined_call_operand.vmem [shape: f32[2,64,256], index: 4, kind: output, shape index: {}]  }
   0x1   :  { %s1105_s17 = smov 0   ;;  %s1107_s18 = smov 0  }
   0x2   :  { %s1109_s19 = smov 0  }
   0x3 LB: > { %s29_s20 = sadd.s32 1, %s1065_s17  ;;  %s33_s21 = sadd.s32 1, %s1069_s18  ;;  %s1073_s19 = sphi %s1109_s19, %s14_s19   ;;  %s1069_s18 = sphi %s1107_s18, %s1231_s18   ;;  %s1065_s17 = sphi %s1105_s17, %s1230_s17   ;;  %s1061_s16 = sphi %s1103_s16, %s1229_s16   ;;  %s1057_s15 = sphi %s1101_s15, %s1228_s15  }
   0x4   : > { %p31_p0 = scmp.ge.s32.totalorder %s29_s20, 2  ;;  %p948_p1 = scmp.ge.s32.totalorder %s1073_s19, 1 }
   0x5   : > { %p227_p2 = scmp.lt.s32.totalorder %s1073_s19, 5 }
   0x6   : > { %s1233_s20 = smov (%p31_p0, %s29_s20), 0  ;;  %s1235_s21 = smov (!%p31_p0, %s33_s21), %s1069_s18 }
   0x7   : > { %p228_p3 = pnand %p948_p1, %p227_p2  ;;  %p35_p4 = scmp.ge.s32.totalorder %s1235_s21, 2 }
   0x8   : > { %p284_p5 = scmp.lt.s32.totalorder (!%p228_p3), %s1061_s16, 1  ;;  %s951_s22 = sshll.u32 (!%p228_p3), %s1057_s15, 2 }
   0x9   : > { %s1237_s21 = smov (%p35_p4, %s1235_s21), 0  ;;  %231 = sbr.rel (%p228_p3) target bundleno = 620 (0x26c), region = 36 }
   0xa   : > { %p294_p6 = scmp.lt.s32.totalorder (!%p228_p3), %s951_s22, 7 }
   0xe   : > { %v1075_v0 = vmov 0   ;;  %s1239_s16 = smov (!%p284_p5, %s1061_s16), 1  ;;  %s1241_s22 = smov (!%p294_p6, %s951_s22), 7 }
   0xf   : > { %1009 = vset.pattern.permute.xlu0 %v1075_v0  ;;  %1010 = vset.pattern.permute.xlu1 %v1075_v0  ;;  %s965_s23 = sshll.u32 %s1239_s16, 8  ;;  %s961_s24 = sshll.u32 %s1239_s16, 4 }
  0x10   : > { %s1136_s27 = scalar_lea.vmem %s1223_s0, %s965_s23  ;;  %s960_s28 = sshll.u32 %s1241_s22, 1 }
  0x11   : > { %v344_v1 = vld [vmem:[%s1136_s27 + $0x78] sm:$0xff]  ;;  %v343_v2 = vld [vmem:[%s1136_s27 + $0x70] sm:$0xff]  ;;  %v342_v3 = vld [vmem:[%s1136_s27 + $0x68] sm:$0xff]  ;;  %s1143_s29 = sadd.s32 %s961_s24, %s960_s28  ;;  %s966_s30 = sshll.u32 %s1241_s22, 4 }
  0x12   : > { %v392_v4 = vunpack.c.h.bf16 %v344_v1  ;;  %v391_v5 = vunpack.c.l.bf16 %v344_v1  ;;  %v390_v6 = vunpack.c.h.bf16 %v343_v2  ;;  %v389_v7 = vunpack.c.l.bf16 %v343_v2  ;;  %v341_v8 = vld [vmem:[%s1136_s27 + $0x60] sm:$0xff]  ;;  %v340_v11 = vld [vmem:[%s1136_s27 + $0x58] sm:$0xff]  ;;  %v339_v18 = vld [vmem:[%s1136_s27 + $0x50] sm:$0xff]  ;;  %s1177_s7 = scalar_lea.vmem %s1224_s1, %s966_s30  ;;  %s958_s8 = sshll.u32 %s1241_s22, 3 }
  0x13   : > { %v388_v9 = vunpack.c.h.bf16 %v342_v3  ;;  %v387_v10 = vunpack.c.l.bf16 %v342_v3  ;;  %v386_v15 = vunpack.c.h.bf16 %v341_v8  ;;  %v385_v17 = vunpack.c.l.bf16 %v341_v8  ;;  %v338_v23 = vld [vmem:[%s1136_s27 + $0x48] sm:$0xff]  ;;  %v337_v28 = vld [vmem:[%s1136_s27 + $0x40] sm:$0xff]  ;;  %v336_v33 = vld [vmem:[%s1136_s27 + $0x38] sm:$0xff]  ;;  %s1183_s11 = scalar_lea.vmem %s1225_s2, %s966_s30  ;;  %s311_s14 = scalar_lea.vmem %s1226_s3, %s958_s8 }
  0x14   : > { %594 = vmatprep.subr.mxu1 %v392_v4  ;;  %v472_v12 = vmul.f32 %v392_v4, %v392_v4  ;;  %v471_v13 = vmul.f32 %v391_v5, %v391_v5  ;;  %v470_v14 = vmul.f32 %v390_v6, %v390_v6  ;;  %v469_v16 = vmul.f32 %v389_v7, %v389_v7  ;;  %v335_v38 = vld [vmem:[%s1136_s27 + $0x30] sm:$0xff]  ;;  %v334_v43 = vld [vmem:[%s1136_s27 + $0x28] sm:$0xff]  ;;  %v333_v48 = vld [vmem:[%s1136_s27 + $0x20] sm:$0xff]  ;;  %s962_s15 = sshll.u32 %s1143_s29, 3 }
  0x15   : > { %595 = vmatpush1.msra.mxu1 %v391_v5  ;;  %v468_v19 = vmul.f32 %v388_v9, %v388_v9  ;;  %v384_v20 = vunpack.c.h.bf16 %v340_v11  ;;  %v467_v21 = vmul.f32 %v387_v10, %v387_v10  ;;  %v383_v22 = vunpack.c.l.bf16 %v340_v11  ;;  %v332_v53 = vld [vmem:[%s1136_s27 + $0x18] sm:$0xff]  ;;  %v331_v58 = vld [vmem:[%s1136_s27 + $0x10] sm:$0xff]  ;;  %v330_v63 = vld [vmem:[%s1136_s27 + $0x8] sm:$0xff]  ;;  %s326_s23 = scalar_lea.vmem %s1227_s4, %s962_s15 }
  0x16   : > { %505 = vmatprep.subr.mxu0 %v472_v12  ;;  %596 = vmatprep.subr.mxu1 %v390_v6  ;;  %v466_v24 = vmul.f32 %v386_v15, %v386_v15  ;;  %v382_v25 = vunpack.c.h.bf16 %v339_v18  ;;  %v465_v26 = vmul.f32 %v385_v17, %v385_v17  ;;  %v381_v27 = vunpack.c.l.bf16 %v339_v18  ;;  %v329_v4 = vld [vmem:[%s1136_s27] sm:$0xff] }
  0x17   : > { %506 = vmatpush1.msra.mxu0 %v471_v13  ;;  %597 = vmatpush1.msra.mxu1 %v389_v7  ;;  %v464_v29 = vmul.f32 %v384_v20, %v384_v20  ;;  %v380_v30 = vunpack.c.h.bf16 %v338_v23  ;;  %v463_v31 = vmul.f32 %v383_v22, %v383_v22  ;;  %v379_v32 = vunpack.c.l.bf16 %v338_v23 }
  0x18   : > { %507 = vmatprep.subr.mxu0 %v470_v14  ;;  %598 = vmatprep.subr.mxu1 %v388_v9  ;;  %v462_v34 = vmul.f32 %v382_v25, %v382_v25  ;;  %v378_v35 = vunpack.c.h.bf16 %v337_v28  ;;  %v461_v36 = vmul.f32 %v381_v27, %v381_v27  ;;  %v377_v37 = vunpack.c.l.bf16 %v337_v28  ;;  %v360_v9 = vld [vmem:[%s1136_s27 + $0xf8] sm:$0xff]  ;;  %v359_v14 = vld [vmem:[%s1136_s27 + $0xf0] sm:$0xff] }
  0x19   : > { %508 = vmatpush1.msra.mxu0 %v469_v16  ;;  %599 = vmatpush1.msra.mxu1 %v387_v10  ;;  %v460_v39 = vmul.f32 %v380_v30, %v380_v30  ;;  %v376_v40 = vunpack.c.h.bf16 %v336_v33  ;;  %v459_v41 = vmul.f32 %v379_v32, %v379_v32  ;;  %v375_v42 = vunpack.c.l.bf16 %v336_v33 }
  0x1a   : > { %509 = vmatprep.subr.mxu0 %v468_v19  ;;  %600 = vmatprep.subr.mxu1 %v386_v15  ;;  %v458_v44 = vmul.f32 %v378_v35, %v378_v35  ;;  %v374_v45 = vunpack.c.h.bf16 %v335_v38  ;;  %v457_v46 = vmul.f32 %v377_v37, %v377_v37  ;;  %v373_v47 = vunpack.c.l.bf16 %v335_v38  ;;  %v358_v19 = vld [vmem:[%s1136_s27 + $0xe8] sm:$0xff] }
  0x1b   : > { %510 = vmatpush1.msra.mxu0 %v467_v21  ;;  %601 = vmatpush1.msra.mxu1 %v385_v17  ;;  %v456_v49 = vmul.f32 %v376_v40, %v376_v40  ;;  %v372_v50 = vunpack.c.h.bf16 %v334_v43  ;;  %v455_v51 = vmul.f32 %v375_v42, %v375_v42  ;;  %v371_v52 = vunpack.c.l.bf16 %v334_v43 }
  0x1c   : > { %511 = vmatprep.subr.mxu0 %v466_v24  ;;  %602 = vmatprep.subr.mxu1 %v384_v20  ;;  %v454_v54 = vmul.f32 %v374_v45, %v374_v45  ;;  %v370_v55 = vunpack.c.h.bf16 %v333_v48  ;;  %v453_v56 = vmul.f32 %v373_v47, %v373_v47  ;;  %v369_v57 = vunpack.c.l.bf16 %v333_v48  ;;  %v357_v24 = vld [vmem:[%s1136_s27 + $0xe0] sm:$0xff] }
  0x1d   : > { %512 = vmatpush1.msra.mxu0 %v465_v26  ;;  %603 = vmatpush1.msra.mxu1 %v383_v22  ;;  %v452_v59 = vmul.f32 %v372_v50, %v372_v50  ;;  %v368_v60 = vunpack.c.h.bf16 %v332_v53  ;;  %v451_v61 = vmul.f32 %v371_v52, %v371_v52  ;;  %v367_v62 = vunpack.c.l.bf16 %v332_v53 }
  0x1e   : > { %513 = vmatprep.subr.mxu0 %v464_v29  ;;  %604 = vmatprep.subr.mxu1 %v382_v25  ;;  %v450_v0 = vmul.f32 %v370_v55, %v370_v55  ;;  %v366_v1 = vunpack.c.h.bf16 %v331_v58  ;;  %v449_v2 = vmul.f32 %v369_v57, %v369_v57  ;;  %v365_v3 = vunpack.c.l.bf16 %v331_v58  ;;  %v356_v29 = vld [vmem:[%s1136_s27 + $0xd8] sm:$0xff] }
  0x1f   : > { %514 = vmatpush1.msra.mxu0 %v463_v31  ;;  %605 = vmatpush1.msra.mxu1 %v381_v27  ;;  %v448_v5 = vmul.f32 %v368_v60, %v368_v60  ;;  %v364_v6 = vunpack.c.h.bf16 %v330_v63  ;;  %v447_v7 = vmul.f32 %v367_v62, %v367_v62  ;;  %v363_v8 = vunpack.c.l.bf16 %v330_v63 }
  0x20   : > { %515 = vmatprep.subr.mxu0 %v462_v34  ;;  %606 = vmatprep.subr.mxu1 %v380_v30  ;;  %v446_v10 = vmul.f32 %v366_v1, %v366_v1  ;;  %v362_v11 = vunpack.c.h.bf16 %v329_v4  ;;  %v445_v12 = vmul.f32 %v365_v3, %v365_v3  ;;  %v361_v13 = vunpack.c.l.bf16 %v329_v4  ;;  %v355_v34 = vld [vmem:[%s1136_s27 + $0xd0] sm:$0xff] }
  0x21   : > { %516 = vmatpush1.msra.mxu0 %v461_v36  ;;  %607 = vmatpush1.msra.mxu1 %v379_v32  ;;  %v444_v15 = vmul.f32 %v364_v6, %v364_v6  ;;  %v424_v16 = vunpack.c.h.bf16 %v360_v9  ;;  %v443_v17 = vmul.f32 %v363_v8, %v363_v8  ;;  %v423_v18 = vunpack.c.l.bf16 %v360_v9 }
  0x22   : > { %517 = vmatprep.subr.mxu0 %v460_v39  ;;  %608 = vmatprep.subr.mxu1 %v378_v35  ;;  %v442_v20 = vmul.f32 %v362_v11, %v362_v11  ;;  %v422_v21 = vunpack.c.h.bf16 %v359_v14  ;;  %v441_v22 = vmul.f32 %v361_v13, %v361_v13  ;;  %v421_v23 = vunpack.c.l.bf16 %v359_v14  ;;  %v354_v39 = vld [vmem:[%s1136_s27 + $0xc8] sm:$0xff] }
  0x23   : > { %518 = vmatpush1.msra.mxu0 %v459_v41  ;;  %609 = vmatpush1.msra.mxu1 %v377_v37  ;;  %v504_v25 = vmul.f32 %v424_v16, %v424_v16  ;;  %v420_v26 = vunpack.c.h.bf16 %v358_v19  ;;  %v503_v27 = vmul.f32 %v423_v18, %v423_v18  ;;  %v419_v28 = vunpack.c.l.bf16 %v358_v19 }
  0x24   : > { %519 = vmatprep.subr.mxu0 %v458_v44  ;;  %610 = vmatprep.subr.mxu1 %v376_v40  ;;  %v502_v30 = vmul.f32 %v422_v21, %v422_v21  ;;  %v418_v31 = vunpack.c.h.bf16 %v357_v24  ;;  %v501_v32 = vmul.f32 %v421_v23, %v421_v23  ;;  %v417_v33 = vunpack.c.l.bf16 %v357_v24  ;;  %v353_v44 = vld [vmem:[%s1136_s27 + $0xc0] sm:$0xff] }
  0x25   : > { %520 = vmatpush1.msra.mxu0 %v457_v46  ;;  %611 = vmatpush1.msra.mxu1 %v375_v42  ;;  %v500_v35 = vmul.f32 %v420_v26, %v420_v26  ;;  %v416_v36 = vunpack.c.h.bf16 %v356_v29  ;;  %v499_v37 = vmul.f32 %v419_v28, %v419_v28  ;;  %v415_v38 = vunpack.c.l.bf16 %v356_v29 }
  0x26   : > { %521 = vmatprep.subr.mxu0 %v456_v49  ;;  %612 = vmatprep.subr.mxu1 %v374_v45  ;;  %v498_v40 = vmul.f32 %v418_v31, %v418_v31  ;;  %v414_v41 = vunpack.c.h.bf16 %v355_v34  ;;  %v497_v42 = vmul.f32 %v417_v33, %v417_v33  ;;  %v413_v43 = vunpack.c.l.bf16 %v355_v34  ;;  %v352_v49 = vld [vmem:[%s1136_s27 + $0xb8] sm:$0xff]  ;;  %v425_v34 = vld [vmem:[%s1177_s7] sm:$0xff] }
  0x27   : > { %522 = vmatpush1.msra.mxu0 %v455_v51  ;;  %613 = vmatpush1.msra.mxu1 %v373_v47  ;;  %v496_v45 = vmul.f32 %v416_v36, %v416_v36  ;;  %v412_v46 = vunpack.c.h.bf16 %v354_v39  ;;  %v495_v47 = vmul.f32 %v415_v38, %v415_v38  ;;  %v411_v48 = vunpack.c.l.bf16 %v354_v39  ;;  %v436_v39 = vld [vmem:[%s1183_s11 + $0x18] sm:$0xff] }
  0x28   : > { %523 = vmatprep.subr.mxu0 %v454_v54  ;;  %614 = vmatprep.subr.mxu1 %v372_v50  ;;  %v494_v50 = vmul.f32 %v414_v41, %v414_v41  ;;  %v410_v51 = vunpack.c.h.bf16 %v353_v44  ;;  %v409_v53 = vunpack.c.l.bf16 %v353_v44  ;;  %v351_v54 = vld [vmem:[%s1136_s27 + $0xb0] sm:$0xff]  ;;  %v407_v58 = vunpack.c.l.bf16 %v352_v49  ;;  %v684_v44 = vld [vmem:[%s311_s14 + $0x8] sm:$0xff] }
  0x29   : > { %524 = vmatpush1.msra.mxu0 %v453_v56  ;;  %615 = vmatpush1.msra.mxu1 %v371_v52  ;;  %v493_v52 = vmul.f32 %v413_v43, %v413_v43  ;;  %v408_v56 = vunpack.c.h.bf16 %v352_v49  ;;  %v405_v63 = vunpack.c.l.bf16 %v351_v54  ;;  %v437_v49 = vld [vmem:[%s1183_s11 + $0x20] sm:$0xff] }
  0x2a   : > { %525 = vmatprep.subr.mxu0 %v452_v59  ;;  %616 = vmatprep.subr.mxu1 %v370_v55  ;;  %v492_v55 = vmul.f32 %v412_v46, %v412_v46  ;;  %v350_v59 = vld [vmem:[%s1136_s27 + $0xa8] sm:$0xff] }
  0x2b   : > { %526 = vmatpush1.msra.mxu0 %v451_v61  ;;  %617 = vmatpush1.msra.mxu1 %v369_v57  ;;  %v491_v57 = vmul.f32 %v411_v48, %v411_v48  ;;  %v406_v61 = vunpack.c.h.bf16 %v351_v54  ;;  %v403_v4 = vunpack.c.l.bf16 %v350_v59 }
  0x2c   : > { %527 = vmatprep.subr.mxu0 %v450_v0  ;;  %618 = vmatprep.subr.mxu1 %v368_v60  ;;  %v490_v60 = vmul.f32 %v410_v51, %v410_v51  ;;  %v349_v0 = vld [vmem:[%s1136_s27 + $0xa0] sm:$0xff] }
  0x2d   : > { %528 = vmatpush1.msra.mxu0 %v449_v2  ;;  %619 = vmatpush1.msra.mxu1 %v367_v62  ;;  %v489_v62 = vmul.f32 %v409_v53, %v409_v53  ;;  %v404_v2 = vunpack.c.h.bf16 %v350_v59  ;;  %v401_v9 = vunpack.c.l.bf16 %v349_v0 }
  0x2e   : > { %529 = vmatprep.subr.mxu0 %v448_v5  ;;  %620 = vmatprep.subr.mxu1 %v366_v1  ;;  %v488_v1 = vmul.f32 %v408_v56, %v408_v56  ;;  %v348_v5 = vld [vmem:[%s1136_s27 + $0x98] sm:$0xff] }
  0x2f   : > { %530 = vmatpush1.msra.mxu0 %v447_v7  ;;  %621 = vmatpush1.msra.mxu1 %v365_v3  ;;  %v487_v3 = vmul.f32 %v407_v58, %v407_v58  ;;  %v402_v7 = vunpack.c.h.bf16 %v349_v0  ;;  %v399_v14 = vunpack.c.l.bf16 %v348_v5 }
  0x30   : > { %531 = vmatprep.subr.mxu0 %v446_v10  ;;  %622 = vmatprep.subr.mxu1 %v364_v6  ;;  %v486_v6 = vmul.f32 %v406_v61, %v406_v61  ;;  %v347_v10 = vld [vmem:[%s1136_s27 + $0x90] sm:$0xff] }
  0x31   : > { %532 = vmatpush1.msra.mxu0 %v445_v12  ;;  %623 = vmatpush1.msra.mxu1 %v363_v8  ;;  %v485_v8 = vmul.f32 %v405_v63, %v405_v63  ;;  %v400_v12 = vunpack.c.h.bf16 %v348_v5  ;;  %v397_v19 = vunpack.c.l.bf16 %v347_v10 }
  0x32   : > { %533 = vmatprep.subr.mxu0 %v444_v15  ;;  %624 = vmatprep.subr.mxu1 %v362_v11  ;;  %v484_v11 = vmul.f32 %v404_v2, %v404_v2  ;;  %v346_v15 = vld [vmem:[%s1136_s27 + $0x88] sm:$0xff] }
  0x33   : > { %534 = vmatpush1.msra.mxu0 %v443_v17  ;;  %625 = vmatpush1.msra.mxu1 %v361_v13  ;;  %v483_v13 = vmul.f32 %v403_v4, %v403_v4  ;;  %v398_v17 = vunpack.c.h.bf16 %v347_v10  ;;  %v395_v24 = vunpack.c.l.bf16 %v346_v15 }
  0x34   : > { %535 = vmatprep.subr.mxu0 %v442_v20  ;;  %626 = vmatprep.subr.mxu1 %v424_v16  ;;  %v482_v16 = vmul.f32 %v402_v7, %v402_v7  ;;  %v345_v20 = vld [vmem:[%s1136_s27 + $0x80] sm:$0xff] }
  0x35   : > { %536 = vmatpush1.msra.mxu0 %v441_v22  ;;  %627 = vmatpush2.msra.mxu1 %v423_v18  ;;  %v481_v18 = vmul.f32 %v401_v9, %v401_v9  ;;  %v396_v22 = vunpack.c.h.bf16 %v346_v15 }
  0x36   : > { %537 = vmatprep.subr.mxu0 %v504_v25  ;;  %628 = vmatprep.subr.mxu1 %v422_v21  ;;  %v480_v21 = vmul.f32 %v400_v12, %v400_v12  ;;  %v478_v25 = vmul.f32 %v398_v17, %v398_v17 }
  0x37   : > { %538 = vmatpush2.msra.mxu0 %v503_v27  ;;  %629 = vmatpush2.msra.mxu1 %v421_v23  ;;  %v479_v23 = vmul.f32 %v399_v14, %v399_v14  ;;  %v477_v27 = vmul.f32 %v397_v19, %v397_v19  ;;  %v476_v29 = vmul.f32 %v396_v22, %v396_v22 }
  0x38   : > { %539 = vmatprep.subr.mxu0 %v502_v30  ;;  %630 = vmatprep.subr.mxu1 %v420_v26  ;;  %v394_v26 = vunpack.c.h.bf16 %v345_v20  ;;  %v475_v30 = vmul.f32 %v395_v24, %v395_v24 }
  0x39   : > { %540 = vmatpush2.msra.mxu0 %v501_v32  ;;  %631 = vmatpush2.msra.mxu1 %v419_v28  ;;  %v393_v28 = vunpack.c.l.bf16 %v345_v20  ;;  %v426_v32 = vld [vmem:[%s1177_s7 + $0x8] sm:$0xff] }
  0x3a   : > { %541 = vmatprep.subr.mxu0 %v500_v35  ;;  %632 = vmatprep.subr.mxu1 %v418_v31  ;;  %v474_v31 = vmul.f32 %v394_v26, %v394_v26  ;;  %v434_v35 = vld [vmem:[%s1183_s11 + $0x8] sm:$0xff] }
  0x3b   : > { %542 = vmatpush2.msra.mxu0 %v499_v37  ;;  %633 = vmatpush2.msra.mxu1 %v417_v33  ;;  %v473_v33 = vmul.f32 %v393_v28, %v393_v28  ;;  %v433_v37 = vld [vmem:[%s1183_s11] sm:$0xff] }
  0x3c   : > { %543 = vmatprep.subr.mxu0 %v498_v40  ;;  %634 = vmatprep.subr.mxu1 %v416_v36  ;;  %v428_v36 = vld [vmem:[%s1177_s7 + $0x18] sm:$0xff]  ;;  %v685_v40 = vld [vmem:[%s311_s14 + $0x10] sm:$0xff] }
  0x3d   : > { %544 = vmatpush2.msra.mxu0 %v497_v42  ;;  %635 = vmatpush2.msra.mxu1 %v415_v38  ;;  %v683_v38 = vld [vmem:[%s311_s14] sm:$0xff]  ;;  %v430_v42 = vld [vmem:[%s1177_s7 + $0x28] sm:$0xff] }
  0x3e   : > { %545 = vmatprep.subr.mxu0 %v496_v45  ;;  %636 = vmatprep.subr.mxu1 %v414_v41  ;;  %v427_v41 = vld [vmem:[%s1177_s7 + $0x10] sm:$0xff]  ;;  %v438_v45 = vld [vmem:[%s1183_s11 + $0x28] sm:$0xff] }
  0x3f   : > { %546 = vmatpush2.msra.mxu0 %v495_v47  ;;  %637 = vmatpush2.msra.mxu1 %v413_v43  ;;  %v435_v43 = vld [vmem:[%s1183_s11 + $0x10] sm:$0xff]  ;;  %v429_v47 = vld [vmem:[%s1177_s7 + $0x20] sm:$0xff] }
  0x40   : > { %547 = vmatprep.subr.mxu0 %v494_v50  ;;  %638 = vmatprep.subr.mxu1 %v412_v46  ;;  %v686_v46 = vld [vmem:[%s311_s14 + $0x18] sm:$0xff] }
  0x41   : > { %548 = vmatpush2.msra.mxu0 %v493_v52  ;;  %639 = vmatpush2.msra.mxu1 %v411_v48  ;;  %v432_v48 = vld [vmem:[%s1177_s7 + $0x38] sm:$0xff]  ;;  %v439_v52 = vld [vmem:[%s1183_s11 + $0x30] sm:$0xff] }
  0x42   : > { %549 = vmatprep.subr.mxu0 %v492_v55  ;;  %640 = vmatprep.subr.mxu1 %v410_v51  ;;  %v440_v50 = vld [vmem:[%s1183_s11 + $0x38] sm:$0xff]  ;;  %v431_v51 = vld [vmem:[%s1177_s7 + $0x30] sm:$0xff] }
  0x43   : > { %550 = vmatpush2.msra.mxu0 %v491_v57  ;;  %641 = vmatpush2.msra.mxu1 %v409_v53 }
  0x44   : > { %551 = vmatprep.subr.mxu0 %v490_v60  ;;  %642 = vmatprep.subr.mxu1 %v408_v56 }
  0x45   : > { %552 = vmatpush2.msra.mxu0 %v489_v62  ;;  %643 = vmatpush2.msra.mxu1 %v407_v58 }
  0x46   : > { %553 = vmatprep.subr.mxu0 %v488_v1  ;;  %644 = vmatprep.subr.mxu1 %v406_v61 }
  0x47   : > { %554 = vmatpush2.msra.mxu0 %v487_v3  ;;  %645 = vmatpush2.msra.mxu1 %v405_v63 }
  0x48   : > { %555 = vmatprep.subr.mxu0 %v486_v6  ;;  %646 = vmatprep.subr.mxu1 %v404_v2 }
  0x49   : > { %556 = vmatpush2.msra.mxu0 %v485_v8  ;;  %647 = vmatpush2.msra.mxu1 %v403_v4 }
  0x4a   : > { %557 = vmatprep.subr.mxu0 %v484_v11  ;;  %648 = vmatprep.subr.mxu1 %v402_v7 }
  0x4b   : > { %558 = vmatpush2.msra.mxu0 %v483_v13  ;;  %649 = vmatpush2.msra.mxu1 %v401_v9 }
  0x4c   : > { %559 = vmatprep.subr.mxu0 %v482_v16  ;;  %650 = vmatprep.subr.mxu1 %v400_v12 }
  0x4d   : > { %560 = vmatpush2.msra.mxu0 %v481_v18  ;;  %651 = vmatpush2.msra.mxu1 %v399_v14 }
  0x4e   : > { %561 = vmatprep.subr.mxu0 %v480_v21  ;;  %652 = vmatprep.subr.mxu1 %v398_v17 }
  0x4f   : > { %562 = vmatpush2.msra.mxu0 %v479_v23  ;;  %653 = vmatpush2.msra.mxu1 %v397_v19 }
  0x50   : > { %563 = vmatprep.subr.mxu0 %v478_v25  ;;  %654 = vmatprep.subr.mxu1 %v396_v22 }
  0x51   : > { %564 = vmatpush2.msra.mxu0 %v477_v27  ;;  %655 = vmatpush2.msra.mxu1 %v395_v24 }
  0x52   : > { %565 = vmatprep.subr.mxu0 %v476_v29  ;;  %656 = vmatprep.subr.mxu1 %v394_v26 }
  0x53   : > { %566 = vmatpush2.msra.mxu0 %v475_v30  ;;  %657 = vmatpush2.msra.mxu1 %v393_v28 }
  0x54   : > { %658 = vmatprep.mubr.f32.mxu1 %v426_v32  ;;  %567 = vmatprep.subr.mxu0 %v474_v31 }
  0x55   : > { %659 = vmatmul.mubr.f32.vlgmr.msra.gmra.mxu1 %v425_v34  ;;  %568 = vmatpush2.msra.mxu0 %v473_v33 }
  0x56   : > { %569 = vmatprep.mubr.f32.mxu0 %v434_v35  ;;  %664 = vmatprep.mubr.f32.mxu1 %v428_v36 }
  0x57   : > { %570 = vmatmul.mubr.f32.vlgmr.msra.gmra.mxu0 %v433_v37  ;;  %689 = vperm.xlu0 %1009, %v683_v38  }
  0x58   : > { %575 = vmatprep.mubr.f32.mxu0 %v436_v39  ;;  %699 = vperm.xlu1 %1010, %v685_v40  }
  0x59   : > { %665 = vmatmul.mubr.f32.gmra.mxu1 %v427_v41 }
  0x5a   : > { %670 = vmatprep.mubr.f32.mxu1 %v430_v42 }
  0x5b   : > { %576 = vmatmul.mubr.f32.gmra.mxu0 %v435_v43  ;;  %694 = vperm.xlu0 %1009, %v684_v44  }
  0x5c   : > { %581 = vmatprep.mubr.f32.mxu0 %v438_v45  ;;  %704 = vperm.xlu1 %1010, %v686_v46  }
  0x5d   : > { %671 = vmatmul.mubr.f32.gmra.mxu1 %v429_v47 }
  0x5e   : > { %676 = vmatprep.mubr.f32.mxu1 %v432_v48 }
  0x5f   : > { %582 = vmatmul.mubr.f32.gmra.mxu0 %v437_v49 }
  0x60   : > { %587 = vmatprep.mubr.f32.mxu0 %v440_v50 }
  0x61   : > { %677 = vmatmul.mubr.f32.gmra.mxu1 %v431_v51 }
  0x63   : > { %588 = vmatmul.mubr.f32.gmra.mxu0 %v439_v52 }
  0xd2   : > { %v690_v54 = vpop.permute.xlu0 %689 }
  0xd3   : > { %v700_v11 = vpop.permute.xlu1 %699 }
  0xd6   : > { %v695_v2 = vpop.permute.xlu0 %694 }
  0xd7   : > { %v705_v25 = vpop.permute.xlu1 %704 }
 0x115   : > { %v660_v53 = vpop.f32.mrf.mxu1 }
 0x117   : > { %v571_v55 = vpop.f32.mrf.mxu0  ;;  %v662_v56 = vpop.f32.mrf.mxu1 }
 0x118   : > { %v661_v57 = vadd.f32 %v660_v53, %v571_v55 }
 0x119   : > { %v573_v58 = vpop.f32.mrf.mxu0  ;;  %v666_v59 = vpop.f32.mrf.mxu1 }
 0x11a   : > { %v663_v60 = vadd.f32 %v662_v56, %v573_v58  ;;  %v707_v63 = vadd.f32 %v690_v54, %v661_v57 }
 0x11b   : > { %v577_v61 = vpop.f32.mrf.mxu0  ;;  %v668_v62 = vpop.f32.mrf.mxu1 }
 0x11c   : > { %v708_v0 = vadd.f32 %v690_v54, %v663_v60  ;;  %v667_v1 = vadd.f32 %v666_v59, %v577_v61 }
 0x11d   : > { %v579_v3 = vpop.f32.mrf.mxu0  ;;  %v672_v4 = vpop.f32.mrf.mxu1 }
 0x11e   : > { %v669_v5 = vadd.f32 %v668_v62, %v579_v3  ;;  %v715_v6 = vadd.f32 %v708_v0, %v707_v63  ;;  %v709_v9 = vadd.f32 %v695_v2, %v667_v1 }
 0x11f   : > { %v583_v7 = vpop.f32.mrf.mxu0  ;;  %v674_v8 = vpop.f32.mrf.mxu1 }
 0x120   : > { %v710_v10 = vadd.f32 %v695_v2, %v669_v5  ;;  %v673_v12 = vadd.f32 %v672_v4, %v583_v7  ;;  %716 = vadd.xlane.f32.xlu0 %v715_v6 }
 0x121   : > { %v585_v13 = vpop.f32.mrf.mxu0  ;;  %v678_v14 = vpop.f32.mrf.mxu1 }
 0x122   : > { %v675_v15 = vadd.f32 %v674_v8, %v585_v13  ;;  %v718_v16 = vadd.f32 %v710_v10, %v709_v9  ;;  %v711_v18 = vadd.f32 %v700_v11, %v673_v12 }
 0x123   : > { %v589_v17 = vpop.f32.mrf.mxu0  ;;  %v680_v21 = vpop.f32.mrf.mxu1 }
 0x124   : > { %v712_v19 = vadd.f32 %v700_v11, %v675_v15  ;;  %v679_v20 = vadd.f32 %v678_v14, %v589_v17  ;;  %719 = vadd.xlane.f32.xlu1 %v718_v16 }
 0x125   : > { %v591_v22 = vpop.f32.mrf.mxu0 }
 0x126   : > { %v681_v23 = vadd.f32 %v680_v21, %v591_v22  ;;  %v721_v24 = vadd.f32 %v712_v19, %v711_v18  ;;  %v713_v26 = vadd.f32 %v705_v25, %v679_v20 }
 0x128   : > { %v714_v27 = vadd.f32 %v705_v25, %v681_v23  ;;  %722 = vadd.xlane.f32.xlu0 %v721_v24 }
 0x12a   : > { %v724_v28 = vadd.f32 %v714_v27, %v713_v26 }
 0x12c   : > { %725 = vadd.xlane.f32.xlu0 %v724_v28 }
 0x1a9   : > { %v717_v29 = vpop.xlane.xlu0 %716 }
 0x1aa   : > { %v728_v30 = vmul.f32 0.00390625, %v717_v29 }
 0x1ac   : > { %v732_v31 = vsub.f32 %v707_v63, %v728_v30  ;;  %v733_v32 = vsub.f32 %v708_v0, %v728_v30 }
 0x1ad   : > { %v720_v33 = vpop.xlane.xlu1 %719 }
 0x1ae   : > { %v729_v34 = vmul.f32 0.00390625, %v720_v33  ;;  %v740_v35 = vmul.f32 %v732_v31, %v732_v31  ;;  %v741_v36 = vmul.f32 %v733_v32, %v733_v32 }
 0x1b0   : > { %v734_v37 = vsub.f32 %v709_v9, %v729_v34  ;;  %v735_v38 = vsub.f32 %v710_v10, %v729_v34  ;;  %v748_v39 = vadd.f32 %v741_v36, %v740_v35 }
 0x1b1   : > { %v723_v40 = vpop.xlane.xlu0 %722 }
 0x1b2   : > { %v730_v41 = vmul.f32 0.00390625, %v723_v40  ;;  %749 = vadd.xlane.f32.xlu1 %v748_v39  ;;  %v742_v42 = vmul.f32 %v734_v37, %v734_v37  ;;  %v743_v43 = vmul.f32 %v735_v38, %v735_v38 }
 0x1b4   : > { %v736_v44 = vsub.f32 %v711_v18, %v730_v41  ;;  %v737_v45 = vsub.f32 %v712_v19, %v730_v41  ;;  %v751_v46 = vadd.f32 %v743_v43, %v742_v42 }
 0x1b5   : > { %v726_v47 = vpop.xlane.xlu0 %725 }
 0x1b6   : > { %v731_v48 = vmul.f32 0.00390625, %v726_v47  ;;  %752 = vadd.xlane.f32.xlu0 %v751_v46  ;;  %v744_v49 = vmul.f32 %v736_v44, %v736_v44  ;;  %v745_v50 = vmul.f32 %v737_v45, %v737_v45 }
 0x1b8   : > { %v738_v51 = vsub.f32 %v713_v26, %v731_v48  ;;  %v739_v52 = vsub.f32 %v714_v27, %v731_v48  ;;  %v754_v53 = vadd.f32 %v745_v50, %v744_v49 }
 0x1ba   : > { %755 = vadd.xlane.f32.xlu1 %v754_v53  ;;  %v746_v54 = vmul.f32 %v738_v51, %v738_v51  ;;  %v747_v55 = vmul.f32 %v739_v52, %v739_v52 }
 0x1bc   : > { %v757_v56 = vadd.f32 %v747_v55, %v746_v54 }
 0x1be   : > { %758 = vadd.xlane.f32.xlu0 %v757_v56 }
 0x23b   : > { %v750_v57 = vpop.xlane.xlu1 %749 }
 0x23c   : > { %v760_v58 = vmul.f32 0.00390625, %v750_v57 }
 0x23e   : > { %v764_v59 = vadd.f32 1e-05, %v760_v58 }
 0x23f   : > { %v753_v60 = vpop.xlane.xlu0 %752 }
 0x240   : > { %1011 = vrsqrt.f32 %v764_v59  ;;  %v761_v61 = vmul.f32 0.00390625, %v753_v60 }
 0x242   : > { %v765_v62 = vadd.f32 1e-05, %v761_v61 }
 0x243   : > { %v756_v63 = vpop.xlane.xlu1 %755 }
 0x244   : > { %1013 = vrsqrt.f32 %v765_v62  ;;  %v762_v0 = vmul.f32 0.00390625, %v756_v63 }
 0x246   : > { %v766_v1 = vadd.f32 1e-05, %v762_v0 }
 0x247   : > { %v759_v2 = vpop.xlane.xlu0 %758 }
 0x248   : > { %1015 = vrsqrt.f32 %v766_v1  ;;  %v763_v3 = vmul.f32 0.00390625, %v759_v2 }
 0x24a   : > { %v767_v4 = vadd.f32 1e-05, %v763_v3 }
 0x24c   : > { %1017 = vrsqrt.f32 %v767_v4 }
 0x24d   : > { %v1012_v5 = vpop.eup %1011 }
 0x24e   : > { %v772_v6 = vmul.f32 %v1012_v5, %v732_v31  ;;  %v773_v7 = vmul.f32 %v1012_v5, %v733_v32 }
 0x250   : > { %1019 = vtanh.f32 %v772_v6 }
 0x251   : > { %v1014_v8 = vpop.eup %1013  ;;  %1021 = vtanh.f32 %v773_v7 }
 0x252   : > { %v774_v9 = vmul.f32 %v1014_v8, %v734_v37  ;;  %v775_v10 = vmul.f32 %v1014_v8, %v735_v38 }
 0x254   : > { %1023 = vtanh.f32 %v774_v9 }
 0x255   : > { %v1016_v11 = vpop.eup %1015  ;;  %1025 = vtanh.f32 %v775_v10 }
 0x256   : > { %v776_v12 = vmul.f32 %v1016_v11, %v736_v44  ;;  %v777_v13 = vmul.f32 %v1016_v11, %v737_v45 }
 0x258   : > { %1027 = vtanh.f32 %v776_v12 }
 0x259   : > { %v1018_v14 = vpop.eup %1017  ;;  %1029 = vtanh.f32 %v777_v13 }
 0x25a   : > { %v778_v15 = vmul.f32 %v1018_v14, %v738_v51  ;;  %v779_v16 = vmul.f32 %v1018_v14, %v739_v52 }
 0x25c   : > { %1031 = vtanh.f32 %v778_v15 }
 0x25d   : > { %v1020_v17 = vpop.eup %1019  ;;  %1033 = vtanh.f32 %v779_v16 }
 0x25e   : > { %v1022_v18 = vpop.eup %1021  ;;  %788 = vst [vmem:[%s326_s23] sm:$0xff] %v1020_v17 }
 0x25f   : > { %789 = vst [vmem:[%s326_s23 + $0x8] sm:$0xff] %v1022_v18 }
 0x261   : > { %v1024_v19 = vpop.eup %1023 }
 0x262   : > { %v1026_v20 = vpop.eup %1025  ;;  %790 = vst [vmem:[%s326_s23 + $0x10] sm:$0xff] %v1024_v19 }
 0x263   : > { %791 = vst [vmem:[%s326_s23 + $0x18] sm:$0xff] %v1026_v20 }
 0x265   : > { %v1028_v21 = vpop.eup %1027 }
 0x266   : > { %v1030_v22 = vpop.eup %1029  ;;  %792 = vst [vmem:[%s326_s23 + $0x20] sm:$0xff] %v1028_v21 }
 0x267   : > { %793 = vst [vmem:[%s326_s23 + $0x28] sm:$0xff] %v1030_v22 }
 0x269   : > { %v1032_v23 = vpop.eup %1031 }
 0x26a   : > { %v1034_v24 = vpop.eup %1033  ;;  %794 = vst [vmem:[%s326_s23 + $0x30] sm:$0xff] %v1032_v23 }
 0x26b   : > { %795 = vst [vmem:[%s326_s23 + $0x38] sm:$0xff] %v1034_v24 }
 0x26c PF: > { %s14_s19 = sadd.s32 1, %s1073_s19   ;;  %s1228_s15 = smov %s1065_s17 }
 0x26d   : > { %p11_p7 = scmp.ge.s32.totalorder %s14_s19, 6   ;;  %s1229_s16 = smov %s1069_s18 }
 0x26e   : > { %s1230_s17 = smov %s1233_s20  ;;  %s1231_s18 = smov %s1237_s21 }
 0x26f   :  { %13 = sbr.rel (!%p11_p7) target bundleno = 3 (0x3), region = 75 }

// kernel: master_regressor_forward.6
= control target key start
LH: loop header
LB: loop body
LE: loop exit
PB: predicated region body
PF: predicated region fallthrough
CT: control target
= control target key end

     0   :  { %s1549_s15 = smov 0   ;;  %s2455_s0 = inlined_call_operand.vmem [shape: f32[2,16,1024], index: 0, kind: input, shape index: {}]   ;;  %s2456_s1 = inlined_call_operand.vmem [shape: f32[1024,64], index: 1, kind: input, shape index: {}]   ;;  %s2457_s2 = inlined_call_operand.vmem [shape: f32[1024,64], index: 2, kind: input, shape index: {}]   ;;  %s2458_s3 = inlined_call_operand.vmem [shape: f32[1,64], index: 3, kind: input, shape index: {}]   ;;  %s2459_s4 = inlined_call_operand.vmem [shape: f32[2,16,64], index: 4, kind: output, shape index: {}]  }
   0x1 LB: > { %s1184_s16 = sadd.s32 4294967295, %s1522_s15   ;;  %p1188_p0 = scmp.ge.s32.totalorder %s1522_s15, 1  ;;  %s1522_s15 = sphi %s1549_s15, %s14_s15  }
   0x2   : > { %p162_p1 = scmp.lt.s32.totalorder %s1522_s15, 3 }
   0x4   : > { %p163_p2 = pnand %p1188_p0, %p162_p1 }
   0x5   : > { %p1643_p3 = scmp.lt.s32.totalorder (!%p163_p2), %s1184_s16, 1 }
   0x6   : > { %166 = sbr.rel (%p163_p2) target bundleno = 433 (0x1b1), region = 36 }
   0xb   : > { %v389_v0 = vld [vmem:[%s2457_s2 + $0xf8] sm:$0xff]  ;;  %v388_v4 = vld [vmem:[%s2457_s2 + $0xf0] sm:$0xff]  ;;  %v387_v8 = vld [vmem:[%s2457_s2 + $0xe8] sm:$0xff]  ;;  %s2462_s16 = smov (!%p1643_p3, %s1184_s16), 1  ;;  %vm1095_vm0 = vcmask 523264  }
   0xc   : > { %v421_v1 = vld [vmem:[%s2457_s2 + $0x1f8] sm:$0xff]  ;;  %1198 = vmatprep.subr.mxu0 %v389_v0  ;;  %v420_v5 = vld [vmem:[%s2457_s2 + $0x1f0] sm:$0xff]  ;;  %v419_v9 = vld [vmem:[%s2457_s2 + $0x1e8] sm:$0xff]  ;;  %s1196_s8 = sshll.u32 %s2462_s16, 7  ;;  %s1197_s13 = sshll.u32 %s2462_s16, 4 }
   0xd   : > { %v373_v2 = vld [vmem:[%s2457_s2 + $0x78] sm:$0xff]  ;;  %1236 = vmatprep.subr.mxu1 %v421_v1  ;;  %v372_v6 = vld [vmem:[%s2457_s2 + $0x70] sm:$0xff]  ;;  %v371_v10 = vld [vmem:[%s2457_s2 + $0x68] sm:$0xff]  ;;  %s1723_s25 = scalar_lea.vmem %s2455_s0, %s1196_s8  ;;  %s197_s18 = scalar_lea.vmem %s2459_s4, %s1197_s13 }
   0xe   : > { %v405_v3 = vld [vmem:[%s2457_s2 + $0x178] sm:$0xff]  ;;  %1199 = vmatpush3.msra.mxu0 %v373_v2  ;;  %v404_v7 = vld [vmem:[%s2457_s2 + $0x170] sm:$0xff]  ;;  %v403_v11 = vld [vmem:[%s2457_s2 + $0x168] sm:$0xff] }
   0xf   : > { %1237 = vmatpush3.msra.mxu1 %v405_v3  ;;  %1200 = vmatprep.subr.mxu0 %v388_v4  ;;  %v386_v12 = vld [vmem:[%s2457_s2 + $0xe0] sm:$0xff]  ;;  %v385_v16 = vld [vmem:[%s2457_s2 + $0xd8] sm:$0xff]  ;;  %v384_v20 = vld [vmem:[%s2457_s2 + $0xd0] sm:$0xff] }
  0x10   : > { %1238 = vmatprep.subr.mxu1 %v420_v5  ;;  %1201 = vmatpush3.msra.mxu0 %v372_v6  ;;  %v418_v13 = vld [vmem:[%s2457_s2 + $0x1e0] sm:$0xff]  ;;  %v417_v17 = vld [vmem:[%s2457_s2 + $0x1d8] sm:$0xff]  ;;  %v416_v21 = vld [vmem:[%s2457_s2 + $0x1d0] sm:$0xff] }
  0x11   : > { %1239 = vmatpush3.msra.mxu1 %v404_v7  ;;  %1202 = vmatprep.subr.mxu0 %v387_v8  ;;  %v370_v14 = vld [vmem:[%s2457_s2 + $0x60] sm:$0xff]  ;;  %v369_v18 = vld [vmem:[%s2457_s2 + $0x58] sm:$0xff]  ;;  %v368_v22 = vld [vmem:[%s2457_s2 + $0x50] sm:$0xff] }
  0x12   : > { %1240 = vmatprep.subr.mxu1 %v419_v9  ;;  %v402_v15 = vld [vmem:[%s2457_s2 + $0x160] sm:$0xff]  ;;  %1203 = vmatpush3.msra.mxu0 %v371_v10  ;;  %v401_v19 = vld [vmem:[%s2457_s2 + $0x158] sm:$0xff]  ;;  %v400_v23 = vld [vmem:[%s2457_s2 + $0x150] sm:$0xff] }
  0x13   : > { %1241 = vmatpush3.msra.mxu1 %v403_v11  ;;  %1204 = vmatprep.subr.mxu0 %v386_v12  ;;  %v383_v24 = vld [vmem:[%s2457_s2 + $0xc8] sm:$0xff]  ;;  %v382_v28 = vld [vmem:[%s2457_s2 + $0xc0] sm:$0xff]  ;;  %v381_v32 = vld [vmem:[%s2457_s2 + $0xb8] sm:$0xff] }
  0x14   : > { %1242 = vmatprep.subr.mxu1 %v418_v13  ;;  %1205 = vmatpush3.msra.mxu0 %v370_v14  ;;  %v415_v25 = vld [vmem:[%s2457_s2 + $0x1c8] sm:$0xff]  ;;  %v414_v29 = vld [vmem:[%s2457_s2 + $0x1c0] sm:$0xff]  ;;  %v413_v33 = vld [vmem:[%s2457_s2 + $0x1b8] sm:$0xff] }
  0x15   : > { %1243 = vmatpush3.msra.mxu1 %v402_v15  ;;  %1206 = vmatprep.subr.mxu0 %v385_v16  ;;  %v367_v26 = vld [vmem:[%s2457_s2 + $0x48] sm:$0xff]  ;;  %v366_v30 = vld [vmem:[%s2457_s2 + $0x40] sm:$0xff]  ;;  %v365_v34 = vld [vmem:[%s2457_s2 + $0x38] sm:$0xff] }
  0x16   : > { %1244 = vmatprep.subr.mxu1 %v417_v17  ;;  %1207 = vmatpush3.msra.mxu0 %v369_v18  ;;  %v399_v27 = vld [vmem:[%s2457_s2 + $0x148] sm:$0xff]  ;;  %v398_v31 = vld [vmem:[%s2457_s2 + $0x140] sm:$0xff]  ;;  %v397_v35 = vld [vmem:[%s2457_s2 + $0x138] sm:$0xff] }
  0x17   : > { %1245 = vmatpush3.msra.mxu1 %v401_v19  ;;  %1208 = vmatprep.subr.mxu0 %v384_v20  ;;  %v380_v36 = vld [vmem:[%s2457_s2 + $0xb0] sm:$0xff]  ;;  %v379_v40 = vld [vmem:[%s2457_s2 + $0xa8] sm:$0xff]  ;;  %v378_v44 = vld [vmem:[%s2457_s2 + $0xa0] sm:$0xff] }
  0x18   : > { %1246 = vmatprep.subr.mxu1 %v416_v21  ;;  %1209 = vmatpush3.msra.mxu0 %v368_v22  ;;  %v412_v37 = vld [vmem:[%s2457_s2 + $0x1b0] sm:$0xff]  ;;  %v411_v41 = vld [vmem:[%s2457_s2 + $0x1a8] sm:$0xff]  ;;  %v410_v45 = vld [vmem:[%s2457_s2 + $0x1a0] sm:$0xff] }
  0x19   : > { %1247 = vmatpush3.msra.mxu1 %v400_v23  ;;  %1210 = vmatprep.subr.mxu0 %v383_v24  ;;  %v364_v38 = vld [vmem:[%s2457_s2 + $0x30] sm:$0xff]  ;;  %v363_v42 = vld [vmem:[%s2457_s2 + $0x28] sm:$0xff]  ;;  %v362_v46 = vld [vmem:[%s2457_s2 + $0x20] sm:$0xff] }
  0x1a   : > { %1248 = vmatprep.subr.mxu1 %v415_v25  ;;  %1211 = vmatpush3.msra.mxu0 %v367_v26  ;;  %v396_v39 = vld [vmem:[%s2457_s2 + $0x130] sm:$0xff]  ;;  %v395_v43 = vld [vmem:[%s2457_s2 + $0x128] sm:$0xff]  ;;  %v394_v47 = vld [vmem:[%s2457_s2 + $0x120] sm:$0xff] }
  0x1b   : > { %1249 = vmatpush3.msra.mxu1 %v399_v27  ;;  %1212 = vmatprep.subr.mxu0 %v382_v28  ;;  %v377_v48 = vld [vmem:[%s2457_s2 + $0x98] sm:$0xff]  ;;  %v376_v52 = vld [vmem:[%s2457_s2 + $0x90] sm:$0xff]  ;;  %v375_v56 = vld [vmem:[%s2457_s2 + $0x88] sm:$0xff] }
  0x1c   : > { %1250 = vmatprep.subr.mxu1 %v414_v29  ;;  %1213 = vmatpush3.msra.mxu0 %v366_v30  ;;  %v409_v49 = vld [vmem:[%s2457_s2 + $0x198] sm:$0xff]  ;;  %v408_v53 = vld [vmem:[%s2457_s2 + $0x190] sm:$0xff]  ;;  %v1747_v57 = vld [vmem:[%s1723_s25 + $0x8] sm:$0xff] }
  0x1d   : > { %1251 = vmatpush3.msra.mxu1 %v398_v31  ;;  %1214 = vmatprep.subr.mxu0 %v381_v32  ;;  %v361_v50 = vld [vmem:[%s2457_s2 + $0x18] sm:$0xff]  ;;  %v360_v54 = vld [vmem:[%s2457_s2 + $0x10] sm:$0xff]  ;;  %v407_v58 = vld [vmem:[%s2457_s2 + $0x188] sm:$0xff]  ;;  %v343_v2 = vmul.f32 %v1747_v57, %v1747_v57 }
  0x1e   : > { %1252 = vmatprep.subr.mxu1 %v413_v33  ;;  %1215 = vmatpush3.msra.mxu0 %v365_v34  ;;  %v393_v51 = vld [vmem:[%s2457_s2 + $0x118] sm:$0xff]  ;;  %v392_v55 = vld [vmem:[%s2457_s2 + $0x110] sm:$0xff]  ;;  %v359_v59 = vld [vmem:[%s2457_s2 + $0x8] sm:$0xff] }
  0x1f   : > { %1253 = vmatpush3.msra.mxu1 %v397_v35  ;;  %1216 = vmatprep.subr.mxu0 %v380_v36  ;;  %v1756_v60 = vld [vmem:[%s1723_s25 + $0x18] sm:$0xff]  ;;  %v391_v61 = vld [vmem:[%s2457_s2 + $0x108] sm:$0xff]  ;;  %v1762_v62 = vld [vmem:[%s1723_s25] sm:$0xff] }
  0x20   : > { %1254 = vmatprep.subr.mxu1 %v412_v37  ;;  %1217 = vmatpush3.msra.mxu0 %v364_v38  ;;  %v1765_v63 = vld [vmem:[%s1723_s25 + $0x10] sm:$0xff]  ;;  %v374_v0 = vld [vmem:[%s2457_s2 + $0x80] sm:$0xff]  ;;  %v345_v4 = vmul.f32 %v1756_v60, %v1756_v60  ;;  %v342_v6 = vmul.f32 %v1762_v62, %v1762_v62  ;;  %v453_v8 = vld [vmem:[%s2457_s2 + $0x2f8] sm:$0xff] }
  0x21   : > { %1255 = vmatpush3.msra.mxu1 %v396_v39  ;;  %1218 = vmatprep.subr.mxu0 %v379_v40  ;;  %v406_v1 = vld [vmem:[%s2457_s2 + $0x180] sm:$0xff]  ;;  %v344_v7 = vmul.f32 %v1765_v63, %v1765_v63  ;;  %v485_v9 = vld [vmem:[%s2457_s2 + $0x3f8] sm:$0xff]  ;;  %v452_v12 = vld [vmem:[%s2457_s2 + $0x2f0] sm:$0xff] }
  0x22   : > { %1256 = vmatprep.subr.mxu1 %v411_v41  ;;  %1219 = vmatpush3.msra.mxu0 %v363_v42  ;;  %v358_v3 = vld [vmem:[%s2457_s2] sm:$0xff]  ;;  %v437_v10 = vld [vmem:[%s2457_s2 + $0x278] sm:$0xff]  ;;  %v484_v13 = vld [vmem:[%s2457_s2 + $0x3f0] sm:$0xff] }
  0x23   : > { %1257 = vmatpush3.msra.mxu1 %v395_v43  ;;  %1220 = vmatprep.subr.mxu0 %v378_v44  ;;  %v390_v5 = vld [vmem:[%s2457_s2 + $0x100] sm:$0xff]  ;;  %v469_v11 = vld [vmem:[%s2457_s2 + $0x378] sm:$0xff]  ;;  %v436_v14 = vld [vmem:[%s2457_s2 + $0x270] sm:$0xff] }
  0x24   : > { %1258 = vmatprep.subr.mxu1 %v410_v45  ;;  %1221 = vmatpush3.msra.mxu0 %v362_v46  ;;  %v468_v15 = vld [vmem:[%s2457_s2 + $0x370] sm:$0xff]  ;;  %v451_v16 = vld [vmem:[%s2457_s2 + $0x2e8] sm:$0xff]  ;;  %v450_v20 = vld [vmem:[%s2457_s2 + $0x2e0] sm:$0xff] }
  0x25   : > { %1259 = vmatpush3.msra.mxu1 %v394_v47  ;;  %1222 = vmatprep.subr.mxu0 %v377_v48  ;;  %v483_v17 = vld [vmem:[%s2457_s2 + $0x3e8] sm:$0xff]  ;;  %v482_v21 = vld [vmem:[%s2457_s2 + $0x3e0] sm:$0xff]  ;;  %v449_v24 = vld [vmem:[%s2457_s2 + $0x2d8] sm:$0xff] }
  0x26   : > { %1260 = vmatprep.subr.mxu1 %v409_v49  ;;  %1223 = vmatpush3.msra.mxu0 %v361_v50  ;;  %v435_v18 = vld [vmem:[%s2457_s2 + $0x268] sm:$0xff]  ;;  %v434_v22 = vld [vmem:[%s2457_s2 + $0x260] sm:$0xff]  ;;  %v481_v25 = vld [vmem:[%s2457_s2 + $0x3d8] sm:$0xff] }
  0x27   : > { %1261 = vmatpush3.msra.mxu1 %v393_v51  ;;  %1224 = vmatprep.subr.mxu0 %v376_v52  ;;  %v467_v19 = vld [vmem:[%s2457_s2 + $0x368] sm:$0xff]  ;;  %v466_v23 = vld [vmem:[%s2457_s2 + $0x360] sm:$0xff]  ;;  %v433_v26 = vld [vmem:[%s2457_s2 + $0x258] sm:$0xff] }
  0x28   : > { %1262 = vmatprep.subr.mxu1 %v408_v53  ;;  %1225 = vmatpush3.msra.mxu0 %v360_v54  ;;  %v465_v27 = vld [vmem:[%s2457_s2 + $0x358] sm:$0xff]  ;;  %v448_v28 = vld [vmem:[%s2457_s2 + $0x2d0] sm:$0xff]  ;;  %v447_v32 = vld [vmem:[%s2457_s2 + $0x2c8] sm:$0xff] }
  0x29   : > { %1263 = vmatpush3.msra.mxu1 %v392_v55  ;;  %1226 = vmatprep.subr.mxu0 %v375_v56  ;;  %v480_v29 = vld [vmem:[%s2457_s2 + $0x3d0] sm:$0xff]  ;;  %v479_v33 = vld [vmem:[%s2457_s2 + $0x3c8] sm:$0xff]  ;;  %v446_v36 = vld [vmem:[%s2457_s2 + $0x2c0] sm:$0xff] }
  0x2a   : > { %1264 = vmatprep.subr.mxu1 %v407_v58  ;;  %1227 = vmatpush3.msra.mxu0 %v359_v59  ;;  %v432_v30 = vld [vmem:[%s2457_s2 + $0x250] sm:$0xff]  ;;  %v431_v34 = vld [vmem:[%s2457_s2 + $0x248] sm:$0xff]  ;;  %v478_v37 = vld [vmem:[%s2457_s2 + $0x3c0] sm:$0xff] }
  0x2b   : > { %1265 = vmatpush3.msra.mxu1 %v391_v61  ;;  %1228 = vmatprep.subr.mxu0 %v374_v0  ;;  %v464_v31 = vld [vmem:[%s2457_s2 + $0x350] sm:$0xff]  ;;  %v463_v35 = vld [vmem:[%s2457_s2 + $0x348] sm:$0xff]  ;;  %v430_v38 = vld [vmem:[%s2457_s2 + $0x240] sm:$0xff] }
  0x2c   : > { %1266 = vmatprep.subr.mxu1 %v406_v1  ;;  %1229 = vmatpush3.msra.mxu0 %v358_v3  ;;  %v462_v39 = vld [vmem:[%s2457_s2 + $0x340] sm:$0xff]  ;;  %v445_v40 = vld [vmem:[%s2457_s2 + $0x2b8] sm:$0xff]  ;;  %v444_v44 = vld [vmem:[%s2457_s2 + $0x2b0] sm:$0xff] }
  0x2d   : > { %550 = vmatprep.mubr.f32.mxu0 %v343_v2  ;;  %1267 = vmatpush3.msra.mxu1 %v390_v5  ;;  %v477_v41 = vld [vmem:[%s2457_s2 + $0x3b8] sm:$0xff]  ;;  %v476_v45 = vld [vmem:[%s2457_s2 + $0x3b0] sm:$0xff]  ;;  %v443_v48 = vld [vmem:[%s2457_s2 + $0x2a8] sm:$0xff] }
  0x2e   : > { %625 = vmatprep.mubr.f32.mxu1 %v345_v4  ;;  %551 = vmatmul.mubr.f32.vlgmr.msra.gmra.mxu0 %v342_v6  ;;  %v429_v42 = vld [vmem:[%s2457_s2 + $0x238] sm:$0xff]  ;;  %v428_v46 = vld [vmem:[%s2457_s2 + $0x230] sm:$0xff]  ;;  %v475_v49 = vld [vmem:[%s2457_s2 + $0x3a8] sm:$0xff] }
  0x2f   : > { %626 = vmatmul.mubr.f32.vlgmr.msra.gmra.mxu1 %v344_v7  ;;  %1274 = vmatprep.subr.mxu0 %v453_v8  ;;  %v461_v43 = vld [vmem:[%s2457_s2 + $0x338] sm:$0xff]  ;;  %v460_v47 = vld [vmem:[%s2457_s2 + $0x330] sm:$0xff]  ;;  %v427_v50 = vld [vmem:[%s2457_s2 + $0x228] sm:$0xff] }
  0x30   : > { %1312 = vmatprep.subr.mxu1 %v485_v9  ;;  %1275 = vmatpush3.msra.mxu0 %v437_v10  ;;  %v459_v51 = vld [vmem:[%s2457_s2 + $0x328] sm:$0xff]  ;;  %v442_v52 = vld [vmem:[%s2457_s2 + $0x2a0] sm:$0xff]  ;;  %v1929_v55 = vld [vmem:[%s1723_s25 + $0x58] sm:$0xff] }
  0x31   : > { %1313 = vmatpush3.msra.mxu1 %v469_v11  ;;  %1276 = vmatprep.subr.mxu0 %v452_v12  ;;  %v474_v53 = vld [vmem:[%s2457_s2 + $0x3a0] sm:$0xff]  ;;  %v1926_v54 = vld [vmem:[%s1723_s25 + $0x48] sm:$0xff]  ;;  %v441_v59 = vld [vmem:[%s2457_s2 + $0x298] sm:$0xff]  ;;  %v353_v5 = vmul.f32 %v1929_v55, %v1929_v55 }
  0x32   : > { %1314 = vmatprep.subr.mxu1 %v484_v13  ;;  %1277 = vmatpush3.msra.mxu0 %v436_v14  ;;  %v426_v56 = vld [vmem:[%s2457_s2 + $0x220] sm:$0xff]  ;;  %v473_v61 = vld [vmem:[%s2457_s2 + $0x398] sm:$0xff]  ;;  %v1947_v1 = vld [vmem:[%s1723_s25 + $0x50] sm:$0xff]  ;;  %v351_v4 = vmul.f32 %v1926_v54, %v1926_v54 }
  0x33   : > { %1315 = vmatpush3.msra.mxu1 %v468_v15  ;;  %1278 = vmatprep.subr.mxu0 %v451_v16  ;;  %v458_v58 = vld [vmem:[%s2457_s2 + $0x320] sm:$0xff]  ;;  %v425_v2 = vld [vmem:[%s2457_s2 + $0x218] sm:$0xff]  ;;  %v440_v6 = vld [vmem:[%s2457_s2 + $0x290] sm:$0xff]  ;;  %v352_v9 = vmul.f32 %v1947_v1, %v1947_v1 }
  0x34   : > { %1316 = vmatprep.subr.mxu1 %v483_v17  ;;  %1279 = vmatpush3.msra.mxu0 %v435_v18  ;;  %v1944_v0 = vld [vmem:[%s1723_s25 + $0x40] sm:$0xff]  ;;  %v457_v3 = vld [vmem:[%s2457_s2 + $0x318] sm:$0xff]  ;;  %v472_v7 = vld [vmem:[%s2457_s2 + $0x390] sm:$0xff] }
  0x35   : > { %1317 = vmatpush3.msra.mxu1 %v467_v19  ;;  %1280 = vmatprep.subr.mxu0 %v450_v20  ;;  %v350_v8 = vmul.f32 %v1944_v0, %v1944_v0  ;;  %v424_v10 = vld [vmem:[%s2457_s2 + $0x210] sm:$0xff]  ;;  %v1976_v12 = vld [vmem:[%s1723_s25 + $0x28] sm:$0xff]  ;;  %v1985_v15 = vld [vmem:[%s1723_s25 + $0x20] sm:$0xff] }
  0x36   : > { %1318 = vmatprep.subr.mxu1 %v482_v21  ;;  %1281 = vmatpush3.msra.mxu0 %v434_v22  ;;  %v456_v11 = vld [vmem:[%s2457_s2 + $0x310] sm:$0xff]  ;;  %v439_v13 = vld [vmem:[%s2457_s2 + $0x288] sm:$0xff]  ;;  %v1994_v18 = vld [vmem:[%s1723_s25 + $0x38] sm:$0xff]  ;;  %v347_v21 = vmul.f32 %v1976_v12, %v1976_v12 }
  0x37   : > { %1319 = vmatpush3.msra.mxu1 %v466_v23  ;;  %1282 = vmatprep.subr.mxu0 %v449_v24  ;;  %v471_v14 = vld [vmem:[%s2457_s2 + $0x388] sm:$0xff]  ;;  %v438_v19 = vld [vmem:[%s2457_s2 + $0x280] sm:$0xff]  ;;  %v2005_v22 = vld [vmem:[%s1723_s25 + $0x30] sm:$0xff]  ;;  %v346_v24 = vmul.f32 %v1985_v15, %v1985_v15 }
  0x38   : > { %1320 = vmatprep.subr.mxu1 %v481_v25  ;;  %1283 = vmatpush3.msra.mxu0 %v433_v26  ;;  %v423_v16 = vld [vmem:[%s2457_s2 + $0x208] sm:$0xff]  ;;  %v470_v20 = vld [vmem:[%s2457_s2 + $0x380] sm:$0xff]  ;;  %v349_v26 = vmul.f32 %v1994_v18, %v1994_v18 }
  0x39   : > { %1321 = vmatpush3.msra.mxu1 %v465_v27  ;;  %1284 = vmatprep.subr.mxu0 %v448_v28  ;;  %v455_v17 = vld [vmem:[%s2457_s2 + $0x308] sm:$0xff]  ;;  %v422_v23 = vld [vmem:[%s2457_s2 + $0x200] sm:$0xff]  ;;  %v245_v27 = vld [vmem:[%s2456_s1 + $0xf8] sm:$0xff]  ;;  %v348_v28 = vmul.f32 %v2005_v22, %v2005_v22 }
  0x3a   : > { %1322 = vmatprep.subr.mxu1 %v480_v29  ;;  %1285 = vmatpush3.msra.mxu0 %v432_v30  ;;  %v454_v25 = vld [vmem:[%s2457_s2 + $0x300] sm:$0xff]  ;;  %v2023_v29 = vld [vmem:[%s1723_s25 + $0x68] sm:$0xff]  ;;  %v277_v30 = vld [vmem:[%s2456_s1 + $0x1f8] sm:$0xff] }
  0x3b   : > { %1323 = vmatpush3.msra.mxu1 %v464_v31  ;;  %1286 = vmatprep.subr.mxu0 %v447_v32  ;;  %v2029_v31 = vld [vmem:[%s1723_s25 + $0x60] sm:$0xff]  ;;  %v229_v32 = vld [vmem:[%s2456_s1 + $0x78] sm:$0xff] }
  0x3c   : > { %1324 = vmatprep.subr.mxu1 %v479_v33  ;;  %1287 = vmatpush3.msra.mxu0 %v431_v34  ;;  %v261_v33 = vld [vmem:[%s2456_s1 + $0x178] sm:$0xff]  ;;  %v244_v34 = vld [vmem:[%s2456_s1 + $0xf0] sm:$0xff] }
  0x3d   : > { %1325 = vmatpush3.msra.mxu1 %v463_v35  ;;  %1288 = vmatprep.subr.mxu0 %v446_v36  ;;  %v276_v35 = vld [vmem:[%s2456_s1 + $0x1f0] sm:$0xff]  ;;  %v355_v36 = vmul.f32 %v2023_v29, %v2023_v29 }
  0x3e   : > { %1326 = vmatprep.subr.mxu1 %v478_v37  ;;  %1289 = vmatpush3.msra.mxu0 %v430_v38  ;;  %v2046_v37 = vld [vmem:[%s1723_s25 + $0x78] sm:$0xff]  ;;  %v228_v38 = vld [vmem:[%s2456_s1 + $0x70] sm:$0xff] }
  0x3f   : > { %1327 = vmatpush3.msra.mxu1 %v462_v39  ;;  %1290 = vmatprep.subr.mxu0 %v445_v40  ;;  %v354_v39 = vmul.f32 %v2029_v31, %v2029_v31  ;;  %v260_v40 = vld [vmem:[%s2456_s1 + $0x170] sm:$0xff] }
  0x40   : > { %1328 = vmatprep.subr.mxu1 %v477_v41  ;;  %1291 = vmatpush3.msra.mxu0 %v429_v42  ;;  %v2057_v41 = vld [vmem:[%s1723_s25 + $0x70] sm:$0xff]  ;;  %v243_v42 = vld [vmem:[%s2456_s1 + $0xe8] sm:$0xff] }
  0x41   : > { %1329 = vmatpush3.msra.mxu1 %v461_v43  ;;  %1292 = vmatprep.subr.mxu0 %v444_v44  ;;  %v275_v43 = vld [vmem:[%s2456_s1 + $0x1e8] sm:$0xff]  ;;  %v357_v44 = vmul.f32 %v2046_v37, %v2046_v37 }
  0x42   : > { %1330 = vmatprep.subr.mxu1 %v476_v45  ;;  %1293 = vmatpush3.msra.mxu0 %v428_v46  ;;  %v227_v45 = vld [vmem:[%s2456_s1 + $0x68] sm:$0xff] }
  0x43   : > { %1331 = vmatpush3.msra.mxu1 %v460_v47  ;;  %1294 = vmatprep.subr.mxu0 %v443_v48  ;;  %v259_v46 = vld [vmem:[%s2456_s1 + $0x168] sm:$0xff]  ;;  %v356_v47 = vmul.f32 %v2057_v41, %v2057_v41  ;;  %v242_v48 = vld [vmem:[%s2456_s1 + $0xe0] sm:$0xff] }
  0x44   : > { %1332 = vmatprep.subr.mxu1 %v475_v49  ;;  %1295 = vmatpush3.msra.mxu0 %v427_v50  ;;  %v274_v49 = vld [vmem:[%s2456_s1 + $0x1e0] sm:$0xff] }
  0x45   : > { %1333 = vmatpush3.msra.mxu1 %v459_v51  ;;  %1296 = vmatprep.subr.mxu0 %v442_v52  ;;  %v226_v50 = vld [vmem:[%s2456_s1 + $0x60] sm:$0xff]  ;;  %v241_v52 = vld [vmem:[%s2456_s1 + $0xd8] sm:$0xff] }
  0x46   : > { %1334 = vmatprep.subr.mxu1 %v474_v53  ;;  %1297 = vmatpush3.msra.mxu0 %v426_v56  ;;  %v258_v51 = vld [vmem:[%s2456_s1 + $0x160] sm:$0xff]  ;;  %v273_v53 = vld [vmem:[%s2456_s1 + $0x1d8] sm:$0xff] }
  0x47   : > { %1335 = vmatpush3.msra.mxu1 %v458_v58  ;;  %1298 = vmatprep.subr.mxu0 %v441_v59  ;;  %v225_v56 = vld [vmem:[%s2456_s1 + $0x58] sm:$0xff]  ;;  %v240_v59 = vld [vmem:[%s2456_s1 + $0xd0] sm:$0xff] }
  0x48   : > { %1336 = vmatprep.subr.mxu1 %v473_v61  ;;  %1299 = vmatpush3.msra.mxu0 %v425_v2  ;;  %v257_v58 = vld [vmem:[%s2456_s1 + $0x158] sm:$0xff]  ;;  %v272_v61 = vld [vmem:[%s2456_s1 + $0x1d0] sm:$0xff] }
  0x49   : > { %1337 = vmatpush3.msra.mxu1 %v457_v3  ;;  %555 = vmatprep.mubr.f32.mxu0 %v351_v4  ;;  %v224_v2 = vld [vmem:[%s2456_s1 + $0x50] sm:$0xff]  ;;  %v239_v4 = vld [vmem:[%s2456_s1 + $0xc8] sm:$0xff] }
  0x4a   : > { %630 = vmatprep.mubr.f32.mxu1 %v353_v5  ;;  %1300 = vmatprep.subr.mxu0 %v440_v6  ;;  %v256_v3 = vld [vmem:[%s2456_s1 + $0x150] sm:$0xff]  ;;  %v271_v5 = vld [vmem:[%s2456_s1 + $0x1c8] sm:$0xff] }
  0x4b   : > { %1338 = vmatprep.subr.mxu1 %v472_v7  ;;  %556 = vmatmul.mubr.f32.gmra.mxu0 %v350_v8  ;;  %v223_v6 = vld [vmem:[%s2456_s1 + $0x48] sm:$0xff]  ;;  %v238_v8 = vld [vmem:[%s2456_s1 + $0xc0] sm:$0xff] }
  0x4c   : > { %631 = vmatmul.mubr.f32.gmra.mxu1 %v352_v9  ;;  %1301 = vmatpush3.msra.mxu0 %v424_v10  ;;  %v255_v7 = vld [vmem:[%s2456_s1 + $0x148] sm:$0xff]  ;;  %v270_v9 = vld [vmem:[%s2456_s1 + $0x1c0] sm:$0xff] }
  0x4d   : > { %1339 = vmatpush3.msra.mxu1 %v456_v11  ;;  %1302 = vmatprep.subr.mxu0 %v439_v13  ;;  %v222_v10 = vld [vmem:[%s2456_s1 + $0x40] sm:$0xff]  ;;  %v237_v13 = vld [vmem:[%s2456_s1 + $0xb8] sm:$0xff] }
  0x4e   : > { %1340 = vmatprep.subr.mxu1 %v471_v14  ;;  %1303 = vmatpush3.msra.mxu0 %v423_v16  ;;  %v254_v11 = vld [vmem:[%s2456_s1 + $0x140] sm:$0xff]  ;;  %v269_v14 = vld [vmem:[%s2456_s1 + $0x1b8] sm:$0xff] }
  0x4f   : > { %1341 = vmatpush3.msra.mxu1 %v455_v17  ;;  %1304 = vmatprep.subr.mxu0 %v438_v19  ;;  %v221_v16 = vld [vmem:[%s2456_s1 + $0x38] sm:$0xff]  ;;  %v236_v19 = vld [vmem:[%s2456_s1 + $0xb0] sm:$0xff] }
  0x50   : > { %1342 = vmatprep.subr.mxu1 %v470_v20  ;;  %1305 = vmatpush3.msra.mxu0 %v422_v23  ;;  %v253_v17 = vld [vmem:[%s2456_s1 + $0x138] sm:$0xff]  ;;  %v268_v20 = vld [vmem:[%s2456_s1 + $0x1b0] sm:$0xff] }
  0x51   : > { %700 = vmatprep.mubr.f32.mxu0 %v347_v21  ;;  %1343 = vmatpush3.msra.mxu1 %v454_v25  ;;  %v220_v21 = vld [vmem:[%s2456_s1 + $0x30] sm:$0xff]  ;;  %v267_v25 = vld [vmem:[%s2456_s1 + $0x1a8] sm:$0xff] }
  0x52   : > { %701 = vmatmul.mubr.f32.vlgmr.msra.gmra.mxu0 %v346_v24  ;;  %775 = vmatprep.mubr.f32.mxu1 %v349_v26  ;;  %v252_v23 = vld [vmem:[%s2456_s1 + $0x130] sm:$0xff]  ;;  %v235_v24 = vld [vmem:[%s2456_s1 + $0xa8] sm:$0xff] }
  0x53   : > { %1350 = vmatprep.subr.mxu0 %v245_v27  ;;  %1388 = vmatprep.subr.mxu1 %v277_v30  ;;  %v219_v26 = vld [vmem:[%s2456_s1 + $0x28] sm:$0xff]  ;;  %v266_v30 = vld [vmem:[%s2456_s1 + $0x1a0] sm:$0xff] }
  0x54   : > { %776 = vmatmul.mubr.f32.vlgmr.msra.gmra.mxu1 %v348_v28  ;;  %1351 = vmatpush3.msra.mxu0 %v229_v32  ;;  %v251_v27 = vld [vmem:[%s2456_s1 + $0x128] sm:$0xff]  ;;  %v234_v28 = vld [vmem:[%s2456_s1 + $0xa0] sm:$0xff] }
  0x55   : > { %1389 = vmatpush3.msra.mxu1 %v261_v33  ;;  %1352 = vmatprep.subr.mxu0 %v244_v34  ;;  %v218_v32 = vld [vmem:[%s2456_s1 + $0x20] sm:$0xff]  ;;  %v233_v34 = vld [vmem:[%s2456_s1 + $0x98] sm:$0xff] }
  0x56   : > { %1390 = vmatprep.subr.mxu1 %v276_v35  ;;  %705 = vmatprep.mubr.f32.mxu0 %v355_v36  ;;  %v250_v33 = vld [vmem:[%s2456_s1 + $0x120] sm:$0xff]  ;;  %v265_v35 = vld [vmem:[%s2456_s1 + $0x198] sm:$0xff] }
  0x57   : > { %1353 = vmatpush3.msra.mxu0 %v228_v38  ;;  %1391 = vmatpush3.msra.mxu1 %v260_v40  ;;  %v217_v36 = vld [vmem:[%s2456_s1 + $0x18] sm:$0xff]  ;;  %v264_v40 = vld [vmem:[%s2456_s1 + $0x190] sm:$0xff] }
  0x58   : > { %706 = vmatmul.mubr.f32.gmra.mxu0 %v354_v39  ;;  %1354 = vmatprep.subr.mxu0 %v243_v42  ;;  %v249_v38 = vld [vmem:[%s2456_s1 + $0x118] sm:$0xff]  ;;  %v232_v39 = vld [vmem:[%s2456_s1 + $0x90] sm:$0xff] }
  0x59   : > { %1392 = vmatprep.subr.mxu1 %v275_v43  ;;  %780 = vmatprep.mubr.f32.mxu1 %v357_v44  ;;  %v216_v42 = vld [vmem:[%s2456_s1 + $0x10] sm:$0xff]  ;;  %v231_v44 = vld [vmem:[%s2456_s1 + $0x88] sm:$0xff] }
  0x5a   : > { %1355 = vmatpush3.msra.mxu0 %v227_v45  ;;  %1393 = vmatpush3.msra.mxu1 %v259_v46  ;;  %v248_v43 = vld [vmem:[%s2456_s1 + $0x110] sm:$0xff]  ;;  %v263_v45 = vld [vmem:[%s2456_s1 + $0x188] sm:$0xff] }
  0x5b   : > { %1356 = vmatprep.subr.mxu0 %v242_v48  ;;  %781 = vmatmul.mubr.f32.gmra.mxu1 %v356_v47  ;;  %v215_v46 = vld [vmem:[%s2456_s1 + $0x8] sm:$0xff]  ;;  %v230_v48 = vld [vmem:[%s2456_s1 + $0x80] sm:$0xff] }
  0x5c   : > { %1394 = vmatprep.subr.mxu1 %v274_v49  ;;  %1357 = vmatpush3.msra.mxu0 %v226_v50  ;;  %v247_v47 = vld [vmem:[%s2456_s1 + $0x108] sm:$0xff]  ;;  %v262_v49 = vld [vmem:[%s2456_s1 + $0x180] sm:$0xff] }
  0x5d   : > { %1395 = vmatpush3.msra.mxu1 %v258_v51  ;;  %1358 = vmatprep.subr.mxu0 %v241_v52  ;;  %v214_v50 = vld [vmem:[%s2456_s1] sm:$0xff]  ;;  %v309_v52 = vld [vmem:[%s2456_s1 + $0x2f8] sm:$0xff] }
  0x5e   : > { %1396 = vmatprep.subr.mxu1 %v273_v53  ;;  %1359 = vmatpush3.msra.mxu0 %v225_v56  ;;  %v246_v51 = vld [vmem:[%s2456_s1 + $0x100] sm:$0xff]  ;;  %v341_v53 = vld [vmem:[%s2456_s1 + $0x3f8] sm:$0xff] }
  0x5f   : > { %1397 = vmatpush3.msra.mxu1 %v257_v58  ;;  %1360 = vmatprep.subr.mxu0 %v240_v59  ;;  %v293_v56 = vld [vmem:[%s2456_s1 + $0x278] sm:$0xff]  ;;  %v340_v59 = vld [vmem:[%s2456_s1 + $0x3f0] sm:$0xff] }
  0x60   : > { %1398 = vmatprep.subr.mxu1 %v272_v61  ;;  %1361 = vmatpush3.msra.mxu0 %v224_v2  ;;  %v325_v58 = vld [vmem:[%s2456_s1 + $0x378] sm:$0xff]  ;;  %v307_v61 = vld [vmem:[%s2456_s1 + $0x2e8] sm:$0xff] }
  0x61   : > { %1399 = vmatpush3.msra.mxu1 %v256_v3  ;;  %1362 = vmatprep.subr.mxu0 %v239_v4  ;;  %v291_v2 = vld [vmem:[%s2456_s1 + $0x268] sm:$0xff]  ;;  %v306_v4 = vld [vmem:[%s2456_s1 + $0x2e0] sm:$0xff] }
  0x62   : > { %1400 = vmatprep.subr.mxu1 %v271_v5  ;;  %1363 = vmatpush3.msra.mxu0 %v223_v6  ;;  %v323_v3 = vld [vmem:[%s2456_s1 + $0x368] sm:$0xff]  ;;  %v322_v5 = vld [vmem:[%s2456_s1 + $0x360] sm:$0xff]  ;;  %v305_v6 = vld [vmem:[%s2456_s1 + $0x2d8] sm:$0xff] }
  0x63   : > { %1401 = vmatpush3.msra.mxu1 %v255_v7  ;;  %1364 = vmatprep.subr.mxu0 %v238_v8  ;;  %v337_v7 = vld [vmem:[%s2456_s1 + $0x3d8] sm:$0xff] }
  0x64   : > { %1402 = vmatprep.subr.mxu1 %v270_v9  ;;  %1365 = vmatpush3.msra.mxu0 %v222_v10  ;;  %v321_v8 = vld [vmem:[%s2456_s1 + $0x358] sm:$0xff]  ;;  %v304_v9 = vld [vmem:[%s2456_s1 + $0x2d0] sm:$0xff] }
  0x65   : > { %1403 = vmatpush3.msra.mxu1 %v254_v11  ;;  %1366 = vmatprep.subr.mxu0 %v237_v13  ;;  %v336_v10 = vld [vmem:[%s2456_s1 + $0x3d0] sm:$0xff]  ;;  %v303_v13 = vld [vmem:[%s2456_s1 + $0x2c8] sm:$0xff] }
  0x66   : > { %1404 = vmatprep.subr.mxu1 %v269_v14  ;;  %1367 = vmatpush3.msra.mxu0 %v221_v16  ;;  %v320_v11 = vld [vmem:[%s2456_s1 + $0x350] sm:$0xff]  ;;  %v335_v14 = vld [vmem:[%s2456_s1 + $0x3c8] sm:$0xff] }
  0x67   : > { %1405 = vmatpush3.msra.mxu1 %v253_v17  ;;  %1368 = vmatprep.subr.mxu0 %v236_v19  ;;  %v287_v16 = vld [vmem:[%s2456_s1 + $0x248] sm:$0xff]  ;;  %v302_v19 = vld [vmem:[%s2456_s1 + $0x2c0] sm:$0xff] }
  0x68   : > { %1406 = vmatprep.subr.mxu1 %v268_v20  ;;  %1369 = vmatpush3.msra.mxu0 %v220_v21  ;;  %v319_v17 = vld [vmem:[%s2456_s1 + $0x348] sm:$0xff]  ;;  %v334_v20 = vld [vmem:[%s2456_s1 + $0x3c0] sm:$0xff] }
  0x69   : > { %1407 = vmatpush3.msra.mxu1 %v252_v23  ;;  %1370 = vmatprep.subr.mxu0 %v235_v24  ;;  %v286_v21 = vld [vmem:[%s2456_s1 + $0x240] sm:$0xff]  ;;  %v301_v24 = vld [vmem:[%s2456_s1 + $0x2b8] sm:$0xff] }
  0x6a   : > { %1408 = vmatprep.subr.mxu1 %v267_v25  ;;  %1371 = vmatpush3.msra.mxu0 %v219_v26  ;;  %v318_v23 = vld [vmem:[%s2456_s1 + $0x340] sm:$0xff]  ;;  %v333_v25 = vld [vmem:[%s2456_s1 + $0x3b8] sm:$0xff] }
  0x6b   : > { %1409 = vmatpush3.msra.mxu1 %v251_v27  ;;  %1372 = vmatprep.subr.mxu0 %v234_v28  ;;  %v285_v26 = vld [vmem:[%s2456_s1 + $0x238] sm:$0xff]  ;;  %v300_v28 = vld [vmem:[%s2456_s1 + $0x2b0] sm:$0xff] }
  0x6c   : > { %1410 = vmatprep.subr.mxu1 %v266_v30  ;;  %1373 = vmatpush3.msra.mxu0 %v218_v32  ;;  %v317_v27 = vld [vmem:[%s2456_s1 + $0x338] sm:$0xff]  ;;  %v332_v30 = vld [vmem:[%s2456_s1 + $0x3b0] sm:$0xff] }
  0x6d   : > { %1411 = vmatpush3.msra.mxu1 %v250_v33  ;;  %1374 = vmatprep.subr.mxu0 %v233_v34  ;;  %v284_v32 = vld [vmem:[%s2456_s1 + $0x230] sm:$0xff]  ;;  %v299_v34 = vld [vmem:[%s2456_s1 + $0x2a8] sm:$0xff] }
  0x6e   : > { %1412 = vmatprep.subr.mxu1 %v265_v35  ;;  %1375 = vmatpush3.msra.mxu0 %v217_v36  ;;  %v316_v33 = vld [vmem:[%s2456_s1 + $0x330] sm:$0xff]  ;;  %v331_v35 = vld [vmem:[%s2456_s1 + $0x3a8] sm:$0xff] }
  0x6f   : > { %1413 = vmatpush3.msra.mxu1 %v249_v38  ;;  %1376 = vmatprep.subr.mxu0 %v232_v39  ;;  %v283_v36 = vld [vmem:[%s2456_s1 + $0x228] sm:$0xff]  ;;  %v298_v39 = vld [vmem:[%s2456_s1 + $0x2a0] sm:$0xff] }
  0x70   : > { %1414 = vmatprep.subr.mxu1 %v264_v40  ;;  %1377 = vmatpush3.msra.mxu0 %v216_v42  ;;  %v315_v38 = vld [vmem:[%s2456_s1 + $0x328] sm:$0xff]  ;;  %v330_v40 = vld [vmem:[%s2456_s1 + $0x3a0] sm:$0xff] }
  0x71   : > { %1415 = vmatpush3.msra.mxu1 %v248_v43  ;;  %1378 = vmatprep.subr.mxu0 %v231_v44  ;;  %v282_v42 = vld [vmem:[%s2456_s1 + $0x220] sm:$0xff]  ;;  %v297_v44 = vld [vmem:[%s2456_s1 + $0x298] sm:$0xff] }
  0x72   : > { %1416 = vmatprep.subr.mxu1 %v263_v45  ;;  %1379 = vmatpush3.msra.mxu0 %v215_v46  ;;  %v314_v43 = vld [vmem:[%s2456_s1 + $0x320] sm:$0xff]  ;;  %v329_v45 = vld [vmem:[%s2456_s1 + $0x398] sm:$0xff] }
  0x73   : > { %1417 = vmatpush3.msra.mxu1 %v247_v47  ;;  %1380 = vmatprep.subr.mxu0 %v230_v48  ;;  %v281_v46 = vld [vmem:[%s2456_s1 + $0x218] sm:$0xff]  ;;  %v296_v48 = vld [vmem:[%s2456_s1 + $0x290] sm:$0xff] }
  0x74   : > { %1418 = vmatprep.subr.mxu1 %v262_v49  ;;  %1381 = vmatpush3.msra.mxu0 %v214_v50  ;;  %v313_v47 = vld [vmem:[%s2456_s1 + $0x318] sm:$0xff]  ;;  %v328_v49 = vld [vmem:[%s2456_s1 + $0x390] sm:$0xff] }
  0x75   : > { %850 = vmatprep.mubr.f32.mxu0 %v1747_v57  ;;  %1419 = vmatpush3.msra.mxu1 %v246_v51  ;;  %v308_v57 = vld [vmem:[%s2456_s1 + $0x2f0] sm:$0xff] }
  0x76   : > { %851 = vmatmul.mubr.f32.vlgmr.msra.gmra.mxu0 %v1762_v62  ;;  %925 = vmatprep.mubr.f32.mxu1 %v1756_v60  ;;  %v292_v62 = vld [vmem:[%s2456_s1 + $0x270] sm:$0xff] }
  0x77   : > { %1426 = vmatprep.subr.mxu0 %v309_v52  ;;  %1464 = vmatprep.subr.mxu1 %v341_v53  ;;  %v324_v60 = vld [vmem:[%s2456_s1 + $0x370] sm:$0xff]  ;;  %v295_v52 = vld [vmem:[%s2456_s1 + $0x288] sm:$0xff] }
  0x78   : > { %926 = vmatmul.mubr.f32.vlgmr.msra.gmra.mxu1 %v1765_v63  ;;  %1427 = vmatpush3.msra.mxu0 %v293_v56  ;;  %v339_v63 = vld [vmem:[%s2456_s1 + $0x3e8] sm:$0xff]  ;;  %v280_v50 = vld [vmem:[%s2456_s1 + $0x210] sm:$0xff] }
  0x79   : > { %1465 = vmatpush3.msra.mxu1 %v325_v58  ;;  %1428 = vmatprep.subr.mxu0 %v308_v57  ;;  %v312_v51 = vld [vmem:[%s2456_s1 + $0x310] sm:$0xff]  ;;  %v327_v53 = vld [vmem:[%s2456_s1 + $0x388] sm:$0xff]  ;;  %v294_v57 = vld [vmem:[%s2456_s1 + $0x280] sm:$0xff] }
  0x7a   : > { %1466 = vmatprep.subr.mxu1 %v340_v59  ;;  %855 = vmatprep.mubr.f32.mxu0 %v1926_v54  ;;  %v338_v54 = vld [vmem:[%s2456_s1 + $0x3e0] sm:$0xff]  ;;  %v279_v56 = vld [vmem:[%s2456_s1 + $0x208] sm:$0xff] }
  0x7b   : > { %1429 = vmatpush3.msra.mxu0 %v292_v62  ;;  %1467 = vmatpush3.msra.mxu1 %v324_v60  ;;  %v311_v58 = vld [vmem:[%s2456_s1 + $0x308] sm:$0xff]  ;;  %v326_v59 = vld [vmem:[%s2456_s1 + $0x380] sm:$0xff] }
  0x7c   : > { %856 = vmatmul.mubr.f32.gmra.mxu0 %v1944_v0  ;;  %1430 = vmatprep.subr.mxu0 %v307_v61  ;;  %v290_v0 = vld [vmem:[%s2456_s1 + $0x260] sm:$0xff] }
  0x7d   : > { %1468 = vmatprep.subr.mxu1 %v339_v63  ;;  %930 = vmatprep.mubr.f32.mxu1 %v1929_v55  ;;  %v289_v55 = vld [vmem:[%s2456_s1 + $0x258] sm:$0xff]  ;;  %v278_v62 = vld [vmem:[%s2456_s1 + $0x200] sm:$0xff] }
  0x7e   : > { %1431 = vmatpush3.msra.mxu0 %v291_v2  ;;  %1469 = vmatpush3.msra.mxu1 %v323_v3  ;;  %v310_v60 = vld [vmem:[%s2456_s1 + $0x300] sm:$0xff] }
  0x7f   : > { %1432 = vmatprep.subr.mxu0 %v306_v4  ;;  %931 = vmatmul.mubr.f32.gmra.mxu1 %v1947_v1  ;;  %v288_v1 = vld [vmem:[%s2456_s1 + $0x250] sm:$0xff] }
  0x80   : > { %1470 = vmatprep.subr.mxu1 %v338_v54  ;;  %1433 = vmatpush3.msra.mxu0 %v290_v0 }
  0x81   : > { %1471 = vmatpush3.msra.mxu1 %v322_v5  ;;  %1434 = vmatprep.subr.mxu0 %v305_v6 }
  0x82   : > { %1472 = vmatprep.subr.mxu1 %v337_v7  ;;  %1435 = vmatpush3.msra.mxu0 %v289_v55 }
  0x83   : > { %1473 = vmatpush3.msra.mxu1 %v321_v8  ;;  %1436 = vmatprep.subr.mxu0 %v304_v9 }
  0x84   : > { %1474 = vmatprep.subr.mxu1 %v336_v10  ;;  %1437 = vmatpush3.msra.mxu0 %v288_v1 }
  0x85   : > { %1475 = vmatpush3.msra.mxu1 %v320_v11  ;;  %1438 = vmatprep.subr.mxu0 %v303_v13 }
  0x86   : > { %1476 = vmatprep.subr.mxu1 %v335_v14  ;;  %1439 = vmatpush3.msra.mxu0 %v287_v16 }
  0x87   : > { %1477 = vmatpush3.msra.mxu1 %v319_v17  ;;  %1440 = vmatprep.subr.mxu0 %v302_v19 }
  0x88   : > { %1478 = vmatprep.subr.mxu1 %v334_v20  ;;  %1441 = vmatpush3.msra.mxu0 %v286_v21 }
  0x89   : > { %1479 = vmatpush3.msra.mxu1 %v318_v23  ;;  %1442 = vmatprep.subr.mxu0 %v301_v24 }
  0x8a   : > { %1480 = vmatprep.subr.mxu1 %v333_v25  ;;  %1443 = vmatpush3.msra.mxu0 %v285_v26 }
  0x8b   : > { %1481 = vmatpush3.msra.mxu1 %v317_v27  ;;  %1444 = vmatprep.subr.mxu0 %v300_v28 }
  0x8c   : > { %1482 = vmatprep.subr.mxu1 %v332_v30  ;;  %1445 = vmatpush3.msra.mxu0 %v284_v32 }
  0x8d   : > { %1483 = vmatpush3.msra.mxu1 %v316_v33  ;;  %1446 = vmatprep.subr.mxu0 %v299_v34 }
  0x8e   : > { %1484 = vmatprep.subr.mxu1 %v331_v35  ;;  %1447 = vmatpush3.msra.mxu0 %v283_v36 }
  0x8f   : > { %1485 = vmatpush3.msra.mxu1 %v315_v38  ;;  %1448 = vmatprep.subr.mxu0 %v298_v39 }
  0x90   : > { %1486 = vmatprep.subr.mxu1 %v330_v40  ;;  %1449 = vmatpush3.msra.mxu0 %v282_v42 }
  0x91   : > { %1487 = vmatpush3.msra.mxu1 %v314_v43  ;;  %1450 = vmatprep.subr.mxu0 %v297_v44 }
  0x92   : > { %1488 = vmatprep.subr.mxu1 %v329_v45  ;;  %1451 = vmatpush3.msra.mxu0 %v281_v46 }
  0x93   : > { %1489 = vmatpush3.msra.mxu1 %v313_v47  ;;  %1452 = vmatprep.subr.mxu0 %v296_v48 }
  0x94   : > { %1490 = vmatprep.subr.mxu1 %v328_v49  ;;  %1453 = vmatpush3.msra.mxu0 %v280_v50 }
  0x95   : > { %1491 = vmatpush3.msra.mxu1 %v312_v51  ;;  %1454 = vmatprep.subr.mxu0 %v295_v52 }
  0x96   : > { %1492 = vmatprep.subr.mxu1 %v327_v53  ;;  %1455 = vmatpush3.msra.mxu0 %v279_v56 }
  0x97   : > { %1493 = vmatpush3.msra.mxu1 %v311_v58  ;;  %1456 = vmatprep.subr.mxu0 %v294_v57  ;;  %v1193_v58 = vld [vmem:[%s2458_s3] ss:$0 sm:$0xff] }
  0x98   : > { %1494 = vmatprep.subr.mxu1 %v326_v59  ;;  %1457 = vmatpush3.msra.mxu0 %v278_v62 }
  0x99   : > { %1000 = vmatprep.mubr.f32.mxu0 %v1976_v12  ;;  %1495 = vmatpush3.msra.mxu1 %v310_v60 }
  0x9a   : > { %1075 = vmatprep.mubr.f32.mxu1 %v1994_v18  ;;  %1001 = vmatmul.mubr.f32.vlgmr.msra.gmra.mxu0 %v1985_v15 }
  0x9b   : > { %1076 = vmatmul.mubr.f32.vlgmr.msra.gmra.mxu1 %v2005_v22  ;;  %1005 = vmatprep.mubr.f32.mxu0 %v2023_v29 }
  0x9c   : > { %1080 = vmatprep.mubr.f32.mxu1 %v2046_v37 }
  0x9e   : > { %1006 = vmatmul.mubr.f32.gmra.mxu0 %v2029_v31 }
  0x9f   : > { %1081 = vmatmul.mubr.f32.gmra.mxu1 %v2057_v41 }
  0xee   : > { %v1230_v61 = vpop.f32.mrf.mxu0 }
  0xef   : > { %v1268_v63 = vpop.f32.mrf.mxu1 }
  0xf0   : > { %v1231_v2 = vpop.f32.mrf.mxu0 }
  0xf1   : > { %v1269_v12 = vpop.f32.mrf.mxu1  ;;  %v1232_v8 = vadd.f32 %v1231_v2, %v1230_v61 }
  0xf2   : > { %v1270_v41 = vadd.f32 %v1269_v12, %v1268_v63 }
  0xf4   : > { %v628_v11 = vadd.f32 %v1270_v41, %v1232_v8 }
 0x10b   : > { %v1233_v3 = vpop.f32.mrf.mxu0 }
 0x10c   : > { %v1271_v4 = vpop.f32.mrf.mxu1 }
 0x10d   : > { %v1234_v54 = vpop.f32.mrf.mxu0 }
 0x10e   : > { %v1272_v18 = vpop.f32.mrf.mxu1  ;;  %v1235_v13 = vadd.f32 %v1234_v54, %v1233_v3 }
 0x10f   : > { %v1273_v14 = vadd.f32 %v1272_v18, %v1271_v4 }
 0x111   : > { %v633_v23 = vadd.f32 %v1273_v14, %v1235_v13 }
 0x112   : > { %v1306_v0 = vpop.f32.mrf.mxu0 }
 0x114   : > { %v1344_v15 = vpop.f32.mrf.mxu1  ;;  %v1307_v5 = vpop.f32.mrf.mxu0 }
 0x115   : > { %v1308_v10 = vadd.f32 %v1307_v5, %v1306_v0 }
 0x116   : > { %v1345_v22 = vpop.f32.mrf.mxu1 }
 0x117   : > { %v703_v17 = vadd.f32 %v1308_v10, %v628_v11  ;;  %v1346_v19 = vadd.f32 %v1345_v22, %v1344_v15 }
 0x118   : > { %v1309_v6 = vpop.f32.mrf.mxu0 }
 0x119   : > { %v778_v26 = vadd.f32 %v1346_v19, %v703_v17 }
 0x11a   : > { %v1310_v7 = vpop.f32.mrf.mxu0 }
 0x11b   : > { %v1347_v29 = vpop.f32.mrf.mxu1  ;;  %v1311_v20 = vadd.f32 %v1310_v7, %v1309_v6 }
 0x11d   : > { %v1348_v37 = vpop.f32.mrf.mxu1  ;;  %v708_v27 = vadd.f32 %v1311_v20, %v633_v23 }
 0x11e   : > { %v1349_v28 = vadd.f32 %v1348_v37, %v1347_v29 }
 0x120   : > { %v783_v38 = vadd.f32 %v1349_v28, %v708_v27 }
 0x136   : > { %v1382_v55 = vpop.f32.mrf.mxu0 }
 0x138   : > { %v1420_v31 = vpop.f32.mrf.mxu1  ;;  %v1383_v9 = vpop.f32.mrf.mxu0 }
 0x139   : > { %v1384_v24 = vadd.f32 %v1383_v9, %v1382_v55 }
 0x13a   : > { %v1421_v1 = vpop.f32.mrf.mxu1 }
 0x13b   : > { %v853_v32 = vadd.f32 %v1384_v24, %v778_v26  ;;  %v1422_v33 = vadd.f32 %v1421_v1, %v1420_v31 }
 0x13c   : > { %v1385_v16 = vpop.f32.mrf.mxu0 }
 0x13d   : > { %v928_v42 = vadd.f32 %v1422_v33, %v853_v32 }
 0x13e   : > { %v1386_v25 = vpop.f32.mrf.mxu0 }
 0x13f   : > { %v1423_v21 = vpop.f32.mrf.mxu1  ;;  %v1387_v34 = vadd.f32 %v1386_v25, %v1385_v16 }
 0x141   : > { %v1424_v30 = vpop.f32.mrf.mxu1  ;;  %v858_v43 = vadd.f32 %v1387_v34, %v783_v38 }
 0x142   : > { %v1425_v44 = vadd.f32 %v1424_v30, %v1423_v21 }
 0x144   : > { %v933_v52 = vadd.f32 %v1425_v44, %v858_v43 }
 0x15a   : > { %v1458_v35 = vpop.f32.mrf.mxu0 }
 0x15b   : > { %v1496_v36 = vpop.f32.mrf.mxu1 }
 0x15c   : > { %v1459_v39 = vpop.f32.mrf.mxu0 }
 0x15d   : > { %v1497_v40 = vpop.f32.mrf.mxu1  ;;  %v1460_v45 = vadd.f32 %v1459_v39, %v1458_v35 }
 0x15e   : > { %v1461_v46 = vpop.f32.mrf.mxu0  ;;  %v1498_v49 = vadd.f32 %v1497_v40, %v1496_v36 }
 0x15f   : > { %v1499_v47 = vpop.f32.mrf.mxu1  ;;  %v1003_v48 = vadd.f32 %v1460_v45, %v928_v42 }
 0x160   : > { %v1462_v50 = vpop.f32.mrf.mxu0 }
 0x161   : > { %v1500_v51 = vpop.f32.mrf.mxu1  ;;  %v1078_v53 = vadd.f32 %v1498_v49, %v1003_v48  ;;  %v1463_v56 = vadd.f32 %v1462_v50, %v1461_v46 }
 0x162   : > { %v1501_v59 = vadd.f32 %v1500_v51, %v1499_v47 }
 0x163   : > { %v1008_v57 = vadd.f32 %v1463_v56, %v933_v52  ;;  %v1093_v62 = vadd.f32 %v1193_v58, %v1078_v53 }
 0x165   : > { %v1083_v60 = vadd.f32 %v1501_v59, %v1008_v57  ;;  %v1096_v63 = vsel %vm1095_vm0, %v1093_v62, 0.0 }
 0x167   : > { %v1094_v61 = vadd.f32 %v1193_v58, %v1083_v60 }
 0x169   : > { %v1097_v2 = vsel %vm1095_vm0, %v1094_v61, 0.0 }
 0x16a   : > { %v1098_v3 = vadd.f32 %v1097_v2, %v1096_v63 }
 0x16c   : > { %v1099_v12 = vrot.slane %v1098_v3, 4 }
 0x16e   : > { %v1100_v4 = vadd.f32 %v1099_v12, %v1098_v3 }
 0x170   : > { %v1101_v54 = vrot.slane %v1100_v4, 2 }
 0x172   : > { %v1102_v18 = vadd.f32 %v1101_v54, %v1100_v4 }
 0x174   : > { %v1103_v0 = vrot.slane %v1102_v18, 1 }
 0x176   : > { %v1104_v15 = vadd.f32 %v1103_v0, %v1102_v18 }
 0x178   : > { %v1106_v5 = vmul.f32 0.0625, %v1104_v15 }
 0x17a   : > { %v1107_v22 = vsub.f32 %v1093_v62, %v1106_v5  ;;  %v1108_v6 = vsub.f32 %v1094_v61, %v1106_v5 }
 0x17c   : > { %v1109_v29 = vmul.f32 %v1107_v22, %v1107_v22  ;;  %v1110_v7 = vmul.f32 %v1108_v6, %v1108_v6 }
 0x17e   : > { %v1111_v37 = vsel %vm1095_vm0, %v1109_v29, 0.0  ;;  %v1112_v55 = vsel %vm1095_vm0, %v1110_v7, 0.0 }
 0x17f   : > { %v1113_v31 = vadd.f32 %v1112_v55, %v1111_v37 }
 0x181   : > { %v1114_v8 = vrot.slane %v1113_v31, 4 }
 0x183   : > { %v1115_v41 = vadd.f32 %v1114_v8, %v1113_v31 }
 0x185   : > { %v1116_v9 = vrot.slane %v1115_v41, 2 }
 0x187   : > { %v1117_v10 = vadd.f32 %v1116_v9, %v1115_v41 }
 0x189   : > { %v1118_v1 = vrot.slane %v1117_v10, 1 }
 0x18b   : > { %v1119_v11 = vadd.f32 %v1118_v1, %v1117_v10 }
 0x18d   : > { %v1120_v13 = vmul.f32 0.0625, %v1119_v11 }
 0x18f   : > { %v1121_v14 = vadd.f32 1e-05, %v1120_v13 }
 0x191   : > { %1510 = vrsqrt.f32 %v1121_v14 }
 0x19e   : > { %v1511_v16 = vpop.eup %1510 }
 0x19f   : > { %v1123_v17 = vmul.f32 %v1511_v16, %v1107_v22  ;;  %v1124_v19 = vmul.f32 %v1511_v16, %v1108_v6 }
 0x1a1   : > { %1512 = vtanh.f32 %v1123_v17 }
 0x1a2   : > { %1514 = vtanh.f32 %v1124_v19 }
 0x1ae   : > { %v1513_v20 = vpop.eup %1512 }
 0x1af   : > { %v1515_v21 = vpop.eup %1514  ;;  %1127 = vst.msk [vmem:[%s197_s18] sm:$0xff] %vm1095_vm0, %v1513_v20 }
 0x1b0   : > { %1128 = vst.msk [vmem:[%s197_s18 + $0x8] sm:$0xff] %vm1095_vm0, %v1515_v21 }
 0x1b1 PF: > { %s14_s15 = sadd.s32 1, %s1522_s15  }
 0x1b2   : > { %p11_p4 = scmp.ge.s32.totalorder %s14_s15, 4  }
 0x1b4   :  { %13 = sbr.rel (!%p11_p4) target bundleno = 1 (0x1), region = 66 }

// kernel: master_regressor_forward.7
= control target key start
LH: loop header
LB: loop body
LE: loop exit
PB: predicated region body
PF: predicated region fallthrough
CT: control target
= control target key end

     0   :  { %s2737_s15 = smov 0   ;;  %s4129_s0 = inlined_call_operand.vmem [shape: f32[2,1024,4], index: 0, kind: input, shape index: {}]   ;;  %s4130_s1 = inlined_call_operand.vmem [shape: f32[64,1024], index: 1, kind: input, shape index: {}]   ;;  %s4131_s2 = inlined_call_operand.vmem [shape: f32[64,1024], index: 2, kind: input, shape index: {}]   ;;  %s4132_s3 = inlined_call_operand.vmem [shape: f32[64,1], index: 3, kind: input, shape index: {}]   ;;  %s4133_s4 = inlined_call_operand.vmem [shape: f32[32,128], index: 4, kind: input, shape index: {}]   ;;  %s4134_s5 = inlined_call_operand.vmem [shape: f32[8,1], index: 5, kind: input, shape index: {}]   ;;  %s4135_s6 = inlined_call_operand.vmem [shape: f32[16,8], index: 6, kind: input, shape index: {}]   ;;  %s4136_s7 = inlined_call_operand.vmem [shape: f32[16,1], index: 7, kind: input, shape index: {}]   ;;  %s4137_s8 = inlined_call_operand.vmem [shape: f32[1,16], index: 8, kind: input, shape index: {}]   ;;  %s4138_s9 = inlined_call_operand.<no memory space> [shape: f32[1,1], index: 9, kind: input, shape index: {}]   ;;  %s4139_s10 = inlined_call_operand.vmem [shape: f32[2,1,1], index: 10, kind: output, shape index: {}]  }
   0x1   :  { %v15_v0 = vstv %s4138_s9 }
   0x2   :  { %16 = vst [vmem:[#allocation2] sm:$0x1] %v15_v0 }
   0x3 LB: > { %s2080_s16 = sadd.s32 4294967295, %s2671_s15   ;;  %p2084_p0 = scmp.ge.s32.totalorder %s2671_s15, 1  ;;  %s2671_s15 = sphi %s2737_s15, %s22_s15  }
   0x4   : > { %p314_p1 = scmp.lt.s32.totalorder %s2671_s15, 3 }
   0x6   : > { %p315_p2 = pnand %p2084_p0, %p314_p1 }
   0x8   : > { %318 = sbr.rel (%p315_p2) target bundleno = 1502 (0x5de), region = 60 }
   0xd   : > { %p350_p3 = scmp.lt.s32.totalorder %s2080_s16, 1  ;;  %v551_v1 = vld [vmem:[%s4131_s2 + $0x8] sm:$0xff]  ;;  %v553_v2 = vld [vmem:[%s4131_s2 + $0x18] sm:$0xff]  ;;  %vm1638_vm0 = vcmask 31744   ;;  %vm1870_vm1 = vcmask 64512   ;;  %s2674_s19 = smov 127  }
   0xe   : > { %806 = vmatprep.mubr.f32.mxu0 %v551_v1  ;;  %911 = vmatprep.mubr.f32.mxu1 %v553_v2  ;;  %s2676_s21 = smov 126   ;;  %vm2678_vm2 = vmmov 0   ;;  %vm1956_vm3 = vcmask 130048   ;;  %vm2031_vm4 = vcmask 0  }
   0xf   : > { %s4395_s16 = smov (!%p350_p3, %s2080_s16), 1 }
  0x10   : > { %s2092_s20 = sshll.u32 %s4395_s16, 10  ;;  %s357_s14 = scalar_lea.vmem %s4139_s10, %s4395_s16 }
  0x11   : > { %s2757_s23 = scalar_lea.vmem %s4129_s0, %s2092_s20  ;;  %s2675_s20 = smov 125  }
  0x12   : > { %v2760_v3 = vld [vmem:[%s2757_s23 + $0xf8] sm:$0xff]  ;;  %v2778_v10 = vld [vmem:[%s2757_s23 + $0xf0] sm:$0xff]  ;;  %v2796_v17 = vld [vmem:[%s2757_s23 + $0xe8] sm:$0xff] }
  0x13   : > { %v2763_v4 = vld [vmem:[%s2757_s23 + $0x1f8] sm:$0xff]  ;;  %v645_v6 = vmul.f32 %v2760_v3, %v2760_v3  ;;  %v2781_v11 = vld [vmem:[%s2757_s23 + $0x1f0] sm:$0xff]  ;;  %v644_v13 = vmul.f32 %v2778_v10, %v2778_v10  ;;  %v643_v20 = vmul.f32 %v2796_v17, %v2796_v17  ;;  %v2805_v21 = vld [vmem:[%s2757_s23 + $0x1e8] sm:$0xff] }
  0x14   : > { %v2766_v5 = vld [vmem:[%s2757_s23 + $0x78] sm:$0xff]  ;;  %v677_v7 = vmul.f32 %v2763_v4, %v2763_v4  ;;  %v676_v14 = vmul.f32 %v2781_v11, %v2781_v11  ;;  %v2790_v15 = vld [vmem:[%s2757_s23 + $0x70] sm:$0xff]  ;;  %v2808_v22 = vld [vmem:[%s2757_s23 + $0x68] sm:$0xff]  ;;  %v675_v24 = vmul.f32 %v2805_v21, %v2805_v21 }
  0x15   : > { %v629_v8 = vmul.f32 %v2766_v5, %v2766_v5  ;;  %v2775_v9 = vld [vmem:[%s2757_s23 + $0x178] sm:$0xff]  ;;  %v2793_v16 = vld [vmem:[%s2757_s23 + $0x170] sm:$0xff]  ;;  %2093 = vmatprep.subr.mxu0 %v645_v6  ;;  %v628_v18 = vmul.f32 %v2790_v15, %v2790_v15  ;;  %v2811_v23 = vld [vmem:[%s2757_s23 + $0x168] sm:$0xff]  ;;  %v627_v25 = vmul.f32 %v2808_v22, %v2808_v22 }
  0x16   : > { %v661_v12 = vmul.f32 %v2775_v9, %v2775_v9  ;;  %2149 = vmatprep.subr.mxu1 %v677_v7  ;;  %v660_v19 = vmul.f32 %v2793_v16, %v2793_v16  ;;  %v659_v26 = vmul.f32 %v2811_v23, %v2811_v23  ;;  %v2820_v27 = vld [vmem:[%s2757_s23 + $0xe0] sm:$0xff]  ;;  %v2836_v33 = vld [vmem:[%s2757_s23 + $0xd8] sm:$0xff]  ;;  %v2852_v39 = vld [vmem:[%s2757_s23 + $0xd0] sm:$0xff] }
  0x17   : > { %2094 = vmatpush3.msra.mxu0 %v629_v8  ;;  %v2823_v28 = vld [vmem:[%s2757_s23 + $0x1e0] sm:$0xff]  ;;  %v642_v30 = vmul.f32 %v2820_v27, %v2820_v27  ;;  %v2839_v34 = vld [vmem:[%s2757_s23 + $0x1d8] sm:$0xff]  ;;  %v641_v40 = vmul.f32 %v2836_v33, %v2836_v33  ;;  %v2859_v42 = vld [vmem:[%s2757_s23 + $0x1d0] sm:$0xff]  ;;  %v640_v49 = vmul.f32 %v2852_v39, %v2852_v39 }
  0x18   : > { %2150 = vmatpush3.msra.mxu1 %v661_v12  ;;  %v2826_v29 = vld [vmem:[%s2757_s23 + $0x60] sm:$0xff]  ;;  %2095 = vmatprep.subr.mxu0 %v644_v13  ;;  %v674_v31 = vmul.f32 %v2823_v28, %v2823_v28  ;;  %v2846_v37 = vld [vmem:[%s2757_s23 + $0x58] sm:$0xff]  ;;  %v673_v41 = vmul.f32 %v2839_v34, %v2839_v34  ;;  %v2862_v43 = vld [vmem:[%s2757_s23 + $0x50] sm:$0xff]  ;;  %v672_v50 = vmul.f32 %v2859_v42, %v2859_v42 }
  0x19   : > { %2151 = vmatprep.subr.mxu1 %v676_v14  ;;  %v2833_v32 = vld [vmem:[%s2757_s23 + $0x160] sm:$0xff]  ;;  %2096 = vmatpush3.msra.mxu0 %v628_v18  ;;  %v626_v35 = vmul.f32 %v2826_v29, %v2826_v29  ;;  %v2849_v38 = vld [vmem:[%s2757_s23 + $0x158] sm:$0xff]  ;;  %v2865_v44 = vld [vmem:[%s2757_s23 + $0x150] sm:$0xff]  ;;  %v625_v45 = vmul.f32 %v2846_v37, %v2846_v37  ;;  %v624_v53 = vmul.f32 %v2862_v43, %v2862_v43 }
  0x1a   : > { %2152 = vmatpush3.msra.mxu1 %v660_v19  ;;  %v658_v36 = vmul.f32 %v2833_v32, %v2833_v32  ;;  %2097 = vmatprep.subr.mxu0 %v643_v20  ;;  %v657_v46 = vmul.f32 %v2849_v38, %v2849_v38  ;;  %v2872_v47 = vld [vmem:[%s2757_s23 + $0xc8] sm:$0xff]  ;;  %v656_v54 = vmul.f32 %v2865_v44, %v2865_v44  ;;  %v2892_v55 = vld [vmem:[%s2757_s23 + $0xc0] sm:$0xff]  ;;  %v2912_v63 = vld [vmem:[%s2757_s23 + $0xb8] sm:$0xff] }
  0x1b   : > { %2153 = vmatprep.subr.mxu1 %v675_v24  ;;  %2098 = vmatpush3.msra.mxu0 %v627_v25  ;;  %v2875_v48 = vld [vmem:[%s2757_s23 + $0x1c8] sm:$0xff]  ;;  %v2895_v56 = vld [vmem:[%s2757_s23 + $0x1c0] sm:$0xff]  ;;  %v639_v57 = vmul.f32 %v2872_v47, %v2872_v47  ;;  %v2915_v0 = vld [vmem:[%s2757_s23 + $0x1b8] sm:$0xff]  ;;  %v638_v1 = vmul.f32 %v2892_v55, %v2892_v55  ;;  %v637_v18 = vmul.f32 %v2912_v63, %v2912_v63 }
  0x1c   : > { %2154 = vmatpush3.msra.mxu1 %v659_v26  ;;  %2099 = vmatprep.subr.mxu0 %v642_v30  ;;  %v2882_v51 = vld [vmem:[%s2757_s23 + $0x48] sm:$0xff]  ;;  %v671_v58 = vmul.f32 %v2875_v48, %v2875_v48  ;;  %v2902_v59 = vld [vmem:[%s2757_s23 + $0x40] sm:$0xff]  ;;  %v670_v2 = vmul.f32 %v2895_v56, %v2895_v56  ;;  %v2922_v6 = vld [vmem:[%s2757_s23 + $0x38] sm:$0xff]  ;;  %v669_v19 = vmul.f32 %v2915_v0, %v2915_v0 }
  0x1d   : > { %2155 = vmatprep.subr.mxu1 %v674_v31  ;;  %v2885_v52 = vld [vmem:[%s2757_s23 + $0x148] sm:$0xff]  ;;  %2100 = vmatpush3.msra.mxu0 %v626_v35  ;;  %v2905_v60 = vld [vmem:[%s2757_s23 + $0x140] sm:$0xff]  ;;  %v623_v61 = vmul.f32 %v2882_v51, %v2882_v51  ;;  %v2925_v7 = vld [vmem:[%s2757_s23 + $0x138] sm:$0xff]  ;;  %v622_v8 = vmul.f32 %v2902_v59, %v2902_v59  ;;  %v621_v25 = vmul.f32 %v2922_v6, %v2922_v6 }
  0x1e   : > { %2156 = vmatpush3.msra.mxu1 %v658_v36  ;;  %2101 = vmatprep.subr.mxu0 %v641_v40  ;;  %v655_v62 = vmul.f32 %v2885_v52, %v2885_v52  ;;  %v654_v12 = vmul.f32 %v2905_v60, %v2905_v60  ;;  %v2932_v13 = vld [vmem:[%s2757_s23 + $0xb0] sm:$0xff]  ;;  %v653_v26 = vmul.f32 %v2925_v7, %v2925_v7  ;;  %v2952_v30 = vld [vmem:[%s2757_s23 + $0xa8] sm:$0xff] }
  0x1f   : > { %2157 = vmatprep.subr.mxu1 %v673_v41  ;;  %2102 = vmatpush3.msra.mxu0 %v625_v45  ;;  %v2935_v14 = vld [vmem:[%s2757_s23 + $0x1b0] sm:$0xff]  ;;  %v2955_v31 = vld [vmem:[%s2757_s23 + $0x1a8] sm:$0xff]  ;;  %v636_v35 = vmul.f32 %v2932_v13, %v2932_v13 }
  0x20   : > { %2158 = vmatpush3.msra.mxu1 %v657_v46  ;;  %2103 = vmatprep.subr.mxu0 %v640_v49  ;;  %v2942_v20 = vld [vmem:[%s2757_s23 + $0x30] sm:$0xff]  ;;  %v668_v36 = vmul.f32 %v2935_v14, %v2935_v14  ;;  %v2962_v40 = vld [vmem:[%s2757_s23 + $0x28] sm:$0xff]  ;;  %v2972_v49 = vld [vmem:[%s2757_s23 + $0xa0] sm:$0xff] }
  0x21   : > { %2159 = vmatprep.subr.mxu1 %v672_v50  ;;  %2104 = vmatpush3.msra.mxu0 %v624_v53  ;;  %v2945_v24 = vld [vmem:[%s2757_s23 + $0x130] sm:$0xff]  ;;  %v2965_v41 = vld [vmem:[%s2757_s23 + $0x128] sm:$0xff]  ;;  %v620_v45 = vmul.f32 %v2942_v20, %v2942_v20  ;;  %4216 = vst [vmem:[#allocation3_spill] sm:$0xff] %v2972_v49  ;;  %v2975_v50 = vld [vmem:[%s2757_s23 + $0x1a0] sm:$0xff]  ;;  %v635_v53 = vmul.f32 %v2952_v30, %v2952_v30 }
  0x22   : > { %2160 = vmatpush3.msra.mxu1 %v656_v54  ;;  %2105 = vmatprep.subr.mxu0 %v639_v57  ;;  %v652_v46 = vmul.f32 %v2945_v24, %v2945_v24  ;;  %4217 = vst [vmem:[#allocation4_spill] sm:$0xff] %v2975_v50  ;;  %v667_v54 = vmul.f32 %v2955_v31, %v2955_v31  ;;  %v2982_v57 = vld [vmem:[%s2757_s23 + $0x20] sm:$0xff] }
  0x23   : > { %2161 = vmatprep.subr.mxu1 %v671_v58  ;;  %2106 = vmatpush3.msra.mxu0 %v623_v61  ;;  %4218 = vst [vmem:[#allocation5_spill] sm:$0xff] %v2982_v57  ;;  %v2985_v58 = vld [vmem:[%s2757_s23 + $0x120] sm:$0xff]  ;;  %v619_v61 = vmul.f32 %v2962_v40, %v2962_v40 }
  0x24   : > { %2162 = vmatpush3.msra.mxu1 %v655_v62  ;;  %2107 = vmatprep.subr.mxu0 %v638_v1  ;;  %4219 = vst [vmem:[#allocation6_spill] sm:$0xff] %v2985_v58  ;;  %v651_v62 = vmul.f32 %v2965_v41, %v2965_v41  ;;  %v2992_v1 = vld [vmem:[%s2757_s23 + $0x98] sm:$0xff] }
  0x25   : > { %2163 = vmatprep.subr.mxu1 %v670_v2  ;;  %2108 = vmatpush3.msra.mxu0 %v622_v8  ;;  %4220 = vst [vmem:[#allocation7_spill] sm:$0xff] %v2992_v1  ;;  %v2995_v2 = vld [vmem:[%s2757_s23 + $0x198] sm:$0xff]  ;;  %v634_v8 = vmul.f32 %v2972_v49, %v2972_v49  ;;  %v3055_v49 = vld [vmem:[%s2757_s23 + $0x180] sm:$0xff] }
  0x26   : > { %2164 = vmatpush3.msra.mxu1 %v654_v12  ;;  %2109 = vmatprep.subr.mxu0 %v637_v18  ;;  %4221 = vst [vmem:[#allocation8_spill] sm:$0xff] %v2995_v2  ;;  %v666_v12 = vmul.f32 %v2975_v50, %v2975_v50  ;;  %v3002_v18 = vld [vmem:[%s2757_s23 + $0x18] sm:$0xff]  ;;  %v3022_v50 = vld [vmem:[%s2757_s23 + $0x10] sm:$0xff]  ;;  %4231 = vst [vmem:[#allocation18_spill] sm:$0xff] %v3055_v49 }
  0x27   : > { %2165 = vmatprep.subr.mxu1 %v669_v19  ;;  %2110 = vmatpush3.msra.mxu0 %v621_v25  ;;  %4222 = vst [vmem:[#allocation9_spill] sm:$0xff] %v3002_v18  ;;  %v3005_v19 = vld [vmem:[%s2757_s23 + $0x118] sm:$0xff]  ;;  %v618_v25 = vmul.f32 %v2982_v57, %v2982_v57  ;;  %4225 = vst [vmem:[#allocation12_spill] sm:$0xff] %v3022_v50  ;;  %v3025_v57 = vld [vmem:[%s2757_s23 + $0x110] sm:$0xff] }
  0x28   : > { %2166 = vmatpush3.msra.mxu1 %v653_v26  ;;  %2111 = vmatprep.subr.mxu0 %v636_v35  ;;  %4223 = vst [vmem:[#allocation10_spill] sm:$0xff] %v3005_v19  ;;  %v650_v26 = vmul.f32 %v2985_v58, %v2985_v58  ;;  %v3012_v35 = vld [vmem:[%s2757_s23 + $0x90] sm:$0xff]  ;;  %4226 = vst [vmem:[#allocation13_spill] sm:$0xff] %v3025_v57  ;;  %v3032_v58 = vld [vmem:[%s2757_s23 + $0x88] sm:$0xff] }
  0x29   : > { %2167 = vmatprep.subr.mxu1 %v668_v36  ;;  %2112 = vmatpush3.msra.mxu0 %v620_v45  ;;  %v3015_v36 = vld [vmem:[%s2757_s23 + $0x190] sm:$0xff]  ;;  %v633_v45 = vmul.f32 %v2992_v1, %v2992_v1  ;;  %4227 = vst [vmem:[#allocation14_spill] sm:$0xff] %v3032_v58  ;;  %v3035_v1 = vld [vmem:[%s2757_s23 + $0x188] sm:$0xff] }
  0x2a   : > { %2168 = vmatpush3.msra.mxu1 %v652_v46  ;;  %4224 = vst [vmem:[#allocation11_spill] sm:$0xff] %v3015_v36  ;;  %2113 = vmatprep.subr.mxu0 %v635_v53  ;;  %v665_v46 = vmul.f32 %v2995_v2, %v2995_v2  ;;  %v617_v53 = vmul.f32 %v3002_v18, %v3002_v18  ;;  %4228 = vst [vmem:[#allocation15_spill] sm:$0xff] %v3035_v1  ;;  %v3042_v2 = vld [vmem:[%s2757_s23 + $0x8] sm:$0xff] }
  0x2b   : > { %2169 = vmatprep.subr.mxu1 %v667_v54  ;;  %2114 = vmatpush3.msra.mxu0 %v619_v61  ;;  %v649_v54 = vmul.f32 %v3005_v19, %v3005_v19  ;;  %v632_v61 = vmul.f32 %v3012_v35, %v3012_v35  ;;  %v3045_v18 = vld [vmem:[%s2757_s23 + $0x108] sm:$0xff]  ;;  %v616_v19 = vmul.f32 %v3022_v50, %v3022_v50  ;;  %v3065_v50 = vld [vmem:[%s2757_s23 + $0x100] sm:$0xff] }
  0x2c   : > { %2170 = vmatpush3.msra.mxu1 %v651_v62  ;;  %2115 = vmatprep.subr.mxu0 %v634_v8  ;;  %v664_v62 = vmul.f32 %v3015_v36, %v3015_v36  ;;  %4229 = vst [vmem:[#allocation16_spill] sm:$0xff] %v3045_v18  ;;  %v648_v8 = vmul.f32 %v3025_v57, %v3025_v57  ;;  %4233 = vst [vmem:[#allocation20_spill] sm:$0xff] %v3065_v50 }
  0x2d   : > { %2171 = vmatprep.subr.mxu1 %v666_v12  ;;  %2116 = vmatpush3.msra.mxu0 %v618_v25  ;;  %v3052_v12 = vld [vmem:[%s2757_s23 + $0x80] sm:$0xff]  ;;  %v631_v36 = vmul.f32 %v3032_v58, %v3032_v58  ;;  %v663_v25 = vmul.f32 %v3035_v1, %v3035_v1  ;;  %v615_v57 = vmul.f32 %v3042_v2, %v3042_v2  ;;  %v3076_v58 = vld [vmem:[%s2757_s23 + $0x2f8] sm:$0xff] }
  0x2e   : > { %2172 = vmatpush3.msra.mxu1 %v650_v26  ;;  %4230 = vst [vmem:[#allocation17_spill] sm:$0xff] %v3052_v12  ;;  %2117 = vmatprep.subr.mxu0 %v633_v45  ;;  %v3062_v26 = vld [vmem:[%s2757_s23] sm:$0xff]  ;;  %v647_v45 = vmul.f32 %v3045_v18, %v3045_v18  ;;  %v662_v1 = vmul.f32 %v3055_v49, %v3055_v49  ;;  %4234 = vst [vmem:[#allocation21_spill] sm:$0xff] %v3076_v58  ;;  %v3092_v49 = vld [vmem:[%s2757_s23 + $0x2f0] sm:$0xff] }
  0x2f   : > { %2173 = vmatprep.subr.mxu1 %v665_v46  ;;  %4232 = vst [vmem:[#allocation19_spill] sm:$0xff] %v3062_v26  ;;  %2118 = vmatpush3.msra.mxu0 %v617_v53  ;;  %v630_v46 = vmul.f32 %v3052_v12, %v3052_v12  ;;  %v3079_v53 = vld [vmem:[%s2757_s23 + $0x3f8] sm:$0xff]  ;;  %v646_v18 = vmul.f32 %v3065_v50, %v3065_v50  ;;  %4238 = vst [vmem:[#allocation25_spill] sm:$0xff] %v3092_v49  ;;  %v3095_v12 = vld [vmem:[%s2757_s23 + $0x3f0] sm:$0xff] }
  0x30   : > { %2174 = vmatpush3.msra.mxu1 %v649_v54  ;;  %2119 = vmatprep.subr.mxu0 %v632_v61  ;;  %4235 = vst [vmem:[#allocation22_spill] sm:$0xff] %v3079_v53  ;;  %v614_v54 = vmul.f32 %v3062_v26, %v3062_v26  ;;  %v3086_v61 = vld [vmem:[%s2757_s23 + $0x278] sm:$0xff]  ;;  %4239 = vst [vmem:[#allocation26_spill] sm:$0xff] %v3095_v12  ;;  %v709_v50 = vmul.f32 %v3076_v58, %v3076_v58  ;;  %v3115_v26 = vld [vmem:[%s2757_s23 + $0x370] sm:$0xff] }
  0x31   : > { %2175 = vmatprep.subr.mxu1 %v664_v62  ;;  %2120 = vmatpush3.msra.mxu0 %v616_v19  ;;  %4236 = vst [vmem:[#allocation23_spill] sm:$0xff] %v3086_v61  ;;  %v3089_v62 = vld [vmem:[%s2757_s23 + $0x378] sm:$0xff]  ;;  %v550_v19 = vld [vmem:[%s4131_s2] sm:$0xff]  ;;  %4241 = vst [vmem:[#allocation28_spill] sm:$0xff] %v3115_v26  ;;  %v708_v58 = vmul.f32 %v3092_v49, %v3092_v49 }
  0x32   : > { %2176 = vmatpush3.msra.mxu1 %v648_v8  ;;  %4237 = vst [vmem:[#allocation24_spill] sm:$0xff] %v3089_v62  ;;  %2121 = vmatprep.subr.mxu0 %v631_v36  ;;  %v552_v8 = vld [vmem:[%s4131_s2 + $0x10] sm:$0xff]  ;;  %v741_v36 = vmul.f32 %v3079_v53, %v3079_v53  ;;  %v3167_v53 = vld [vmem:[%s2757_s23 + $0x360] sm:$0xff] }
  0x33   : > { %2177 = vmatprep.subr.mxu1 %v663_v25  ;;  %2122 = vmatpush3.msra.mxu0 %v615_v57  ;;  %v693_v57 = vmul.f32 %v3086_v61, %v3086_v61  ;;  %v725_v25 = vmul.f32 %v3089_v62, %v3089_v62  ;;  %v3125_v62 = vld [vmem:[%s2757_s23 + $0x2e8] sm:$0xff]  ;;  %4249 = vst [vmem:[#allocation36_spill] sm:$0xff] %v3167_v53 }
  0x34   : > { %2178 = vmatpush3.msra.mxu1 %v647_v45  ;;  %2123 = vmatprep.subr.mxu0 %v630_v46  ;;  %v3112_v45 = vld [vmem:[%s2757_s23 + $0x270] sm:$0xff]  ;;  %v559_v46 = vld [vmem:[%s4131_s2 + $0x48] sm:$0xff]  ;;  %4242 = vst [vmem:[#allocation29_spill] sm:$0xff] %v3125_v62  ;;  %v707_v49 = vmul.f32 %v3125_v62, %v3125_v62 }
  0x35   : > { %2179 = vmatprep.subr.mxu1 %v662_v1  ;;  %4240 = vst [vmem:[#allocation27_spill] sm:$0xff] %v3112_v45  ;;  %2124 = vmatpush3.msra.mxu0 %v614_v54  ;;  %v740_v1 = vmul.f32 %v3095_v12, %v3095_v12  ;;  %v3128_v61 = vld [vmem:[%s2757_s23 + $0x3e8] sm:$0xff]  ;;  %v692_v54 = vmul.f32 %v3112_v45, %v3112_v45  ;;  %v558_v45 = vld [vmem:[%s4131_s2 + $0x40] sm:$0xff] }
  0x36   : > { %2180 = vmatpush3.msra.mxu1 %v646_v18  ;;  %807 = vmatmul.mubr.f32.vlgmr.msra.gmra.mxu0 %v550_v19  ;;  %4243 = vst [vmem:[#allocation30_spill] sm:$0xff] %v3128_v61  ;;  %v561_v18 = vld [vmem:[%s4131_s2 + $0x58] sm:$0xff]  ;;  %v724_v19 = vmul.f32 %v3115_v26, %v3115_v26  ;;  %v3141_v12 = vld [vmem:[%s2757_s23 + $0x368] sm:$0xff]  ;;  %v560_v26 = vld [vmem:[%s4131_s2 + $0x50] sm:$0xff] }
  0x37   : > { %912 = vmatmul.mubr.f32.vlgmr.msra.gmra.mxu1 %v552_v8  ;;  %2205 = vmatprep.subr.mxu0 %v709_v50  ;;  %v3138_v8 = vld [vmem:[%s2757_s23 + $0x268] sm:$0xff]  ;;  %4245 = vst [vmem:[#allocation32_spill] sm:$0xff] %v3141_v12  ;;  %v3144_v50 = vld [vmem:[%s2757_s23 + $0x2e0] sm:$0xff] }
  0x38   : > { %2261 = vmatprep.subr.mxu1 %v741_v36  ;;  %4244 = vst [vmem:[#allocation31_spill] sm:$0xff] %v3138_v8  ;;  %2206 = vmatpush3.msra.mxu0 %v693_v57  ;;  %4246 = vst [vmem:[#allocation33_spill] sm:$0xff] %v3144_v50  ;;  %v3147_v36 = vld [vmem:[%s2757_s23 + $0x3e0] sm:$0xff]  ;;  %v739_v57 = vmul.f32 %v3128_v61, %v3128_v61  ;;  %v706_v62 = vmul.f32 %v3144_v50, %v3144_v50  ;;  %v3219_v61 = vld [vmem:[%s2757_s23 + $0x350] sm:$0xff] }
  0x39   : > { %2262 = vmatpush3.msra.mxu1 %v725_v25  ;;  %4247 = vst [vmem:[#allocation34_spill] sm:$0xff] %v3147_v36  ;;  %2207 = vmatprep.subr.mxu0 %v708_v58  ;;  %v691_v58 = vmul.f32 %v3138_v8, %v3138_v8  ;;  %v723_v25 = vmul.f32 %v3141_v12, %v3141_v12  ;;  %v3177_v12 = vld [vmem:[%s2757_s23 + $0x2d8] sm:$0xff]  ;;  %4257 = vst [vmem:[#allocation44_spill] sm:$0xff] %v3219_v61 }
  0x3a   : > { %2263 = vmatprep.subr.mxu1 %v740_v1  ;;  %811 = vmatprep.mubr.f32.mxu0 %v559_v46  ;;  %v3164_v1 = vld [vmem:[%s2757_s23 + $0x260] sm:$0xff]  ;;  %v738_v46 = vmul.f32 %v3147_v36, %v3147_v36  ;;  %4250 = vst [vmem:[#allocation37_spill] sm:$0xff] %v3177_v12  ;;  %v3180_v8 = vld [vmem:[%s2757_s23 + $0x3d8] sm:$0xff]  ;;  %v705_v50 = vmul.f32 %v3177_v12, %v3177_v12 }
  0x3b   : > { %916 = vmatprep.mubr.f32.mxu1 %v561_v18  ;;  %4248 = vst [vmem:[#allocation35_spill] sm:$0xff] %v3164_v1  ;;  %2208 = vmatpush3.msra.mxu0 %v692_v54  ;;  %v567_v18 = vld [vmem:[%s4131_s2 + $0x88] sm:$0xff]  ;;  %4251 = vst [vmem:[#allocation38_spill] sm:$0xff] %v3180_v8  ;;  %v569_v54 = vld [vmem:[%s4131_s2 + $0x98] sm:$0xff] }
  0x3c   : > { %2264 = vmatpush3.msra.mxu1 %v724_v19  ;;  %812 = vmatmul.mubr.f32.gmra.mxu0 %v558_v45  ;;  %v690_v19 = vmul.f32 %v3164_v1, %v3164_v1  ;;  %v3190_v45 = vld [vmem:[%s2757_s23 + $0x258] sm:$0xff]  ;;  %v566_v1 = vld [vmem:[%s4131_s2 + $0x80] sm:$0xff] }
  0x3d   : > { %917 = vmatmul.mubr.f32.gmra.mxu1 %v560_v26  ;;  %2209 = vmatprep.subr.mxu0 %v707_v49  ;;  %v722_v26 = vmul.f32 %v3167_v53, %v3167_v53  ;;  %4252 = vst [vmem:[#allocation39_spill] sm:$0xff] %v3190_v45  ;;  %v3193_v36 = vld [vmem:[%s2757_s23 + $0x358] sm:$0xff]  ;;  %v3196_v49 = vld [vmem:[%s2757_s23 + $0x2d0] sm:$0xff] }
  0x3e   : > { %2265 = vmatprep.subr.mxu1 %v739_v57  ;;  %4253 = vst [vmem:[#allocation40_spill] sm:$0xff] %v3193_v36  ;;  %2210 = vmatpush3.msra.mxu0 %v691_v58  ;;  %4254 = vst [vmem:[#allocation41_spill] sm:$0xff] %v3196_v49  ;;  %v3199_v57 = vld [vmem:[%s2757_s23 + $0x3d0] sm:$0xff]  ;;  %v737_v58 = vmul.f32 %v3180_v8, %v3180_v8  ;;  %v704_v12 = vmul.f32 %v3196_v49, %v3196_v49  ;;  %v3271_v8 = vld [vmem:[%s2757_s23 + $0x340] sm:$0xff] }
  0x3f   : > { %2266 = vmatpush3.msra.mxu1 %v723_v25  ;;  %4255 = vst [vmem:[#allocation42_spill] sm:$0xff] %v3199_v57  ;;  %2211 = vmatprep.subr.mxu0 %v706_v62  ;;  %v568_v53 = vld [vmem:[%s4131_s2 + $0x90] sm:$0xff]  ;;  %v689_v62 = vmul.f32 %v3190_v45, %v3190_v45  ;;  %v721_v25 = vmul.f32 %v3193_v36, %v3193_v36  ;;  %v3229_v36 = vld [vmem:[%s2757_s23 + $0x2c8] sm:$0xff]  ;;  %4265 = vst [vmem:[#allocation52_spill] sm:$0xff] %v3271_v8 }
  0x40   : > { %2267 = vmatprep.subr.mxu1 %v738_v46  ;;  %816 = vmatprep.mubr.f32.mxu0 %v567_v18  ;;  %v3216_v46 = vld [vmem:[%s2757_s23 + $0x250] sm:$0xff]  ;;  %v736_v18 = vmul.f32 %v3199_v57, %v3199_v57  ;;  %4258 = vst [vmem:[#allocation45_spill] sm:$0xff] %v3229_v36  ;;  %v3232_v45 = vld [vmem:[%s2757_s23 + $0x3c8] sm:$0xff]  ;;  %v703_v49 = vmul.f32 %v3229_v36, %v3229_v36 }
  0x41   : > { %921 = vmatprep.mubr.f32.mxu1 %v569_v54  ;;  %4256 = vst [vmem:[#allocation43_spill] sm:$0xff] %v3216_v46  ;;  %2212 = vmatpush3.msra.mxu0 %v690_v19  ;;  %v575_v54 = vld [vmem:[%s4131_s2 + $0xc8] sm:$0xff]  ;;  %4259 = vst [vmem:[#allocation46_spill] sm:$0xff] %v3232_v45  ;;  %v577_v19 = vld [vmem:[%s4131_s2 + $0xd8] sm:$0xff] }
  0x42   : > { %2268 = vmatpush3.msra.mxu1 %v722_v26  ;;  %817 = vmatmul.mubr.f32.gmra.mxu0 %v566_v1  ;;  %v688_v26 = vmul.f32 %v3216_v46, %v3216_v46  ;;  %v3242_v1 = vld [vmem:[%s2757_s23 + $0x248] sm:$0xff]  ;;  %v574_v46 = vld [vmem:[%s4131_s2 + $0xc0] sm:$0xff] }
  0x43   : > { %922 = vmatmul.mubr.f32.gmra.mxu1 %v568_v53  ;;  %2213 = vmatprep.subr.mxu0 %v705_v50  ;;  %v720_v53 = vmul.f32 %v3219_v61, %v3219_v61  ;;  %4260 = vst [vmem:[#allocation47_spill] sm:$0xff] %v3242_v1  ;;  %v3245_v57 = vld [vmem:[%s2757_s23 + $0x348] sm:$0xff]  ;;  %v3248_v50 = vld [vmem:[%s2757_s23 + $0x2c0] sm:$0xff]  ;;  %v576_v61 = vld [vmem:[%s4131_s2 + $0xd0] sm:$0xff] }
  0x44   : > { %2269 = vmatprep.subr.mxu1 %v737_v58  ;;  %4261 = vst [vmem:[#allocation48_spill] sm:$0xff] %v3245_v57  ;;  %2214 = vmatpush3.msra.mxu0 %v689_v62  ;;  %4262 = vst [vmem:[#allocation49_spill] sm:$0xff] %v3248_v50  ;;  %v3251_v58 = vld [vmem:[%s2757_s23 + $0x3c0] sm:$0xff]  ;;  %v735_v62 = vmul.f32 %v3232_v45, %v3232_v45  ;;  %v702_v36 = vmul.f32 %v3248_v50, %v3248_v50  ;;  %v3323_v45 = vld [vmem:[%s2757_s23 + $0x330] sm:$0xff] }
  0x45   : > { %2270 = vmatpush3.msra.mxu1 %v721_v25  ;;  %4263 = vst [vmem:[#allocation50_spill] sm:$0xff] %v3251_v58  ;;  %2215 = vmatprep.subr.mxu0 %v704_v12  ;;  %v687_v12 = vmul.f32 %v3242_v1, %v3242_v1  ;;  %v719_v25 = vmul.f32 %v3245_v57, %v3245_v57  ;;  %v3281_v57 = vld [vmem:[%s2757_s23 + $0x2b8] sm:$0xff]  ;;  %4273 = vst [vmem:[#allocation60_spill] sm:$0xff] %v3323_v45 }
  0x46   : > { %2271 = vmatprep.subr.mxu1 %v736_v18  ;;  %821 = vmatprep.mubr.f32.mxu0 %v575_v54  ;;  %v3268_v18 = vld [vmem:[%s2757_s23 + $0x240] sm:$0xff]  ;;  %v734_v54 = vmul.f32 %v3251_v58, %v3251_v58  ;;  %4266 = vst [vmem:[#allocation53_spill] sm:$0xff] %v3281_v57  ;;  %v3284_v1 = vld [vmem:[%s2757_s23 + $0x3b8] sm:$0xff]  ;;  %v701_v50 = vmul.f32 %v3281_v57, %v3281_v57 }
  0x47   : > { %926 = vmatprep.mubr.f32.mxu1 %v577_v19  ;;  %4264 = vst [vmem:[#allocation51_spill] sm:$0xff] %v3268_v18  ;;  %2216 = vmatpush3.msra.mxu0 %v688_v26  ;;  %v583_v19 = vld [vmem:[%s4131_s2 + $0x108] sm:$0xff]  ;;  %4267 = vst [vmem:[#allocation54_spill] sm:$0xff] %v3284_v1  ;;  %v585_v26 = vld [vmem:[%s4131_s2 + $0x118] sm:$0xff] }
  0x48   : > { %2272 = vmatpush3.msra.mxu1 %v720_v53  ;;  %822 = vmatmul.mubr.f32.gmra.mxu0 %v574_v46  ;;  %v686_v53 = vmul.f32 %v3268_v18, %v3268_v18  ;;  %v3294_v46 = vld [vmem:[%s2757_s23 + $0x238] sm:$0xff]  ;;  %v582_v18 = vld [vmem:[%s4131_s2 + $0x100] sm:$0xff] }
  0x49   : > { %927 = vmatmul.mubr.f32.gmra.mxu1 %v576_v61  ;;  %2217 = vmatprep.subr.mxu0 %v703_v49  ;;  %v718_v61 = vmul.f32 %v3271_v8, %v3271_v8  ;;  %4268 = vst [vmem:[#allocation55_spill] sm:$0xff] %v3294_v46  ;;  %v3297_v58 = vld [vmem:[%s2757_s23 + $0x338] sm:$0xff]  ;;  %v3300_v49 = vld [vmem:[%s2757_s23 + $0x2b0] sm:$0xff] }
  0x4a   : > { %2273 = vmatprep.subr.mxu1 %v735_v62  ;;  %4269 = vst [vmem:[#allocation56_spill] sm:$0xff] %v3297_v58  ;;  %2218 = vmatpush3.msra.mxu0 %v687_v12  ;;  %4270 = vst [vmem:[#allocation57_spill] sm:$0xff] %v3300_v49  ;;  %v3303_v62 = vld [vmem:[%s2757_s23 + $0x3b0] sm:$0xff]  ;;  %v733_v12 = vmul.f32 %v3284_v1, %v3284_v1  ;;  %v700_v57 = vmul.f32 %v3300_v49, %v3300_v49  ;;  %v3375_v1 = vld [vmem:[%s2757_s23 + $0x320] sm:$0xff] }
  0x4b   : > { %2274 = vmatpush3.msra.mxu1 %v719_v25  ;;  %4271 = vst [vmem:[#allocation58_spill] sm:$0xff] %v3303_v62  ;;  %2219 = vmatprep.subr.mxu0 %v702_v36  ;;  %v584_v8 = vld [vmem:[%s4131_s2 + $0x110] sm:$0xff]  ;;  %v685_v36 = vmul.f32 %v3294_v46, %v3294_v46  ;;  %v717_v25 = vmul.f32 %v3297_v58, %v3297_v58  ;;  %v3333_v58 = vld [vmem:[%s2757_s23 + $0x2a8] sm:$0xff]  ;;  %4281 = vst [vmem:[#allocation68_spill] sm:$0xff] %v3375_v1 }
  0x4c   : > { %2275 = vmatprep.subr.mxu1 %v734_v54  ;;  %826 = vmatprep.mubr.f32.mxu0 %v583_v19  ;;  %v3320_v54 = vld [vmem:[%s2757_s23 + $0x230] sm:$0xff]  ;;  %v732_v19 = vmul.f32 %v3303_v62, %v3303_v62  ;;  %4274 = vst [vmem:[#allocation61_spill] sm:$0xff] %v3333_v58  ;;  %v3336_v46 = vld [vmem:[%s2757_s23 + $0x3a8] sm:$0xff]  ;;  %v699_v49 = vmul.f32 %v3333_v58, %v3333_v58 }
  0x4d   : > { %931 = vmatprep.mubr.f32.mxu1 %v585_v26  ;;  %4272 = vst [vmem:[#allocation59_spill] sm:$0xff] %v3320_v54  ;;  %2220 = vmatpush3.msra.mxu0 %v686_v53  ;;  %v591_v26 = vld [vmem:[%s4131_s2 + $0x148] sm:$0xff]  ;;  %4275 = vst [vmem:[#allocation62_spill] sm:$0xff] %v3336_v46  ;;  %v593_v53 = vld [vmem:[%s4131_s2 + $0x158] sm:$0xff] }
  0x4e   : > { %2276 = vmatpush3.msra.mxu1 %v718_v61  ;;  %827 = vmatmul.mubr.f32.gmra.mxu0 %v582_v18  ;;  %v684_v61 = vmul.f32 %v3320_v54, %v3320_v54  ;;  %v3346_v18 = vld [vmem:[%s2757_s23 + $0x228] sm:$0xff]  ;;  %v590_v54 = vld [vmem:[%s4131_s2 + $0x140] sm:$0xff] }
  0x4f   : > { %932 = vmatmul.mubr.f32.gmra.mxu1 %v584_v8  ;;  %2221 = vmatprep.subr.mxu0 %v701_v50  ;;  %v716_v8 = vmul.f32 %v3323_v45, %v3323_v45  ;;  %4276 = vst [vmem:[#allocation63_spill] sm:$0xff] %v3346_v18  ;;  %v3349_v62 = vld [vmem:[%s2757_s23 + $0x328] sm:$0xff]  ;;  %v3352_v50 = vld [vmem:[%s2757_s23 + $0x2a0] sm:$0xff]  ;;  %v592_v45 = vld [vmem:[%s4131_s2 + $0x150] sm:$0xff] }
  0x50   : > { %2277 = vmatprep.subr.mxu1 %v733_v12  ;;  %4277 = vst [vmem:[#allocation64_spill] sm:$0xff] %v3349_v62  ;;  %2222 = vmatpush3.msra.mxu0 %v685_v36  ;;  %4278 = vst [vmem:[#allocation65_spill] sm:$0xff] %v3352_v50  ;;  %v3355_v12 = vld [vmem:[%s2757_s23 + $0x3a0] sm:$0xff]  ;;  %v731_v36 = vmul.f32 %v3336_v46, %v3336_v46  ;;  %v698_v58 = vmul.f32 %v3352_v50, %v3352_v50  ;;  %v3427_v46 = vld [vmem:[%s2757_s23 + $0x310] sm:$0xff] }
  0x51   : > { %2278 = vmatpush3.msra.mxu1 %v717_v25  ;;  %4279 = vst [vmem:[#allocation66_spill] sm:$0xff] %v3355_v12  ;;  %2223 = vmatprep.subr.mxu0 %v700_v57  ;;  %v683_v57 = vmul.f32 %v3346_v18, %v3346_v18  ;;  %v715_v25 = vmul.f32 %v3349_v62, %v3349_v62  ;;  %v3385_v62 = vld [vmem:[%s2757_s23 + $0x298] sm:$0xff]  ;;  %4289 = vst [vmem:[#allocation76_spill] sm:$0xff] %v3427_v46 }
  0x52   : > { %2279 = vmatprep.subr.mxu1 %v732_v19  ;;  %831 = vmatprep.mubr.f32.mxu0 %v591_v26  ;;  %v3372_v19 = vld [vmem:[%s2757_s23 + $0x220] sm:$0xff]  ;;  %v730_v26 = vmul.f32 %v3355_v12, %v3355_v12  ;;  %4282 = vst [vmem:[#allocation69_spill] sm:$0xff] %v3385_v62  ;;  %v3388_v18 = vld [vmem:[%s2757_s23 + $0x398] sm:$0xff]  ;;  %v697_v50 = vmul.f32 %v3385_v62, %v3385_v62 }
  0x53   : > { %936 = vmatprep.mubr.f32.mxu1 %v593_v53  ;;  %4280 = vst [vmem:[#allocation67_spill] sm:$0xff] %v3372_v19  ;;  %2224 = vmatpush3.msra.mxu0 %v684_v61  ;;  %v599_v53 = vld [vmem:[%s4131_s2 + $0x188] sm:$0xff]  ;;  %4283 = vst [vmem:[#allocation70_spill] sm:$0xff] %v3388_v18  ;;  %v601_v61 = vld [vmem:[%s4131_s2 + $0x198] sm:$0xff] }
  0x54   : > { %2280 = vmatpush3.msra.mxu1 %v716_v8  ;;  %832 = vmatmul.mubr.f32.gmra.mxu0 %v590_v54  ;;  %v682_v8 = vmul.f32 %v3372_v19, %v3372_v19  ;;  %v3398_v54 = vld [vmem:[%s2757_s23 + $0x218] sm:$0xff]  ;;  %v598_v19 = vld [vmem:[%s4131_s2 + $0x180] sm:$0xff] }
  0x55   : > { %937 = vmatmul.mubr.f32.gmra.mxu1 %v592_v45  ;;  %2225 = vmatprep.subr.mxu0 %v699_v49  ;;  %v714_v45 = vmul.f32 %v3375_v1, %v3375_v1  ;;  %4284 = vst [vmem:[#allocation71_spill] sm:$0xff] %v3398_v54  ;;  %v3401_v12 = vld [vmem:[%s2757_s23 + $0x318] sm:$0xff]  ;;  %v3404_v49 = vld [vmem:[%s2757_s23 + $0x290] sm:$0xff] }
  0x56   : > { %2281 = vmatprep.subr.mxu1 %v731_v36  ;;  %4285 = vst [vmem:[#allocation72_spill] sm:$0xff] %v3401_v12  ;;  %2226 = vmatpush3.msra.mxu0 %v683_v57  ;;  %4286 = vst [vmem:[#allocation73_spill] sm:$0xff] %v3404_v49  ;;  %v3407_v36 = vld [vmem:[%s2757_s23 + $0x390] sm:$0xff]  ;;  %v729_v57 = vmul.f32 %v3388_v18, %v3388_v18  ;;  %v696_v62 = vmul.f32 %v3404_v49, %v3404_v49  ;;  %v3479_v18 = vld [vmem:[%s2757_s23 + $0x300] sm:$0xff] }
  0x57   : > { %2282 = vmatpush3.msra.mxu1 %v715_v25  ;;  %4287 = vst [vmem:[#allocation74_spill] sm:$0xff] %v3407_v36  ;;  %2227 = vmatprep.subr.mxu0 %v698_v58  ;;  %v600_v1 = vld [vmem:[%s4131_s2 + $0x190] sm:$0xff]  ;;  %v681_v58 = vmul.f32 %v3398_v54, %v3398_v54  ;;  %v713_v25 = vmul.f32 %v3401_v12, %v3401_v12  ;;  %v3437_v12 = vld [vmem:[%s2757_s23 + $0x288] sm:$0xff] }
  0x58   : > { %2283 = vmatprep.subr.mxu1 %v730_v26  ;;  %836 = vmatprep.mubr.f32.mxu0 %v599_v53  ;;  %v3424_v26 = vld [vmem:[%s2757_s23 + $0x210] sm:$0xff]  ;;  %v728_v53 = vmul.f32 %v3407_v36, %v3407_v36  ;;  %4290 = vst [vmem:[#allocation77_spill] sm:$0xff] %v3437_v12  ;;  %v3440_v54 = vld [vmem:[%s2757_s23 + $0x388] sm:$0xff]  ;;  %v695_v49 = vmul.f32 %v3437_v12, %v3437_v12 }
  0x59   : > { %941 = vmatprep.mubr.f32.mxu1 %v601_v61  ;;  %4288 = vst [vmem:[#allocation75_spill] sm:$0xff] %v3424_v26  ;;  %2228 = vmatpush3.msra.mxu0 %v682_v8  ;;  %v607_v61 = vld [vmem:[%s4131_s2 + $0x1c8] sm:$0xff]  ;;  %4291 = vst [vmem:[#allocation78_spill] sm:$0xff] %v3440_v54  ;;  %v609_v8 = vld [vmem:[%s4131_s2 + $0x1d8] sm:$0xff] }
  0x5a   : > { %2284 = vmatpush3.msra.mxu1 %v714_v45  ;;  %837 = vmatmul.mubr.f32.gmra.mxu0 %v598_v19  ;;  %v680_v45 = vmul.f32 %v3424_v26, %v3424_v26  ;;  %v3450_v19 = vld [vmem:[%s2757_s23 + $0x208] sm:$0xff]  ;;  %v606_v26 = vld [vmem:[%s4131_s2 + $0x1c0] sm:$0xff] }
  0x5b   : > { %942 = vmatmul.mubr.f32.gmra.mxu1 %v600_v1  ;;  %2229 = vmatprep.subr.mxu0 %v697_v50  ;;  %v712_v1 = vmul.f32 %v3427_v46, %v3427_v46  ;;  %v3453_v36 = vld [vmem:[%s2757_s23 + $0x308] sm:$0xff]  ;;  %v3456_v50 = vld [vmem:[%s2757_s23 + $0x280] sm:$0xff]  ;;  %v608_v46 = vld [vmem:[%s4131_s2 + $0x1d0] sm:$0xff] }
  0x5c   : > { %2285 = vmatprep.subr.mxu1 %v729_v57  ;;  %2230 = vmatpush3.msra.mxu0 %v681_v58  ;;  %v3459_v57 = vld [vmem:[%s2757_s23 + $0x380] sm:$0xff]  ;;  %v727_v58 = vmul.f32 %v3440_v54, %v3440_v54  ;;  %v694_v12 = vmul.f32 %v3456_v50, %v3456_v50 }
  0x5d   : > { %2286 = vmatpush3.msra.mxu1 %v713_v25  ;;  %2231 = vmatprep.subr.mxu0 %v696_v62  ;;  %v3472_v25 = vld [vmem:[%s2757_s23 + $0x200] sm:$0xff]  ;;  %v679_v62 = vmul.f32 %v3450_v19, %v3450_v19  ;;  %v726_v54 = vmul.f32 %v3459_v57, %v3459_v57 }
  0x5e   : > { %2287 = vmatprep.subr.mxu1 %v728_v53  ;;  %841 = vmatprep.mubr.f32.mxu0 %v607_v61  ;;  %v711_v53 = vmul.f32 %v3453_v36, %v3453_v36  ;;  %v678_v61 = vmul.f32 %v3472_v25, %v3472_v25 }
  0x5f   : > { %946 = vmatprep.mubr.f32.mxu1 %v609_v8  ;;  %2232 = vmatpush3.msra.mxu0 %v680_v45  ;;  %v555_v8 = vld [vmem:[%s4131_s2 + $0x28] sm:$0xff]  ;;  %v710_v45 = vmul.f32 %v3479_v18, %v3479_v18 }
  0x60   : > { %2288 = vmatpush3.msra.mxu1 %v712_v1  ;;  %842 = vmatmul.mubr.f32.gmra.mxu0 %v606_v26  ;;  %v557_v1 = vld [vmem:[%s4131_s2 + $0x38] sm:$0xff]  ;;  %v488_v26 = vld [vmem:[%s4130_s1 + $0x10] sm:$0xff] }
  0x61   : > { %947 = vmatmul.mubr.f32.gmra.mxu1 %v608_v46  ;;  %2233 = vmatprep.subr.mxu0 %v695_v49  ;;  %v554_v46 = vld [vmem:[%s4131_s2 + $0x20] sm:$0xff]  ;;  %v556_v49 = vld [vmem:[%s4131_s2 + $0x30] sm:$0xff] }
  0x62   : > { %2289 = vmatprep.subr.mxu1 %v727_v58  ;;  %2234 = vmatpush3.msra.mxu0 %v679_v62  ;;  %v4308_v58 = vld [vmem:[#allocation19_spill] sm:$0xff]  ;;  %v4310_v62 = vld [vmem:[#allocation21_spill] sm:$0xff] }
  0x63   : > { %2290 = vmatpush3.msra.mxu1 %v711_v53  ;;  %2235 = vmatprep.subr.mxu0 %v694_v12  ;;  %v563_v12 = vld [vmem:[%s4131_s2 + $0x68] sm:$0xff]  ;;  %v4311_v53 = vld [vmem:[#allocation22_spill] sm:$0xff] }
  0x64   : > { %2291 = vmatprep.subr.mxu1 %v726_v54  ;;  %2236 = vmatpush3.msra.mxu0 %v678_v61  ;;  %v565_v54 = vld [vmem:[%s4131_s2 + $0x78] sm:$0xff]  ;;  %v495_v61 = vld [vmem:[%s4130_s1 + $0x48] sm:$0xff] }
  0x65   : > { %1016 = vmatprep.mubr.f32.mxu0 %v555_v8  ;;  %2292 = vmatpush3.msra.mxu1 %v710_v45  ;;  %v497_v8 = vld [vmem:[%s4130_s1 + $0x58] sm:$0xff]  ;;  %v4312_v45 = vld [vmem:[#allocation23_spill] sm:$0xff] }
  0x66   : > { %1121 = vmatprep.mubr.f32.mxu1 %v557_v1  ;;  %1017 = vmatmul.mubr.f32.vlgmr.msra.gmra.mxu0 %v554_v46  ;;  %v4313_v1 = vld [vmem:[#allocation24_spill] sm:$0xff]  ;;  %v4314_v46 = vld [vmem:[#allocation25_spill] sm:$0xff] }
  0x67   : > { %1122 = vmatmul.mubr.f32.vlgmr.msra.gmra.mxu1 %v556_v49  ;;  %2317 = vmatprep.subr.mxu0 %v2760_v3  ;;  %v562_v3 = vld [vmem:[%s4131_s2 + $0x60] sm:$0xff] }
  0x68   : > { %2373 = vmatprep.subr.mxu1 %v2763_v4  ;;  %2318 = vmatpush3.msra.mxu0 %v2766_v5  ;;  %v564_v4 = vld [vmem:[%s4131_s2 + $0x70] sm:$0xff]  ;;  %v571_v5 = vld [vmem:[%s4131_s2 + $0xa8] sm:$0xff]  ;;  %v4315_v49 = vld [vmem:[#allocation26_spill] sm:$0xff] }
  0x69   : > { %2374 = vmatpush3.msra.mxu1 %v2775_v9  ;;  %2319 = vmatprep.subr.mxu0 %v2778_v10  ;;  %v573_v9 = vld [vmem:[%s4131_s2 + $0xb8] sm:$0xff]  ;;  %v570_v10 = vld [vmem:[%s4131_s2 + $0xa0] sm:$0xff] }
  0x6a   : > { %2375 = vmatprep.subr.mxu1 %v2781_v11  ;;  %1021 = vmatprep.mubr.f32.mxu0 %v563_v12  ;;  %v572_v11 = vld [vmem:[%s4131_s2 + $0xb0] sm:$0xff]  ;;  %v494_v12 = vld [vmem:[%s4130_s1 + $0x40] sm:$0xff] }
  0x6b   : > { %1126 = vmatprep.mubr.f32.mxu1 %v565_v54  ;;  %2320 = vmatpush3.msra.mxu0 %v2790_v15  ;;  %v579_v15 = vld [vmem:[%s4131_s2 + $0xe8] sm:$0xff]  ;;  %v496_v54 = vld [vmem:[%s4130_s1 + $0x50] sm:$0xff] }
  0x6c   : > { %2376 = vmatpush3.msra.mxu1 %v2793_v16  ;;  %1022 = vmatmul.mubr.f32.gmra.mxu0 %v562_v3  ;;  %v581_v16 = vld [vmem:[%s4131_s2 + $0xf8] sm:$0xff]  ;;  %v4316_v3 = vld [vmem:[#allocation27_spill] sm:$0xff] }
  0x6d   : > { %1127 = vmatmul.mubr.f32.gmra.mxu1 %v564_v4  ;;  %2321 = vmatprep.subr.mxu0 %v2796_v17  ;;  %v578_v17 = vld [vmem:[%s4131_s2 + $0xe0] sm:$0xff]  ;;  %v4317_v4 = vld [vmem:[#allocation28_spill] sm:$0xff] }
  0x6e   : > { %2377 = vmatprep.subr.mxu1 %v2805_v21  ;;  %2322 = vmatpush3.msra.mxu0 %v2808_v22  ;;  %v580_v21 = vld [vmem:[%s4131_s2 + $0xf0] sm:$0xff]  ;;  %v587_v22 = vld [vmem:[%s4131_s2 + $0x128] sm:$0xff] }
  0x6f   : > { %2378 = vmatpush3.msra.mxu1 %v2811_v23  ;;  %2323 = vmatprep.subr.mxu0 %v2820_v27  ;;  %v589_v23 = vld [vmem:[%s4131_s2 + $0x138] sm:$0xff]  ;;  %v586_v27 = vld [vmem:[%s4131_s2 + $0x120] sm:$0xff] }
  0x70   : > { %2379 = vmatprep.subr.mxu1 %v2823_v28  ;;  %1026 = vmatprep.mubr.f32.mxu0 %v571_v5  ;;  %v588_v28 = vld [vmem:[%s4131_s2 + $0x130] sm:$0xff] }
  0x71   : > { %1131 = vmatprep.mubr.f32.mxu1 %v573_v9  ;;  %2324 = vmatpush3.msra.mxu0 %v2826_v29  ;;  %v595_v29 = vld [vmem:[%s4131_s2 + $0x168] sm:$0xff]  ;;  %v4318_v5 = vld [vmem:[#allocation29_spill] sm:$0xff]  ;;  %v4319_v9 = vld [vmem:[#allocation30_spill] sm:$0xff] }
  0x72   : > { %2380 = vmatpush3.msra.mxu1 %v2833_v32  ;;  %1027 = vmatmul.mubr.f32.gmra.mxu0 %v570_v10  ;;  %v597_v32 = vld [vmem:[%s4131_s2 + $0x178] sm:$0xff]  ;;  %v503_v10 = vld [vmem:[%s4130_s1 + $0x88] sm:$0xff] }
  0x73   : > { %1132 = vmatmul.mubr.f32.gmra.mxu1 %v572_v11  ;;  %2325 = vmatprep.subr.mxu0 %v2836_v33  ;;  %v594_v33 = vld [vmem:[%s4131_s2 + $0x160] sm:$0xff]  ;;  %v505_v11 = vld [vmem:[%s4130_s1 + $0x98] sm:$0xff] }
  0x74   : > { %2381 = vmatprep.subr.mxu1 %v2839_v34  ;;  %2326 = vmatpush3.msra.mxu0 %v2846_v37  ;;  %v596_v34 = vld [vmem:[%s4131_s2 + $0x170] sm:$0xff]  ;;  %v603_v37 = vld [vmem:[%s4131_s2 + $0x1a8] sm:$0xff] }
  0x75   : > { %2382 = vmatpush3.msra.mxu1 %v2849_v38  ;;  %2327 = vmatprep.subr.mxu0 %v2852_v39  ;;  %v605_v38 = vld [vmem:[%s4131_s2 + $0x1b8] sm:$0xff]  ;;  %v4292_v39 = vld [vmem:[#allocation3_spill] sm:$0xff] }
  0x76   : > { %2383 = vmatprep.subr.mxu1 %v2859_v42  ;;  %1031 = vmatprep.mubr.f32.mxu0 %v579_v15  ;;  %v4293_v42 = vld [vmem:[#allocation4_spill] sm:$0xff]  ;;  %v4320_v15 = vld [vmem:[#allocation31_spill] sm:$0xff] }
  0x77   : > { %1136 = vmatprep.mubr.f32.mxu1 %v581_v16  ;;  %2328 = vmatpush3.msra.mxu0 %v2862_v43  ;;  %v602_v43 = vld [vmem:[%s4131_s2 + $0x1a0] sm:$0xff]  ;;  %v4321_v16 = vld [vmem:[#allocation32_spill] sm:$0xff] }
  0x78   : > { %2384 = vmatpush3.msra.mxu1 %v2865_v44  ;;  %1032 = vmatmul.mubr.f32.gmra.mxu0 %v578_v17  ;;  %v604_v44 = vld [vmem:[%s4131_s2 + $0x1b0] sm:$0xff] }
  0x79   : > { %1137 = vmatmul.mubr.f32.gmra.mxu1 %v580_v21  ;;  %2329 = vmatprep.subr.mxu0 %v2872_v47  ;;  %v4294_v47 = vld [vmem:[#allocation5_spill] sm:$0xff]  ;;  %v4323_v21 = vld [vmem:[#allocation34_spill] sm:$0xff] }
  0x7a   : > { %2385 = vmatprep.subr.mxu1 %v2875_v48  ;;  %2330 = vmatpush3.msra.mxu0 %v2882_v51  ;;  %v4295_v48 = vld [vmem:[#allocation6_spill] sm:$0xff]  ;;  %v4296_v51 = vld [vmem:[#allocation7_spill] sm:$0xff]  ;;  %v4322_v17 = vld [vmem:[#allocation33_spill] sm:$0xff] }
  0x7b   : > { %2386 = vmatpush3.msra.mxu1 %v2885_v52  ;;  %2331 = vmatprep.subr.mxu0 %v2892_v55  ;;  %v4297_v52 = vld [vmem:[#allocation8_spill] sm:$0xff] }
  0x7c   : > { %2387 = vmatprep.subr.mxu1 %v2895_v56  ;;  %1036 = vmatprep.mubr.f32.mxu0 %v587_v22  ;;  %v611_v55 = vld [vmem:[%s4131_s2 + $0x1e8] sm:$0xff]  ;;  %v613_v56 = vld [vmem:[%s4131_s2 + $0x1f8] sm:$0xff]  ;;  %v502_v22 = vld [vmem:[%s4130_s1 + $0x80] sm:$0xff] }
  0x7d   : > { %1141 = vmatprep.mubr.f32.mxu1 %v589_v23  ;;  %2332 = vmatpush3.msra.mxu0 %v2902_v59  ;;  %v4298_v59 = vld [vmem:[#allocation9_spill] sm:$0xff] }
  0x7e   : > { %2388 = vmatpush3.msra.mxu1 %v2905_v60  ;;  %1037 = vmatmul.mubr.f32.gmra.mxu0 %v586_v27  ;;  %v4299_v60 = vld [vmem:[#allocation10_spill] sm:$0xff]  ;;  %v504_v23 = vld [vmem:[%s4130_s1 + $0x90] sm:$0xff]  ;;  %v4324_v27 = vld [vmem:[#allocation35_spill] sm:$0xff] }
  0x7f   : > { %1142 = vmatmul.mubr.f32.gmra.mxu1 %v588_v28  ;;  %2333 = vmatprep.subr.mxu0 %v2912_v63  ;;  %v4300_v63 = vld [vmem:[#allocation11_spill] sm:$0xff]  ;;  %v4325_v28 = vld [vmem:[#allocation36_spill] sm:$0xff] }
  0x80   : > { %2389 = vmatprep.subr.mxu1 %v2915_v0  ;;  %2334 = vmatpush3.msra.mxu0 %v2922_v6  ;;  %v610_v0 = vld [vmem:[%s4131_s2 + $0x1e0] sm:$0xff]  ;;  %v612_v6 = vld [vmem:[%s4131_s2 + $0x1f0] sm:$0xff] }
  0x81   : > { %2390 = vmatpush3.msra.mxu1 %v2925_v7  ;;  %2335 = vmatprep.subr.mxu0 %v2932_v13  ;;  %v4301_v7 = vld [vmem:[#allocation12_spill] sm:$0xff]  ;;  %v4302_v13 = vld [vmem:[#allocation13_spill] sm:$0xff] }
  0x82   : > { %2391 = vmatprep.subr.mxu1 %v2935_v14  ;;  %1041 = vmatprep.mubr.f32.mxu0 %v595_v29  ;;  %v4303_v14 = vld [vmem:[#allocation14_spill] sm:$0xff]  ;;  %v4326_v29 = vld [vmem:[#allocation37_spill] sm:$0xff] }
  0x83   : > { %1146 = vmatprep.mubr.f32.mxu1 %v597_v32  ;;  %2336 = vmatpush3.msra.mxu0 %v2942_v20  ;;  %v4304_v20 = vld [vmem:[#allocation15_spill] sm:$0xff]  ;;  %v4327_v32 = vld [vmem:[#allocation38_spill] sm:$0xff] }
  0x84   : > { %2392 = vmatpush3.msra.mxu1 %v2945_v24  ;;  %1042 = vmatmul.mubr.f32.gmra.mxu0 %v594_v33  ;;  %v487_v24 = vld [vmem:[%s4130_s1 + $0x8] sm:$0xff] }
  0x85   : > { %1147 = vmatmul.mubr.f32.gmra.mxu1 %v596_v34  ;;  %2337 = vmatprep.subr.mxu0 %v2952_v30  ;;  %v4305_v30 = vld [vmem:[#allocation16_spill] sm:$0xff]  ;;  %v513_v34 = vld [vmem:[%s4130_s1 + $0xd8] sm:$0xff] }
  0x86   : > { %2393 = vmatprep.subr.mxu1 %v2955_v31  ;;  %2338 = vmatpush3.msra.mxu0 %v2962_v40  ;;  %v489_v31 = vld [vmem:[%s4130_s1 + $0x18] sm:$0xff]  ;;  %v511_v33 = vld [vmem:[%s4130_s1 + $0xc8] sm:$0xff] }
  0x87   : > { %2394 = vmatpush3.msra.mxu1 %v2965_v41  ;;  %2339 = vmatprep.subr.mxu0 %v4292_v39  ;;  %v4306_v40 = vld [vmem:[#allocation17_spill] sm:$0xff]  ;;  %v4307_v41 = vld [vmem:[#allocation18_spill] sm:$0xff] }
  0x88   : > { %2395 = vmatprep.subr.mxu1 %v4293_v42  ;;  %1046 = vmatprep.mubr.f32.mxu0 %v603_v37  ;;  %v4328_v37 = vld [vmem:[#allocation39_spill] sm:$0xff]  ;;  %v4330_v39 = vld [vmem:[#allocation41_spill] sm:$0xff]  ;;  %v4331_v42 = vld [vmem:[#allocation42_spill] sm:$0xff] }
  0x89   : > { %1151 = vmatprep.mubr.f32.mxu1 %v605_v38  ;;  %2340 = vmatpush3.msra.mxu0 %v4294_v47  ;;  %v4329_v38 = vld [vmem:[#allocation40_spill] sm:$0xff]  ;;  %v4332_v47 = vld [vmem:[#allocation43_spill] sm:$0xff] }
  0x8a   : > { %2396 = vmatpush3.msra.mxu1 %v4295_v48  ;;  %1047 = vmatmul.mubr.f32.gmra.mxu0 %v602_v43  ;;  %v510_v43 = vld [vmem:[%s4130_s1 + $0xc0] sm:$0xff]  ;;  %v4333_v48 = vld [vmem:[#allocation44_spill] sm:$0xff] }
  0x8b   : > { %1152 = vmatmul.mubr.f32.gmra.mxu1 %v604_v44  ;;  %2341 = vmatprep.subr.mxu0 %v4296_v51  ;;  %v512_v44 = vld [vmem:[%s4130_s1 + $0xd0] sm:$0xff] }
  0x8c   : > { %2397 = vmatprep.subr.mxu1 %v4297_v52  ;;  %2342 = vmatpush3.msra.mxu0 %v4298_v59  ;;  %v4334_v51 = vld [vmem:[#allocation45_spill] sm:$0xff]  ;;  %v4335_v52 = vld [vmem:[#allocation46_spill] sm:$0xff]  ;;  %v4336_v59 = vld [vmem:[#allocation47_spill] sm:$0xff] }
  0x8d   : > { %2398 = vmatpush3.msra.mxu1 %v4299_v60  ;;  %2343 = vmatprep.subr.mxu0 %v3012_v35  ;;  %v486_v35 = vld [vmem:[%s4130_s1] sm:$0xff]  ;;  %v4337_v60 = vld [vmem:[#allocation48_spill] sm:$0xff] }
  0x8e   : > { %2399 = vmatprep.subr.mxu1 %v4300_v63  ;;  %1051 = vmatprep.mubr.f32.mxu0 %v611_v55  ;;  %v519_v55 = vld [vmem:[%s4130_s1 + $0x108] sm:$0xff]  ;;  %v4338_v63 = vld [vmem:[#allocation49_spill] sm:$0xff] }
  0x8f   : > { %1156 = vmatprep.mubr.f32.mxu1 %v613_v56  ;;  %2344 = vmatpush3.msra.mxu0 %v4301_v7  ;;  %v521_v56 = vld [vmem:[%s4130_s1 + $0x118] sm:$0xff]  ;;  %v520_v7 = vld [vmem:[%s4130_s1 + $0x110] sm:$0xff] }
  0x90   : > { %2400 = vmatpush3.msra.mxu1 %v4302_v13  ;;  %1052 = vmatmul.mubr.f32.gmra.mxu0 %v610_v0  ;;  %v4339_v0 = vld [vmem:[#allocation50_spill] sm:$0xff]  ;;  %v4340_v13 = vld [vmem:[#allocation51_spill] sm:$0xff] }
  0x91   : > { %1157 = vmatmul.mubr.f32.gmra.mxu1 %v612_v6  ;;  %2345 = vmatprep.subr.mxu0 %v4303_v14  ;;  %v518_v6 = vld [vmem:[%s4130_s1 + $0x100] sm:$0xff]  ;;  %v4341_v14 = vld [vmem:[#allocation52_spill] sm:$0xff] }
  0x92   : > { %2401 = vmatprep.subr.mxu1 %v4304_v20  ;;  %2346 = vmatpush3.msra.mxu0 %v3042_v2  ;;  %v4309_v2 = vld [vmem:[#allocation20_spill] sm:$0xff]  ;;  %v4342_v20 = vld [vmem:[#allocation53_spill] sm:$0xff] }
  0x93   : > { %2402 = vmatpush3.msra.mxu1 %v4305_v30  ;;  %2347 = vmatprep.subr.mxu0 %v4306_v40  ;;  %v527_v30 = vld [vmem:[%s4130_s1 + $0x148] sm:$0xff] }
  0x94   : > { %2403 = vmatprep.subr.mxu1 %v4307_v41  ;;  %2348 = vmatpush3.msra.mxu0 %v4308_v58  ;;  %v4344_v40 = vld [vmem:[#allocation55_spill] sm:$0xff]  ;;  %v4345_v41 = vld [vmem:[#allocation56_spill] sm:$0xff] }
  0x95   : > { %1226 = vmatprep.mubr.f32.mxu0 %v487_v24  ;;  %2404 = vmatpush3.msra.mxu1 %v4309_v2  ;;  %v4343_v24 = vld [vmem:[#allocation54_spill] sm:$0xff]  ;;  %v528_v2 = vld [vmem:[%s4130_s1 + $0x150] sm:$0xff] }
  0x96   : > { %1331 = vmatprep.mubr.f32.mxu1 %v489_v31  ;;  %1227 = vmatmul.mubr.f32.vlgmr.msra.gmra.mxu0 %v486_v35  ;;  %v529_v31 = vld [vmem:[%s4130_s1 + $0x158] sm:$0xff]  ;;  %v526_v58 = vld [vmem:[%s4130_s1 + $0x140] sm:$0xff] }
  0x97   : > { %1332 = vmatmul.mubr.f32.vlgmr.msra.gmra.mxu1 %v488_v26  ;;  %2429 = vmatprep.subr.mxu0 %v4310_v62  ;;  %v4346_v35 = vld [vmem:[#allocation57_spill] sm:$0xff]  ;;  %v4347_v26 = vld [vmem:[#allocation58_spill] sm:$0xff]  ;;  %v4348_v62 = vld [vmem:[#allocation59_spill] sm:$0xff] }
  0x98   : > { %2485 = vmatprep.subr.mxu1 %v4311_v53  ;;  %2430 = vmatpush3.msra.mxu0 %v4312_v45  ;;  %v4349_v53 = vld [vmem:[#allocation60_spill] sm:$0xff] }
  0x99   : > { %2486 = vmatpush3.msra.mxu1 %v4313_v1  ;;  %2431 = vmatprep.subr.mxu0 %v4314_v46  ;;  %v535_v45 = vld [vmem:[%s4130_s1 + $0x188] sm:$0xff]  ;;  %v537_v1 = vld [vmem:[%s4130_s1 + $0x198] sm:$0xff] }
  0x9a   : > { %2487 = vmatprep.subr.mxu1 %v4315_v49  ;;  %1231 = vmatprep.mubr.f32.mxu0 %v495_v61  ;;  %v4350_v61 = vld [vmem:[#allocation61_spill] sm:$0xff]  ;;  %v4352_v46 = vld [vmem:[#allocation63_spill] sm:$0xff]  ;;  %v4353_v49 = vld [vmem:[#allocation64_spill] sm:$0xff] }
  0x9b   : > { %1336 = vmatprep.mubr.f32.mxu1 %v497_v8  ;;  %2432 = vmatpush3.msra.mxu0 %v4316_v3  ;;  %v4351_v8 = vld [vmem:[#allocation62_spill] sm:$0xff] }
  0x9c   : > { %2488 = vmatpush3.msra.mxu1 %v4317_v4  ;;  %1232 = vmatmul.mubr.f32.gmra.mxu0 %v494_v12  ;;  %v4354_v12 = vld [vmem:[#allocation65_spill] sm:$0xff]  ;;  %v534_v3 = vld [vmem:[%s4130_s1 + $0x180] sm:$0xff] }
  0x9d   : > { %1337 = vmatmul.mubr.f32.gmra.mxu1 %v496_v54  ;;  %2433 = vmatprep.subr.mxu0 %v4318_v5  ;;  %v4355_v54 = vld [vmem:[#allocation66_spill] sm:$0xff]  ;;  %v536_v4 = vld [vmem:[%s4130_s1 + $0x190] sm:$0xff]  ;;  %v4356_v5 = vld [vmem:[#allocation67_spill] sm:$0xff] }
  0x9e   : > { %2489 = vmatprep.subr.mxu1 %v4319_v9  ;;  %2434 = vmatpush3.msra.mxu0 %v4320_v15  ;;  %v4357_v9 = vld [vmem:[#allocation68_spill] sm:$0xff] }
  0x9f   : > { %2490 = vmatpush3.msra.mxu1 %v4321_v16  ;;  %2435 = vmatprep.subr.mxu0 %v4322_v17  ;;  %v543_v15 = vld [vmem:[%s4130_s1 + $0x1c8] sm:$0xff]  ;;  %v545_v16 = vld [vmem:[%s4130_s1 + $0x1d8] sm:$0xff] }
  0xa0   : > { %2491 = vmatprep.subr.mxu1 %v4323_v21  ;;  %1236 = vmatprep.mubr.f32.mxu0 %v503_v10  ;;  %v4358_v10 = vld [vmem:[#allocation69_spill] sm:$0xff]  ;;  %v4360_v17 = vld [vmem:[#allocation71_spill] sm:$0xff]  ;;  %v4361_v21 = vld [vmem:[#allocation72_spill] sm:$0xff] }
  0xa1   : > { %1341 = vmatprep.mubr.f32.mxu1 %v505_v11  ;;  %2436 = vmatpush3.msra.mxu0 %v4324_v27  ;;  %v4359_v11 = vld [vmem:[#allocation70_spill] sm:$0xff] }
  0xa2   : > { %2492 = vmatpush3.msra.mxu1 %v4325_v28  ;;  %1237 = vmatmul.mubr.f32.gmra.mxu0 %v502_v22  ;;  %v4362_v22 = vld [vmem:[#allocation73_spill] sm:$0xff]  ;;  %v542_v27 = vld [vmem:[%s4130_s1 + $0x1c0] sm:$0xff] }
  0xa3   : > { %1342 = vmatmul.mubr.f32.gmra.mxu1 %v504_v23  ;;  %2437 = vmatprep.subr.mxu0 %v4326_v29  ;;  %v4363_v23 = vld [vmem:[#allocation74_spill] sm:$0xff]  ;;  %v544_v28 = vld [vmem:[%s4130_s1 + $0x1d0] sm:$0xff]  ;;  %v4364_v29 = vld [vmem:[#allocation75_spill] sm:$0xff] }
  0xa4   : > { %2493 = vmatprep.subr.mxu1 %v4327_v32  ;;  %2438 = vmatpush3.msra.mxu0 %v4328_v37  ;;  %v4365_v32 = vld [vmem:[#allocation76_spill] sm:$0xff] }
  0xa5   : > { %2494 = vmatpush3.msra.mxu1 %v4329_v38  ;;  %2439 = vmatprep.subr.mxu0 %v4330_v39  ;;  %v491_v37 = vld [vmem:[%s4130_s1 + $0x28] sm:$0xff]  ;;  %v493_v38 = vld [vmem:[%s4130_s1 + $0x38] sm:$0xff]  ;;  %v490_v39 = vld [vmem:[%s4130_s1 + $0x20] sm:$0xff] }
  0xa6   : > { %2495 = vmatprep.subr.mxu1 %v4331_v42  ;;  %1241 = vmatprep.mubr.f32.mxu0 %v511_v33  ;;  %v4366_v33 = vld [vmem:[#allocation77_spill] sm:$0xff] }
  0xa7   : > { %1346 = vmatprep.mubr.f32.mxu1 %v513_v34  ;;  %2440 = vmatpush3.msra.mxu0 %v4332_v47  ;;  %v4367_v34 = vld [vmem:[#allocation78_spill] sm:$0xff]  ;;  %v492_v42 = vld [vmem:[%s4130_s1 + $0x30] sm:$0xff]  ;;  %v2673_v47 = vmov 0  }
  0xa8   : > { %2496 = vmatpush3.msra.mxu1 %v4333_v48  ;;  %1242 = vmatmul.mubr.f32.gmra.mxu0 %v510_v43  ;;  %v507_v43 = vld [vmem:[%s4130_s1 + $0xa8] sm:$0xff]  ;;  %v1586_v48 = vld [vmem:[%s4132_s3 + $0x20] sm:$0xff] }
  0xa9   : > { %1347 = vmatmul.mubr.f32.gmra.mxu1 %v512_v44  ;;  %2441 = vmatprep.subr.mxu0 %v4334_v51  ;;  %v509_v44 = vld [vmem:[%s4130_s1 + $0xb8] sm:$0xff]  ;;  %v1588_v51 = vld [vmem:[%s4132_s3 + $0x30] sm:$0xff] }
  0xaa   : > { %2497 = vmatprep.subr.mxu1 %v4335_v52  ;;  %2442 = vmatpush3.msra.mxu0 %v4336_v59  ;;  %v506_v52 = vld [vmem:[%s4130_s1 + $0xa0] sm:$0xff]  ;;  %v517_v59 = vld [vmem:[%s4130_s1 + $0xf8] sm:$0xff] }
  0xab   : > { %2498 = vmatpush3.msra.mxu1 %v4337_v60  ;;  %2443 = vmatprep.subr.mxu0 %v4338_v63  ;;  %v1584_v60 = vld [vmem:[%s4132_s3 + $0x10] sm:$0xff]  ;;  %v1585_v63 = vld [vmem:[%s4132_s3 + $0x18] sm:$0xff] }
  0xac   : > { %2499 = vmatprep.subr.mxu1 %v4339_v0  ;;  %1246 = vmatprep.mubr.f32.mxu0 %v519_v55  ;;  %v508_v55 = vld [vmem:[%s4130_s1 + $0xb0] sm:$0xff]  ;;  %v514_v0 = vld [vmem:[%s4130_s1 + $0xe0] sm:$0xff] }
  0xad   : > { %1351 = vmatprep.mubr.f32.mxu1 %v521_v56  ;;  %2444 = vmatpush3.msra.mxu0 %v4340_v13  ;;  %v515_v56 = vld [vmem:[%s4130_s1 + $0xe8] sm:$0xff]  ;;  %v525_v13 = vld [vmem:[%s4130_s1 + $0x138] sm:$0xff] }
  0xae   : > { %2500 = vmatpush3.msra.mxu1 %v4341_v14  ;;  %1247 = vmatmul.mubr.f32.gmra.mxu0 %v518_v6  ;;  %v516_v6 = vld [vmem:[%s4130_s1 + $0xf0] sm:$0xff]  ;;  %v1582_v14 = vld [vmem:[%s4132_s3] sm:$0xff] }
  0xaf   : > { %1352 = vmatmul.mubr.f32.gmra.mxu1 %v520_v7  ;;  %2445 = vmatprep.subr.mxu0 %v4342_v20  ;;  %v523_v7 = vld [vmem:[%s4130_s1 + $0x128] sm:$0xff] }
  0xb0   : > { %2501 = vmatprep.subr.mxu1 %v4343_v24  ;;  %2446 = vmatpush3.msra.mxu0 %v4344_v40  ;;  %v1583_v20 = vld [vmem:[%s4132_s3 + $0x8] sm:$0xff]  ;;  %v522_v24 = vld [vmem:[%s4130_s1 + $0x120] sm:$0xff]  ;;  %v533_v40 = vld [vmem:[%s4130_s1 + $0x178] sm:$0xff] }
  0xb1   : > { %2502 = vmatpush3.msra.mxu1 %v4345_v41  ;;  %2447 = vmatprep.subr.mxu0 %v4346_v35  ;;  %v530_v41 = vld [vmem:[%s4130_s1 + $0x160] sm:$0xff]  ;;  %v532_v35 = vld [vmem:[%s4130_s1 + $0x170] sm:$0xff] }
  0xb2   : > { %2503 = vmatprep.subr.mxu1 %v4347_v26  ;;  %1251 = vmatprep.mubr.f32.mxu0 %v527_v30  ;;  %v524_v30 = vld [vmem:[%s4130_s1 + $0x130] sm:$0xff]  ;;  %v539_v26 = vld [vmem:[%s4130_s1 + $0x1a8] sm:$0xff] }
  0xb3   : > { %1356 = vmatprep.mubr.f32.mxu1 %v529_v31  ;;  %2448 = vmatpush3.msra.mxu0 %v4348_v62  ;;  %v531_v31 = vld [vmem:[%s4130_s1 + $0x168] sm:$0xff]  ;;  %v540_v62 = vld [vmem:[%s4130_s1 + $0x1b0] sm:$0xff] }
  0xb4   : > { %2504 = vmatpush3.msra.mxu1 %v4349_v53  ;;  %1252 = vmatmul.mubr.f32.gmra.mxu0 %v526_v58  ;;  %v541_v58 = vld [vmem:[%s4130_s1 + $0x1b8] sm:$0xff]  ;;  %v547_v53 = vld [vmem:[%s4130_s1 + $0x1e8] sm:$0xff] }
  0xb5   : > { %1357 = vmatmul.mubr.f32.gmra.mxu1 %v528_v2  ;;  %2449 = vmatprep.subr.mxu0 %v4350_v61  ;;  %v538_v2 = vld [vmem:[%s4130_s1 + $0x1a0] sm:$0xff]  ;;  %v549_v61 = vld [vmem:[%s4130_s1 + $0x1f8] sm:$0xff] }
  0xb6   : > { %2505 = vmatprep.subr.mxu1 %v4351_v8  ;;  %2450 = vmatpush3.msra.mxu0 %v4352_v46  ;;  %v546_v8 = vld [vmem:[%s4130_s1 + $0x1e0] sm:$0xff] }
  0xb7   : > { %2506 = vmatpush3.msra.mxu1 %v4353_v49  ;;  %2451 = vmatprep.subr.mxu0 %v4354_v12 }
  0xb8   : > { %2507 = vmatprep.subr.mxu1 %v4355_v54  ;;  %1256 = vmatprep.mubr.f32.mxu0 %v535_v45  ;;  %v548_v45 = vld [vmem:[%s4130_s1 + $0x1f0] sm:$0xff] }
  0xb9   : > { %1361 = vmatprep.mubr.f32.mxu1 %v537_v1  ;;  %2452 = vmatpush3.msra.mxu0 %v4356_v5 }
  0xba   : > { %2508 = vmatpush3.msra.mxu1 %v4357_v9  ;;  %1257 = vmatmul.mubr.f32.gmra.mxu0 %v534_v3 }
  0xbb   : > { %1362 = vmatmul.mubr.f32.gmra.mxu1 %v536_v4  ;;  %2453 = vmatprep.subr.mxu0 %v4358_v10 }
  0xbc   : > { %2509 = vmatprep.subr.mxu1 %v4359_v11  ;;  %2454 = vmatpush3.msra.mxu0 %v4360_v17 }
  0xbd   : > { %2510 = vmatpush3.msra.mxu1 %v4361_v21  ;;  %2455 = vmatprep.subr.mxu0 %v4362_v22 }
  0xbe   : > { %2511 = vmatprep.subr.mxu1 %v4363_v23  ;;  %1261 = vmatprep.mubr.f32.mxu0 %v543_v15 }
  0xbf   : > { %1366 = vmatprep.mubr.f32.mxu1 %v545_v16  ;;  %2456 = vmatpush3.msra.mxu0 %v4364_v29 }
  0xc0   : > { %2512 = vmatpush3.msra.mxu1 %v4365_v32  ;;  %1262 = vmatmul.mubr.f32.gmra.mxu0 %v542_v27 }
  0xc1   : > { %1367 = vmatmul.mubr.f32.gmra.mxu1 %v544_v28  ;;  %2457 = vmatprep.subr.mxu0 %v4366_v33 }
  0xc2   : > { %2513 = vmatprep.subr.mxu1 %v4367_v34  ;;  %2458 = vmatpush3.msra.mxu0 %v3450_v19  ;;  %v501_v19 = vld [vmem:[%s4130_s1 + $0x78] sm:$0xff] }
  0xc3   : > { %2514 = vmatpush3.msra.mxu1 %v3453_v36  ;;  %2459 = vmatprep.subr.mxu0 %v3456_v50  ;;  %v499_v36 = vld [vmem:[%s4130_s1 + $0x68] sm:$0xff] }
  0xc4   : > { %2515 = vmatprep.subr.mxu1 %v3459_v57  ;;  %2460 = vmatpush3.msra.mxu0 %v3472_v25  ;;  %v1587_v50 = vld [vmem:[%s4132_s3 + $0x28] sm:$0xff]  ;;  %v1589_v57 = vld [vmem:[%s4132_s3 + $0x38] sm:$0xff]  ;;  %v498_v25 = vld [vmem:[%s4130_s1 + $0x60] sm:$0xff] }
  0xc5   : > { %1436 = vmatprep.mubr.f32.mxu0 %v491_v37  ;;  %2516 = vmatpush3.msra.mxu1 %v3479_v18  ;;  %v500_v18 = vld [vmem:[%s4130_s1 + $0x70] sm:$0xff] }
  0xc6   : > { %1541 = vmatprep.mubr.f32.mxu1 %v493_v38  ;;  %1437 = vmatmul.mubr.f32.vlgmr.msra.gmra.mxu0 %v490_v39 }
  0xc7   : > { %1542 = vmatmul.mubr.f32.vlgmr.msra.gmra.mxu1 %v492_v42  ;;  %1441 = vmatprep.mubr.f32.mxu0 %v499_v36 }
  0xc8   : > { %1546 = vmatprep.mubr.f32.mxu1 %v501_v19  ;;  %2632 = vset.pattern.permute.xlu1 %v2673_v47 }
  0xc9   : > { %2631 = vset.pattern.permute.xlu0 %v2673_v47  ;;  %1617 = vperm.xlu1 %2632, %v1587_v50  }
  0xca   : > { %1627 = vperm.xlu0 %2631, %v1589_v57   ;;  %1442 = vmatmul.mubr.f32.gmra.mxu0 %v498_v25 }
  0xcb   : > { %1547 = vmatmul.mubr.f32.gmra.mxu1 %v500_v18  ;;  %1446 = vmatprep.mubr.f32.mxu0 %v507_v43 }
  0xcc   : > { %1551 = vmatprep.mubr.f32.mxu1 %v509_v44 }
  0xcd   : > { %1612 = vperm.xlu1 %2632, %v1586_v48  }
  0xce   : > { %1622 = vperm.xlu0 %2631, %v1588_v51   ;;  %1447 = vmatmul.mubr.f32.gmra.mxu0 %v506_v52 }
  0xcf   : > { %1552 = vmatmul.mubr.f32.gmra.mxu1 %v508_v55  ;;  %1451 = vmatprep.mubr.f32.mxu0 %v515_v56 }
  0xd0   : > { %1556 = vmatprep.mubr.f32.mxu1 %v517_v59 }
  0xd1   : > { %1602 = vperm.xlu1 %2632, %v1584_v60  }
  0xd2   : > { %1607 = vperm.xlu0 %2631, %v1585_v63   ;;  %1452 = vmatmul.mubr.f32.gmra.mxu0 %v514_v0 }
  0xd3   : > { %1557 = vmatmul.mubr.f32.gmra.mxu1 %v516_v6  ;;  %1456 = vmatprep.mubr.f32.mxu0 %v523_v7 }
  0xd4   : > { %1561 = vmatprep.mubr.f32.mxu1 %v525_v13 }
  0xd5   : > { %1592 = vperm.xlu1 %2632, %v1582_v14  }
  0xd6   : > { %1597 = vperm.xlu0 %2631, %v1583_v20   ;;  %1457 = vmatmul.mubr.f32.gmra.mxu0 %v522_v24 }
  0xd7   : > { %1562 = vmatmul.mubr.f32.gmra.mxu1 %v524_v30  ;;  %1461 = vmatprep.mubr.f32.mxu0 %v531_v31 }
  0xd8   : > { %1566 = vmatprep.mubr.f32.mxu1 %v533_v40 }
  0xda   : > { %1462 = vmatmul.mubr.f32.gmra.mxu0 %v530_v41 }
  0xdb   : > { %1567 = vmatmul.mubr.f32.gmra.mxu1 %v532_v35  ;;  %1466 = vmatprep.mubr.f32.mxu0 %v539_v26 }
  0xdc   : > { %1571 = vmatprep.mubr.f32.mxu1 %v541_v58 }
  0xde   : > { %1467 = vmatmul.mubr.f32.gmra.mxu0 %v538_v2 }
  0xdf   : > { %1572 = vmatmul.mubr.f32.gmra.mxu1 %v540_v62  ;;  %1471 = vmatprep.mubr.f32.mxu0 %v547_v53 }
  0xe0   : > { %1576 = vmatprep.mubr.f32.mxu1 %v549_v61 }
  0xe2   : > { %1472 = vmatmul.mubr.f32.gmra.mxu0 %v546_v8 }
  0xe3   : > { %1577 = vmatmul.mubr.f32.gmra.mxu1 %v548_v45 }
  0xf6   : > { %v2125_v1 = vpop.f32.mrf.mxu0 }
  0xf7   : > { %v2181_v46 = vpop.f32.mrf.mxu1 }
  0xf8   : > { %v2126_v49 = vpop.f32.mrf.mxu0 }
  0xf9   : > { %v2182_v12 = vpop.f32.mrf.mxu1  ;;  %v2127_v54 = vadd.f32 %v2126_v49, %v2125_v1 }
  0xfa   : > { %v2183_v3 = vadd.f32 %v2182_v12, %v2181_v46 }
  0xfc   : > { %v914_v4 = vadd.f32 %v2183_v3, %v2127_v54  ;;  %v2128_v5 = vpop.f32.mrf.mxu0 }
  0xfd   : > { %v2184_v9 = vpop.f32.mrf.mxu1 }
  0xfe   : > { %v2129_v10 = vpop.f32.mrf.mxu0 }
  0xff   : > { %v2185_v11 = vpop.f32.mrf.mxu1  ;;  %v2130_v15 = vadd.f32 %v2129_v10, %v2128_v5 }
 0x100   : > { %v2186_v16 = vadd.f32 %v2185_v11, %v2184_v9 }
 0x102   : > { %v919_v17 = vadd.f32 %v2186_v16, %v2130_v15  ;;  %v2131_v21 = vpop.f32.mrf.mxu0 }
 0x103   : > { %v2187_v22 = vpop.f32.mrf.mxu1 }
 0x104   : > { %v2132_v23 = vpop.f32.mrf.mxu0 }
 0x105   : > { %v2188_v27 = vpop.f32.mrf.mxu1  ;;  %v2133_v28 = vadd.f32 %v2132_v23, %v2131_v21 }
 0x106   : > { %v2189_v29 = vadd.f32 %v2188_v27, %v2187_v22 }
 0x108   : > { %v924_v32 = vadd.f32 %v2189_v29, %v2133_v28  ;;  %v2134_v33 = vpop.f32.mrf.mxu0 }
 0x109   : > { %v2190_v34 = vpop.f32.mrf.mxu1 }
 0x10a   : > { %v2135_v37 = vpop.f32.mrf.mxu0 }
 0x10b   : > { %v2191_v38 = vpop.f32.mrf.mxu1  ;;  %v2136_v39 = vadd.f32 %v2135_v37, %v2134_v33 }
 0x10c   : > { %v2192_v42 = vadd.f32 %v2191_v38, %v2190_v34 }
 0x10e   : > { %v929_v36 = vadd.f32 %v2192_v42, %v2136_v39  ;;  %v2137_v19 = vpop.f32.mrf.mxu0 }
 0x10f   : > { %v2193_v50 = vpop.f32.mrf.mxu1 }
 0x110   : > { %v2138_v57 = vpop.f32.mrf.mxu0 }
 0x111   : > { %v2194_v25 = vpop.f32.mrf.mxu1  ;;  %v2139_v18 = vadd.f32 %v2138_v57, %v2137_v19 }
 0x112   : > { %v2195_v43 = vadd.f32 %v2194_v25, %v2193_v50 }
 0x114   : > { %v934_v44 = vadd.f32 %v2195_v43, %v2139_v18  ;;  %v2140_v47 = vpop.f32.mrf.mxu0 }
 0x115   : > { %v2196_v48 = vpop.f32.mrf.mxu1 }
 0x116   : > { %v2141_v51 = vpop.f32.mrf.mxu0 }
 0x117   : > { %v2197_v52 = vpop.f32.mrf.mxu1  ;;  %v2142_v55 = vadd.f32 %v2141_v51, %v2140_v47 }
 0x118   : > { %v2198_v56 = vadd.f32 %v2197_v52, %v2196_v48 }
 0x11a   : > { %v939_v59 = vadd.f32 %v2198_v56, %v2142_v55  ;;  %v2143_v60 = vpop.f32.mrf.mxu0 }
 0x11b   : > { %v2199_v63 = vpop.f32.mrf.mxu1 }
 0x11c   : > { %v2144_v0 = vpop.f32.mrf.mxu0 }
 0x11d   : > { %v2200_v6 = vpop.f32.mrf.mxu1  ;;  %v2145_v7 = vadd.f32 %v2144_v0, %v2143_v60 }
 0x11e   : > { %v2201_v13 = vadd.f32 %v2200_v6, %v2199_v63 }
 0x120   : > { %v3929_v14 = vadd.f32 %v2201_v13, %v2145_v7  ;;  %v2146_v20 = vpop.f32.mrf.mxu0 }
 0x121   : > { %v2202_v24 = vpop.f32.mrf.mxu1 }
 0x122   : > { %v2147_v30 = vpop.f32.mrf.mxu0 }
 0x123   : > { %v2203_v31 = vpop.f32.mrf.mxu1  ;;  %v2148_v40 = vadd.f32 %v2147_v30, %v2146_v20 }
 0x124   : > { %v2204_v41 = vadd.f32 %v2203_v31, %v2202_v24 }
 0x126   : > { %v3931_v35 = vadd.f32 %v2204_v41, %v2148_v40  ;;  %v2237_v26 = vpop.f32.mrf.mxu0 }
 0x127   : > { %v2293_v58 = vpop.f32.mrf.mxu1 }
 0x128   : > { %v2238_v2 = vpop.f32.mrf.mxu0 }
 0x129   : > { %v2294_v62 = vpop.f32.mrf.mxu1  ;;  %v2239_v53 = vadd.f32 %v2238_v2, %v2237_v26 }
 0x12a   : > { %v2295_v61 = vadd.f32 %v2294_v62, %v2293_v58 }
 0x12b   : > { %v1019_v8 = vadd.f32 %v2239_v53, %v914_v4 }
 0x12c   : > { %v2240_v45 = vpop.f32.mrf.mxu0 }
 0x12d   : > { %v2296_v1 = vpop.f32.mrf.mxu1  ;;  %v1124_v46 = vadd.f32 %v2295_v61, %v1019_v8 }
 0x12e   : > { %v2241_v49 = vpop.f32.mrf.mxu0 }
 0x12f   : > { %v2297_v12 = vpop.f32.mrf.mxu1  ;;  %v2242_v54 = vadd.f32 %v2241_v49, %v2240_v45 }
 0x130   : > { %v2298_v3 = vadd.f32 %v2297_v12, %v2296_v1 }
 0x131   : > { %v1024_v5 = vadd.f32 %v2242_v54, %v919_v17 }
 0x132   : > { %v2243_v9 = vpop.f32.mrf.mxu0 }
 0x133   : > { %v2299_v10 = vpop.f32.mrf.mxu1  ;;  %v3933_v11 = vadd.f32 %v2298_v3, %v1024_v5 }
 0x134   : > { %v2244_v15 = vpop.f32.mrf.mxu0 }
 0x135   : > { %v2300_v16 = vpop.f32.mrf.mxu1  ;;  %v2245_v21 = vadd.f32 %v2244_v15, %v2243_v9 }
 0x136   : > { %v2301_v22 = vadd.f32 %v2300_v16, %v2299_v10 }
 0x137   : > { %v1029_v23 = vadd.f32 %v2245_v21, %v924_v32 }
 0x138   : > { %v2246_v27 = vpop.f32.mrf.mxu0 }
 0x139   : > { %v2302_v28 = vpop.f32.mrf.mxu1  ;;  %v3935_v4 = vadd.f32 %v2301_v22, %v1029_v23 }
 0x13a   : > { %v2247_v29 = vpop.f32.mrf.mxu0 }
 0x13b   : > { %v2303_v33 = vpop.f32.mrf.mxu1  ;;  %v2248_v34 = vadd.f32 %v2247_v29, %v2246_v27 }
 0x13c   : > { %v2304_v37 = vadd.f32 %v2303_v33, %v2302_v28 }
 0x13d   : > { %v1034_v38 = vadd.f32 %v2248_v34, %v929_v36 }
 0x13e   : > { %v2249_v39 = vpop.f32.mrf.mxu0 }
 0x13f   : > { %v2305_v17 = vpop.f32.mrf.mxu1  ;;  %v3937_v42 = vadd.f32 %v2304_v37, %v1034_v38 }
 0x140   : > { %v2250_v19 = vpop.f32.mrf.mxu0 }
 0x141   : > { %v2306_v50 = vpop.f32.mrf.mxu1  ;;  %v2251_v57 = vadd.f32 %v2250_v19, %v2249_v39 }
 0x142   : > { %v2307_v25 = vadd.f32 %v2306_v50, %v2305_v17 }
 0x143   : > { %v1039_v18 = vadd.f32 %v2251_v57, %v934_v44 }
 0x144   : > { %v2252_v43 = vpop.f32.mrf.mxu0 }
 0x145   : > { %v2308_v32 = vpop.f32.mrf.mxu1  ;;  %v3939_v47 = vadd.f32 %v2307_v25, %v1039_v18 }
 0x146   : > { %v2253_v48 = vpop.f32.mrf.mxu0 }
 0x147   : > { %v2309_v51 = vpop.f32.mrf.mxu1  ;;  %v2254_v52 = vadd.f32 %v2253_v48, %v2252_v43 }
 0x148   : > { %v2310_v55 = vadd.f32 %v2309_v51, %v2308_v32 }
 0x149   : > { %v1044_v56 = vadd.f32 %v2254_v52, %v939_v59 }
 0x14a   : > { %v2255_v60 = vpop.f32.mrf.mxu0 }
 0x14b   : > { %v3941_v36 = vpop.f32.mrf.mxu1  ;;  %v3943_v63 = vadd.f32 %v2310_v55, %v1044_v56 }
 0x14c   : > { %v2256_v0 = vpop.f32.mrf.mxu0 }
 0x14d   : > { %v3945_v6 = vpop.f32.mrf.mxu1 }
 0x150   : > { %v2258_v7 = vpop.f32.mrf.mxu0 }
 0x151   : > { %v3947_v13 = vpop.f32.mrf.mxu1 }
 0x152   : > { %v2259_v44 = vpop.f32.mrf.mxu0 }
 0x153   : > { %v3949_v20 = vpop.f32.mrf.mxu1 }
 0x156   : > { %v2349_v24 = vpop.f32.mrf.mxu0 }
 0x157   : > { %v2405_v30 = vpop.f32.mrf.mxu1 }
 0x158   : > { %v2350_v31 = vpop.f32.mrf.mxu0 }
 0x159   : > { %v2406_v40 = vpop.f32.mrf.mxu1  ;;  %v2351_v41 = vadd.f32 %v2350_v31, %v2349_v24 }
 0x15a   : > { %v2407_v59 = vadd.f32 %v2406_v40, %v2405_v30  ;;  %v2257_v30 = vadd.f32 %v2256_v0, %v2255_v60 }
 0x15b   : > { %v1229_v26 = vadd.f32 %v2351_v41, %v1124_v46  ;;  %v2260_v41 = vadd.f32 %v2259_v44, %v2258_v7 }
 0x15c   : > { %v2352_v58 = vpop.f32.mrf.mxu0 }
 0x15d   : > { %v3951_v2 = vpop.f32.mrf.mxu1  ;;  %v3953_v62 = vadd.f32 %v2407_v59, %v1229_v26  ;;  %v1054_v60 = vadd.f32 %v2260_v41, %v3931_v35 }
 0x15e   : > { %v2353_v53 = vpop.f32.mrf.mxu0 }
 0x15f   : > { %4368 = vst [vmem:[#allocation3_spill] sm:$0xff] %v3953_v62  ;;  %v3955_v61 = vpop.f32.mrf.mxu1  ;;  %v3996_v62 = vpop.permute.xlu0 %1627  ;;  %v2354_v0 = vadd.f32 %v2353_v53, %v2352_v58 }
 0x160   : > { %4379 = vst [vmem:[#allocation14_spill] sm:$0xff] %v3996_v62 }
 0x161   : > { %v1234_v35 = vadd.f32 %v2354_v0, %v3933_v11 }
 0x162   : > { %v3957_v8 = vpop.f32.mrf.mxu0 }
 0x163   : > { %v3959_v45 = vpop.f32.mrf.mxu1 }
 0x164   : > { %v3961_v1 = vpop.f32.mrf.mxu0 }
 0x165   : > { %v3963_v49 = vpop.f32.mrf.mxu1 }
 0x166   : > { %4369 = vst [vmem:[#allocation4_spill] sm:$0xff] %v3963_v49  ;;  %v1623_v49 = vpop.permute.xlu0 %1622 }
 0x168   : > { %v2358_v12 = vpop.f32.mrf.mxu0 }
 0x169   : > { %v2414_v54 = vpop.f32.mrf.mxu1 }
 0x16a   : > { %v2359_v3 = vpop.f32.mrf.mxu0 }
 0x16b   : > { %v2415_v46 = vpop.f32.mrf.mxu1 }
 0x16c   : > { %v2416_v62 = vadd.f32 %v2415_v46, %v2414_v54 }
 0x16e   : > { %v2361_v5 = vpop.f32.mrf.mxu0 }
 0x16f   : > { %v3965_v9 = vpop.f32.mrf.mxu1 }
 0x170   : > { %v2362_v10 = vpop.f32.mrf.mxu0 }
 0x171   : > { %v3967_v15 = vpop.f32.mrf.mxu1  ;;  %v2363_v58 = vadd.f32 %v2362_v10, %v2361_v5  ;;  %v2357_v5 = vadd.f32 %v3961_v1, %v3957_v8 }
 0x174   : > { %v2364_v16 = vpop.f32.mrf.mxu0 }
 0x175   : > { %v2420_v21 = vpop.f32.mrf.mxu1 }
 0x176   : > { %v2365_v22 = vpop.f32.mrf.mxu0 }
 0x177   : > { %v2421_v23 = vpop.f32.mrf.mxu1 }
 0x17a   : > { %v2367_v27 = vpop.f32.mrf.mxu0 }
 0x17b   : > { %v2423_v28 = vpop.f32.mrf.mxu1 }
 0x17c   : > { %v2368_v29 = vpop.f32.mrf.mxu0 }
 0x17d   : > { %v2424_v33 = vpop.f32.mrf.mxu1 }
 0x180   : > { %v2370_v34 = vpop.f32.mrf.mxu0 }
 0x181   : > { %v3969_v37 = vpop.f32.mrf.mxu1 }
 0x182   : > { %v2371_v38 = vpop.f32.mrf.mxu0 }
 0x183   : > { %v3971_v39 = vpop.f32.mrf.mxu1 }
 0x186   : > { %v3973_v17 = vpop.f32.mrf.mxu0 }
 0x187   : > { %4370 = vst [vmem:[#allocation5_spill] sm:$0xff] %v3973_v17  ;;  %v3975_v19 = vpop.f32.mrf.mxu1  ;;  %v2369_v17 = vadd.f32 %v2368_v29, %v2367_v27 }
 0x188   : > { %4371 = vst [vmem:[#allocation6_spill] sm:$0xff] %v3975_v19  ;;  %v3977_v50 = vpop.f32.mrf.mxu0  ;;  %v2360_v19 = vadd.f32 %v2359_v3, %v2358_v12  ;;  %v2372_v12 = vadd.f32 %v2371_v38, %v2370_v34 }
 0x189   : > { %4372 = vst [vmem:[#allocation7_spill] sm:$0xff] %v3977_v50  ;;  %v3979_v57 = vpop.f32.mrf.mxu1 }
 0x18a   : > { %4373 = vst [vmem:[#allocation8_spill] sm:$0xff] %v3979_v57  ;;  %v2464_v25 = vpop.f32.mrf.mxu0  ;;  %v1049_v57 = vadd.f32 %v2257_v30, %v3929_v14  ;;  %v2316_v14 = vadd.f32 %v3949_v20, %v3947_v13  ;;  %v2410_v13 = vadd.f32 %v3955_v61, %v3951_v2  ;;  %v2422_v20 = vadd.f32 %v2421_v23, %v2420_v21  ;;  %v1618_v21 = vpop.permute.xlu1 %1617 }
 0x18b   : > { %v3981_v18 = vpop.f32.mrf.mxu1  ;;  %v1608_v23 = vpop.permute.xlu0 %1607 }
 0x18c   : > { %v2465_v43 = vpop.f32.mrf.mxu0  ;;  %v1339_v11 = vadd.f32 %v2410_v13, %v1234_v35  ;;  %v4386_v35 = vld [vmem:[#allocation14_spill] sm:$0xff] }
 0x18d   : > { %v3983_v32 = vpop.f32.mrf.mxu1  ;;  %v2466_v34 = vadd.f32 %v2465_v43, %v2464_v25  ;;  %v2419_v43 = vadd.f32 %v3967_v15, %v3965_v9  ;;  %v4381_v15 = vld [vmem:[#allocation4_spill] sm:$0xff] }
 0x18e   : > { %v3985_v48 = vpop.f32.mrf.mxu0 }
 0x18f   : > { %4374 = vst [vmem:[#allocation9_spill] sm:$0xff] %v3985_v48  ;;  %v3987_v51 = vpop.f32.mrf.mxu1  ;;  %v2366_v48 = vadd.f32 %v2365_v22, %v2364_v16  ;;  %v2425_v16 = vadd.f32 %v2424_v33, %v2423_v28 }
 0x190   : > { %4375 = vst [vmem:[#allocation10_spill] sm:$0xff] %v3987_v51  ;;  %v3989_v52 = vpop.f32.mrf.mxu0 }
 0x191   : > { %4376 = vst [vmem:[#allocation11_spill] sm:$0xff] %v3989_v52  ;;  %v3991_v55 = vpop.f32.mrf.mxu1 }
 0x192   : > { %4377 = vst [vmem:[#allocation12_spill] sm:$0xff] %v3991_v55  ;;  %v2470_v56 = vpop.f32.mrf.mxu0  ;;  %v2313_v55 = vadd.f32 %v3945_v6, %v3941_v36  ;;  %v1159_v6 = vadd.f32 %v2316_v14, %v1054_v60 }
 0x193   : > { %v2526_v24 = vpop.f32.mrf.mxu1 }
 0x194   : > { %v2471_v31 = vpop.f32.mrf.mxu0  ;;  %v1154_v44 = vadd.f32 %v2313_v55, %v1049_v57  ;;  %v1264_v22 = vadd.f32 %v2372_v12, %v1159_v6  ;;  %v1598_v12 = vpop.permute.xlu0 %1597 }
 0x195   : > { %v2527_v40 = vpop.f32.mrf.mxu1  ;;  %v2472_v36 = vadd.f32 %v2471_v31, %v2470_v56 }
 0x196   : > { %v2473_v59 = vpop.f32.mrf.mxu0  ;;  %v2528_v28 = vadd.f32 %v2527_v40, %v2526_v24  ;;  %v2522_v24 = vadd.f32 %v3983_v32, %v3981_v18  ;;  %v1613_v32 = vpop.permute.xlu1 %1612 }
 0x197   : > { %v3993_v26 = vpop.f32.mrf.mxu1 }
 0x198   : > { %4378 = vst [vmem:[#allocation13_spill] sm:$0xff] %v3993_v26  ;;  %v2474_v50 = vpop.f32.mrf.mxu0  ;;  %v1244_v26 = vadd.f32 %v2360_v19, %v3937_v42  ;;  %v1254_v42 = vadd.f32 %v2366_v48, %v3943_v63  ;;  %v2428_v63 = vadd.f32 %v3971_v39, %v3969_v37  ;;  %v1239_v39 = vadd.f32 %v2357_v5, %v3935_v4  ;;  %v4383_v60 = vld [vmem:[#allocation11_spill] sm:$0xff] }
 0x199   : > { %v3998_v51 = vpop.f32.mrf.mxu1 }
 0x19a   : > { %4380 = vst [vmem:[#allocation15_spill] sm:$0xff] %v3998_v51  ;;  %v2476_v52 = vpop.f32.mrf.mxu0  ;;  %v1259_v51 = vadd.f32 %v2369_v17, %v1154_v44  ;;  %v1349_v29 = vadd.f32 %v2416_v62, %v1244_v26  ;;  %v1249_v62 = vadd.f32 %v2363_v58, %v3939_v47  ;;  %v1359_v61 = vadd.f32 %v2422_v20, %v1254_v42 }
 0x19b   : > { %v2532_v7 = vpop.f32.mrf.mxu1  ;;  %v1369_v48 = vadd.f32 %v2428_v63, %v1264_v22  ;;  %v4392_v63 = vld [vmem:[#allocation6_spill] sm:$0xff] }
 0x19c   : > { %v2477_v3 = vpop.f32.mrf.mxu0  ;;  %v1364_v38 = vadd.f32 %v2425_v16, %v1259_v51  ;;  %v1454_v17 = vadd.f32 %v2472_v36, %v1349_v29  ;;  %v1444_v51 = vadd.f32 %v2466_v34, %v1339_v11  ;;  %v1354_v31 = vadd.f32 %v2419_v43, %v1249_v62  ;;  %v4389_v34 = vld [vmem:[#allocation10_spill] sm:$0xff] }
 0x19d   : > { %v2533_v30 = vpop.f32.mrf.mxu1  ;;  %v2478_v19 = vadd.f32 %v2477_v3, %v2476_v52  ;;  %v2475_v52 = vadd.f32 %v2474_v50, %v2473_v59  ;;  %v2413_v50 = vadd.f32 %v4381_v15, %v3959_v45  ;;  %v4382_v59 = vld [vmem:[#allocation9_spill] sm:$0xff] }
 0x19e   : > { %v2479_v53 = vpop.f32.mrf.mxu0  ;;  %v1559_v47 = vadd.f32 %v2528_v28, %v1454_v17  ;;  %v2534_v40 = vadd.f32 %v2533_v30, %v2532_v7  ;;  %v2469_v0 = vadd.f32 %v4383_v60, %v4382_v59  ;;  %v1549_v44 = vadd.f32 %v2522_v24, %v1444_v51  ;;  %v4387_v45 = vld [vmem:[#allocation5_spill] sm:$0xff] }
 0x19f   : > { %v2535_v27 = vpop.f32.mrf.mxu1  ;;  %v1464_v55 = vadd.f32 %v2478_v19, %v1359_v61  ;;  %v1459_v14 = vadd.f32 %v2475_v52, %v1354_v31  ;;  %v1344_v18 = vadd.f32 %v2413_v50, %v1239_v39  ;;  %v4384_v7 = vld [vmem:[#allocation13_spill] sm:$0xff]  ;;  %v1603_v19 = vpop.permute.xlu1 %1602 }
 0x1a0   : > { %v2480_v54 = vpop.f32.mrf.mxu0  ;;  %v1633_v6 = vadd.f32 %v1608_v23, %v1559_v47  ;;  %v1631_v42 = vadd.f32 %v1598_v12, %v1549_v44 }
 0x1a1   : > { %v2536_v46 = vpop.f32.mrf.mxu1  ;;  %v2481_v57 = vadd.f32 %v2480_v54, %v2479_v53  ;;  %v1569_v3 = vadd.f32 %v2534_v40, %v1464_v55  ;;  %v4385_v30 = vld [vmem:[#allocation15_spill] sm:$0xff]  ;;  %v1449_v29 = vadd.f32 %v2469_v0, %v1344_v18  ;;  %v4390_v54 = vld [vmem:[#allocation12_spill] sm:$0xff] }
 0x1a2   : > { %v2482_v10 = vpop.f32.mrf.mxu0  ;;  %v2537_v25 = vadd.f32 %v2536_v46, %v2535_v27  ;;  %v4388_v53 = vld [vmem:[#allocation7_spill] sm:$0xff]  ;;  %v1648_v20 = vsel %vm1638_vm0, %v1633_v6, 0.0  ;;  %v2525_v46 = vadd.f32 %v4390_v54, %v4389_v34  ;;  %v1642_v5 = vsel %vm1638_vm0, %v1631_v42, 0.0 }
 0x1a3   : > { %v2538_v2 = vpop.f32.mrf.mxu1  ;;  %v1469_v33 = vadd.f32 %v2481_v57, %v1364_v38  ;;  %v2463_v27 = vadd.f32 %v4388_v53, %v4387_v45  ;;  %v1635_v22 = vadd.f32 %v1618_v21, %v1569_v3  ;;  %v4391_v38 = vld [vmem:[#allocation3_spill] sm:$0xff]  ;;  %v1593_v28 = vpop.permute.xlu1 %1592 }
 0x1a4   : > { %v2483_v8 = vpop.f32.mrf.mxu0  ;;  %v1554_v57 = vadd.f32 %v2525_v46, %v1449_v29 }
 0x1a5   : > { %v2539_v1 = vpop.f32.mrf.mxu1  ;;  %v1574_v56 = vadd.f32 %v2537_v25, %v1469_v33  ;;  %v2484_v37 = vadd.f32 %v2483_v8, %v2482_v10  ;;  %v1439_v17 = vadd.f32 %v2463_v27, %v4391_v38  ;;  %v1654_v11 = vsel %vm1638_vm0, %v1635_v22, 0.0  ;;  %v4393_v10 = vld [vmem:[#allocation8_spill] sm:$0xff] }
 0x1a6   : > { %v2540_v26 = vadd.f32 %v2539_v1, %v2538_v2  ;;  %v2519_v2 = vadd.f32 %v4393_v10, %v4392_v63  ;;  %v1632_v23 = vadd.f32 %v1603_v19, %v1554_v57 }
 0x1a7   : > { %v1474_v41 = vadd.f32 %v2484_v37, %v1369_v48  ;;  %v1636_v9 = vadd.f32 %v1623_v49, %v1574_v56  ;;  %v2531_v49 = vadd.f32 %v4385_v30, %v4384_v7 }
 0x1a8   : > { %v1544_v61 = vadd.f32 %v2519_v2, %v1439_v17  ;;  %v1645_v25 = vsel %vm1638_vm0, %v1632_v23, 0.0 }
 0x1a9   : > { %v1579_v4 = vadd.f32 %v2540_v26, %v1474_v41  ;;  %v1657_v36 = vsel %vm1638_vm0, %v1636_v9, 0.0  ;;  %v1564_v16 = vadd.f32 %v2531_v49, %v1459_v14 }
 0x1aa   : > { %1658 = vadd.xlane.f32.xlu1 %v1657_v36  ;;  %v1630_v33 = vadd.f32 %v1593_v28, %v1544_v61 }
 0x1ab   : > { %v1637_v58 = vadd.f32 %v4386_v35, %v1579_v4  ;;  %v1634_v62 = vadd.f32 %v1613_v32, %v1564_v16  ;;  %v1760_v16 = vld [vmem:[%s4133_s4] sm:$0xff] }
 0x1ac   : > { %v1639_v43 = vsel %vm1638_vm0, %v1630_v33, 0.0  ;;  %2599 = vmatprep.mubr.f32.mxu0 %v1760_v16 }
 0x1ad   : > { %v1660_v13 = vsel %vm1638_vm0, %v1637_v58, 0.0  ;;  %v1651_v21 = vsel %vm1638_vm0, %v1634_v62, 0.0 }
 0x1ae   : > { %1661 = vadd.xlane.f32.xlu0 %v1660_v13  ;;  %1649 = vadd.xlane.f32.xlu1 %v1648_v20 }
 0x1b2   : > { %1655 = vadd.xlane.f32.xlu0 %v1654_v11  ;;  %1643 = vadd.xlane.f32.xlu1 %v1642_v5 }
 0x1b6   : > { %1652 = vadd.xlane.f32.xlu0 %v1651_v21 }
 0x1ba   : > { %1646 = vadd.xlane.f32.xlu0 %v1645_v25 }
 0x1be   : > { %1640 = vadd.xlane.f32.xlu0 %v1639_v43 }
 0x233   : > { %v1659_v48 = vpop.xlane.xlu1 %1658 }
 0x234   : > { %v1670_v51 = vmul.f32 0.25, %v1659_v48 }
 0x236   : > { %v4042_v52 = vsub.f32 %v1636_v9, %v1670_v51 }
 0x237   : > { %v1662_v8 = vpop.xlane.xlu0 %1661  ;;  %v1650_v1 = vpop.xlane.xlu1 %1649 }
 0x238   : > { %v1671_v47 = vmul.f32 0.25, %v1662_v8  ;;  %v1686_v55 = vmul.f32 %v4042_v52, %v4042_v52  ;;  %v1667_v37 = vmul.f32 0.25, %v1650_v1 }
 0x23a   : > { %v4046_v56 = vsub.f32 %v1637_v58, %v1671_v47  ;;  %v1706_v39 = vsel %vm1638_vm0, %v1686_v55, 0.0  ;;  %v4051_v26 = vsub.f32 %v1633_v6, %v1667_v37 }
 0x23b   : > { %v1656_v31 = vpop.xlane.xlu0 %1655  ;;  %v1644_v24 = vpop.xlane.xlu1 %1643  ;;  %1707 = vadd.xlane.f32.xlu0 %v1706_v39 }
 0x23c   : > { %v1669_v40 = vmul.f32 0.25, %v1656_v31  ;;  %v1687_v41 = vmul.f32 %v4046_v56, %v4046_v56  ;;  %v1665_v15 = vmul.f32 0.25, %v1644_v24  ;;  %v1683_v3 = vmul.f32 %v4051_v26, %v4051_v26 }
 0x23e   : > { %v4053_v9 = vsub.f32 %v1635_v22, %v1669_v40  ;;  %v1709_v50 = vsel %vm1638_vm0, %v1687_v41, 0.0  ;;  %v4058_v44 = vsub.f32 %v1631_v42, %v1665_v15  ;;  %v1697_v32 = vsel %vm1638_vm0, %v1683_v3, 0.0 }
 0x23f   : > { %v1653_v59 = vpop.xlane.xlu0 %1652  ;;  %1710 = vadd.xlane.f32.xlu1 %v1709_v50 }
 0x240   : > { %v1668_v60 = vmul.f32 0.25, %v1653_v59  ;;  %v1685_v0 = vmul.f32 %v4053_v9, %v4053_v9  ;;  %v1681_v30 = vmul.f32 %v4058_v44, %v4058_v44 }
 0x242   : > { %v4060_v14 = vsub.f32 %v1634_v62, %v1668_v60  ;;  %v1703_v12 = vsel %vm1638_vm0, %v1685_v0, 0.0  ;;  %v1691_v53 = vsel %vm1638_vm0, %v1681_v30, 0.0 }
 0x243   : > { %v1647_v4 = vpop.xlane.xlu0 %1646  ;;  %1704 = vadd.xlane.f32.xlu1 %v1703_v12 }
 0x244   : > { %v1666_v36 = vmul.f32 0.25, %v1647_v4  ;;  %v1684_v6 = vmul.f32 %v4060_v14, %v4060_v14 }
 0x246   : > { %v4067_v18 = vsub.f32 %v1632_v23, %v1666_v36  ;;  %v1700_v7 = vsel %vm1638_vm0, %v1684_v6, 0.0 }
 0x247   : > { %1698 = vadd.xlane.f32.xlu1 %v1697_v32  ;;  %1701 = vadd.xlane.f32.xlu0 %v1700_v7  ;;  %v1641_v49 = vpop.xlane.xlu0 %1640 }
 0x248   : > { %v1664_v35 = vmul.f32 0.25, %v1641_v49  ;;  %v1682_v58 = vmul.f32 %v4067_v18, %v4067_v18 }
 0x24a   : > { %v4075_v45 = vsub.f32 %v1630_v33, %v1664_v35  ;;  %v1694_v27 = vsel %vm1638_vm0, %v1682_v58, 0.0  ;;  %v1761_v35 = vld [vmem:[%s4133_s4 + $0x8] sm:$0xff]  ;;  %v1762_v58 = vld [vmem:[%s4133_s4 + $0x10] sm:$0xff] }
 0x24b   : > { %1692 = vadd.xlane.f32.xlu1 %v1691_v53  ;;  %1695 = vadd.xlane.f32.xlu0 %v1694_v27  ;;  %v1866_v53 = vld [vmem:[%s4135_s6] sm:$0xff] }
 0x24c   : > { %v1680_v29 = vmul.f32 %v4075_v45, %v4075_v45  ;;  %2607 = vmatprep.mubr.msk.f32.mxu1 %vm1870_vm1, %v1866_v53 }
 0x24e   : > { %v1688_v42 = vsel %vm1638_vm0, %v1680_v29, 0.0 }
 0x24f   : > { %1689 = vadd.xlane.f32.xlu0 %v1688_v42 }
 0x2c4   : > { %v1708_v13 = vpop.xlane.xlu0 %1707 }
 0x2c5   : > { %v1718_v20 = vmul.f32 0.25, %v1708_v13  ;;  %v1849_v13 = vld [vmem:[%s4134_s5] sm:$0xff] }
 0x2c7   : > { %v1726_v22 = vadd.f32 1e-05, %v1718_v20 }
 0x2c8   : > { %v1711_v34 = vpop.xlane.xlu1 %1710 }
 0x2c9   : > { %2633 = vrsqrt.f32 %v1726_v22  ;;  %v1719_v54 = vmul.f32 0.25, %v1711_v34 }
 0x2cb   : > { %v1727_v46 = vadd.f32 1e-05, %v1719_v54 }
 0x2cc   : > { %v1705_v38 = vpop.xlane.xlu1 %1704 }
 0x2cd   : > { %2635 = vrsqrt.f32 %v1727_v46  ;;  %v1717_v17 = vmul.f32 0.25, %v1705_v38 }
 0x2cf   : > { %v1725_v19 = vadd.f32 1e-05, %v1717_v17 }
 0x2d0   : > { %v1699_v57 = vpop.xlane.xlu1 %1698  ;;  %v1702_v11 = vpop.xlane.xlu0 %1701 }
 0x2d1   : > { %2637 = vrsqrt.f32 %v1725_v19  ;;  %v1715_v5 = vmul.f32 0.25, %v1699_v57  ;;  %v1716_v62 = vmul.f32 0.25, %v1702_v11  ;;  %v1867_v19 = vld [vmem:[%s4135_s6 + $0x8] sm:$0xff]  ;;  %v2677_v57 = vmov 0.0  }
 0x2d2   : > { %v1869_v11 = vld [vmem:[%s4136_s7 + $0x8] sm:$0xff] }
 0x2d3   : > { %v1723_v63 = vadd.f32 1e-05, %v1715_v5  ;;  %v1724_v10 = vadd.f32 1e-05, %v1716_v62  ;;  %v1868_v62 = vld [vmem:[%s4136_s7] sm:$0xff] }
 0x2d4   : > { %v1693_v2 = vpop.xlane.xlu1 %1692  ;;  %v1696_v61 = vpop.xlane.xlu0 %1695 }
 0x2d5   : > { %2639 = vrsqrt.f32 %v1723_v63  ;;  %v1713_v21 = vmul.f32 0.25, %v1693_v2  ;;  %v1714_v23 = vmul.f32 0.25, %v1696_v61 }
 0x2d6   : > { %v2634_v28 = vpop.eup %2633  ;;  %2641 = vrsqrt.f32 %v1724_v10 }
 0x2d7   : > { %v1721_v33 = vadd.f32 1e-05, %v1713_v21  ;;  %v1722_v25 = vadd.f32 1e-05, %v1714_v23  ;;  %v1742_v43 = vmul.f32 %v2634_v28, %v4042_v52  ;;  %v1954_v23 = vld [vmem:[%s4137_s8] sm:$0x1] }
 0x2d8   : > { %v1690_v48 = vpop.xlane.xlu0 %1689  ;;  %v1955_v28 = vld [vmem:[#allocation2] sm:$0x1] }
 0x2d9   : > { %v1712_v51 = vmul.f32 0.25, %v1690_v48  ;;  %2643 = vrsqrt.f32 %v1721_v33 }
 0x2da   : > { %v2636_v8 = vpop.eup %2635  ;;  %2645 = vrsqrt.f32 %v1722_v25 }
 0x2db   : > { %v1743_v1 = vmul.f32 %v2636_v8, %v4046_v56  ;;  %v1720_v47 = vadd.f32 1e-05, %v1712_v51  ;;  %2647 = vtanh.f32 %v1742_v43 }
 0x2dd   : > { %2649 = vtanh.f32 %v1743_v1 }
 0x2de   : > { %v2638_v55 = vpop.eup %2637  ;;  %2651 = vrsqrt.f32 %v1720_v47 }
 0x2df   : > { %v1741_v37 = vmul.f32 %v2638_v55, %v4053_v9 }
 0x2e1   : > { %2653 = vtanh.f32 %v1741_v37 }
 0x2e2   : > { %v2640_v39 = vpop.eup %2639 }
 0x2e3   : > { %v2642_v31 = vpop.eup %2641  ;;  %v1739_v24 = vmul.f32 %v2640_v39, %v4051_v26 }
 0x2e4   : > { %v1740_v52 = vmul.f32 %v2642_v31, %v4060_v14 }
 0x2e5   : > { %2655 = vtanh.f32 %v1739_v24 }
 0x2e6   : > { %2657 = vtanh.f32 %v1740_v52  ;;  %v2644_v40 = vpop.eup %2643 }
 0x2e7   : > { %v2646_v41 = vpop.eup %2645  ;;  %v1737_v56 = vmul.f32 %v2644_v40, %v4058_v44 }
 0x2e8   : > { %v2648_v15 = vpop.eup %2647  ;;  %v1738_v50 = vmul.f32 %v2646_v41, %v4067_v18 }
 0x2e9   : > { %2659 = vtanh.f32 %v1737_v56  ;;  %v1758_v26 = vmul.f32 %v2648_v15, %v2648_v15 }
 0x2ea   : > { %v2650_v59 = vpop.eup %2649  ;;  %2661 = vtanh.f32 %v1738_v50 }
 0x2eb   : > { %v2652_v60 = vpop.eup %2651  ;;  %v1759_v9 = vmul.f32 %v2650_v59, %v2650_v59 }
 0x2ec   : > { %v1736_v0 = vmul.f32 %v2652_v60, %v4075_v45  ;;  %v1763_v45 = vld [vmem:[%s4133_s4 + $0x18] sm:$0xff] }
 0x2ed   : > { %2567 = vmatprep.subr.mxu0 %v1759_v9 }
 0x2ee   : > { %v2654_v12 = vpop.eup %2653  ;;  %2663 = vtanh.f32 %v1736_v0  ;;  %2568 = vmatpush3.msra.mxu0 %v1759_v9 }
 0x2ef   : > { %2569 = vmatprep.subr.mxu0 %v1758_v26  ;;  %v1757_v14 = vmul.f32 %v2654_v12, %v2654_v12 }
 0x2f0   : > { %2570 = vmatpush3.msra.mxu0 %v1758_v26 }
 0x2f1   : > { %2571 = vmatprep.subr.mxu0 %v1757_v14 }
 0x2f2   : > { %v2656_v44 = vpop.eup %2655  ;;  %2572 = vmatpush3.msra.mxu0 %v1757_v14 }
 0x2f3   : > { %v2658_v3 = vpop.eup %2657  ;;  %v1755_v36 = vmul.f32 %v2656_v44, %v2656_v44 }
 0x2f4   : > { %v1756_v4 = vmul.f32 %v2658_v3, %v2658_v3 }
 0x2f6   : > { %2573 = vmatprep.subr.mxu0 %v1756_v4  ;;  %v2660_v6 = vpop.eup %2659 }
 0x2f7   : > { %2574 = vmatpush3.msra.mxu0 %v1756_v4  ;;  %v2662_v18 = vpop.eup %2661  ;;  %v1753_v30 = vmul.f32 %v2660_v6, %v2660_v6 }
 0x2f8   : > { %2575 = vmatprep.subr.mxu0 %v1755_v36  ;;  %v1754_v32 = vmul.f32 %v2662_v18, %v2662_v18 }
 0x2f9   : > { %2576 = vmatpush3.msra.mxu0 %v1755_v36 }
 0x2fa   : > { %2577 = vmatprep.subr.mxu0 %v1754_v32 }
 0x2fb   : > { %v2664_v7 = vpop.eup %2663  ;;  %2578 = vmatpush3.msra.mxu0 %v1754_v32 }
 0x2fc   : > { %v1752_v49 = vmul.f32 %v2664_v7, %v2664_v7  ;;  %2579 = vmatprep.subr.mxu0 %v1753_v30 }
 0x2fd   : > { %2580 = vmatpush3.msra.mxu0 %v1753_v30 }
 0x2fe   : > { %2581 = vmatprep.subr.mxu0 %v1752_v49 }
 0x2ff   : > { %2582 = vmatpush3.msra.mxu0 %v1752_v49 }
 0x300   : > { %2583 = vmatprep.subr.mxu0 %v2650_v59 }
 0x301   : > { %2584 = vmatpush3.msra.mxu0 %v2650_v59 }
 0x302   : > { %2585 = vmatprep.subr.mxu0 %v2648_v15 }
 0x303   : > { %2586 = vmatpush3.msra.mxu0 %v2648_v15 }
 0x304   : > { %2587 = vmatprep.subr.mxu0 %v2654_v12 }
 0x305   : > { %2588 = vmatpush3.msra.mxu0 %v2654_v12 }
 0x306   : > { %2589 = vmatprep.subr.mxu0 %v2658_v3 }
 0x307   : > { %2590 = vmatpush3.msra.mxu0 %v2658_v3 }
 0x308   : > { %2591 = vmatprep.subr.mxu0 %v2656_v44 }
 0x309   : > { %2592 = vmatpush3.msra.mxu0 %v2656_v44 }
 0x30a   : > { %2593 = vmatprep.subr.mxu0 %v2662_v18 }
 0x30b   : > { %2594 = vmatpush3.msra.mxu0 %v2662_v18 }
 0x30c   : > { %2595 = vmatprep.subr.mxu0 %v2660_v6 }
 0x30d   : > { %2596 = vmatpush3.msra.mxu0 %v2660_v6 }
 0x30e   : > { %2597 = vmatprep.subr.mxu0 %v2664_v7 }
 0x30f   : > { %2598 = vmatpush3.msra.mxu0 %v2664_v7 }
 0x310   : > { %2600 = vmatmul.mubr.f32.vlgmr.msra.gmra.mxu0 %v1761_v35 }
 0x311   : > { %2602 = vmatprep.mubr.f32.mxu0 %v1762_v58 }
 0x314   : > { %2603 = vmatmul.mubr.f32.gmra.mxu0 %v1763_v45 }
 0x3d0   : > { %v2601_v27 = vpop.f32.mrf.mxu0 }
 0x3d1   : > { %1852 = vrot.lane.b32.xlu1 %v2601_v27, %s2674_s19 }
 0x3d2   : > { %v1830_v29 = vpop.f32.mrf.mxu0 }
 0x3d3   : > { %v1850_v22 = vadd.f32 %v1849_v13, %v1830_v29 }
 0x3d4   : > { %v2604_v42 = vpop.f32.mrf.mxu0 }
 0x3d5   : > { %1862 = vrot.lane.b32.xlu1 %v2604_v42, %s2675_s20 }
 0x3d6   : > { %v1840_v16 = vpop.f32.mrf.mxu0 }
 0x3d7   : > { %1857 = vrot.lane.b32.xlu0 %v1840_v16, %s2676_s21 }
 0x443   : > { %v1853_v20 = vpop.permute.xlu1 %1852 }
 0x444   : > { %v1855_v34 = vadd.f32 %v1853_v20, %v1850_v22 }
 0x447   : > { %v1863_v38 = vpop.permute.xlu1 %1862 }
 0x449   : > { %v1858_v54 = vpop.permute.xlu0 %1857 }
 0x44a   : > { %v1860_v46 = vadd.f32 %v1858_v54, %v1855_v34 }
 0x44c   : > { %v1865_v17 = vadd.f32 %v1863_v38, %v1860_v46 }
 0x44e   : > { %2605 = vmatprep.subr.mxu1 %v1865_v17 }
 0x44f   : > { %2606 = vmatpush3.msra.mxu1 %v1865_v17 }
 0x450   : > { %2608 = vmatmul.mubr.msk.f32.vlgmr.msra.gmra.mxu1 %vm1870_vm1, %v1867_v19  ;;  %2610 = vmatprep.subr.mxu1 %v2677_v57 }
 0x451   : > { %2614 = vmatprep.mubr.msk.f32.mxu1 %vm2678_vm2, %v2677_v57 }
 0x510   : > { %v2609_v5 = vpop.f32.mrf.mxu1 }
 0x511   : > { %v1949_v63 = vadd.f32 %v2609_v5, %v1869_v11 }
 0x512   : > { %v1943_v10 = vpop.f32.mrf.mxu1 }
 0x513   : > { %v1953_v2 = vmax.f32 %v1949_v63, 0.0  ;;  %v1944_v61 = vadd.f32 %v1943_v10, %v1868_v62 }
 0x515   : > { %v1952_v21 = vmax.f32 %v1944_v61, 0.0  ;;  %2611 = vmatpush3.msra.mxu1 %v1953_v2 }
 0x516   : > { %2612 = vmatprep.subr.mxu1 %v2677_v57 }
 0x517   : > { %2613 = vmatpush3.msra.mxu1 %v1952_v21 }
 0x518   : > { %2615 = vmatmul.mubr.msk.f32.vlgmr.msra.gmra.mxu1 %vm1956_vm3, %v1954_v23 }
 0x5d8   : > { %v2026_v33 = vpop.f32.mrf.mxu1 }
 0x5d9   : > { %v2027_v25 = vadd.f32 %v2026_v33, %v1955_v28 }
 0x5da   : > { %v2616_v43 = vpop.f32.mrf.mxu1 }
 0x5db   : > { %v2030_v48 = vmax.f32 %v2027_v25, 0.0 }
 0x5dd   : > { %2032 = vst.msk [vmem:[%s357_s14] sm:$0x1] %vm2031_vm4, %v2030_v48 }
 0x5de PF: > { %s22_s15 = sadd.s32 1, %s2671_s15  }
 0x5df   : > { %p19_p4 = scmp.ge.s32.totalorder %s22_s15, 4  }
 0x5e1   :  { %21 = sbr.rel (!%p19_p4) target bundleno = 3 (0x3), region = 90 }

</bundles_post_ra>
